<compile_context>
chip_gen: v6e
topology: v6e:2x2x1
jax: 0.10.0
libtpu: 0.0.40
codegen_flags: <defaults>
</compile_context>

<pallas_src>
import math
from functools import partial

import jax
import jax.numpy as jnp
from jax import lax
from jax.experimental import pallas as pl
from jax.experimental.pallas import tpu as pltpu

_INV_SQRT2 = float(2.0 ** -0.5)


def _round_up(n, m):
    return ((n + m - 1) // m) * m


# ----------------------------------------------------------------------------
# Pallas kernel 1: multi-step LIF neuron (recurrent elementwise over time)
# ----------------------------------------------------------------------------
def _lif_kernel(x_ref, o_ref, *, inv_tau, v_th):
    T, tn = x_ref.shape
    v = jnp.zeros((1, tn), jnp.float32)
    spikes = []
    for t in range(T):                       # T <= 8 and static: unrolled
        xt = x_ref[t:t + 1, :]
        v = v + (xt - v) * inv_tau           # charge (decay_input=True, v_reset=0)
        s = (v >= v_th).astype(jnp.float32)
        spikes.append(s)
        v = v * (1.0 - s)                    # hard reset to 0
    # one full-block store instead of 8 sublane-masked row stores
    o_ref[...] = jnp.concatenate(spikes, axis=0)


def lif(x, tau, v_th, max_tile=4096):
    """x: (T, ...) -> spikes, same shape.  Time-major (T, N) Pallas kernel."""
    T = x.shape[0]
    N = math.prod(x.shape[1:])
    xf = x.astype(jnp.float32).reshape(T, N)
    tile = min(max_tile, _round_up(N, 128))
    Np = _round_up(N, tile)
    if Np != N:
        xf = jnp.pad(xf, ((0, 0), (0, Np - N)))
    out = pl.pallas_call(
        partial(_lif_kernel, inv_tau=1.0 / float(tau), v_th=float(v_th)),
        out_shape=jax.ShapeDtypeStruct((T, Np), jnp.float32),
        grid=(Np // tile,),
        in_specs=[pl.BlockSpec((T, tile), lambda i: (0, i))],
        out_specs=pl.BlockSpec((T, tile), lambda i: (0, i)),
        compiler_params=pltpu.CompilerParams(dimension_semantics=("parallel",)),
    )(xf)
    return out[:, :N].reshape(x.shape)


# ----------------------------------------------------------------------------
# Pallas kernel 2: fused tail of a high-frequency branch
#   (x @ Wbd1 + b1) -> LIF -> (s @ Wbd2 + b2) -> LIF    on (T, rows, C)
# BatchNorm is folded into Wbd*/b* at trace time.
# ----------------------------------------------------------------------------
def _dual_mix_lif_kernel(x_ref, w1_ref, b1_ref, w2_ref, b2_ref, o_ref,
                         *, inv_tau, v_th):
    Tt, rows, C = x_ref.shape
    w1 = w1_ref[...]                               # (C, C)
    b1 = b1_ref[...]                               # (1, C)
    w2 = w2_ref[...]
    b2 = b2_ref[...]
    v1 = jnp.zeros((rows, C), jnp.float32)
    v2 = jnp.zeros((rows, C), jnp.float32)
    for t in range(Tt):                            # Tt <= 4, static: unrolled
        xt = x_ref[t]                              # (rows, C)
        y1 = jnp.dot(xt, w1, preferred_element_type=jnp.float32) + b1
        v1 = v1 + (y1 - v1) * inv_tau
        s1 = (v1 >= v_th).astype(jnp.float32)
        v1 = v1 * (1.0 - s1)
        y2 = jnp.dot(s1, w2, preferred_element_type=jnp.float32) + b2
        v2 = v2 + (y2 - v2) * inv_tau
        s2 = (v2 >= v_th).astype(jnp.float32)
        v2 = v2 * (1.0 - s2)
        o_ref[t] = s2                              # full (rows, C) store


def fused_mix_lif(x, w1, b1, w2, b2, tau, v_th):
    """x: (Tt, R, C); w*: (C, C) block-diagonal (+BN folded); b*: (C,)."""
    Tt, R, C = x.shape
    ntiles = 1 if R < 16 else max(2, -(-R // 256))
    tile_r = _round_up(-(-R // ntiles), 8)
    Rp = tile_r * ntiles
    if Rp != R:
        x = jnp.pad(x, ((0, 0), (0, Rp - R), (0, 0)))
    out = pl.pallas_call(
        partial(_dual_mix_lif_kernel, inv_tau=1.0 / float(tau), v_th=float(v_th)),
        out_shape=jax.ShapeDtypeStruct((Tt, Rp, C), jnp.float32),
        grid=(ntiles,),
        in_specs=[
            pl.BlockSpec((Tt, tile_r, C), lambda i: (0, i, 0)),
            pl.BlockSpec((C, C), lambda i: (0, 0)),
            pl.BlockSpec((1, C), lambda i: (0, 0)),
            pl.BlockSpec((C, C), lambda i: (0, 0)),
            pl.BlockSpec((1, C), lambda i: (0, 0)),
        ],
        out_specs=pl.BlockSpec((Tt, tile_r, C), lambda i: (0, i, 0)),
        compiler_params=pltpu.CompilerParams(dimension_semantics=("parallel",)),
    )(x.astype(jnp.float32),
      w1.astype(jnp.float32), b1.reshape(1, C).astype(jnp.float32),
      w2.astype(jnp.float32), b2.reshape(1, C).astype(jnp.float32))
    return out[:, :R, :]


# ----------------------------------------------------------------------------
# Trace-time parameter folding helpers
# ----------------------------------------------------------------------------
def bn_affine(bnp, eps=1e-5):
    scale = bnp["gamma"] / jnp.sqrt(bnp["var"] + eps)
    shift = bnp["beta"] - bnp["mean"] * scale
    return scale, shift


def block_diag_weight(w):
    """(nb, bs, bs) block weights -> (nb*bs, nb*bs) block-diagonal matrix."""
    nb, bs, _ = w.shape
    eye = jnp.eye(nb, dtype=w.dtype)
    full = jnp.einsum("bdk,bc->bdck", w, eye)      # (nb, bs, nb, bs)
    return full.reshape(nb * bs, nb * bs)


# ----------------------------------------------------------------------------
# Glue: 2-level orthonormal 3-D Haar DWT / IDWT over (T, H, W)
# ----------------------------------------------------------------------------
def _haar_split(x, axis):
    n = x.shape[axis]
    a = lax.slice_in_dim(x, 0, n, 2, axis)
    b = lax.slice_in_dim(x, 1, n, 2, axis)
    return (a + b) * _INV_SQRT2, (a - b) * _INV_SQRT2


def _haar_merge(lo, hi, axis):
    a = (lo + hi) * _INV_SQRT2
    b = (lo - hi) * _INV_SQRT2
    y = jnp.stack([a, b], axis=axis + 1)
    shp = list(lo.shape)
    shp[axis] *= 2
    return y.reshape(shp)


def _dwt3_level(x):
    # x: (B, C, D, H, W) -> LLL (B,C,D/2,H/2,W/2), highs (B,7,C,D/2,H/2,W/2)
    lT, hT = _haar_split(x, 2)
    ll, lh = _haar_split(lT, 3)
    hl, hh = _haar_split(hT, 3)
    lll, llh = _haar_split(ll, 4)
    lhl, lhh = _haar_split(lh, 4)
    hll, hlh = _haar_split(hl, 4)
    hhl, hhh = _haar_split(hh, 4)
    highs = jnp.stack([llh, lhl, lhh, hll, hlh, hhl, hhh], axis=1)
    return lll, highs


def _idwt3_level(lll, highs):
    # highs: (7, B, C, D, H, W), same subband order as _dwt3_level
    llh, lhl, lhh, hll, hlh, hhl, hhh = [highs[i] for i in range(7)]
    ll = _haar_merge(lll, llh, 4)
    lh = _haar_merge(lhl, lhh, 4)
    hl = _haar_merge(hll, hlh, 4)
    hh = _haar_merge(hhl, hhh, 4)
    lT = _haar_merge(ll, lh, 3)
    hT = _haar_merge(hl, hh, 3)
    return _haar_merge(lT, hT, 2)


def dwt3d_haar_2level(x):
    lll1, high1 = _dwt3_level(x)
    lll2, high2 = _dwt3_level(lll1)
    return lll2, high1, high2


def idwt3d_haar_2level(lll2, high1, high2):
    lll1 = _idwt3_level(lll2, high2)
    return _idwt3_level(lll1, high1)


# ----------------------------------------------------------------------------
# Parameters
# ----------------------------------------------------------------------------
def init_params(key, dim, h, w, time_step=8, num_blocks=8):
    bs = dim // num_blocks
    ks = jax.random.split(key, 13)
    n = lambda k, shape: jax.random.normal(k, shape, jnp.float32) * 0.02
    p = {
        "complex_weight_ll": n(ks[0], (dim, time_step // 4, h // 4, w // 4)),
        "complex_weight_lh_1": n(ks[1], (num_blocks, bs, bs)),
        "complex_weight_lh_12": n(ks[2], (num_blocks, bs, bs)),
        "complex_weight_lh_2": n(ks[3], (num_blocks, bs, bs)),
        "complex_weight_lh_22": n(ks[4], (num_blocks, bs, bs)),
        "complex_weight_lh_b1": n(ks[5], (num_blocks, bs)),
        "complex_weight_lh_b12": n(ks[6], (num_blocks, bs)),
        "complex_weight_lh_b2": n(ks[7], (num_blocks, bs)),
        "complex_weight_lh_b22": n(ks[8], (num_blocks, bs)),
        "weight_lh_1": n(ks[9], (7, h // 2, w // 2, time_step // 2)),
        "weight_lh_12": n(ks[10], (7, h // 2, w // 2, time_step // 2)),
        "weight_lh_2": n(ks[11], (7, h // 4, w // 4, time_step // 4)),
        "weight_lh_22": n(ks[12], (7, h // 4, w // 4, time_step // 4)),
    }
    for name in ("bn1", "bn12", "bn2", "bn22", "bn3", "bn31", "bn4", "bn41"):
        p[name] = {
            "gamma": jnp.ones((dim,), jnp.float32),
            "beta": jnp.zeros((dim,), jnp.float32),
            "mean": jnp.zeros((dim,), jnp.float32),
            "var": jnp.ones((dim,), jnp.float32),
        }
    return p


# ----------------------------------------------------------------------------
# High-frequency branch (shared by level-1 / level-2 bands)
# ----------------------------------------------------------------------------
def _high_branch(h, Tt, Hs, Ws, w_a, bn_a, w_b, bn_b,
                 wblk1, bblk1, bn_m1, wblk2, bblk2, bn_m2, tau, v_th):
    """h: (B, 7, C, Tt, Hs, Ws) -> (7, B, C, Tt, Hs, Ws)."""
    B, _, C = h.shape[0], h.shape[1], h.shape[2]

    # --- head: LIF -> *w -> bn -> LIF -> *w -> bn -> LIF, all time-major -----
    a = lif(jnp.transpose(h, (3, 0, 1, 2, 4, 5)), tau, v_th)     # act4 / act5
    sa, ta = bn_affine(bn_a)
    wa = jnp.transpose(w_a, (3, 0, 1, 2))[:, None, :, None, :, :]
    a = (a * wa) * sa[None, None, None, :, None, None] \
        + ta[None, None, None, :, None, None]                    # *w_lh + bn (XLA-fused)
    a = lif(a, tau, v_th)                                        # act10 / act12
    sb, tb = bn_affine(bn_b)
    wb = jnp.transpose(w_b, (3, 0, 1, 2))[:, None, :, None, :, :]
    a = (a * wb) * sb[None, None, None, :, None, None] \
        + tb[None, None, None, :, None, None]
    a = lif(a, tau, v_th)                                        # act11 / act13

    # --- tail: blockmm+bn+LIF twice, fused in one Pallas kernel --------------
    a = jnp.transpose(a, (0, 1, 2, 4, 5, 3)).reshape(Tt, B * 7 * Hs * Ws, C)
    s1, t1 = bn_affine(bn_m1)
    s2, t2 = bn_affine(bn_m2)
    W1 = block_diag_weight(wblk1) * s1[None, :]
    b1 = bblk1.reshape(-1) * s1 + t1
    W2 = block_diag_weight(wblk2) * s2[None, :]
    b2 = bblk2.reshape(-1) * s2 + t2
    a = fused_mix_lif(a, W1, b1, W2, b2, tau, v_th)              # acts 6/7 or 8/9
    a = a.reshape(Tt, B, 7, Hs, Ws, C)
    return jnp.transpose(a, (2, 1, 5, 0, 3, 4))                  # (7,B,C,Tt,Hs,Ws)


# ----------------------------------------------------------------------------
# Forward pass (mirrors TM_mixing_time.forward)
# ----------------------------------------------------------------------------
def tm_mixing_time_forward(x, p):
    T, B, C, H, W = x.shape
    Th, Hh, Wh = T // 2, H // 2, W // 2
    Tq, Hq, Wq = T // 4, H // 4, W // 4
    tau = 1.75

    x = x.astype(jnp.float32)
    x = lif(x, tau, 0.75)                                     # act1
    x = jnp.transpose(x, (1, 2, 0, 3, 4))                     # (B,C,T,H,W)
    x_lll, high1, high2 = dwt3d_haar_2level(x)

    # ---- low-frequency branch (time-major throughout) --------------------
    a = lif(jnp.transpose(x_lll, (2, 0, 1, 3, 4)), tau, 0.55)     # act2
    wll = jnp.transpose(p["complex_weight_ll"], (1, 0, 2, 3))[:, None]
    a = a * wll
    a = lif(a, tau, 0.55)                                         # act3
    x_lll = jnp.transpose(a, (1, 2, 0, 3, 4))                     # (B,C,Tq,Hq,Wq)

    # ---- level-1 high-frequency branch ------------------------------------
    high1 = _high_branch(high1, Th, Hh, Wh,
                         p["weight_lh_1"], p["bn3"], p["weight_lh_12"], p["bn31"],
                         p["complex_weight_lh_1"], p["complex_weight_lh_b1"], p["bn1"],
                         p["complex_weight_lh_12"], p["complex_weight_lh_b12"], p["bn12"],
                         tau, 0.75)

    # ---- level-2 high-frequency branch ------------------------------------
    high2 = _high_branch(high2, Tq, Hq, Wq,
                         p["weight_lh_2"], p["bn4"], p["weight_lh_22"], p["bn41"],
                         p["complex_weight_lh_2"], p["complex_weight_lh_b2"], p["bn2"],
                         p["complex_weight_lh_22"], p["complex_weight_lh_b22"], p["bn22"],
                         tau, 0.75)

    # ---- inverse wavelet transform -----------------------------------------
    x = idwt3d_haar_2level(x_lll, high1, high2)               # (B,C,T,H,W)
    # Raw reshape (not permute), mirroring the PyTorch reference exactly.
    x = x.reshape(T, B, C, H, W)
    return x


# ----------------------------------------------------------------------------
if __name__ == "__main__":
    T, B, C, H, W = 8, 2, 32, 16, 16      # time_step=8 fixed by the module
    key = jax.random.PRNGKey(0)
    kx, kp = jax.random.split(key)
    params = init_params(kp, dim=C, h=H, w=W)
    x = jax.random.normal(kx, (T, B, C, H, W), jnp.float32)

    fwd = jax.jit(tm_mixing_time_forward)
    y = fwd(x, params)
    jax.block_until_ready(y)
    assert y.shape == (T, B, C, H, W) and y.dtype == jnp.float32
    print("KERNEL_OK")
</pallas_src>

<mosaic_0001>
module attributes {stable_mosaic.version = 11 : i64} {
  func.func @_lif_kernel(%arg0: i32, %arg1: memref<8x4096xf32, #tpu.memory_space<vmem>>, %arg2: memref<8x4096xf32, #tpu.memory_space<vmem>>) attributes {dimension_semantics = [#tpu.dimension_semantics<parallel>], iteration_bounds = array<i64: 4>, scalar_prefetch = 0 : i64, scratch_operands = 0 : i64, tpu.core_type = #tpu.core_type<tc>, window_params = [{transform_indices = @transform_0, window_bounds = array<i64: 8, 4096>}, {transform_indices = @transform_1, window_bounds = array<i64: 8, 4096>}]} {
    %cst = arith.constant 0.000000e+00 : f32
    %0 = vector.broadcast %cst : f32 to vector<1x4096xf32>
    %c0 = arith.constant 0 : index
    %c0_0 = arith.constant 0 : index
    %1 = vector.load %arg1[%c0, %c0_0] : memref<8x4096xf32, #tpu.memory_space<vmem>>, vector<1x4096xf32>
    %2 = arith.subf %1, %0 : vector<1x4096xf32>
    %cst_1 = arith.constant 0.571428597 : f32
    %3 = vector.broadcast %cst_1 : f32 to vector<1x4096xf32>
    %4 = arith.mulf %2, %3 : vector<1x4096xf32>
    %5 = arith.addf %0, %4 : vector<1x4096xf32>
    %cst_2 = arith.constant 7.500000e-01 : f32
    %6 = vector.broadcast %cst_2 : f32 to vector<1x4096xf32>
    %7 = arith.cmpf oge, %5, %6 : vector<1x4096xf32>
    %8 = arith.extui %7 : vector<1x4096xi1> to vector<1x4096xi32>
    %9 = arith.sitofp %8 : vector<1x4096xi32> to vector<1x4096xf32>
    %cst_3 = arith.constant 1.000000e+00 : f32
    %10 = vector.broadcast %cst_3 : f32 to vector<1x4096xf32>
    %11 = arith.subf %10, %9 : vector<1x4096xf32>
    %12 = arith.mulf %5, %11 : vector<1x4096xf32>
    %c1 = arith.constant 1 : index
    %c0_4 = arith.constant 0 : index
    %13 = vector.load %arg1[%c1, %c0_4] : memref<8x4096xf32, #tpu.memory_space<vmem>>, vector<1x4096xf32>
    %14 = arith.subf %13, %12 : vector<1x4096xf32>
    %cst_5 = arith.constant 0.571428597 : f32
    %15 = vector.broadcast %cst_5 : f32 to vector<1x4096xf32>
    %16 = arith.mulf %14, %15 : vector<1x4096xf32>
    %17 = arith.addf %12, %16 : vector<1x4096xf32>
    %cst_6 = arith.constant 7.500000e-01 : f32
    %18 = vector.broadcast %cst_6 : f32 to vector<1x4096xf32>
    %19 = arith.cmpf oge, %17, %18 : vector<1x4096xf32>
    %20 = arith.extui %19 : vector<1x4096xi1> to vector<1x4096xi32>
    %21 = arith.sitofp %20 : vector<1x4096xi32> to vector<1x4096xf32>
    %cst_7 = arith.constant 1.000000e+00 : f32
    %22 = vector.broadcast %cst_7 : f32 to vector<1x4096xf32>
    %23 = arith.subf %22, %21 : vector<1x4096xf32>
    %24 = arith.mulf %17, %23 : vector<1x4096xf32>
    %c2 = arith.constant 2 : index
    %c0_8 = arith.constant 0 : index
    %25 = vector.load %arg1[%c2, %c0_8] : memref<8x4096xf32, #tpu.memory_space<vmem>>, vector<1x4096xf32>
    %26 = arith.subf %25, %24 : vector<1x4096xf32>
    %cst_9 = arith.constant 0.571428597 : f32
    %27 = vector.broadcast %cst_9 : f32 to vector<1x4096xf32>
    %28 = arith.mulf %26, %27 : vector<1x4096xf32>
    %29 = arith.addf %24, %28 : vector<1x4096xf32>
    %cst_10 = arith.constant 7.500000e-01 : f32
    %30 = vector.broadcast %cst_10 : f32 to vector<1x4096xf32>
    %31 = arith.cmpf oge, %29, %30 : vector<1x4096xf32>
    %32 = arith.extui %31 : vector<1x4096xi1> to vector<1x4096xi32>
    %33 = arith.sitofp %32 : vector<1x4096xi32> to vector<1x4096xf32>
    %cst_11 = arith.constant 1.000000e+00 : f32
    %34 = vector.broadcast %cst_11 : f32 to vector<1x4096xf32>
    %35 = arith.subf %34, %33 : vector<1x4096xf32>
    %36 = arith.mulf %29, %35 : vector<1x4096xf32>
    %c3 = arith.constant 3 : index
    %c0_12 = arith.constant 0 : index
    %37 = vector.load %arg1[%c3, %c0_12] : memref<8x4096xf32, #tpu.memory_space<vmem>>, vector<1x4096xf32>
    %38 = arith.subf %37, %36 : vector<1x4096xf32>
    %cst_13 = arith.constant 0.571428597 : f32
    %39 = vector.broadcast %cst_13 : f32 to vector<1x4096xf32>
    %40 = arith.mulf %38, %39 : vector<1x4096xf32>
    %41 = arith.addf %36, %40 : vector<1x4096xf32>
    %cst_14 = arith.constant 7.500000e-01 : f32
    %42 = vector.broadcast %cst_14 : f32 to vector<1x4096xf32>
    %43 = arith.cmpf oge, %41, %42 : vector<1x4096xf32>
    %44 = arith.extui %43 : vector<1x4096xi1> to vector<1x4096xi32>
    %45 = arith.sitofp %44 : vector<1x4096xi32> to vector<1x4096xf32>
    %cst_15 = arith.constant 1.000000e+00 : f32
    %46 = vector.broadcast %cst_15 : f32 to vector<1x4096xf32>
    %47 = arith.subf %46, %45 : vector<1x4096xf32>
    %48 = arith.mulf %41, %47 : vector<1x4096xf32>
    %c4 = arith.constant 4 : index
    %c0_16 = arith.constant 0 : index
    %49 = vector.load %arg1[%c4, %c0_16] : memref<8x4096xf32, #tpu.memory_space<vmem>>, vector<1x4096xf32>
    %50 = arith.subf %49, %48 : vector<1x4096xf32>
    %cst_17 = arith.constant 0.571428597 : f32
    %51 = vector.broadcast %cst_17 : f32 to vector<1x4096xf32>
    %52 = arith.mulf %50, %51 : vector<1x4096xf32>
    %53 = arith.addf %48, %52 : vector<1x4096xf32>
    %cst_18 = arith.constant 7.500000e-01 : f32
    %54 = vector.broadcast %cst_18 : f32 to vector<1x4096xf32>
    %55 = arith.cmpf oge, %53, %54 : vector<1x4096xf32>
    %56 = arith.extui %55 : vector<1x4096xi1> to vector<1x4096xi32>
    %57 = arith.sitofp %56 : vector<1x4096xi32> to vector<1x4096xf32>
    %cst_19 = arith.constant 1.000000e+00 : f32
    %58 = vector.broadcast %cst_19 : f32 to vector<1x4096xf32>
    %59 = arith.subf %58, %57 : vector<1x4096xf32>
    %60 = arith.mulf %53, %59 : vector<1x4096xf32>
    %c5 = arith.constant 5 : index
    %c0_20 = arith.constant 0 : index
    %61 = vector.load %arg1[%c5, %c0_20] : memref<8x4096xf32, #tpu.memory_space<vmem>>, vector<1x4096xf32>
    %62 = arith.subf %61, %60 : vector<1x4096xf32>
    %cst_21 = arith.constant 0.571428597 : f32
    %63 = vector.broadcast %cst_21 : f32 to vector<1x4096xf32>
    %64 = arith.mulf %62, %63 : vector<1x4096xf32>
    %65 = arith.addf %60, %64 : vector<1x4096xf32>
    %cst_22 = arith.constant 7.500000e-01 : f32
    %66 = vector.broadcast %cst_22 : f32 to vector<1x4096xf32>
    %67 = arith.cmpf oge, %65, %66 : vector<1x4096xf32>
    %68 = arith.extui %67 : vector<1x4096xi1> to vector<1x4096xi32>
    %69 = arith.sitofp %68 : vector<1x4096xi32> to vector<1x4096xf32>
    %cst_23 = arith.constant 1.000000e+00 : f32
    %70 = vector.broadcast %cst_23 : f32 to vector<1x4096xf32>
    %71 = arith.subf %70, %69 : vector<1x4096xf32>
    %72 = arith.mulf %65, %71 : vector<1x4096xf32>
    %c6 = arith.constant 6 : index
    %c0_24 = arith.constant 0 : index
    %73 = vector.load %arg1[%c6, %c0_24] : memref<8x4096xf32, #tpu.memory_space<vmem>>, vector<1x4096xf32>
    %74 = arith.subf %73, %72 : vector<1x4096xf32>
    %cst_25 = arith.constant 0.571428597 : f32
    %75 = vector.broadcast %cst_25 : f32 to vector<1x4096xf32>
    %76 = arith.mulf %74, %75 : vector<1x4096xf32>
    %77 = arith.addf %72, %76 : vector<1x4096xf32>
    %cst_26 = arith.constant 7.500000e-01 : f32
    %78 = vector.broadcast %cst_26 : f32 to vector<1x4096xf32>
    %79 = arith.cmpf oge, %77, %78 : vector<1x4096xf32>
    %80 = arith.extui %79 : vector<1x4096xi1> to vector<1x4096xi32>
    %81 = arith.sitofp %80 : vector<1x4096xi32> to vector<1x4096xf32>
    %cst_27 = arith.constant 1.000000e+00 : f32
    %82 = vector.broadcast %cst_27 : f32 to vector<1x4096xf32>
    %83 = arith.subf %82, %81 : vector<1x4096xf32>
    %84 = arith.mulf %77, %83 : vector<1x4096xf32>
    %c7 = arith.constant 7 : index
    %c0_28 = arith.constant 0 : index
    %85 = vector.load %arg1[%c7, %c0_28] : memref<8x4096xf32, #tpu.memory_space<vmem>>, vector<1x4096xf32>
    %86 = arith.subf %85, %84 : vector<1x4096xf32>
    %cst_29 = arith.constant 0.571428597 : f32
    %87 = vector.broadcast %cst_29 : f32 to vector<1x4096xf32>
    %88 = arith.mulf %86, %87 : vector<1x4096xf32>
    %89 = arith.addf %84, %88 : vector<1x4096xf32>
    %cst_30 = arith.constant 7.500000e-01 : f32
    %90 = vector.broadcast %cst_30 : f32 to vector<1x4096xf32>
    %91 = arith.cmpf oge, %89, %90 : vector<1x4096xf32>
    %92 = arith.extui %91 : vector<1x4096xi1> to vector<1x4096xi32>
    %93 = arith.sitofp %92 : vector<1x4096xi32> to vector<1x4096xf32>
    %94 = tpu.concatenate %9, %21, %33, %45, %57, %69, %81, %93 in 0 : vector<1x4096xf32>, vector<1x4096xf32>, vector<1x4096xf32>, vector<1x4096xf32>, vector<1x4096xf32>, vector<1x4096xf32>, vector<1x4096xf32>, vector<1x4096xf32> -> vector<8x4096xf32>
    %c0_31 = arith.constant 0 : index
    %c0_32 = arith.constant 0 : index
    %95 = vector.load %arg2[%c0_31, %c0_32] : memref<8x4096xf32, #tpu.memory_space<vmem>>, vector<8x4096xf32>
    tpu.vector_store %arg2[%c0_31, %c0_32], %94 {strides = array<i32>} : memref<8x4096xf32, #tpu.memory_space<vmem>>, vector<8x4096xf32>,
    return
  }
  func.func @transform_0(%arg0: i32) -> (i32, i32) {
    %c0_i32 = arith.constant 0 : i32
    %c0_i32_0 = arith.constant 0 : i32
    return %c0_i32, %arg0 : i32, i32
  }
  func.func @transform_1(%arg0: i32) -> (i32, i32) {
    %c0_i32 = arith.constant 0 : i32
    %c0_i32_0 = arith.constant 0 : i32
    return %c0_i32, %arg0 : i32, i32
  }
}

module attributes {stable_mosaic.version = 11 : i64} {
  func.func @_lif_kernel(%arg0: i32, %arg1: memref<2x4096xf32, #tpu.memory_space<vmem>>, %arg2: memref<2x4096xf32, #tpu.memory_space<vmem>>) attributes {dimension_semantics = [#tpu.dimension_semantics<parallel>], iteration_bounds = array<i64: 2>, scalar_prefetch = 0 : i64, scratch_operands = 0 : i64, tpu.core_type = #tpu.core_type<tc>, window_params = [{transform_indices = @transform_0, window_bounds = array<i64: 2, 4096>}, {transform_indices = @transform_1, window_bounds = array<i64: 2, 4096>}]} {
    %cst = arith.constant 0.000000e+00 : f32
    %0 = vector.broadcast %cst : f32 to vector<1x4096xf32>
    %c0 = arith.constant 0 : index
    %c0_0 = arith.constant 0 : index
    %1 = vector.load %arg1[%c0, %c0_0] : memref<2x4096xf32, #tpu.memory_space<vmem>>, vector<1x4096xf32>
    %2 = arith.subf %1, %0 : vector<1x4096xf32>
    %cst_1 = arith.constant 0.571428597 : f32
    %3 = vector.broadcast %cst_1 : f32 to vector<1x4096xf32>
    %4 = arith.mulf %2, %3 : vector<1x4096xf32>
    %5 = arith.addf %0, %4 : vector<1x4096xf32>
    %cst_2 = arith.constant 7.500000e-01 : f32
    %6 = vector.broadcast %cst_2 : f32 to vector<1x4096xf32>
    %7 = arith.cmpf oge, %5, %6 : vector<1x4096xf32>
    %8 = arith.extui %7 : vector<1x4096xi1> to vector<1x4096xi32>
    %9 = arith.sitofp %8 : vector<1x4096xi32> to vector<1x4096xf32>
    %cst_3 = arith.constant 1.000000e+00 : f32
    %10 = vector.broadcast %cst_3 : f32 to vector<1x4096xf32>
    %11 = arith.subf %10, %9 : vector<1x4096xf32>
    %12 = arith.mulf %5, %11 : vector<1x4096xf32>
    %c1 = arith.constant 1 : index
    %c0_4 = arith.constant 0 : index
    %13 = vector.load %arg1[%c1, %c0_4] : memref<2x4096xf32, #tpu.memory_space<vmem>>, vector<1x4096xf32>
    %14 = arith.subf %13, %12 : vector<1x4096xf32>
    %cst_5 = arith.constant 0.571428597 : f32
    %15 = vector.broadcast %cst_5 : f32 to vector<1x4096xf32>
    %16 = arith.mulf %14, %15 : vector<1x4096xf32>
    %17 = arith.addf %12, %16 : vector<1x4096xf32>
    %cst_6 = arith.constant 7.500000e-01 : f32
    %18 = vector.broadcast %cst_6 : f32 to vector<1x4096xf32>
    %19 = arith.cmpf oge, %17, %18 : vector<1x4096xf32>
    %20 = arith.extui %19 : vector<1x4096xi1> to vector<1x4096xi32>
    %21 = arith.sitofp %20 : vector<1x4096xi32> to vector<1x4096xf32>
    %22 = tpu.concatenate %9, %21 in 0 : vector<1x4096xf32>, vector<1x4096xf32> -> vector<2x4096xf32>
    %c0_7 = arith.constant 0 : index
    %c0_8 = arith.constant 0 : index
    %23 = vector.load %arg2[%c0_7, %c0_8] : memref<2x4096xf32, #tpu.memory_space<vmem>>, vector<2x4096xf32>
    tpu.vector_store %arg2[%c0_7, %c0_8], %22 {strides = array<i32>} : memref<2x4096xf32, #tpu.memory_space<vmem>>, vector<2x4096xf32>,
    return
  }
  func.func @transform_0(%arg0: i32) -> (i32, i32) {
    %c0_i32 = arith.constant 0 : i32
    %c0_i32_0 = arith.constant 0 : i32
    return %c0_i32, %arg0 : i32, i32
  }
  func.func @transform_1(%arg0: i32) -> (i32, i32) {
    %c0_i32 = arith.constant 0 : i32
    %c0_i32_0 = arith.constant 0 : i32
    return %c0_i32, %arg0 : i32, i32
  }
}

module attributes {stable_mosaic.version = 11 : i64} {
  func.func @_dual_mix_lif_kernel(%arg0: i32, %arg1: memref<2x112x32xf32, #tpu.memory_space<vmem>>, %arg2: memref<32x32xf32, #tpu.memory_space<vmem>>, %arg3: memref<1x32xf32, #tpu.memory_space<vmem>>, %arg4: memref<32x32xf32, #tpu.memory_space<vmem>>, %arg5: memref<1x32xf32, #tpu.memory_space<vmem>>, %arg6: memref<2x112x32xf32, #tpu.memory_space<vmem>>) attributes {dimension_semantics = [#tpu.dimension_semantics<parallel>], iteration_bounds = array<i64: 2>, scalar_prefetch = 0 : i64, scratch_operands = 0 : i64, tpu.core_type = #tpu.core_type<tc>, window_params = [{transform_indices = @transform_0, window_bounds = array<i64: 2, 112, 32>}, {pipeline_mode = #tpu.pipeline_mode<synchronous>, transform_indices = @transform_1, window_bounds = array<i64: 32, 32>}, {pipeline_mode = #tpu.pipeline_mode<synchronous>, transform_indices = @transform_2, window_bounds = array<i64: 1, 32>}, {pipeline_mode = #tpu.pipeline_mode<synchronous>, transform_indices = @transform_3, window_bounds = array<i64: 32, 32>}, {pipeline_mode = #tpu.pipeline_mode<synchronous>, transform_indices = @transform_4, window_bounds = array<i64: 1, 32>}, {transform_indices = @transform_5, window_bounds = array<i64: 2, 112, 32>}]} {
    %c0 = arith.constant 0 : index
    %c0_0 = arith.constant 0 : index
    %0 = vector.load %arg2[%c0, %c0_0] : memref<32x32xf32, #tpu.memory_space<vmem>>, vector<32x32xf32>
    %c0_1 = arith.constant 0 : index
    %c0_2 = arith.constant 0 : index
    %1 = vector.load %arg3[%c0_1, %c0_2] : memref<1x32xf32, #tpu.memory_space<vmem>>, vector<1x32xf32>
    %c0_3 = arith.constant 0 : index
    %c0_4 = arith.constant 0 : index
    %2 = vector.load %arg4[%c0_3, %c0_4] : memref<32x32xf32, #tpu.memory_space<vmem>>, vector<32x32xf32>
    %c0_5 = arith.constant 0 : index
    %c0_6 = arith.constant 0 : index
    %3 = vector.load %arg5[%c0_5, %c0_6] : memref<1x32xf32, #tpu.memory_space<vmem>>, vector<1x32xf32>
    %cst = arith.constant 0.000000e+00 : f32
    %4 = vector.broadcast %cst : f32 to vector<112x32xf32>
    %cst_7 = arith.constant 0.000000e+00 : f32
    %5 = vector.broadcast %cst_7 : f32 to vector<112x32xf32>
    %c0_8 = arith.constant 0 : index
    %c0_9 = arith.constant 0 : index
    %c0_10 = arith.constant 0 : index
    %6 = vector.load %arg1[%c0_8, %c0_9, %c0_10] : memref<2x112x32xf32, #tpu.memory_space<vmem>>, vector<1x112x32xf32>
    %7 = vector.shape_cast %6 : vector<1x112x32xf32> to vector<112x32xf32>
    %cst_11 = arith.constant dense<0.000000e+00> : vector<112x32xf32>
    %8 = tpu.matmul %7, %0, %cst_11 {dimension_numbers = #tpu.dot_dimension_numbers<[1], [0], [0], [1], [0, 0, 1, 1], [], []>} : vector<112x32xf32>, vector<32x32xf32>, vector<112x32xf32> -> vector<112x32xf32>
    %9 = vector.broadcast %1 : vector<1x32xf32> to vector<112x32xf32>
    %10 = arith.addf %8, %9 : vector<112x32xf32>
    %11 = arith.subf %10, %4 : vector<112x32xf32>
    %cst_12 = arith.constant 0.571428597 : f32
    %12 = vector.broadcast %cst_12 : f32 to vector<112x32xf32>
    %13 = arith.mulf %11, %12 : vector<112x32xf32>
    %14 = arith.addf %4, %13 : vector<112x32xf32>
    %cst_13 = arith.constant 7.500000e-01 : f32
    %15 = vector.broadcast %cst_13 : f32 to vector<112x32xf32>
    %16 = arith.cmpf oge, %14, %15 : vector<112x32xf32>
    %17 = arith.extui %16 : vector<112x32xi1> to vector<112x32xi32>
    %18 = arith.sitofp %17 : vector<112x32xi32> to vector<112x32xf32>
    %cst_14 = arith.constant 1.000000e+00 : f32
    %19 = vector.broadcast %cst_14 : f32 to vector<112x32xf32>
    %20 = arith.subf %19, %18 : vector<112x32xf32>
    %21 = arith.mulf %14, %20 : vector<112x32xf32>
    %cst_15 = arith.constant dense<0.000000e+00> : vector<112x32xf32>
    %22 = tpu.matmul %18, %2, %cst_15 {dimension_numbers = #tpu.dot_dimension_numbers<[1], [0], [0], [1], [0, 0, 1, 1], [], []>} : vector<112x32xf32>, vector<32x32xf32>, vector<112x32xf32> -> vector<112x32xf32>
    %23 = vector.broadcast %3 : vector<1x32xf32> to vector<112x32xf32>
    %24 = arith.addf %22, %23 : vector<112x32xf32>
    %25 = arith.subf %24, %5 : vector<112x32xf32>
    %cst_16 = arith.constant 0.571428597 : f32
    %26 = vector.broadcast %cst_16 : f32 to vector<112x32xf32>
    %27 = arith.mulf %25, %26 : vector<112x32xf32>
    %28 = arith.addf %5, %27 : vector<112x32xf32>
    %cst_17 = arith.constant 7.500000e-01 : f32
    %29 = vector.broadcast %cst_17 : f32 to vector<112x32xf32>
    %30 = arith.cmpf oge, %28, %29 : vector<112x32xf32>
    %31 = arith.extui %30 : vector<112x32xi1> to vector<112x32xi32>
    %32 = arith.sitofp %31 : vector<112x32xi32> to vector<112x32xf32>
    %cst_18 = arith.constant 1.000000e+00 : f32
    %33 = vector.broadcast %cst_18 : f32 to vector<112x32xf32>
    %34 = arith.subf %33, %32 : vector<112x32xf32>
    %35 = arith.mulf %28, %34 : vector<112x32xf32>
    %c0_19 = arith.constant 0 : index
    %c0_20 = arith.constant 0 : index
    %c0_21 = arith.constant 0 : index
    %36 = vector.load %arg6[%c0_19, %c0_20, %c0_21] : memref<2x112x32xf32, #tpu.memory_space<vmem>>, vector<1x112x32xf32>
    %37 = vector.shape_cast %36 : vector<1x112x32xf32> to vector<112x32xf32>
    %38 = vector.shape_cast %32 : vector<112x32xf32> to vector<1x112x32xf32>
    tpu.vector_store %arg6[%c0_19, %c0_20, %c0_21], %38 {strides = array<i32>} : memref<2x112x32xf32, #tpu.memory_space<vmem>>, vector<1x112x32xf32>,
    %c1 = arith.constant 1 : index
    %c0_22 = arith.constant 0 : index
    %c0_23 = arith.constant 0 : index
    %39 = vector.load %arg1[%c1, %c0_22, %c0_23] : memref<2x112x32xf32, #tpu.memory_space<vmem>>, vector<1x112x32xf32>
    %40 = vector.shape_cast %39 : vector<1x112x32xf32> to vector<112x32xf32>
    %cst_24 = arith.constant dense<0.000000e+00> : vector<112x32xf32>
    %41 = tpu.matmul %40, %0, %cst_24 {dimension_numbers = #tpu.dot_dimension_numbers<[1], [0], [0], [1], [0, 0, 1, 1], [], []>} : vector<112x32xf32>, vector<32x32xf32>, vector<112x32xf32> -> vector<112x32xf32>
    %42 = vector.broadcast %1 : vector<1x32xf32> to vector<112x32xf32>
    %43 = arith.addf %41, %42 : vector<112x32xf32>
    %44 = arith.subf %43, %21 : vector<112x32xf32>
    %cst_25 = arith.constant 0.571428597 : f32
    %45 = vector.broadcast %cst_25 : f32 to vector<112x32xf32>
    %46 = arith.mulf %44, %45 : vector<112x32xf32>
    %47 = arith.addf %21, %46 : vector<112x32xf32>
    %cst_26 = arith.constant 7.500000e-01 : f32
    %48 = vector.broadcast %cst_26 : f32 to vector<112x32xf32>
    %49 = arith.cmpf oge, %47, %48 : vector<112x32xf32>
    %50 = arith.extui %49 : vector<112x32xi1> to vector<112x32xi32>
    %51 = arith.sitofp %50 : vector<112x32xi32> to vector<112x32xf32>
    %cst_27 = arith.constant dense<0.000000e+00> : vector<112x32xf32>
    %52 = tpu.matmul %51, %2, %cst_27 {dimension_numbers = #tpu.dot_dimension_numbers<[1], [0], [0], [1], [0, 0, 1, 1], [], []>} : vector<112x32xf32>, vector<32x32xf32>, vector<112x32xf32> -> vector<112x32xf32>
    %53 = vector.broadcast %3 : vector<1x32xf32> to vector<112x32xf32>
    %54 = arith.addf %52, %53 : vector<112x32xf32>
    %55 = arith.subf %54, %35 : vector<112x32xf32>
    %cst_28 = arith.constant 0.571428597 : f32
    %56 = vector.broadcast %cst_28 : f32 to vector<112x32xf32>
    %57 = arith.mulf %55, %56 : vector<112x32xf32>
    %58 = arith.addf %35, %57 : vector<112x32xf32>
    %cst_29 = arith.constant 7.500000e-01 : f32
    %59 = vector.broadcast %cst_29 : f32 to vector<112x32xf32>
    %60 = arith.cmpf oge, %58, %59 : vector<112x32xf32>
    %61 = arith.extui %60 : vector<112x32xi1> to vector<112x32xi32>
    %62 = arith.sitofp %61 : vector<112x32xi32> to vector<112x32xf32>
    %c1_30 = arith.constant 1 : index
    %c0_31 = arith.constant 0 : index
    %c0_32 = arith.constant 0 : index
    %63 = vector.load %arg6[%c1_30, %c0_31, %c0_32] : memref<2x112x32xf32, #tpu.memory_space<vmem>>, vector<1x112x32xf32>
    %64 = vector.shape_cast %63 : vector<1x112x32xf32> to vector<112x32xf32>
    %65 = vector.shape_cast %62 : vector<112x32xf32> to vector<1x112x32xf32>
    tpu.vector_store %arg6[%c1_30, %c0_31, %c0_32], %65 {strides = array<i32>} : memref<2x112x32xf32, #tpu.memory_space<vmem>>, vector<1x112x32xf32>,
    return
  }
  func.func @transform_0(%arg0: i32) -> (i32, i32, i32) {
    %c0_i32 = arith.constant 0 : i32
    %c0_i32_0 = arith.constant 0 : i32
    %c0_i32_1 = arith.constant 0 : i32
    return %c0_i32, %arg0, %c0_i32_0 : i32, i32, i32
  }
  func.func @transform_1(%arg0: i32) -> (i32, i32) {
    %c0_i32 = arith.constant 0 : i32
    %c0_i32_0 = arith.constant 0 : i32
    %c0_i32_1 = arith.constant 0 : i32
    return %c0_i32, %c0_i32_0 : i32, i32
  }
  func.func @transform_2(%arg0: i32) -> (i32, i32) {
    %c0_i32 = arith.constant 0 : i32
    %c0_i32_0 = arith.constant 0 : i32
    %c0_i32_1 = arith.constant 0 : i32
    return %c0_i32, %c0_i32_0 : i32, i32
  }
  func.func @transform_3(%arg0: i32) -> (i32, i32) {
    %c0_i32 = arith.constant 0 : i32
    %c0_i32_0 = arith.constant 0 : i32
    %c0_i32_1 = arith.constant 0 : i32
    return %c0_i32, %c0_i32_0 : i32, i32
  }
  func.func @transform_4(%arg0: i32) -> (i32, i32) {
    %c0_i32 = arith.constant 0 : i32
    %c0_i32_0 = arith.constant 0 : i32
    %c0_i32_1 = arith.constant 0 : i32
    return %c0_i32, %c0_i32_0 : i32, i32
  }
  func.func @transform_5(%arg0: i32) -> (i32, i32, i32) {
    %c0_i32 = arith.constant 0 : i32
    %c0_i32_0 = arith.constant 0 : i32
    %c0_i32_1 = arith.constant 0 : i32
    return %c0_i32, %arg0, %c0_i32_0 : i32, i32, i32
  }
}

module attributes {stable_mosaic.version = 11 : i64} {
  func.func @_lif_kernel(%arg0: i32, %arg1: memref<2x1024xf32, #tpu.memory_space<vmem>>, %arg2: memref<2x1024xf32, #tpu.memory_space<vmem>>) attributes {dimension_semantics = [#tpu.dimension_semantics<parallel>], iteration_bounds = array<i64: 1>, scalar_prefetch = 0 : i64, scratch_operands = 0 : i64, tpu.core_type = #tpu.core_type<tc>, window_params = [{transform_indices = @transform_0, window_bounds = array<i64: 2, 1024>}, {transform_indices = @transform_1, window_bounds = array<i64: 2, 1024>}]} {
    %cst = arith.constant 0.000000e+00 : f32
    %0 = vector.broadcast %cst : f32 to vector<1x1024xf32>
    %c0 = arith.constant 0 : index
    %c0_0 = arith.constant 0 : index
    %1 = vector.load %arg1[%c0, %c0_0] : memref<2x1024xf32, #tpu.memory_space<vmem>>, vector<1x1024xf32>
    %2 = arith.subf %1, %0 : vector<1x1024xf32>
    %cst_1 = arith.constant 0.571428597 : f32
    %3 = vector.broadcast %cst_1 : f32 to vector<1x1024xf32>
    %4 = arith.mulf %2, %3 : vector<1x1024xf32>
    %5 = arith.addf %0, %4 : vector<1x1024xf32>
    %cst_2 = arith.constant 5.500000e-01 : f32
    %6 = vector.broadcast %cst_2 : f32 to vector<1x1024xf32>
    %7 = arith.cmpf oge, %5, %6 : vector<1x1024xf32>
    %8 = arith.extui %7 : vector<1x1024xi1> to vector<1x1024xi32>
    %9 = arith.sitofp %8 : vector<1x1024xi32> to vector<1x1024xf32>
    %cst_3 = arith.constant 1.000000e+00 : f32
    %10 = vector.broadcast %cst_3 : f32 to vector<1x1024xf32>
    %11 = arith.subf %10, %9 : vector<1x1024xf32>
    %12 = arith.mulf %5, %11 : vector<1x1024xf32>
    %c1 = arith.constant 1 : index
    %c0_4 = arith.constant 0 : index
    %13 = vector.load %arg1[%c1, %c0_4] : memref<2x1024xf32, #tpu.memory_space<vmem>>, vector<1x1024xf32>
    %14 = arith.subf %13, %12 : vector<1x1024xf32>
    %cst_5 = arith.constant 0.571428597 : f32
    %15 = vector.broadcast %cst_5 : f32 to vector<1x1024xf32>
    %16 = arith.mulf %14, %15 : vector<1x1024xf32>
    %17 = arith.addf %12, %16 : vector<1x1024xf32>
    %cst_6 = arith.constant 5.500000e-01 : f32
    %18 = vector.broadcast %cst_6 : f32 to vector<1x1024xf32>
    %19 = arith.cmpf oge, %17, %18 : vector<1x1024xf32>
    %20 = arith.extui %19 : vector<1x1024xi1> to vector<1x1024xi32>
    %21 = arith.sitofp %20 : vector<1x1024xi32> to vector<1x1024xf32>
    %22 = tpu.concatenate %9, %21 in 0 : vector<1x1024xf32>, vector<1x1024xf32> -> vector<2x1024xf32>
    %c0_7 = arith.constant 0 : index
    %c0_8 = arith.constant 0 : index
    %23 = vector.load %arg2[%c0_7, %c0_8] : memref<2x1024xf32, #tpu.memory_space<vmem>>, vector<2x1024xf32>
    tpu.vector_store %arg2[%c0_7, %c0_8], %22 {strides = array<i32>} : memref<2x1024xf32, #tpu.memory_space<vmem>>, vector<2x1024xf32>,
    return
  }
  func.func @transform_0(%arg0: i32) -> (i32, i32) {
    %c0_i32 = arith.constant 0 : i32
    %c0_i32_0 = arith.constant 0 : i32
    return %c0_i32, %arg0 : i32, i32
  }
  func.func @transform_1(%arg0: i32) -> (i32, i32) {
    %c0_i32 = arith.constant 0 : i32
    %c0_i32_0 = arith.constant 0 : i32
    return %c0_i32, %arg0 : i32, i32
  }
}

module attributes {stable_mosaic.version = 11 : i64} {
  func.func @_lif_kernel(%arg0: i32, %arg1: memref<4x4096xf32, #tpu.memory_space<vmem>>, %arg2: memref<4x4096xf32, #tpu.memory_space<vmem>>) attributes {dimension_semantics = [#tpu.dimension_semantics<parallel>], iteration_bounds = array<i64: 7>, scalar_prefetch = 0 : i64, scratch_operands = 0 : i64, tpu.core_type = #tpu.core_type<tc>, window_params = [{transform_indices = @transform_0, window_bounds = array<i64: 4, 4096>}, {transform_indices = @transform_1, window_bounds = array<i64: 4, 4096>}]} {
    %cst = arith.constant 0.000000e+00 : f32
    %0 = vector.broadcast %cst : f32 to vector<1x4096xf32>
    %c0 = arith.constant 0 : index
    %c0_0 = arith.constant 0 : index
    %1 = vector.load %arg1[%c0, %c0_0] : memref<4x4096xf32, #tpu.memory_space<vmem>>, vector<1x4096xf32>
    %2 = arith.subf %1, %0 : vector<1x4096xf32>
    %cst_1 = arith.constant 0.571428597 : f32
    %3 = vector.broadcast %cst_1 : f32 to vector<1x4096xf32>
    %4 = arith.mulf %2, %3 : vector<1x4096xf32>
    %5 = arith.addf %0, %4 : vector<1x4096xf32>
    %cst_2 = arith.constant 7.500000e-01 : f32
    %6 = vector.broadcast %cst_2 : f32 to vector<1x4096xf32>
    %7 = arith.cmpf oge, %5, %6 : vector<1x4096xf32>
    %8 = arith.extui %7 : vector<1x4096xi1> to vector<1x4096xi32>
    %9 = arith.sitofp %8 : vector<1x4096xi32> to vector<1x4096xf32>
    %cst_3 = arith.constant 1.000000e+00 : f32
    %10 = vector.broadcast %cst_3 : f32 to vector<1x4096xf32>
    %11 = arith.subf %10, %9 : vector<1x4096xf32>
    %12 = arith.mulf %5, %11 : vector<1x4096xf32>
    %c1 = arith.constant 1 : index
    %c0_4 = arith.constant 0 : index
    %13 = vector.load %arg1[%c1, %c0_4] : memref<4x4096xf32, #tpu.memory_space<vmem>>, vector<1x4096xf32>
    %14 = arith.subf %13, %12 : vector<1x4096xf32>
    %cst_5 = arith.constant 0.571428597 : f32
    %15 = vector.broadcast %cst_5 : f32 to vector<1x4096xf32>
    %16 = arith.mulf %14, %15 : vector<1x4096xf32>
    %17 = arith.addf %12, %16 : vector<1x4096xf32>
    %cst_6 = arith.constant 7.500000e-01 : f32
    %18 = vector.broadcast %cst_6 : f32 to vector<1x4096xf32>
    %19 = arith.cmpf oge, %17, %18 : vector<1x4096xf32>
    %20 = arith.extui %19 : vector<1x4096xi1> to vector<1x4096xi32>
    %21 = arith.sitofp %20 : vector<1x4096xi32> to vector<1x4096xf32>
    %cst_7 = arith.constant 1.000000e+00 : f32
    %22 = vector.broadcast %cst_7 : f32 to vector<1x4096xf32>
    %23 = arith.subf %22, %21 : vector<1x4096xf32>
    %24 = arith.mulf %17, %23 : vector<1x4096xf32>
    %c2 = arith.constant 2 : index
    %c0_8 = arith.constant 0 : index
    %25 = vector.load %arg1[%c2, %c0_8] : memref<4x4096xf32, #tpu.memory_space<vmem>>, vector<1x4096xf32>
    %26 = arith.subf %25, %24 : vector<1x4096xf32>
    %cst_9 = arith.constant 0.571428597 : f32
    %27 = vector.broadcast %cst_9 : f32 to vector<1x4096xf32>
    %28 = arith.mulf %26, %27 : vector<1x4096xf32>
    %29 = arith.addf %24, %28 : vector<1x4096xf32>
    %cst_10 = arith.constant 7.500000e-01 : f32
    %30 = vector.broadcast %cst_10 : f32 to vector<1x4096xf32>
    %31 = arith.cmpf oge, %29, %30 : vector<1x4096xf32>
    %32 = arith.extui %31 : vector<1x4096xi1> to vector<1x4096xi32>
    %33 = arith.sitofp %32 : vector<1x4096xi32> to vector<1x4096xf32>
    %cst_11 = arith.constant 1.000000e+00 : f32
    %34 = vector.broadcast %cst_11 : f32 to vector<1x4096xf32>
    %35 = arith.subf %34, %33 : vector<1x4096xf32>
    %36 = arith.mulf %29, %35 : vector<1x4096xf32>
    %c3 = arith.constant 3 : index
    %c0_12 = arith.constant 0 : index
    %37 = vector.load %arg1[%c3, %c0_12] : memref<4x4096xf32, #tpu.memory_space<vmem>>, vector<1x4096xf32>
    %38 = arith.subf %37, %36 : vector<1x4096xf32>
    %cst_13 = arith.constant 0.571428597 : f32
    %39 = vector.broadcast %cst_13 : f32 to vector<1x4096xf32>
    %40 = arith.mulf %38, %39 : vector<1x4096xf32>
    %41 = arith.addf %36, %40 : vector<1x4096xf32>
    %cst_14 = arith.constant 7.500000e-01 : f32
    %42 = vector.broadcast %cst_14 : f32 to vector<1x4096xf32>
    %43 = arith.cmpf oge, %41, %42 : vector<1x4096xf32>
    %44 = arith.extui %43 : vector<1x4096xi1> to vector<1x4096xi32>
    %45 = arith.sitofp %44 : vector<1x4096xi32> to vector<1x4096xf32>
    %46 = tpu.concatenate %9, %21, %33, %45 in 0 : vector<1x4096xf32>, vector<1x4096xf32>, vector<1x4096xf32>, vector<1x4096xf32> -> vector<4x4096xf32>
    %c0_15 = arith.constant 0 : index
    %c0_16 = arith.constant 0 : index
    %47 = vector.load %arg2[%c0_15, %c0_16] : memref<4x4096xf32, #tpu.memory_space<vmem>>, vector<4x4096xf32>
    tpu.vector_store %arg2[%c0_15, %c0_16], %46 {strides = array<i32>} : memref<4x4096xf32, #tpu.memory_space<vmem>>, vector<4x4096xf32>,
    return
  }
  func.func @transform_0(%arg0: i32) -> (i32, i32) {
    %c0_i32 = arith.constant 0 : i32
    %c0_i32_0 = arith.constant 0 : i32
    return %c0_i32, %arg0 : i32, i32
  }
  func.func @transform_1(%arg0: i32) -> (i32, i32) {
    %c0_i32 = arith.constant 0 : i32
    %c0_i32_0 = arith.constant 0 : i32
    return %c0_i32, %arg0 : i32, i32
  }
}

module attributes {stable_mosaic.version = 11 : i64} {
  func.func @_dual_mix_lif_kernel(%arg0: i32, %arg1: memref<4x224x32xf32, #tpu.memory_space<vmem>>, %arg2: memref<32x32xf32, #tpu.memory_space<vmem>>, %arg3: memref<1x32xf32, #tpu.memory_space<vmem>>, %arg4: memref<32x32xf32, #tpu.memory_space<vmem>>, %arg5: memref<1x32xf32, #tpu.memory_space<vmem>>, %arg6: memref<4x224x32xf32, #tpu.memory_space<vmem>>) attributes {dimension_semantics = [#tpu.dimension_semantics<parallel>], iteration_bounds = array<i64: 4>, scalar_prefetch = 0 : i64, scratch_operands = 0 : i64, tpu.core_type = #tpu.core_type<tc>, window_params = [{transform_indices = @transform_0, window_bounds = array<i64: 4, 224, 32>}, {pipeline_mode = #tpu.pipeline_mode<synchronous>, transform_indices = @transform_1, window_bounds = array<i64: 32, 32>}, {pipeline_mode = #tpu.pipeline_mode<synchronous>, transform_indices = @transform_2, window_bounds = array<i64: 1, 32>}, {pipeline_mode = #tpu.pipeline_mode<synchronous>, transform_indices = @transform_3, window_bounds = array<i64: 32, 32>}, {pipeline_mode = #tpu.pipeline_mode<synchronous>, transform_indices = @transform_4, window_bounds = array<i64: 1, 32>}, {transform_indices = @transform_5, window_bounds = array<i64: 4, 224, 32>}]} {
    %c0 = arith.constant 0 : index
    %c0_0 = arith.constant 0 : index
    %0 = vector.load %arg2[%c0, %c0_0] : memref<32x32xf32, #tpu.memory_space<vmem>>, vector<32x32xf32>
    %c0_1 = arith.constant 0 : index
    %c0_2 = arith.constant 0 : index
    %1 = vector.load %arg3[%c0_1, %c0_2] : memref<1x32xf32, #tpu.memory_space<vmem>>, vector<1x32xf32>
    %c0_3 = arith.constant 0 : index
    %c0_4 = arith.constant 0 : index
    %2 = vector.load %arg4[%c0_3, %c0_4] : memref<32x32xf32, #tpu.memory_space<vmem>>, vector<32x32xf32>
    %c0_5 = arith.constant 0 : index
    %c0_6 = arith.constant 0 : index
    %3 = vector.load %arg5[%c0_5, %c0_6] : memref<1x32xf32, #tpu.memory_space<vmem>>, vector<1x32xf32>
    %cst = arith.constant 0.000000e+00 : f32
    %4 = vector.broadcast %cst : f32 to vector<224x32xf32>
    %cst_7 = arith.constant 0.000000e+00 : f32
    %5 = vector.broadcast %cst_7 : f32 to vector<224x32xf32>
    %c0_8 = arith.constant 0 : index
    %c0_9 = arith.constant 0 : index
    %c0_10 = arith.constant 0 : index
    %6 = vector.load %arg1[%c0_8, %c0_9, %c0_10] : memref<4x224x32xf32, #tpu.memory_space<vmem>>, vector<1x224x32xf32>
    %7 = vector.shape_cast %6 : vector<1x224x32xf32> to vector<224x32xf32>
    %cst_11 = arith.constant dense<0.000000e+00> : vector<224x32xf32>
    %8 = tpu.matmul %7, %0, %cst_11 {dimension_numbers = #tpu.dot_dimension_numbers<[1], [0], [0], [1], [0, 0, 1, 1], [], []>} : vector<224x32xf32>, vector<32x32xf32>, vector<224x32xf32> -> vector<224x32xf32>
    %9 = vector.broadcast %1 : vector<1x32xf32> to vector<224x32xf32>
    %10 = arith.addf %8, %9 : vector<224x32xf32>
    %11 = arith.subf %10, %4 : vector<224x32xf32>
    %cst_12 = arith.constant 0.571428597 : f32
    %12 = vector.broadcast %cst_12 : f32 to vector<224x32xf32>
    %13 = arith.mulf %11, %12 : vector<224x32xf32>
    %14 = arith.addf %4, %13 : vector<224x32xf32>
    %cst_13 = arith.constant 7.500000e-01 : f32
    %15 = vector.broadcast %cst_13 : f32 to vector<224x32xf32>
    %16 = arith.cmpf oge, %14, %15 : vector<224x32xf32>
    %17 = arith.extui %16 : vector<224x32xi1> to vector<224x32xi32>
    %18 = arith.sitofp %17 : vector<224x32xi32> to vector<224x32xf32>
    %cst_14 = arith.constant 1.000000e+00 : f32
    %19 = vector.broadcast %cst_14 : f32 to vector<224x32xf32>
    %20 = arith.subf %19, %18 : vector<224x32xf32>
    %21 = arith.mulf %14, %20 : vector<224x32xf32>
    %cst_15 = arith.constant dense<0.000000e+00> : vector<224x32xf32>
    %22 = tpu.matmul %18, %2, %cst_15 {dimension_numbers = #tpu.dot_dimension_numbers<[1], [0], [0], [1], [0, 0, 1, 1], [], []>} : vector<224x32xf32>, vector<32x32xf32>, vector<224x32xf32> -> vector<224x32xf32>
    %23 = vector.broadcast %3 : vector<1x32xf32> to vector<224x32xf32>
    %24 = arith.addf %22, %23 : vector<224x32xf32>
    %25 = arith.subf %24, %5 : vector<224x32xf32>
    %cst_16 = arith.constant 0.571428597 : f32
    %26 = vector.broadcast %cst_16 : f32 to vector<224x32xf32>
    %27 = arith.mulf %25, %26 : vector<224x32xf32>
    %28 = arith.addf %5, %27 : vector<224x32xf32>
    %cst_17 = arith.constant 7.500000e-01 : f32
    %29 = vector.broadcast %cst_17 : f32 to vector<224x32xf32>
    %30 = arith.cmpf oge, %28, %29 : vector<224x32xf32>
    %31 = arith.extui %30 : vector<224x32xi1> to vector<224x32xi32>
    %32 = arith.sitofp %31 : vector<224x32xi32> to vector<224x32xf32>
    %cst_18 = arith.constant 1.000000e+00 : f32
    %33 = vector.broadcast %cst_18 : f32 to vector<224x32xf32>
    %34 = arith.subf %33, %32 : vector<224x32xf32>
    %35 = arith.mulf %28, %34 : vector<224x32xf32>
    %c0_19 = arith.constant 0 : index
    %c0_20 = arith.constant 0 : index
    %c0_21 = arith.constant 0 : index
    %36 = vector.load %arg6[%c0_19, %c0_20, %c0_21] : memref<4x224x32xf32, #tpu.memory_space<vmem>>, vector<1x224x32xf32>
    %37 = vector.shape_cast %36 : vector<1x224x32xf32> to vector<224x32xf32>
    %38 = vector.shape_cast %32 : vector<224x32xf32> to vector<1x224x32xf32>
    tpu.vector_store %arg6[%c0_19, %c0_20, %c0_21], %38 {strides = array<i32>} : memref<4x224x32xf32, #tpu.memory_space<vmem>>, vector<1x224x32xf32>,
    %c1 = arith.constant 1 : index
    %c0_22 = arith.constant 0 : index
    %c0_23 = arith.constant 0 : index
    %39 = vector.load %arg1[%c1, %c0_22, %c0_23] : memref<4x224x32xf32, #tpu.memory_space<vmem>>, vector<1x224x32xf32>
    %40 = vector.shape_cast %39 : vector<1x224x32xf32> to vector<224x32xf32>
    %cst_24 = arith.constant dense<0.000000e+00> : vector<224x32xf32>
    %41 = tpu.matmul %40, %0, %cst_24 {dimension_numbers = #tpu.dot_dimension_numbers<[1], [0], [0], [1], [0, 0, 1, 1], [], []>} : vector<224x32xf32>, vector<32x32xf32>, vector<224x32xf32> -> vector<224x32xf32>
    %42 = vector.broadcast %1 : vector<1x32xf32> to vector<224x32xf32>
    %43 = arith.addf %41, %42 : vector<224x32xf32>
    %44 = arith.subf %43, %21 : vector<224x32xf32>
    %cst_25 = arith.constant 0.571428597 : f32
    %45 = vector.broadcast %cst_25 : f32 to vector<224x32xf32>
    %46 = arith.mulf %44, %45 : vector<224x32xf32>
    %47 = arith.addf %21, %46 : vector<224x32xf32>
    %cst_26 = arith.constant 7.500000e-01 : f32
    %48 = vector.broadcast %cst_26 : f32 to vector<224x32xf32>
    %49 = arith.cmpf oge, %47, %48 : vector<224x32xf32>
    %50 = arith.extui %49 : vector<224x32xi1> to vector<224x32xi32>
    %51 = arith.sitofp %50 : vector<224x32xi32> to vector<224x32xf32>
    %cst_27 = arith.constant 1.000000e+00 : f32
    %52 = vector.broadcast %cst_27 : f32 to vector<224x32xf32>
    %53 = arith.subf %52, %51 : vector<224x32xf32>
    %54 = arith.mulf %47, %53 : vector<224x32xf32>
    %cst_28 = arith.constant dense<0.000000e+00> : vector<224x32xf32>
    %55 = tpu.matmul %51, %2, %cst_28 {dimension_numbers = #tpu.dot_dimension_numbers<[1], [0], [0], [1], [0, 0, 1, 1], [], []>} : vector<224x32xf32>, vector<32x32xf32>, vector<224x32xf32> -> vector<224x32xf32>
    %56 = vector.broadcast %3 : vector<1x32xf32> to vector<224x32xf32>
    %57 = arith.addf %55, %56 : vector<224x32xf32>
    %58 = arith.subf %57, %35 : vector<224x32xf32>
    %cst_29 = arith.constant 0.571428597 : f32
    %59 = vector.broadcast %cst_29 : f32 to vector<224x32xf32>
    %60 = arith.mulf %58, %59 : vector<224x32xf32>
    %61 = arith.addf %35, %60 : vector<224x32xf32>
    %cst_30 = arith.constant 7.500000e-01 : f32
    %62 = vector.broadcast %cst_30 : f32 to vector<224x32xf32>
    %63 = arith.cmpf oge, %61, %62 : vector<224x32xf32>
    %64 = arith.extui %63 : vector<224x32xi1> to vector<224x32xi32>
    %65 = arith.sitofp %64 : vector<224x32xi32> to vector<224x32xf32>
    %cst_31 = arith.constant 1.000000e+00 : f32
    %66 = vector.broadcast %cst_31 : f32 to vector<224x32xf32>
    %67 = arith.subf %66, %65 : vector<224x32xf32>
    %68 = arith.mulf %61, %67 : vector<224x32xf32>
    %c1_32 = arith.constant 1 : index
    %c0_33 = arith.constant 0 : index
    %c0_34 = arith.constant 0 : index
    %69 = vector.load %arg6[%c1_32, %c0_33, %c0_34] : memref<4x224x32xf32, #tpu.memory_space<vmem>>, vector<1x224x32xf32>
    %70 = vector.shape_cast %69 : vector<1x224x32xf32> to vector<224x32xf32>
    %71 = vector.shape_cast %65 : vector<224x32xf32> to vector<1x224x32xf32>
    tpu.vector_store %arg6[%c1_32, %c0_33, %c0_34], %71 {strides = array<i32>} : memref<4x224x32xf32, #tpu.memory_space<vmem>>, vector<1x224x32xf32>,
    %c2 = arith.constant 2 : index
    %c0_35 = arith.constant 0 : index
    %c0_36 = arith.constant 0 : index
    %72 = vector.load %arg1[%c2, %c0_35, %c0_36] : memref<4x224x32xf32, #tpu.memory_space<vmem>>, vector<1x224x32xf32>
    %73 = vector.shape_cast %72 : vector<1x224x32xf32> to vector<224x32xf32>
    %cst_37 = arith.constant dense<0.000000e+00> : vector<224x32xf32>
    %74 = tpu.matmul %73, %0, %cst_37 {dimension_numbers = #tpu.dot_dimension_numbers<[1], [0], [0], [1], [0, 0, 1, 1], [], []>} : vector<224x32xf32>, vector<32x32xf32>, vector<224x32xf32> -> vector<224x32xf32>
    %75 = vector.broadcast %1 : vector<1x32xf32> to vector<224x32xf32>
    %76 = arith.addf %74, %75 : vector<224x32xf32>
    %77 = arith.subf %76, %54 : vector<224x32xf32>
    %cst_38 = arith.constant 0.571428597 : f32
    %78 = vector.broadcast %cst_38 : f32 to vector<224x32xf32>
    %79 = arith.mulf %77, %78 : vector<224x32xf32>
    %80 = arith.addf %54, %79 : vector<224x32xf32>
    %cst_39 = arith.constant 7.500000e-01 : f32
    %81 = vector.broadcast %cst_39 : f32 to vector<224x32xf32>
    %82 = arith.cmpf oge, %80, %81 : vector<224x32xf32>
    %83 = arith.extui %82 : vector<224x32xi1> to vector<224x32xi32>
    %84 = arith.sitofp %83 : vector<224x32xi32> to vector<224x32xf32>
    %cst_40 = arith.constant 1.000000e+00 : f32
    %85 = vector.broadcast %cst_40 : f32 to vector<224x32xf32>
    %86 = arith.subf %85, %84 : vector<224x32xf32>
    %87 = arith.mulf %80, %86 : vector<224x32xf32>
    %cst_41 = arith.constant dense<0.000000e+00> : vector<224x32xf32>
    %88 = tpu.matmul %84, %2, %cst_41 {dimension_numbers = #tpu.dot_dimension_numbers<[1], [0], [0], [1], [0, 0, 1, 1], [], []>} : vector<224x32xf32>, vector<32x32xf32>, vector<224x32xf32> -> vector<224x32xf32>
    %89 = vector.broadcast %3 : vector<1x32xf32> to vector<224x32xf32>
    %90 = arith.addf %88, %89 : vector<224x32xf32>
    %91 = arith.subf %90, %68 : vector<224x32xf32>
    %cst_42 = arith.constant 0.571428597 : f32
    %92 = vector.broadcast %cst_42 : f32 to vector<224x32xf32>
    %93 = arith.mulf %91, %92 : vector<224x32xf32>
    %94 = arith.addf %68, %93 : vector<224x32xf32>
    %cst_43 = arith.constant 7.500000e-01 : f32
    %95 = vector.broadcast %cst_43 : f32 to vector<224x32xf32>
    %96 = arith.cmpf oge, %94, %95 : vector<224x32xf32>
    %97 = arith.extui %96 : vector<224x32xi1> to vector<224x32xi32>
    %98 = arith.sitofp %97 : vector<224x32xi32> to vector<224x32xf32>
    %cst_44 = arith.constant 1.000000e+00 : f32
    %99 = vector.broadcast %cst_44 : f32 to vector<224x32xf32>
    %100 = arith.subf %99, %98 : vector<224x32xf32>
    %101 = arith.mulf %94, %100 : vector<224x32xf32>
    %c2_45 = arith.constant 2 : index
    %c0_46 = arith.constant 0 : index
    %c0_47 = arith.constant 0 : index
    %102 = vector.load %arg6[%c2_45, %c0_46, %c0_47] : memref<4x224x32xf32, #tpu.memory_space<vmem>>, vector<1x224x32xf32>
    %103 = vector.shape_cast %102 : vector<1x224x32xf32> to vector<224x32xf32>
    %104 = vector.shape_cast %98 : vector<224x32xf32> to vector<1x224x32xf32>
    tpu.vector_store %arg6[%c2_45, %c0_46, %c0_47], %104 {strides = array<i32>} : memref<4x224x32xf32, #tpu.memory_space<vmem>>, vector<1x224x32xf32>,
    %c3 = arith.constant 3 : index
    %c0_48 = arith.constant 0 : index
    %c0_49 = arith.constant 0 : index
    %105 = vector.load %arg1[%c3, %c0_48, %c0_49] : memref<4x224x32xf32, #tpu.memory_space<vmem>>, vector<1x224x32xf32>
    %106 = vector.shape_cast %105 : vector<1x224x32xf32> to vector<224x32xf32>
    %cst_50 = arith.constant dense<0.000000e+00> : vector<224x32xf32>
    %107 = tpu.matmul %106, %0, %cst_50 {dimension_numbers = #tpu.dot_dimension_numbers<[1], [0], [0], [1], [0, 0, 1, 1], [], []>} : vector<224x32xf32>, vector<32x32xf32>, vector<224x32xf32> -> vector<224x32xf32>
    %108 = vector.broadcast %1 : vector<1x32xf32> to vector<224x32xf32>
    %109 = arith.addf %107, %108 : vector<224x32xf32>
    %110 = arith.subf %109, %87 : vector<224x32xf32>
    %cst_51 = arith.constant 0.571428597 : f32
    %111 = vector.broadcast %cst_51 : f32 to vector<224x32xf32>
    %112 = arith.mulf %110, %111 : vector<224x32xf32>
    %113 = arith.addf %87, %112 : vector<224x32xf32>
    %cst_52 = arith.constant 7.500000e-01 : f32
    %114 = vector.broadcast %cst_52 : f32 to vector<224x32xf32>
    %115 = arith.cmpf oge, %113, %114 : vector<224x32xf32>
    %116 = arith.extui %115 : vector<224x32xi1> to vector<224x32xi32>
    %117 = arith.sitofp %116 : vector<224x32xi32> to vector<224x32xf32>
    %cst_53 = arith.constant dense<0.000000e+00> : vector<224x32xf32>
    %118 = tpu.matmul %117, %2, %cst_53 {dimension_numbers = #tpu.dot_dimension_numbers<[1], [0], [0], [1], [0, 0, 1, 1], [], []>} : vector<224x32xf32>, vector<32x32xf32>, vector<224x32xf32> -> vector<224x32xf32>
    %119 = vector.broadcast %3 : vector<1x32xf32> to vector<224x32xf32>
    %120 = arith.addf %118, %119 : vector<224x32xf32>
    %121 = arith.subf %120, %101 : vector<224x32xf32>
    %cst_54 = arith.constant 0.571428597 : f32
    %122 = vector.broadcast %cst_54 : f32 to vector<224x32xf32>
    %123 = arith.mulf %121, %122 : vector<224x32xf32>
    %124 = arith.addf %101, %123 : vector<224x32xf32>
    %cst_55 = arith.constant 7.500000e-01 : f32
    %125 = vector.broadcast %cst_55 : f32 to vector<224x32xf32>
    %126 = arith.cmpf oge, %124, %125 : vector<224x32xf32>
    %127 = arith.extui %126 : vector<224x32xi1> to vector<224x32xi32>
    %128 = arith.sitofp %127 : vector<224x32xi32> to vector<224x32xf32>
    %c3_56 = arith.constant 3 : index
    %c0_57 = arith.constant 0 : index
    %c0_58 = arith.constant 0 : index
    %129 = vector.load %arg6[%c3_56, %c0_57, %c0_58] : memref<4x224x32xf32, #tpu.memory_space<vmem>>, vector<1x224x32xf32>
    %130 = vector.shape_cast %129 : vector<1x224x32xf32> to vector<224x32xf32>
    %131 = vector.shape_cast %128 : vector<224x32xf32> to vector<1x224x32xf32>
    tpu.vector_store %arg6[%c3_56, %c0_57, %c0_58], %131 {strides = array<i32>} : memref<4x224x32xf32, #tpu.memory_space<vmem>>, vector<1x224x32xf32>,
    return
  }
  func.func @transform_0(%arg0: i32) -> (i32, i32, i32) {
    %c0_i32 = arith.constant 0 : i32
    %c0_i32_0 = arith.constant 0 : i32
    %c0_i32_1 = arith.constant 0 : i32
    return %c0_i32, %arg0, %c0_i32_0 : i32, i32, i32
  }
  func.func @transform_1(%arg0: i32) -> (i32, i32) {
    %c0_i32 = arith.constant 0 : i32
    %c0_i32_0 = arith.constant 0 : i32
    %c0_i32_1 = arith.constant 0 : i32
    return %c0_i32, %c0_i32_0 : i32, i32
  }
  func.func @transform_2(%arg0: i32) -> (i32, i32) {
    %c0_i32 = arith.constant 0 : i32
    %c0_i32_0 = arith.constant 0 : i32
    %c0_i32_1 = arith.constant 0 : i32
    return %c0_i32, %c0_i32_0 : i32, i32
  }
  func.func @transform_3(%arg0: i32) -> (i32, i32) {
    %c0_i32 = arith.constant 0 : i32
    %c0_i32_0 = arith.constant 0 : i32
    %c0_i32_1 = arith.constant 0 : i32
    return %c0_i32, %c0_i32_0 : i32, i32
  }
  func.func @transform_4(%arg0: i32) -> (i32, i32) {
    %c0_i32 = arith.constant 0 : i32
    %c0_i32_0 = arith.constant 0 : i32
    %c0_i32_1 = arith.constant 0 : i32
    return %c0_i32, %c0_i32_0 : i32, i32
  }
  func.func @transform_5(%arg0: i32) -> (i32, i32, i32) {
    %c0_i32 = arith.constant 0 : i32
    %c0_i32_0 = arith.constant 0 : i32
    %c0_i32_1 = arith.constant 0 : i32
    return %c0_i32, %arg0, %c0_i32_0 : i32, i32, i32
  }
}

</mosaic_0001>

<bundles_post_ra>
// kernel: tm_mixing_time_forward.11
= control target key start
LH: loop header
LB: loop body
LE: loop exit
PB: predicated region body
PF: predicated region fallthrough
CT: control target
= control target key end

     0   :  { %s2255_s6 = smov 0   ;;  %s3413_s0 = inlined_call_operand.vmem [shape: f32[8,16384], index: 0, kind: input, shape index: {}]   ;;  %s3414_s1 = inlined_call_operand.vmem [shape: f32[8,16384], index: 1, kind: output, shape index: {}]  }
   0x1 LB: > { %s2122_s7 = sadd.s32 4294967295, %s2242_s6   ;;  %p2126_p0 = scmp.ge.s32.totalorder %s2242_s6, 1  ;;  %s2242_s6 = sphi %s2255_s6, %s11_s6  }
   0x2   : > { %p88_p1 = scmp.lt.s32.totalorder %s2242_s6, 5 }
   0x4   : > { %p89_p2 = pnand %p2126_p0, %p88_p1 }
   0x6   : > { %92 = sbr.rel (%p89_p2) target bundleno = 247 (0xf7), region = 24 }
   0xb   : > { %s2127_s8 = sshll.u32 %s2122_s7, 5  ;;  %v495_v3 = vlaneseq  ;;  %v3417_v8 = vmov 0.0   ;;  %vm1803_vm1 = vcmask 1040384   ;;  %vm1836_vm8 = vcmask 1041408  }
   0xc   : > { %p109_p3 = scmp.lt.s32.totalorder %s2127_s8, 127  ;;  %vm1869_vm9 = vcmask 1042432   ;;  %vm1902_vm12 = vcmask 1043456   ;;  %vm1935_vm15 = vcmask 1044480  }
   0xd   : > { %v496_v7 = vshrl.u32 %v495_v3, 7 }
   0xe   : > { %s3463_s8 = smov (!%p109_p3, %s2127_s8), 127 }
   0xf   : > { %s2128_s9 = sshll.u32 %s3463_s8, 3  ;;  %v2281_v13 = vsub.s32 0, %v496_v7  ;;  %v2283_v14 = vsub.s32 1, %v496_v7  ;;  %v2285_v15 = vsub.s32 2, %v496_v7  ;;  %v2289_v19 = vsub.s32 3, %v496_v7 }
  0x10   : > { %s2271_s12 = scalar_lea.vmem %s3413_s0, %s2128_s9  ;;  %v2291_v20 = vsub.s32 4, %v496_v7  ;;  %v2295_v25 = vsub.s32 5, %v496_v7  ;;  %v2297_v26 = vsub.s32 6, %v496_v7  ;;  %v2299_v28 = vsub.s32 7, %v496_v7  ;;  %s2749_s15 = scalar_lea.vmem %s3414_s1, %s2128_s9 }
  0x11   : > { %v120_v0 = vld [vmem:[%s2271_s12] ss:$8 sm:$0xf]  ;;  %v2141_v5 = vld [vmem:[%s2271_s12 + $0x1] ss:$8 sm:$0xf] }
  0x12   : > { %v121_v1 = vld [vmem:[%s2271_s12] ss:$8 sm:$0xf0]  ;;  %v2142_v6 = vld [vmem:[%s2271_s12 + $0x1] ss:$8 sm:$0xf0] }
  0x13   : > { %v122_v2 = vor.u32 %v121_v1, %v120_v0  ;;  %v166_v11 = vor.u32 %v2142_v6, %v2141_v5  ;;  %v2131_v16 = vld [vmem:[%s2271_s12 + $0x40] ss:$8 sm:$0xf]  ;;  %v2153_v22 = vld [vmem:[%s2271_s12 + $0x2] ss:$8 sm:$0xf] }
  0x14   : > { %v2132_v17 = vld [vmem:[%s2271_s12 + $0x40] ss:$8 sm:$0xf0]  ;;  %v2154_v23 = vld [vmem:[%s2271_s12 + $0x2] ss:$8 sm:$0xf0] }
  0x15   : > { %v135_v4 = vmul.f32 0.5714286, %v122_v2  ;;  %v126_v21 = vor.u32 %v2132_v17, %v2131_v16  ;;  %v2143_v29 = vld [vmem:[%s2271_s12 + $0x41] ss:$8 sm:$0xf]  ;;  %v214_v31 = vor.u32 %v2154_v23, %v2153_v22 }
  0x16   : > { %v2144_v33 = vld [vmem:[%s2271_s12 + $0x41] ss:$8 sm:$0xf0]  ;;  %v2133_v0 = vld [vmem:[%s2271_s12 + $0x80] ss:$8 sm:$0xf] }
  0x17   : > { %vm143_vm0 = vcmp.ge.f32.partialorder %v135_v4, 0.75  ;;  %v136_v27 = vmul.f32 0.5714286, %v126_v21  ;;  %v170_v44 = vor.u32 %v2144_v33, %v2143_v29  ;;  %v2134_v1 = vld [vmem:[%s2271_s12 + $0x80] ss:$8 sm:$0xf0] }
  0x18   : > { %v2278_v9 = vsel %vm143_vm0, 1.0, %v3417_v8  ;;  %v130_v5 = vor.u32 %v2134_v1, %v2133_v0  ;;  %v2156_v22 = vld [vmem:[%s2271_s12 + $0x42] ss:$8 sm:$0xf0] }
  0x19   : > { %v155_v10 = vsub.f32 1.0, %v2278_v9  ;;  %v498_v32 = vrot.slane %v2278_v9, %v2281_v13  ;;  %vm144_vm2 = vcmp.ge.f32.partialorder %v136_v27, 0.75  ;;  %v502_v34 = vrot.slane %v2278_v9, %v2283_v14 }
  0x1a   : > { %v506_v35 = vrot.slane %v2278_v9, %v2285_v15  ;;  %v510_v36 = vrot.slane %v2278_v9, %v2289_v19  ;;  %v2312_v37 = vsel %vm144_vm2, 1.0, %v3417_v8  ;;  %v514_v38 = vrot.slane %v2278_v9, %v2291_v20 }
  0x1b   : > { %v159_v12 = vmul.f32 %v155_v10, %v135_v4  ;;  %v518_v39 = vrot.slane %v2278_v9, %v2295_v25  ;;  %v522_v40 = vrot.slane %v2278_v9, %v2297_v26  ;;  %v526_v42 = vrot.slane %v2278_v9, %v2299_v28  ;;  %v2165_v9 = vld [vmem:[%s2271_s12 + $0x3] ss:$8 sm:$0xf] }
  0x1c   : > { %v156_v43 = vsub.f32 1.0, %v2312_v37  ;;  %v2166_v10 = vld [vmem:[%s2271_s12 + $0x3] ss:$8 sm:$0xf0]  ;;  %v137_v16 = vmul.f32 0.5714286, %v130_v5  ;;  %v542_v33 = vrot.slane %v2312_v37, %v2289_v19 }
  0x1d   : > { %v179_v18 = vsub.f32 %v166_v11, %v159_v12  ;;  %vm1968_vm2 = vcmask 1045504  }
  0x1e   : > { %v160_v63 = vmul.f32 %v156_v43, %v136_v27  ;;  %v530_v27 = vrot.slane %v2312_v37, %v2281_v13  ;;  %vm145_vm5 = vcmp.ge.f32.partialorder %v137_v16, 0.75 }
  0x1f   : > { %v183_v24 = vmul.f32 0.5714286, %v179_v18  ;;  %v262_v18 = vor.u32 %v2166_v10, %v2165_v9  ;;  %v2146_v9 = vld [vmem:[%s2271_s12 + $0x81] ss:$8 sm:$0xf0] }
  0x20   : > { %v180_v4 = vsub.f32 %v170_v44, %v160_v63  ;;  %v2419_v10 = vld [vmem:[%s2271_s12 + $0x5] ss:$8 sm:$0xf] }
  0x21   : > { %v187_v30 = vadd.f32 %v183_v24, %v159_v12  ;;  %v2155_v12 = vld [vmem:[%s2271_s12 + $0x42] ss:$8 sm:$0xf] }
  0x22   : > { %v184_v7 = vmul.f32 0.5714286, %v180_v4  ;;  %v218_v24 = vor.u32 %v2156_v22, %v2155_v12  ;;  %v2422_v12 = vld [vmem:[%s2271_s12 + $0x5] ss:$8 sm:$0xf0] }
  0x23   : > { %vm191_vm3 = vcmp.ge.f32.partialorder %v187_v30, 0.75 }
  0x24   : > { %v2149_v41 = vsel %vm191_vm3, 1.0, %v3417_v8  ;;  %v188_v21 = vadd.f32 %v184_v7, %v160_v63 }
  0x25   : > { %v203_v45 = vsub.f32 1.0, %v2149_v41  ;;  %v662_v46 = vrot.slane %v2149_v41, %v2281_v13  ;;  %v666_v47 = vrot.slane %v2149_v41, %v2283_v14  ;;  %v670_v48 = vrot.slane %v2149_v41, %v2285_v15 }
  0x26   : > { %v674_v49 = vrot.slane %v2149_v41, %v2289_v19  ;;  %v678_v50 = vrot.slane %v2149_v41, %v2291_v20  ;;  %v682_v51 = vrot.slane %v2149_v41, %v2295_v25  ;;  %v686_v52 = vrot.slane %v2149_v41, %v2297_v26 }
  0x27   : > { %v207_v53 = vmul.f32 %v203_v45, %v187_v30  ;;  %v2332_v54 = vsel %vm1803_vm1, %v498_v32, %v662_v46  ;;  %v2335_v55 = vsel %vm1803_vm1, %v502_v34, %v666_v47  ;;  %v2338_v56 = vsel %vm1803_vm1, %v506_v35, %v670_v48  ;;  %v2177_v46 = vld [vmem:[%s2271_s12 + $0x4] ss:$8 sm:$0xf] }
  0x28   : > { %v2341_v57 = vsel %vm1803_vm1, %v510_v36, %v674_v49  ;;  %v2344_v58 = vsel %vm1803_vm1, %v514_v38, %v678_v50  ;;  %v2347_v59 = vsel %vm1803_vm1, %v518_v39, %v682_v51  ;;  %v2350_v60 = vsel %vm1803_vm1, %v522_v40, %v686_v52  ;;  %v2178_v47 = vld [vmem:[%s2271_s12 + $0x4] ss:$8 sm:$0xf0] }
  0x29   : > { %v227_v61 = vsub.f32 %v214_v31, %v207_v53  ;;  %v690_v62 = vrot.slane %v2149_v41, %v2299_v28  ;;  %vm192_vm6 = vcmp.ge.f32.partialorder %v188_v21, 0.75  ;;  %v534_v30 = vrot.slane %v2312_v37, %v2283_v14 }
  0x2a   : > { %v538_v31 = vrot.slane %v2312_v37, %v2285_v15  ;;  %v2150_v32 = vsel %vm192_vm6, 1.0, %v3417_v8  ;;  %v546_v34 = vrot.slane %v2312_v37, %v2291_v20  ;;  %v550_v35 = vrot.slane %v2312_v37, %v2295_v25 }
  0x2b   : > { %v231_v2 = vmul.f32 0.5714286, %v227_v61  ;;  %v2356_v3 = vsel %vm1803_vm1, %v526_v42, %v690_v62  ;;  %v204_v38 = vsub.f32 1.0, %v2150_v32  ;;  %v694_v39 = vrot.slane %v2150_v32, %v2281_v13 }
  0x2c   : > { %v2381_v40 = vsel %vm145_vm5, 1.0, %v3417_v8  ;;  %v698_v41 = vrot.slane %v2150_v32, %v2283_v14  ;;  %v702_v42 = vrot.slane %v2150_v32, %v2285_v15  ;;  %v706_v43 = vrot.slane %v2150_v32, %v2289_v19 }
  0x2d   : > { %v235_v6 = vadd.f32 %v231_v2, %v207_v53  ;;  %v710_v44 = vrot.slane %v2150_v32, %v2291_v20  ;;  %v208_v48 = vmul.f32 %v204_v38, %v188_v21  ;;  %v2390_v49 = vsel %vm1803_vm1, %v530_v27, %v694_v39  ;;  %v2145_v2 = vld [vmem:[%s2271_s12 + $0x81] ss:$8 sm:$0xf]  ;;  %v2437_v27 = vld [vmem:[%s2271_s12 + $0x7] ss:$8 sm:$0xf0] }
  0x2e   : > { %v714_v50 = vrot.slane %v2150_v32, %v2295_v25  ;;  %v2394_v51 = vsel %vm1803_vm1, %v534_v30, %v698_v41  ;;  %v2397_v52 = vsel %vm1803_vm1, %v538_v31, %v702_v42  ;;  %v2400_v53 = vsel %vm1803_vm1, %v542_v33, %v706_v43  ;;  %v2443_v30 = vld [vmem:[%s2271_s12 + $0x43] ss:$8 sm:$0xf0]  ;;  %v2446_v31 = vld [vmem:[%s2271_s12 + $0x44] ss:$8 sm:$0xf] }
  0x2f   : > { %vm239_vm4 = vcmp.ge.f32.partialorder %v235_v6, 0.75  ;;  %v2403_v61 = vsel %vm1803_vm1, %v546_v34, %v710_v44  ;;  %v310_v0 = vor.u32 %v2178_v47, %v2177_v46  ;;  %v157_v1 = vsub.f32 1.0, %v2381_v40  ;;  %v2449_v33 = vld [vmem:[%s2271_s12 + $0x44] ss:$8 sm:$0xf0] }
  0x30   : > { %v2361_v11 = vsel %vm239_vm4, 1.0, %v3417_v8  ;;  %v2406_v62 = vsel %vm1803_vm1, %v550_v35, %v714_v50  ;;  %v228_v5 = vsub.f32 %v218_v24, %v208_v48  ;;  %v718_v7 = vrot.slane %v2150_v32, %v2297_v26  ;;  %v2434_v24 = vld [vmem:[%s2271_s12 + $0x7] ss:$8 sm:$0xf] }
  0x31   : > { %v251_v17 = vsub.f32 1.0, %v2361_v11  ;;  %3423 = vst [vmem:[#allocation2_spill] sm:$0xff] %v2406_v62  ;;  %v558_v21 = vrot.slane %v2312_v37, %v2299_v28  ;;  %v722_v22 = vrot.slane %v2150_v32, %v2299_v28  ;;  %v2452_v34 = vld [vmem:[%s2271_s12 + $0x45] ss:$8 sm:$0xf]  ;;  %v161_v35 = vmul.f32 %v157_v1, %v137_v16 }
  0x32   : > { %v2458_v32 = vld [vmem:[%s2271_s12 + $0x46] ss:$8 sm:$0xf]  ;;  %v232_v39 = vmul.f32 0.5714286, %v228_v5  ;;  %v358_v16 = vor.u32 %v2422_v12, %v2419_v10  ;;  %v850_v47 = vrot.slane %v2361_v11, %v2297_v26  ;;  %vm2001_vm4 = vcmask 1046528  }
  0x33   : > { %v255_v23 = vmul.f32 %v251_v17, %v235_v6  ;;  %v554_v6 = vrot.slane %v2312_v37, %v2297_v26  ;;  %v2425_v17 = vld [vmem:[%s2271_s12 + $0x6] ss:$8 sm:$0xf]  ;;  %v2455_v37 = vld [vmem:[%s2271_s12 + $0x45] ss:$8 sm:$0xf0] }
  0x34   : > { %3424 = vst [vmem:[#allocation3_spill] sm:$0xff] %v2458_v32  ;;  %v2461_v41 = vld [vmem:[%s2271_s12 + $0x46] ss:$8 sm:$0xf0]  ;;  %v236_v50 = vadd.f32 %v232_v39, %v208_v48  ;;  %v842_v39 = vrot.slane %v2361_v11, %v2291_v20 }
  0x35   : > { %v275_v29 = vsub.f32 %v262_v18, %v255_v23  ;;  %v2428_v18 = vld [vmem:[%s2271_s12 + $0x6] ss:$8 sm:$0xf0]  ;;  %3425 = vst [vmem:[#allocation4_spill] sm:$0xff] %v2461_v41  ;;  %v2464_v42 = vsel %vm1803_vm1, %v554_v6, %v718_v7 }
  0x36   : > { %3426 = vst [vmem:[#allocation5_spill] sm:$0xff] %v2464_v42  ;;  %v2467_v43 = vld [vmem:[%s2271_s12 + $0x47] ss:$8 sm:$0xf]  ;;  %vm240_vm10 = vcmp.ge.f32.partialorder %v236_v50, 0.75 }
  0x37   : > { %v279_v36 = vmul.f32 0.5714286, %v275_v29  ;;  %v2440_v29 = vld [vmem:[%s2271_s12 + $0x43] ss:$8 sm:$0xf]  ;;  %3427 = vst [vmem:[#allocation6_spill] sm:$0xff] %v2467_v43 }
  0x38   : > { %v2470_v44 = vld [vmem:[%s2271_s12 + $0x47] ss:$8 sm:$0xf0]  ;;  %v2489_v6 = vld [vmem:[%s2271_s12 + $0x82] ss:$8 sm:$0xf0] }
  0x39   : > { %v283_v45 = vadd.f32 %v279_v36, %v255_v23  ;;  %v174_v36 = vor.u32 %v2146_v9, %v2145_v2  ;;  %3428 = vst [vmem:[#allocation7_spill] sm:$0xff] %v2470_v44  ;;  %v266_v2 = vor.u32 %v2443_v30, %v2440_v29  ;;  %v2492_v7 = vld [vmem:[%s2271_s12 + $0x83] ss:$8 sm:$0xf]  ;;  %v2506_v29 = vsel %vm240_vm10, 1.0, %v3417_v8 }
  0x3a   : > { %v2499_v12 = vld [vmem:[%s2271_s12 + $0x83] ss:$8 sm:$0xf0]  ;;  %v2511_v30 = vld [vmem:[%s2271_s12 + $0x84] ss:$8 sm:$0xf]  ;;  %v1841_v44 = vsel %vm1836_vm8, %v2344_v58, %v842_v39 }
  0x3b   : > { %vm287_vm7 = vcmp.ge.f32.partialorder %v283_v45, 0.75  ;;  %v181_v5 = vsub.f32 %v174_v36, %v161_v35  ;;  %3430 = vst [vmem:[#allocation9_spill] sm:$0xff] %v2511_v30  ;;  %v834_v36 = vrot.slane %v2361_v11, %v2285_v15  ;;  %v252_v43 = vsub.f32 1.0, %v2506_v29 }
  0x3c   : > { %v2409_v63 = vsel %vm287_vm7, 1.0, %v3417_v8  ;;  %v3432_v39 = vmov 0.0  }
  0x3d   : > { %v299_v4 = vsub.f32 1.0, %v2409_v63  ;;  %v185_v48 = vmul.f32 0.5714286, %v181_v5  ;;  %v854_v5 = vrot.slane %v2361_v11, %v2299_v28  ;;  %v1002_v58 = vrot.slane %v2409_v63, %v2289_v19 }
  0x3f   : > { %v303_v23 = vmul.f32 %v299_v4, %v283_v45  ;;  %v2473_v45 = vsel %vm1803_vm1, %v558_v21, %v722_v22  ;;  %v826_v21 = vrot.slane %v2361_v11, %v2281_v13  ;;  %v830_v22 = vrot.slane %v2361_v11, %v2283_v14 }
  0x40   : > { %3429 = vst [vmem:[#allocation8_spill] sm:$0xff] %v2473_v45  ;;  %v1839_v45 = vsel %vm1836_vm8, %v2338_v56, %v834_v36  ;;  %v998_v56 = vrot.slane %v2409_v63, %v2285_v15  ;;  %v1010_v36 = vrot.slane %v2409_v63, %v2295_v25 }
  0x41   : > { %v323_v38 = vsub.f32 %v310_v0, %v303_v23  ;;  %v2480_v0 = vld [vmem:[%s2271_s12 + $0x82] ss:$8 sm:$0xf]  ;;  %v1838_v32 = vsel %vm1836_vm8, %v2335_v55, %v830_v22  ;;  %v994_v55 = vrot.slane %v2409_v63, %v2283_v14  ;;  %v1006_v22 = vrot.slane %v2409_v63, %v2291_v20 }
  0x43   : > { %v327_v46 = vmul.f32 0.5714286, %v323_v38  ;;  %v838_v38 = vrot.slane %v2361_v11, %v2289_v19 }
  0x45   : > { %v331_v9 = vadd.f32 %v327_v46, %v303_v23  ;;  %v2520_v46 = vld [vmem:[%s2271_s12 + $0x84] ss:$8 sm:$0xf0]  ;;  %v846_v23 = vrot.slane %v2361_v11, %v2295_v25  ;;  %v1840_v42 = vsel %vm1836_vm8, %v2341_v57, %v838_v38  ;;  %v1843_v57 = vsel %vm1836_vm8, %v2350_v60, %v850_v47 }
  0x46   : > { %3431 = vst [vmem:[#allocation10_spill] sm:$0xff] %v2520_v46  ;;  %v562_v60 = vrot.slane %v2381_v40, %v2281_v13  ;;  %v1871_v47 = vsel %vm1869_vm9, %v1838_v32, %v994_v55  ;;  %v574_v55 = vrot.slane %v2381_v40, %v2289_v19 }
  0x47   : > { %vm335_vm11 = vcmp.ge.f32.partialorder %v331_v9, 0.75  ;;  %v1842_v11 = vsel %vm1836_vm8, %v2347_v59, %v846_v23  ;;  %v1844_v59 = vsel %vm1836_vm8, %v2356_v3, %v854_v5  ;;  %v1872_v3 = vsel %vm1869_vm9, %v1839_v45, %v998_v56 }
  0x48   : > { %v2523_v10 = vsel %vm335_vm11, 1.0, %v3417_v8  ;;  %v1837_v8 = vsel %vm1836_vm8, %v2332_v54, %v826_v21  ;;  %v990_v54 = vrot.slane %v2409_v63, %v2281_v13  ;;  %v189_v21 = vadd.f32 %v185_v48, %v161_v35 }
  0x49   : > { %v347_v4 = vsub.f32 1.0, %v2523_v10  ;;  %v570_v45 = vrot.slane %v2381_v40, %v2285_v15 }
  0x4a   : > { %vm193_vm13 = vcmp.ge.f32.partialorder %v189_v21, 0.75 }
  0x4b   : > { %v351_v41 = vmul.f32 %v347_v4, %v331_v9  ;;  %v256_v9 = vmul.f32 %v252_v43, %v236_v50  ;;  %v1870_v43 = vsel %vm1869_vm9, %v1837_v8, %v990_v54  ;;  %v1018_v50 = vrot.slane %v2409_v63, %v2299_v28 }
  0x4c   : > { %v2577_v5 = vsel %vm193_vm13, 1.0, %v3432_v39  ;;  %v1875_v8 = vsel %vm1869_vm9, %v1842_v11, %v1010_v36 }
  0x4d   : > { %v371_v4 = vsub.f32 %v358_v16, %v351_v41  ;;  %v1014_v16 = vrot.slane %v2409_v63, %v2297_v26  ;;  %v276_v48 = vsub.f32 %v266_v2, %v256_v9  ;;  %v1873_v2 = vsel %vm1869_vm9, %v1840_v42, %v1002_v58 }
  0x4e   : > { %v726_v32 = vrot.slane %v2577_v5, %v2281_v13  ;;  %v1877_v42 = vsel %vm1869_vm9, %v1844_v59, %v1018_v50  ;;  %v734_v36 = vrot.slane %v2577_v5, %v2285_v15  ;;  %v738_v59 = vrot.slane %v2577_v5, %v2289_v19 }
  0x4f   : > { %v375_v35 = vmul.f32 0.5714286, %v371_v4  ;;  %v280_v38 = vmul.f32 0.5714286, %v276_v48  ;;  %v1874_v4 = vsel %vm1869_vm9, %v1841_v44, %v1006_v22  ;;  %v1876_v63 = vsel %vm1869_vm9, %v1843_v57, %v1014_v16 }
  0x50   : > { %v2594_v44 = vsel %vm1803_vm1, %v562_v60, %v726_v32  ;;  %v205_v57 = vsub.f32 1.0, %v2577_v5  ;;  %v730_v22 = vrot.slane %v2577_v5, %v2283_v14  ;;  %v1158_v48 = vrot.slane %v2523_v10, %v2283_v14 }
  0x51   : > { %v379_v23 = vadd.f32 %v375_v35, %v351_v41  ;;  %v566_v41 = vrot.slane %v2381_v40, %v2283_v14  ;;  %3433 = vst [vmem:[#allocation11_spill] sm:$0xff] %v2594_v44  ;;  %v284_v56 = vadd.f32 %v280_v38, %v256_v9  ;;  %v1154_v9 = vrot.slane %v2523_v10, %v2281_v13 }
  0x52   : > { %v1162_v50 = vrot.slane %v2523_v10, %v2285_v15  ;;  %v1166_v38 = vrot.slane %v2523_v10, %v2289_v19  ;;  %v1170_v32 = vrot.slane %v2523_v10, %v2291_v20  ;;  %v1178_v35 = vrot.slane %v2523_v10, %v2297_v26 }
  0x53   : > { %vm383_vm14 = vcmp.ge.f32.partialorder %v379_v23, 0.75  ;;  %vm288_vm0 = vcmp.ge.f32.partialorder %v284_v56, 0.75  ;;  %v209_v60 = vmul.f32 %v205_v57, %v189_v21  ;;  %v2633_v30 = vsel %vm1803_vm1, %v566_v41, %v730_v22 }
  0x54   : > { %v2590_v54 = vsel %vm383_vm14, 1.0, %v3432_v39  ;;  %v2630_v58 = vsel %vm288_vm0, 1.0, %v3432_v39  ;;  %v2636_v46 = vsel %vm1803_vm1, %v570_v45, %v734_v36  ;;  %v2639_v44 = vsel %vm1803_vm1, %v574_v55, %v738_v59 }
  0x55   : > { %v395_v11 = vsub.f32 1.0, %v2590_v54  ;;  %v1905_v21 = vsel %vm1902_vm12, %v1872_v3, %v1162_v50  ;;  %v1906_v57 = vsel %vm1902_vm12, %v1873_v2, %v1166_v38  ;;  %v1907_v41 = vsel %vm1902_vm12, %v1874_v4, %v1170_v32 }
  0x56   : > { %v1182_v45 = vrot.slane %v2523_v10, %v2299_v28  ;;  %v1318_v55 = vrot.slane %v2590_v54, %v2281_v13  ;;  %v1330_v3 = vrot.slane %v2590_v54, %v2289_v19  ;;  %v1334_v4 = vrot.slane %v2590_v54, %v2291_v20 }
  0x57   : > { %v399_v16 = vmul.f32 %v395_v11, %v379_v23  ;;  %v1174_v23 = vrot.slane %v2523_v10, %v2295_v25  ;;  %v3434_v11 = vor.u32 %v2428_v18, %v2425_v17  ;;  %v1903_v17 = vsel %vm1902_vm12, %v1870_v43, %v1154_v9 }
  0x58   : > { %v1904_v18 = vsel %vm1902_vm12, %v1871_v47, %v1158_v48  ;;  %v1326_v47 = vrot.slane %v2590_v54, %v2285_v15  ;;  %v3435_v10 = vor.u32 %v2489_v6, %v2480_v0  ;;  %v1338_v36 = vrot.slane %v2590_v54, %v2295_v25 }
  0x59   : > { %v419_v1 = vsub.f32 %v3434_v11, %v399_v16  ;;  %v300_v11 = vsub.f32 1.0, %v2630_v58  ;;  %v1908_v2 = vsel %vm1902_vm12, %v1875_v8, %v1174_v23  ;;  %v1346_v8 = vrot.slane %v2590_v54, %v2299_v28 }
  0x5a   : > { %v1910_v0 = vsel %vm1902_vm12, %v1877_v42, %v1182_v45  ;;  %v1936_v9 = vsel %vm1935_vm15, %v1903_v17, %v1318_v55  ;;  %v3436_v50 = vor.u32 %v2449_v33, %v2446_v31  ;;  %v1938_v32 = vsel %vm1935_vm15, %v1905_v21, %v1326_v47 }
  0x5b   : > { %v423_v62 = vmul.f32 0.5714286, %v419_v1  ;;  %v1322_v1 = vrot.slane %v2590_v54, %v2283_v14  ;;  %v304_v43 = vmul.f32 %v300_v11, %v284_v56  ;;  %v1342_v56 = vrot.slane %v2590_v54, %v2297_v26 }
  0x5c   : > { %v1939_v23 = vsel %vm1935_vm15, %v1906_v57, %v1330_v3  ;;  %v1940_v42 = vsel %vm1935_vm15, %v1907_v41, %v1334_v4  ;;  %v1943_v21 = vsel %vm1935_vm15, %v1910_v0, %v1346_v8  ;;  %v3437_v57 = vor.u32 %v2437_v27, %v2434_v24 }
  0x5d   : > { %v427_v22 = vadd.f32 %v423_v62, %v399_v16  ;;  %v229_v62 = vsub.f32 %v3435_v10, %v209_v60  ;;  %v1909_v16 = vsel %vm1902_vm12, %v1876_v63, %v1178_v35  ;;  %v1937_v48 = vsel %vm1935_vm15, %v1904_v18, %v1322_v1 }
  0x5e   : > { %v324_v38 = vsub.f32 %v3436_v50, %v304_v43  ;;  %v742_v63 = vrot.slane %v2577_v5, %v2291_v20  ;;  %v1941_v35 = vsel %vm1935_vm15, %v1908_v2, %v1338_v36  ;;  %v1942_v17 = vsel %vm1935_vm15, %v1909_v16, %v1342_v56 }
  0x5f   : > { %vm431_vm3 = vcmp.ge.f32.partialorder %v427_v22, 0.75  ;;  %v233_v11 = vmul.f32 0.5714286, %v229_v62  ;;  %v3438_v3 = vrot.slane %v2381_v40, %v2291_v20  ;;  %v746_v10 = vrot.slane %v2577_v5, %v2295_v25 }
  0x60   : > { %v2209_v59 = vsel %vm431_vm3, 1.0, %v3432_v39  ;;  %v328_v55 = vmul.f32 0.5714286, %v324_v38  ;;  %v750_v4 = vrot.slane %v2577_v5, %v2297_v26  ;;  %v3439_v56 = vrot.slane %v2381_v40, %v2295_v25 }
  0x61   : > { %v443_v6 = vsub.f32 1.0, %v2209_v59  ;;  %v1482_v18 = vrot.slane %v2209_v59, %v2281_v13  ;;  %v1486_v31 = vrot.slane %v2209_v59, %v2283_v14  ;;  %v1490_v33 = vrot.slane %v2209_v59, %v2285_v15 }
  0x62   : > { %v1498_v41 = vrot.slane %v2209_v59, %v2291_v20  ;;  %v1502_v1 = vrot.slane %v2209_v59, %v2295_v25  ;;  %v2694_v47 = vadd.f32 %v233_v11, %v209_v60  ;;  %v2700_v2 = vsel %vm1803_vm1, %v3438_v3, %v742_v63  ;;  %v2766_v3 = vld [vmem:[%s2271_s12 + $0x87] ss:$8 sm:$0xf] }
  0x63   : > { %v447_v54 = vmul.f32 %v443_v6, %v427_v22  ;;  %v1494_v22 = vrot.slane %v2209_v59, %v2289_v19  ;;  %v1506_v27 = vrot.slane %v2209_v59, %v2297_v26  ;;  %v332_v62 = vadd.f32 %v328_v55, %v304_v43 }
  0x64   : > { %v1969_v36 = vsel %vm1968_vm2, %v1936_v9, %v1482_v18  ;;  %v1510_v60 = vrot.slane %v2209_v59, %v2299_v28  ;;  %vm241_vm5 = vcmp.ge.f32.partialorder %v2694_v47, 0.75  ;;  %v2714_v16 = vsel %vm1803_vm1, %v3439_v56, %v746_v10  ;;  %v2769_v10 = vld [vmem:[%s2271_s12 + $0x87] ss:$8 sm:$0xf0] }
  0x65   : > { %v467_v45 = vsub.f32 %v3437_v57, %v447_v54  ;;  %vm336_vm6 = vcmp.ge.f32.partialorder %v332_v62, 0.75  ;;  %v2717_v43 = vsel %vm241_vm5, 1.0, %v3432_v39  ;;  %v3440_v0 = vrot.slane %v2381_v40, %v2297_v26  ;;  %v2756_v57 = vld [vmem:[%s2271_s12 + $0x86] ss:$8 sm:$0xf] }
  0x66   : > { %v1970_v6 = vsel %vm1968_vm2, %v1937_v48, %v1486_v31  ;;  %v1971_v9 = vsel %vm1968_vm2, %v1938_v32, %v1490_v33  ;;  %v1972_v50 = vsel %vm1968_vm2, %v1939_v23, %v1494_v22  ;;  %v2729_v38 = vsel %vm336_vm6, 1.0, %v3432_v39  ;;  %v2739_v31 = vld [vmem:[%s2271_s12 + $0x85] ss:$8 sm:$0xf] }
  0x67   : > { %v471_v24 = vmul.f32 0.5714286, %v467_v45  ;;  %v2723_v59 = vsel %vm1803_vm1, %v3440_v0, %v750_v4  ;;  %v1973_v11 = vsel %vm1968_vm2, %v1940_v42, %v1498_v41  ;;  %v1974_v63 = vsel %vm1968_vm2, %v1941_v35, %v1502_v1  ;;  %v2742_v33 = vld [vmem:[%s2271_s12 + $0x85] ss:$8 sm:$0xf0] }
  0x68   : > { %v1976_v48 = vsel %vm1968_vm2, %v1943_v21, %v1510_v60  ;;  %v348_v32 = vsub.f32 1.0, %v2729_v38  ;;  %v253_v23 = vsub.f32 1.0, %v2717_v43  ;;  %v2759_v45 = vld [vmem:[%s2271_s12 + $0x86] ss:$8 sm:$0xf0] }
  0x69   : > { %v475_v8 = vadd.f32 %v471_v24, %v447_v54  ;;  %v1975_v54 = vsel %vm1968_vm2, %v1942_v17, %v1506_v27  ;;  %v2135_v56 = vld [vmem:[%s2271_s12 + $0xc0] ss:$8 sm:$0xf] }
  0x6b   : > { %vm479_vm7 = vcmp.ge.f32.partialorder %v475_v8, 0.75  ;;  %v2136_v8 = vld [vmem:[%s2271_s12 + $0xc0] ss:$8 sm:$0xf0] }
  0x6c   : > { %v2221_v18 = vsel %vm479_vm7, 1.0, %v3432_v39 }
  0x6d   : > { %v1646_v42 = vrot.slane %v2221_v18, %v2281_v13  ;;  %v1650_v35 = vrot.slane %v2221_v18, %v2283_v14  ;;  %v1654_v17 = vrot.slane %v2221_v18, %v2285_v15  ;;  %v1658_v21 = vrot.slane %v2221_v18, %v2289_v19 }
  0x6e   : > { %v1662_v22 = vrot.slane %v2221_v18, %v2291_v20  ;;  %v1666_v41 = vrot.slane %v2221_v18, %v2295_v25  ;;  %v1670_v55 = vrot.slane %v2221_v18, %v2297_v26  ;;  %v1674_v1 = vrot.slane %v2221_v18, %v2299_v28  ;;  %v2786_v18 = vld [vmem:[%s2271_s12 + $0xc1] ss:$8 sm:$0xf] }
  0x6f   : > { %v2002_v24 = vsel %vm2001_vm4, %v1969_v36, %v1646_v42  ;;  %v2003_v27 = vsel %vm2001_vm4, %v1970_v6, %v1650_v35  ;;  %v2004_v4 = vsel %vm2001_vm4, %v1971_v9, %v1654_v17  ;;  %v2005_v60 = vsel %vm2001_vm4, %v1972_v50, %v1658_v21  ;;  %v2789_v50 = vld [vmem:[%s2271_s12 + $0xc1] ss:$8 sm:$0xf0] }
  0x70   : > { %2034 = vst [vmem:[%s2749_s15] sm:$0xff] %v2002_v24  ;;  %2035 = vst [vmem:[%s2749_s15 + $0x8] sm:$0xff] %v2003_v27  ;;  %v2006_v36 = vsel %vm2001_vm4, %v1973_v11, %v1662_v22  ;;  %v2007_v0 = vsel %vm2001_vm4, %v1974_v63, %v1666_v41  ;;  %v2008_v6 = vsel %vm2001_vm4, %v1975_v54, %v1670_v55  ;;  %v2802_v54 = vld [vmem:[%s2271_s12 + $0xc2] ss:$8 sm:$0xf] }
  0x71   : > { %2036 = vst [vmem:[%s2749_s15 + $0x10] sm:$0xff] %v2004_v4  ;;  %2037 = vst [vmem:[%s2749_s15 + $0x18] sm:$0xff] %v2005_v60  ;;  %v2009_v9 = vsel %vm2001_vm4, %v1976_v48, %v1674_v1  ;;  %v352_v42 = vmul.f32 %v348_v32, %v332_v62  ;;  %v858_v35 = vrot.slane %v2506_v29, %v2281_v13  ;;  %v2805_v48 = vld [vmem:[%s2271_s12 + $0xc2] ss:$8 sm:$0xf0] }
  0x72   : > { %2038 = vst [vmem:[%s2749_s15 + $0x20] sm:$0xff] %v2006_v36  ;;  %2039 = vst [vmem:[%s2749_s15 + $0x28] sm:$0xff] %v2007_v0  ;;  %v862_v17 = vrot.slane %v2506_v29, %v2283_v14  ;;  %v866_v21 = vrot.slane %v2506_v29, %v2285_v15  ;;  %v134_v32 = vor.u32 %v2136_v8, %v2135_v56 }
  0x73   : > { %2040 = vst [vmem:[%s2749_s15 + $0x30] sm:$0xff] %v2008_v6  ;;  %2041 = vst [vmem:[%s2749_s15 + $0x38] sm:$0xff] %v2009_v9  ;;  %v3441_v22 = vor.u32 %v2455_v37, %v2452_v34  ;;  %v870_v55 = vrot.slane %v2506_v29, %v2289_v19  ;;  %v257_v1 = vmul.f32 %v253_v23, %v2694_v47 }
  0x74   : > { %v590_v24 = vrot.slane %v2381_v40, %v2299_v28  ;;  %v874_v27 = vrot.slane %v2506_v29, %v2291_v20  ;;  %v754_v4 = vrot.slane %v2577_v5, %v2299_v28  ;;  %v178_v60 = vor.u32 %v2789_v50, %v2786_v18  ;;  %v3454_v18 = vld [vmem:[#allocation6_spill] sm:$0xff] }
  0x75   : > { %v372_v41 = vsub.f32 %v3441_v22, %v352_v42  ;;  %v1845_v56 = vsel %vm1836_vm8, %v2390_v49, %v858_v35  ;;  %v878_v47 = vrot.slane %v2506_v29, %v2295_v25  ;;  %v3442_v40 = vor.u32 %v2499_v12, %v2492_v7  ;;  %v3444_v22 = vld [vmem:[#allocation5_spill] sm:$0xff] }
  0x76   : > { %v1846_v5 = vsel %vm1836_vm8, %v2394_v51, %v862_v17  ;;  %v1847_v8 = vsel %vm1836_vm8, %v2397_v52, %v866_v21  ;;  %v882_v36 = vrot.slane %v2506_v29, %v2297_v26  ;;  %v138_v0 = vmul.f32 0.5714286, %v134_v32 }
  0x77   : > { %v376_v37 = vmul.f32 0.5714286, %v372_v41  ;;  %v277_v23 = vsub.f32 %v3442_v40, %v257_v1  ;;  %v1848_v49 = vsel %vm1836_vm8, %v2400_v53, %v870_v55  ;;  %v886_v9 = vrot.slane %v2506_v29, %v2299_v28  ;;  %v3445_v40 = vld [vmem:[#allocation8_spill] sm:$0xff] }
  0x78   : > { %v1022_v7 = vrot.slane %v2630_v58, %v2281_v13  ;;  %v1026_v51 = vrot.slane %v2630_v58, %v2283_v14  ;;  %v1030_v52 = vrot.slane %v2630_v58, %v2285_v15  ;;  %v2853_v12 = vsel %vm1803_vm1, %v590_v24, %v754_v4 }
  0x79   : > { %v380_v6 = vadd.f32 %v376_v37, %v352_v42  ;;  %v281_v35 = vmul.f32 0.5714286, %v277_v23  ;;  %v1034_v53 = vrot.slane %v2630_v58, %v2289_v19  ;;  %v1849_v29 = vsel %vm1836_vm8, %v2403_v61, %v874_v27  ;;  %v3443_v42 = vld [vmem:[#allocation2_spill] sm:$0xff] }
  0x7a   : > { %v1850_v17 = vsel %vm1836_vm8, %v3443_v42, %v878_v47  ;;  %v1038_v32 = vrot.slane %v2630_v58, %v2291_v20  ;;  %v1851_v41 = vsel %vm1836_vm8, %v3444_v22, %v882_v36  ;;  %vm146_vm11 = vcmp.ge.f32.partialorder %v138_v0, 0.75 }
  0x7b   : > { %vm384_vm10 = vcmp.ge.f32.partialorder %v380_v6, 0.75  ;;  %v1042_v24 = vrot.slane %v2630_v58, %v2295_v25  ;;  %v1046_v61 = vrot.slane %v2630_v58, %v2297_v26  ;;  %v285_v27 = vadd.f32 %v281_v35, %v257_v1 }
  0x7c   : > { %v2862_v21 = vsel %vm384_vm10, 1.0, %v3432_v39  ;;  %v1878_v4 = vsel %vm1869_vm9, %v1845_v56, %v1022_v7  ;;  %v1879_v37 = vsel %vm1869_vm9, %v1846_v5, %v1026_v51  ;;  %v1880_v47 = vsel %vm1869_vm9, %v1847_v8, %v1030_v52 }
  0x7d   : > { %v396_v55 = vsub.f32 1.0, %v2862_v21  ;;  %v1852_v23 = vsel %vm1836_vm8, %v3445_v40, %v886_v9  ;;  %v1881_v42 = vsel %vm1869_vm9, %v1848_v49, %v1034_v53  ;;  %v1050_v22 = vrot.slane %v2630_v58, %v2299_v28  ;;  %v3447_v9 = vld [vmem:[#allocation3_spill] sm:$0xff] }
  0x7e   : > { %v2882_v62 = vsel %vm146_vm11, 1.0, %v3432_v39  ;;  %v1186_v1 = vrot.slane %v2729_v38, %v2281_v13  ;;  %v1190_v56 = vrot.slane %v2729_v38, %v2283_v14  ;;  %v1194_v5 = vrot.slane %v2729_v38, %v2285_v15 }
  0x7f   : > { %v400_v36 = vmul.f32 %v396_v55, %v380_v6  ;;  %v1882_v8 = vsel %vm1869_vm9, %v1849_v29, %v1038_v32  ;;  %v3446_v6 = vld [vmem:[#allocation4_spill] sm:$0xff]  ;;  %v1883_v58 = vsel %vm1869_vm9, %v1850_v17, %v1042_v24  ;;  %v1884_v7 = vsel %vm1869_vm9, %v1851_v41, %v1046_v61 }
  0x80   : > { %v3448_v49 = vor.u32 %v3446_v6, %v3447_v9  ;;  %vm289_vm13 = vcmp.ge.f32.partialorder %v285_v27, 0.75  ;;  %v1198_v51 = vrot.slane %v2729_v38, %v2289_v19  ;;  %v1202_v52 = vrot.slane %v2729_v38, %v2291_v20 }
  0x81   : > { %v2901_v53 = vsel %vm289_vm13, 1.0, %v3432_v39  ;;  %v158_v29 = vsub.f32 1.0, %v2882_v62  ;;  %v1885_v55 = vsel %vm1869_vm9, %v1852_v23, %v1050_v22  ;;  %v890_v17 = vrot.slane %v2717_v43, %v2281_v13 }
  0x82   : > { %v420_v35 = vsub.f32 %v3448_v49, %v400_v36  ;;  %v301_v40 = vsub.f32 1.0, %v2901_v53  ;;  %v1911_v41 = vsel %vm1902_vm12, %v1878_v4, %v1186_v1  ;;  %v1912_v24 = vsel %vm1902_vm12, %v1879_v37, %v1190_v56  ;;  %v3449_v1 = vld [vmem:[#allocation11_spill] sm:$0xff] }
  0x83   : > { %v1913_v61 = vsel %vm1902_vm12, %v1880_v47, %v1194_v5  ;;  %v1206_v49 = vrot.slane %v2729_v38, %v2295_v25  ;;  %v1210_v23 = vrot.slane %v2729_v38, %v2297_v26  ;;  %v1915_v63 = vsel %vm1902_vm12, %v1882_v8, %v1202_v52  ;;  %v3450_v52 = vld [vmem:[#allocation10_spill] sm:$0xff] }
  0x84   : > { %v424_v32 = vmul.f32 0.5714286, %v420_v35  ;;  %v305_v22 = vmul.f32 %v301_v40, %v285_v27  ;;  %v1914_v35 = vsel %vm1902_vm12, %v1881_v42, %v1198_v51  ;;  %v1214_v4 = vrot.slane %v2729_v38, %v2299_v28 }
  0x85   : > { %v162_v37 = vmul.f32 %v158_v29, %v138_v0  ;;  %v1350_v47 = vrot.slane %v2862_v21, %v2281_v13  ;;  %v2927_v56 = vsel %vm1836_vm8, %v3449_v1, %v890_v17  ;;  %v1358_v42 = vrot.slane %v2862_v21, %v2285_v15  ;;  %v3451_v29 = vld [vmem:[#allocation9_spill] sm:$0xff] }
  0x86   : > { %v428_v9 = vadd.f32 %v424_v32, %v400_v36  ;;  %v1354_v36 = vrot.slane %v2862_v21, %v2283_v14  ;;  %v1362_v38 = vrot.slane %v2862_v21, %v2289_v19  ;;  %v1366_v0 = vrot.slane %v2862_v21, %v2291_v20 }
  0x87   : > { %v1916_v8 = vsel %vm1902_vm12, %v1883_v58, %v1206_v49  ;;  %v1917_v51 = vsel %vm1902_vm12, %v1884_v7, %v1210_v23  ;;  %v3452_v32 = vor.u32 %v3450_v52, %v3451_v29  ;;  %v1370_v17 = vrot.slane %v2862_v21, %v2295_v25  ;;  %v3453_v29 = vld [vmem:[#allocation7_spill] sm:$0xff] }
  0x88   : > { %vm432_vm14 = vcmp.ge.f32.partialorder %v428_v9, 0.75  ;;  %v1918_v1 = vsel %vm1902_vm12, %v1885_v55, %v1214_v4  ;;  %v182_v11 = vsub.f32 %v178_v60, %v162_v37  ;;  %v1944_v58 = vsel %vm1935_vm15, %v1911_v41, %v1350_v47 }
  0x89   : > { %v2210_v27 = vsel %vm432_vm14, 1.0, %v3432_v39  ;;  %v325_v40 = vsub.f32 %v3452_v32, %v305_v22  ;;  %v1945_v7 = vsel %vm1935_vm15, %v1912_v24, %v1354_v36  ;;  %v1374_v49 = vrot.slane %v2862_v21, %v2297_v26 }
  0x8a   : > { %v444_v5 = vsub.f32 1.0, %v2210_v27  ;;  %v1946_v23 = vsel %vm1935_vm15, %v1913_v61, %v1358_v42  ;;  %v1947_v52 = vsel %vm1935_vm15, %v1914_v35, %v1362_v38  ;;  %v1948_v55 = vsel %vm1935_vm15, %v1915_v63, %v1366_v0 }
  0x8b   : > { %v1378_v4 = vrot.slane %v2862_v21, %v2299_v28  ;;  %v3455_v50 = vor.u32 %v3453_v29, %v3454_v18  ;;  %v1514_v41 = vrot.slane %v2210_v27, %v2281_v13  ;;  %v1518_v24 = vrot.slane %v2210_v27, %v2283_v14 }
  0x8c   : > { %v448_v6 = vmul.f32 %v444_v5, %v428_v9  ;;  %v329_v9 = vmul.f32 0.5714286, %v325_v40  ;;  %v1522_v47 = vrot.slane %v2210_v27, %v2285_v15  ;;  %v1526_v61 = vrot.slane %v2210_v27, %v2289_v19 }
  0x8d   : > { %v1530_v35 = vrot.slane %v2210_v27, %v2291_v20  ;;  %v186_v36 = vmul.f32 0.5714286, %v182_v11  ;;  %v1534_v42 = vrot.slane %v2210_v27, %v2295_v25  ;;  %v1538_v21 = vrot.slane %v2210_v27, %v2297_v26 }
  0x8e   : > { %v468_v60 = vsub.f32 %v3455_v50, %v448_v6  ;;  %v333_v38 = vadd.f32 %v329_v9, %v305_v22  ;;  %v1949_v0 = vsel %vm1935_vm15, %v1916_v8, %v1370_v17  ;;  %v1950_v5 = vsel %vm1935_vm15, %v1917_v51, %v1374_v49 }
  0x8f   : > { %v1542_v32 = vrot.slane %v2210_v27, %v2299_v28  ;;  %v190_v40 = vadd.f32 %v186_v36, %v162_v37  ;;  %v1977_v18 = vsel %vm1968_vm2, %v1944_v58, %v1514_v41  ;;  %v1951_v50 = vsel %vm1935_vm15, %v1918_v1, %v1378_v4 }
  0x90   : > { %v472_v63 = vmul.f32 0.5714286, %v468_v60  ;;  %vm337_vm0 = vcmp.ge.f32.partialorder %v333_v38, 0.75  ;;  %v1978_v11 = vsel %vm1968_vm2, %v1945_v7, %v1518_v24  ;;  %v1979_v60 = vsel %vm1968_vm2, %v1946_v23, %v1522_v47 }
  0x91   : > { %v1980_v34 = vsel %vm1968_vm2, %v1947_v52, %v1526_v61  ;;  %v2977_v22 = vsel %vm337_vm0, 1.0, %v3432_v39  ;;  %v1981_v8 = vsel %vm1968_vm2, %v1948_v55, %v1530_v35  ;;  %v1982_v37 = vsel %vm1968_vm2, %v1949_v0, %v1534_v42 }
  0x92   : > { %v476_v29 = vadd.f32 %v472_v63, %v448_v6  ;;  %v1983_v6 = vsel %vm1968_vm2, %v1950_v5, %v1538_v21  ;;  %v1984_v51 = vsel %vm1968_vm2, %v1951_v50, %v1542_v32  ;;  %v349_v17 = vsub.f32 1.0, %v2977_v22 }
  0x93   : > { %vm194_vm5 = vcmp.ge.f32.partialorder %v190_v40, 0.75  ;;  %v3457_v0 = vrot.slane %v2717_v43, %v2285_v15  ;;  %v902_v32 = vrot.slane %v2717_v43, %v2289_v19  ;;  %v3458_v50 = vor.u32 %v2742_v33, %v2739_v31 }
  0x94   : > { %vm480_vm3 = vcmp.ge.f32.partialorder %v476_v29, 0.75  ;;  %v353_v42 = vmul.f32 %v349_v17, %v333_v38  ;;  %v906_v38 = vrot.slane %v2717_v43, %v2291_v20  ;;  %v910_v29 = vrot.slane %v2717_v43, %v2295_v25 }
  0x95   : > { %v2222_v27 = vsel %vm480_vm3, 1.0, %v3432_v39  ;;  %v3021_v5 = vsel %vm1836_vm8, %v2636_v46, %v3457_v0 }
  0x96   : > { %v1678_v1 = vrot.slane %v2222_v27, %v2281_v13  ;;  %v1682_v58 = vrot.slane %v2222_v27, %v2283_v14  ;;  %v1686_v7 = vrot.slane %v2222_v27, %v2285_v15  ;;  %v1690_v49 = vrot.slane %v2222_v27, %v2289_v19 }
  0x97   : > { %v1694_v23 = vrot.slane %v2222_v27, %v2291_v20  ;;  %v1698_v52 = vrot.slane %v2222_v27, %v2295_v25  ;;  %v1702_v55 = vrot.slane %v2222_v27, %v2297_v26  ;;  %v1706_v4 = vrot.slane %v2222_v27, %v2299_v28 }
  0x98   : > { %v2010_v41 = vsel %vm2001_vm4, %v1977_v18, %v1678_v1  ;;  %v2011_v24 = vsel %vm2001_vm4, %v1978_v11, %v1682_v58  ;;  %v2012_v9 = vsel %vm2001_vm4, %v1979_v60, %v1686_v7  ;;  %v2013_v47 = vsel %vm2001_vm4, %v1980_v34, %v1690_v49 }
  0x99   : > { %2042 = vst [vmem:[%s2749_s15 + $0x40] sm:$0xff] %v2010_v41  ;;  %2043 = vst [vmem:[%s2749_s15 + $0x48] sm:$0xff] %v2011_v24  ;;  %v2014_v61 = vsel %vm2001_vm4, %v1981_v8, %v1694_v23  ;;  %v2015_v35 = vsel %vm2001_vm4, %v1982_v37, %v1698_v52  ;;  %v2016_v36 = vsel %vm2001_vm4, %v1983_v6, %v1702_v55  ;;  %v2152_v11 = vsel %vm194_vm5, 1.0, %v3432_v39 }
  0x9a   : > { %2044 = vst [vmem:[%s2749_s15 + $0x50] sm:$0xff] %v2012_v9  ;;  %2045 = vst [vmem:[%s2749_s15 + $0x58] sm:$0xff] %v2013_v47  ;;  %v2017_v63 = vsel %vm2001_vm4, %v1984_v51, %v1706_v4  ;;  %v3456_v34 = vrot.slane %v2717_v43, %v2283_v14  ;;  %v598_v18 = vrot.slane %v2882_v62, %v2283_v14  ;;  %v206_v37 = vsub.f32 1.0, %v2152_v11 }
  0x9b   : > { %2046 = vst [vmem:[%s2749_s15 + $0x60] sm:$0xff] %v2014_v61  ;;  %2047 = vst [vmem:[%s2749_s15 + $0x68] sm:$0xff] %v2015_v35  ;;  %v373_v46 = vsub.f32 %v3458_v50, %v353_v42  ;;  %v602_v60 = vrot.slane %v2882_v62, %v2285_v15  ;;  %v606_v8 = vrot.slane %v2882_v62, %v2289_v19 }
  0x9c   : > { %2048 = vst [vmem:[%s2749_s15 + $0x70] sm:$0xff] %v2016_v36  ;;  %2049 = vst [vmem:[%s2749_s15 + $0x78] sm:$0xff] %v2017_v63  ;;  %v3014_v21 = vsel %vm1836_vm8, %v2633_v30, %v3456_v34  ;;  %v594_v30 = vrot.slane %v2882_v62, %v2281_v13  ;;  %v758_v6 = vrot.slane %v2152_v11, %v2281_v13  ;;  %v3088_v34 = vld [vmem:[%s2271_s12 + $0xc3] ss:$8 sm:$0xf] }
  0x9d   : > { %v610_v27 = vrot.slane %v2882_v62, %v2291_v20  ;;  %v614_v51 = vrot.slane %v2882_v62, %v2295_v25  ;;  %v377_v31 = vmul.f32 0.5714286, %v373_v46  ;;  %v762_v33 = vrot.slane %v2152_v11, %v2283_v14 }
  0x9e   : > { %v766_v17 = vrot.slane %v2152_v11, %v2285_v15  ;;  %v618_v1 = vrot.slane %v2882_v62, %v2297_v26  ;;  %v210_v58 = vmul.f32 %v206_v37, %v190_v40  ;;  %v3052_v7 = vsel %vm1803_vm1, %v594_v30, %v758_v6 }
  0x9f   : > { %v770_v49 = vrot.slane %v2152_v11, %v2289_v19  ;;  %v774_v23 = vrot.slane %v2152_v11, %v2291_v20  ;;  %v381_v52 = vadd.f32 %v377_v31, %v353_v42  ;;  %v3057_v55 = vsel %vm1803_vm1, %v598_v18, %v762_v33  ;;  %v3095_v18 = vld [vmem:[%s2271_s12 + $0xc3] ss:$8 sm:$0xf0] }
  0xa0   : > { %v3060_v4 = vsel %vm1803_vm1, %v602_v60, %v766_v17  ;;  %v778_v41 = vrot.slane %v2152_v11, %v2295_v25  ;;  %v3459_v40 = vor.u32 %v2805_v48, %v2802_v54  ;;  %v782_v61 = vrot.slane %v2152_v11, %v2297_v26 }
  0xa1   : > { %v3067_v9 = vsel %vm1803_vm1, %v606_v8, %v770_v49  ;;  %v3070_v47 = vsel %vm1803_vm1, %v610_v27, %v774_v23  ;;  %vm385_vm6 = vcmp.ge.f32.partialorder %v381_v52, 0.75  ;;  %v914_v35 = vrot.slane %v2717_v43, %v2297_v26 }
  0xa2   : > { %v230_v24 = vsub.f32 %v3459_v40, %v210_v58  ;;  %v918_v36 = vrot.slane %v2717_v43, %v2299_v28  ;;  %v3078_v63 = vsel %vm1803_vm1, %v614_v51, %v778_v41  ;;  %v3081_v54 = vsel %vm385_vm6, 1.0, %v3432_v39 }
  0xa3   : > { %v1856_v48 = vsel %vm1836_vm8, %v2639_v44, %v902_v32  ;;  %v1857_v42 = vsel %vm1836_vm8, %v2700_v2, %v906_v38  ;;  %v3091_v0 = vsel %vm1803_vm1, %v618_v1, %v782_v61  ;;  %v397_v30 = vsub.f32 1.0, %v3081_v54 }
  0xa4   : > { %v234_v43 = vmul.f32 0.5714286, %v230_v24  ;;  %v622_v50 = vrot.slane %v2882_v62, %v2299_v28  ;;  %v786_v46 = vrot.slane %v2152_v11, %v2299_v28  ;;  %v1054_v44 = vrot.slane %v2901_v53, %v2281_v13 }
  0xa5   : > { %v1058_v2 = vrot.slane %v2901_v53, %v2283_v14  ;;  %v1062_v32 = vrot.slane %v2901_v53, %v2285_v15  ;;  %v1066_v38 = vrot.slane %v2901_v53, %v2289_v19  ;;  %v401_v60 = vmul.f32 %v397_v30, %v381_v52 }
  0xa6   : > { %v1858_v8 = vsel %vm1836_vm8, %v2714_v16, %v910_v29  ;;  %v1859_v62 = vsel %vm1836_vm8, %v2723_v59, %v914_v35  ;;  %v1860_v11 = vsel %vm1836_vm8, %v2853_v12, %v918_v36  ;;  %v1070_v37 = vrot.slane %v2901_v53, %v2291_v20 }
  0xa7   : > { %v1074_v6 = vrot.slane %v2901_v53, %v2295_v25  ;;  %v1078_v27 = vrot.slane %v2901_v53, %v2297_v26  ;;  %v274_v51 = vor.u32 %v3095_v18, %v3088_v34  ;;  %v3460_v16 = vor.u32 %v2759_v45, %v2756_v57 }
  0xa8   : > { %v1082_v59 = vrot.slane %v2901_v53, %v2299_v28  ;;  %v238_v12 = vadd.f32 %v234_v43, %v210_v58  ;;  %v3128_v31 = vsel %vm1803_vm1, %v622_v50, %v786_v46  ;;  %v1886_v33 = vsel %vm1869_vm9, %v2927_v56, %v1054_v44 }
  0xa9   : > { %v421_v29 = vsub.f32 %v3460_v16, %v401_v60  ;;  %v1887_v17 = vsel %vm1869_vm9, %v3014_v21, %v1058_v2  ;;  %v1888_v1 = vsel %vm1869_vm9, %v3021_v5, %v1062_v32  ;;  %v1889_v49 = vsel %vm1869_vm9, %v1856_v48, %v1066_v38 }
  0xaa   : > { %v1218_v45 = vrot.slane %v2977_v22, %v2281_v13  ;;  %v1222_v53 = vrot.slane %v2977_v22, %v2283_v14  ;;  %vm242_vm1 = vcmp.ge.f32.partialorder %v238_v12, 0.75  ;;  %v1890_v58 = vsel %vm1869_vm9, %v1857_v42, %v1070_v37 }
  0xab   : > { %v425_v57 = vmul.f32 0.5714286, %v421_v29  ;;  %v1891_v56 = vsel %vm1869_vm9, %v1858_v8, %v1074_v6  ;;  %v1892_v23 = vsel %vm1869_vm9, %v1859_v62, %v1078_v27  ;;  %v3145_v21 = vsel %vm242_vm1, 1.0, %v3432_v39 }
  0xac   : > { %v1226_v52 = vrot.slane %v2977_v22, %v2285_v15  ;;  %v1893_v41 = vsel %vm1869_vm9, %v1860_v11, %v1082_v59  ;;  %v254_v40 = vsub.f32 1.0, %v3145_v21  ;;  %v1230_v24 = vrot.slane %v2977_v22, %v2289_v19 }
  0xad   : > { %v429_v5 = vadd.f32 %v425_v57, %v401_v60  ;;  %v1234_v61 = vrot.slane %v2977_v22, %v2291_v20  ;;  %v1238_v35 = vrot.slane %v2977_v22, %v2295_v25  ;;  %v1242_v36 = vrot.slane %v2977_v22, %v2297_v26 }
  0xae   : > { %v1919_v48 = vsel %vm1902_vm12, %v1886_v33, %v1218_v45  ;;  %v1920_v42 = vsel %vm1902_vm12, %v1887_v17, %v1222_v53  ;;  %v1246_v34 = vrot.slane %v2977_v22, %v2299_v28  ;;  %v1382_v43 = vrot.slane %v3081_v54, %v2281_v13 }
  0xaf   : > { %vm433_vm7 = vcmp.ge.f32.partialorder %v429_v5, 0.75  ;;  %v1386_v18 = vrot.slane %v3081_v54, %v2283_v14  ;;  %v1390_v50 = vrot.slane %v3081_v54, %v2285_v15  ;;  %v1921_v44 = vsel %vm1902_vm12, %v1888_v1, %v1226_v52 }
  0xb0   : > { %v2211_v30 = vsel %vm433_vm7, 1.0, %v3432_v39  ;;  %v1394_v2 = vrot.slane %v3081_v54, %v2289_v19  ;;  %v258_v32 = vmul.f32 %v254_v40, %v238_v12  ;;  %v1922_v22 = vsel %vm1902_vm12, %v1889_v49, %v1230_v24 }
  0xb1   : > { %v445_v46 = vsub.f32 1.0, %v2211_v30  ;;  %v1923_v38 = vsel %vm1902_vm12, %v1890_v58, %v1234_v61  ;;  %v1924_v60 = vsel %vm1902_vm12, %v1891_v56, %v1238_v35  ;;  %v1925_v8 = vsel %vm1902_vm12, %v1892_v23, %v1242_v36 }
  0xb2   : > { %v1398_v11 = vrot.slane %v3081_v54, %v2291_v20  ;;  %v1402_v37 = vrot.slane %v3081_v54, %v2295_v25  ;;  %v1926_v6 = vsel %vm1902_vm12, %v1893_v41, %v1246_v34  ;;  %v1952_v27 = vsel %vm1935_vm15, %v1919_v48, %v1382_v43 }
  0xb3   : > { %v449_v62 = vmul.f32 %v445_v46, %v429_v5  ;;  %v1953_v16 = vsel %vm1935_vm15, %v1920_v42, %v1386_v18  ;;  %v1954_v29 = vsel %vm1935_vm15, %v1921_v44, %v1390_v50  ;;  %v1406_v59 = vrot.slane %v3081_v54, %v2297_v26 }
  0xb4   : > { %v3461_v12 = vor.u32 %v2769_v10, %v2766_v3  ;;  %v1955_v17 = vsel %vm1935_vm15, %v1922_v22, %v1394_v2  ;;  %v1410_v1 = vrot.slane %v3081_v54, %v2299_v28  ;;  %v278_v49 = vsub.f32 %v274_v51, %v258_v32 }
  0xb5   : > { %v1546_v57 = vrot.slane %v2211_v30, %v2281_v13  ;;  %v1550_v45 = vrot.slane %v2211_v30, %v2283_v14  ;;  %v1554_v53 = vrot.slane %v2211_v30, %v2285_v15  ;;  %v1558_v58 = vrot.slane %v2211_v30, %v2289_v19 }
  0xb6   : > { %v469_v33 = vsub.f32 %v3461_v12, %v449_v62  ;;  %v1562_v23 = vrot.slane %v2211_v30, %v2291_v20  ;;  %v1566_v3 = vrot.slane %v2211_v30, %v2295_v25  ;;  %v282_v10 = vmul.f32 0.5714286, %v278_v49 }
  0xb7   : > { %v1956_v5 = vsel %vm1935_vm15, %v1923_v38, %v1398_v11  ;;  %v1957_v52 = vsel %vm1935_vm15, %v1924_v60, %v1402_v37  ;;  %v1570_v54 = vrot.slane %v2211_v30, %v2297_v26  ;;  %v1574_v51 = vrot.slane %v2211_v30, %v2299_v28  ;;  %v2183_v11 = vld [vmem:[%s2271_s12 + $0xc4] ss:$8 sm:$0xf] }
  0xb8   : > { %v473_v56 = vmul.f32 0.5714286, %v469_v33  ;;  %v1958_v40 = vsel %vm1935_vm15, %v1925_v8, %v1406_v59  ;;  %v1959_v24 = vsel %vm1935_vm15, %v1926_v6, %v1410_v1  ;;  %v286_v61 = vadd.f32 %v282_v10, %v258_v32  ;;  %v2184_v37 = vld [vmem:[%s2271_s12 + $0xc4] ss:$8 sm:$0xf0] }
  0xb9   : > { %v1985_v35 = vsel %vm1968_vm2, %v1952_v27, %v1546_v57  ;;  %v1986_v36 = vsel %vm1968_vm2, %v1953_v16, %v1550_v45  ;;  %v1987_v48 = vsel %vm1968_vm2, %v1954_v29, %v1554_v53  ;;  %v1988_v42 = vsel %vm1968_vm2, %v1955_v17, %v1558_v58 }
  0xba   : > { %v477_v41 = vadd.f32 %v473_v56, %v449_v62  ;;  %v1989_v34 = vsel %vm1968_vm2, %v1956_v5, %v1562_v23  ;;  %v1990_v30 = vsel %vm1968_vm2, %v1957_v52, %v1566_v3  ;;  %vm290_vm11 = vcmp.ge.f32.partialorder %v286_v61, 0.75  ;;  %v2195_v56 = vld [vmem:[%s2271_s12 + $0xc5] ss:$8 sm:$0xf] }
  0xbb   : > { %v1991_v18 = vsel %vm1968_vm2, %v1958_v40, %v1570_v54  ;;  %v1992_v50 = vsel %vm1968_vm2, %v1959_v24, %v1574_v51  ;;  %v3215_v46 = vsel %vm290_vm11, 1.0, %v3432_v39  ;;  %v322_v49 = vor.u32 %v2184_v37, %v2183_v11  ;;  %v2196_v23 = vld [vmem:[%s2271_s12 + $0xc5] ss:$8 sm:$0xf0] }
  0xbc   : > { %vm481_vm10 = vcmp.ge.f32.partialorder %v477_v41, 0.75  ;;  %v302_v1 = vsub.f32 1.0, %v3215_v46  ;;  %v370_v5 = vor.u32 %v2196_v23, %v2195_v56  ;;  %v2207_v40 = vld [vmem:[%s2271_s12 + $0xc6] ss:$8 sm:$0xf]  ;;  %v1094_v11 = vrot.slane %v3215_v46, %v2285_v15 }
  0xbd   : > { %v2223_v43 = vsel %vm481_vm10, 1.0, %v3432_v39  ;;  %v2208_v24 = vld [vmem:[%s2271_s12 + $0xc6] ss:$8 sm:$0xf0] }
  0xbe   : > { %v1710_v44 = vrot.slane %v2223_v43, %v2281_v13  ;;  %v1714_v2 = vrot.slane %v2223_v43, %v2283_v14  ;;  %v1718_v32 = vrot.slane %v2223_v43, %v2285_v15  ;;  %v1722_v22 = vrot.slane %v2223_v43, %v2289_v19 }
  0xbf   : > { %v1726_v38 = vrot.slane %v2223_v43, %v2291_v20  ;;  %v1730_v60 = vrot.slane %v2223_v43, %v2295_v25  ;;  %v1734_v8 = vrot.slane %v2223_v43, %v2297_v26  ;;  %v1738_v62 = vrot.slane %v2223_v43, %v2299_v28 }
  0xc0   : > { %v2018_v6 = vsel %vm2001_vm4, %v1985_v35, %v1710_v44  ;;  %v2019_v27 = vsel %vm2001_vm4, %v1986_v36, %v1714_v2  ;;  %v2020_v16 = vsel %vm2001_vm4, %v1987_v48, %v1718_v32  ;;  %v2021_v29 = vsel %vm2001_vm4, %v1988_v42, %v1722_v22  ;;  %v3258_v36 = vld [vmem:[%s2271_s12 + $0xc7] ss:$8 sm:$0xf0] }
  0xc1   : > { %2050 = vst [vmem:[%s2749_s15 + $0x80] sm:$0xff] %v2018_v6  ;;  %2051 = vst [vmem:[%s2749_s15 + $0x88] sm:$0xff] %v2019_v27  ;;  %v2022_v59 = vsel %vm2001_vm4, %v1989_v34, %v1726_v38  ;;  %v2023_v12 = vsel %vm2001_vm4, %v1990_v30, %v1730_v60  ;;  %v2024_v33 = vsel %vm2001_vm4, %v1991_v18, %v1734_v8 }
  0xc2   : > { %2052 = vst [vmem:[%s2749_s15 + $0x90] sm:$0xff] %v2020_v16  ;;  %2053 = vst [vmem:[%s2749_s15 + $0x98] sm:$0xff] %v2021_v29  ;;  %v2025_v17 = vsel %vm2001_vm4, %v1992_v50, %v1738_v62  ;;  %v306_v57 = vmul.f32 %v302_v1, %v286_v61  ;;  %v3253_v61 = vld [vmem:[%s2271_s12 + $0xc7] ss:$8 sm:$0xf]  ;;  %v922_v35 = vrot.slane %v3145_v21, %v2281_v13 }
  0xc3   : > { %2054 = vst [vmem:[%s2749_s15 + $0xa0] sm:$0xff] %v2022_v59  ;;  %2055 = vst [vmem:[%s2749_s15 + $0xa8] sm:$0xff] %v2023_v12  ;;  %v926_v42 = vrot.slane %v3145_v21, %v2283_v14  ;;  %v930_v34 = vrot.slane %v3145_v21, %v2285_v15  ;;  %v418_v43 = vor.u32 %v2208_v24, %v2207_v40 }
  0xc4   : > { %2056 = vst [vmem:[%s2749_s15 + $0xb0] sm:$0xff] %v2024_v33  ;;  %2057 = vst [vmem:[%s2749_s15 + $0xb8] sm:$0xff] %v2025_v17  ;;  %v326_v45 = vsub.f32 %v322_v49, %v306_v57  ;;  %v934_v18 = vrot.slane %v3145_v21, %v2289_v19  ;;  %v466_v50 = vor.u32 %v3258_v36, %v3253_v61 }
  0xc5   : > { %v1861_v44 = vsel %vm1836_vm8, %v3052_v7, %v922_v35  ;;  %v938_v2 = vrot.slane %v3145_v21, %v2291_v20  ;;  %v942_v32 = vrot.slane %v3145_v21, %v2295_v25  ;;  %v1086_v38 = vrot.slane %v3215_v46, %v2281_v13 }
  0xc6   : > { %v330_v53 = vmul.f32 0.5714286, %v326_v45  ;;  %v946_v60 = vrot.slane %v3145_v21, %v2297_v26  ;;  %v950_v8 = vrot.slane %v3145_v21, %v2299_v28  ;;  %v1090_v62 = vrot.slane %v3215_v46, %v2283_v14 }
  0xc7   : > { %v1862_v7 = vsel %vm1836_vm8, %v3057_v55, %v926_v42  ;;  %v1863_v37 = vsel %vm1836_vm8, %v3060_v4, %v930_v34  ;;  %v1098_v27 = vrot.slane %v3215_v46, %v2289_v19  ;;  %v1864_v16 = vsel %vm1836_vm8, %v3067_v9, %v934_v18 }
  0xc8   : > { %v334_v58 = vadd.f32 %v330_v53, %v306_v57  ;;  %v1102_v21 = vrot.slane %v3215_v46, %v2291_v20  ;;  %v1865_v29 = vsel %vm1836_vm8, %v3070_v47, %v938_v2  ;;  %v1106_v55 = vrot.slane %v3215_v46, %v2295_v25 }
  0xc9   : > { %v1866_v59 = vsel %vm1836_vm8, %v3078_v63, %v942_v32  ;;  %v1110_v4 = vrot.slane %v3215_v46, %v2297_v26  ;;  %v1894_v33 = vsel %vm1869_vm9, %v1861_v44, %v1086_v38  ;;  %v1867_v9 = vsel %vm1836_vm8, %v3091_v0, %v946_v60 }
  0xca   : > { %vm338_vm13 = vcmp.ge.f32.partialorder %v334_v58, 0.75  ;;  %v1868_v17 = vsel %vm1836_vm8, %v3128_v31, %v950_v8  ;;  %v1895_v1 = vsel %vm1869_vm9, %v1862_v7, %v1090_v62  ;;  %v1896_v49 = vsel %vm1869_vm9, %v1863_v37, %v1094_v11 }
  0xcb   : > { %v3247_v3 = vsel %vm338_vm13, 1.0, %v3432_v39  ;;  %v1114_v63 = vrot.slane %v3215_v46, %v2299_v28  ;;  %v1897_v53 = vsel %vm1869_vm9, %v1864_v16, %v1098_v27  ;;  %v1898_v0 = vsel %vm1869_vm9, %v1865_v29, %v1102_v21 }
  0xcc   : > { %v350_v10 = vsub.f32 1.0, %v3247_v3  ;;  %v1250_v47 = vrot.slane %v3247_v3, %v2281_v13  ;;  %v1254_v45 = vrot.slane %v3247_v3, %v2283_v14  ;;  %v1258_v31 = vrot.slane %v3247_v3, %v2285_v15 }
  0xcd   : > { %v1899_v56 = vsel %vm1869_vm9, %v1866_v59, %v1106_v55  ;;  %v1900_v23 = vsel %vm1869_vm9, %v1867_v9, %v1110_v4  ;;  %v1266_v46 = vrot.slane %v3247_v3, %v2291_v20 }
  0xce   : > { %v354_v52 = vmul.f32 %v350_v10, %v334_v58  ;;  %v1262_v58 = vrot.slane %v3247_v3, %v2289_v19  ;;  %v1270_v10 = vrot.slane %v3247_v3, %v2295_v25  ;;  %v1928_v35 = vsel %vm1902_vm12, %v1895_v1, %v1254_v45 }
  0xcf   : > { %v1929_v42 = vsel %vm1902_vm12, %v1896_v49, %v1258_v31 }
  0xd0   : > { %v374_v54 = vsub.f32 %v370_v5, %v354_v52  ;;  %v1274_v5 = vrot.slane %v3247_v3, %v2297_v26  ;;  %v1932_v18 = vsel %vm1902_vm12, %v1899_v56, %v1270_v10 }
  0xd2   : > { %v378_v51 = vmul.f32 0.5714286, %v374_v54  ;;  %v1927_v54 = vsel %vm1902_vm12, %v1894_v33, %v1250_v47  ;;  %v1933_v44 = vsel %vm1902_vm12, %v1900_v23, %v1274_v5 }
  0xd4   : > { %v382_v41 = vadd.f32 %v378_v51, %v354_v52  ;;  %v1278_v51 = vrot.slane %v3247_v3, %v2299_v28  ;;  %v1930_v3 = vsel %vm1902_vm12, %v1897_v53, %v1262_v58 }
  0xd6   : > { %vm386_vm14 = vcmp.ge.f32.partialorder %v382_v41, 0.75 }
  0xd7   : > { %v3261_v48 = vsel %vm386_vm14, 1.0, %v3432_v39 }
  0xd8   : > { %v398_v30 = vsub.f32 1.0, %v3261_v48  ;;  %v1414_v24 = vrot.slane %v3261_v48, %v2281_v13  ;;  %v1418_v61 = vrot.slane %v3261_v48, %v2283_v14  ;;  %v1422_v36 = vrot.slane %v3261_v48, %v2285_v15 }
  0xd9   : > { %v1426_v34 = vrot.slane %v3261_v48, %v2289_v19  ;;  %v1430_v2 = vrot.slane %v3261_v48, %v2291_v20  ;;  %v1434_v32 = vrot.slane %v3261_v48, %v2295_v25  ;;  %v1442_v7 = vrot.slane %v3261_v48, %v2299_v28 }
  0xda   : > { %v402_v22 = vmul.f32 %v398_v30, %v382_v41  ;;  %v1901_v41 = vsel %vm1869_vm9, %v1868_v17, %v1114_v63  ;;  %v1960_v8 = vsel %vm1935_vm15, %v1927_v54, %v1414_v24  ;;  %v1961_v62 = vsel %vm1935_vm15, %v1928_v35, %v1418_v61 }
  0xdb   : > { %v1934_v38 = vsel %vm1902_vm12, %v1901_v41, %v1278_v51  ;;  %v1963_v27 = vsel %vm1935_vm15, %v1930_v3, %v1426_v34  ;;  %v1965_v33 = vsel %vm1935_vm15, %v1932_v18, %v1434_v32 }
  0xdc   : > { %v422_v6 = vsub.f32 %v418_v43, %v402_v22  ;;  %v1931_v43 = vsel %vm1902_vm12, %v1898_v0, %v1266_v46  ;;  %v1967_v17 = vsel %vm1935_vm15, %v1934_v38, %v1442_v7 }
  0xdd   : > { %v1964_v55 = vsel %vm1935_vm15, %v1931_v43, %v1430_v2 }
  0xde   : > { %v426_v12 = vmul.f32 0.5714286, %v422_v6  ;;  %v1962_v6 = vsel %vm1935_vm15, %v1929_v42, %v1422_v36 }
  0xe0   : > { %v430_v57 = vadd.f32 %v426_v12, %v402_v22  ;;  %v1438_v22 = vrot.slane %v3261_v48, %v2297_v26 }
  0xe2   : > { %vm434_vm8 = vcmp.ge.f32.partialorder %v430_v57, 0.75  ;;  %v1966_v9 = vsel %vm1935_vm15, %v1933_v44, %v1438_v22 }
  0xe3   : > { %v2212_v52 = vsel %vm434_vm8, 1.0, %v3432_v39 }
  0xe4   : > { %v446_v40 = vsub.f32 1.0, %v2212_v52  ;;  %v1578_v11 = vrot.slane %v2212_v52, %v2281_v13  ;;  %v1582_v37 = vrot.slane %v2212_v52, %v2283_v14  ;;  %v1586_v21 = vrot.slane %v2212_v52, %v2285_v15 }
  0xe5   : > { %v1594_v29 = vrot.slane %v2212_v52, %v2291_v20  ;;  %v1598_v59 = vrot.slane %v2212_v52, %v2295_v25  ;;  %v1602_v48 = vrot.slane %v2212_v52, %v2297_v26  ;;  %v1606_v4 = vrot.slane %v2212_v52, %v2299_v28 }
  0xe6   : > { %v450_v30 = vmul.f32 %v446_v40, %v430_v57  ;;  %v1993_v47 = vsel %vm1968_vm2, %v1960_v8, %v1578_v11  ;;  %v1994_v1 = vsel %vm1968_vm2, %v1961_v62, %v1582_v37  ;;  %v1995_v49 = vsel %vm1968_vm2, %v1962_v6, %v1586_v21 }
  0xe7   : > { %v1997_v57 = vsel %vm1968_vm2, %v1964_v55, %v1594_v29  ;;  %v1998_v53 = vsel %vm1968_vm2, %v1965_v33, %v1598_v59  ;;  %v1999_v0 = vsel %vm1968_vm2, %v1966_v9, %v1602_v48  ;;  %v2000_v31 = vsel %vm1968_vm2, %v1967_v17, %v1606_v4 }
  0xe8   : > { %v470_v60 = vsub.f32 %v466_v50, %v450_v30  ;;  %v1590_v50 = vrot.slane %v2212_v52, %v2289_v19 }
  0xea   : > { %v474_v16 = vmul.f32 0.5714286, %v470_v60  ;;  %v1996_v63 = vsel %vm1968_vm2, %v1963_v27, %v1590_v50 }
  0xec   : > { %v478_v12 = vadd.f32 %v474_v16, %v450_v30 }
  0xee   : > { %vm482_vm9 = vcmp.ge.f32.partialorder %v478_v12, 0.75 }
  0xef   : > { %v2224_v45 = vsel %vm482_vm9, 1.0, %v3432_v39 }
  0xf0   : > { %v1742_v58 = vrot.slane %v2224_v45, %v2281_v13  ;;  %v1746_v56 = vrot.slane %v2224_v45, %v2283_v14  ;;  %v1750_v23 = vrot.slane %v2224_v45, %v2285_v15  ;;  %v1754_v46 = vrot.slane %v2224_v45, %v2289_v19 }
  0xf1   : > { %v1758_v39 = vrot.slane %v2224_v45, %v2291_v20  ;;  %v1762_v10 = vrot.slane %v2224_v45, %v2295_v25  ;;  %v1766_v5 = vrot.slane %v2224_v45, %v2297_v26  ;;  %v1770_v52 = vrot.slane %v2224_v45, %v2299_v28 }
  0xf2   : > { %v2026_v13 = vsel %vm2001_vm4, %v1993_v47, %v1742_v58  ;;  %v2027_v14 = vsel %vm2001_vm4, %v1994_v1, %v1746_v56  ;;  %v2028_v15 = vsel %vm2001_vm4, %v1995_v49, %v1750_v23  ;;  %v2029_v19 = vsel %vm2001_vm4, %v1996_v63, %v1754_v46 }
  0xf3   : > { %2058 = vst [vmem:[%s2749_s15 + $0xc0] sm:$0xff] %v2026_v13  ;;  %2059 = vst [vmem:[%s2749_s15 + $0xc8] sm:$0xff] %v2027_v14  ;;  %v2030_v20 = vsel %vm2001_vm4, %v1997_v57, %v1758_v39  ;;  %v2031_v25 = vsel %vm2001_vm4, %v1998_v53, %v1762_v10  ;;  %v2032_v26 = vsel %vm2001_vm4, %v1999_v0, %v1766_v5 }
  0xf4   : > { %2060 = vst [vmem:[%s2749_s15 + $0xd0] sm:$0xff] %v2028_v15  ;;  %2061 = vst [vmem:[%s2749_s15 + $0xd8] sm:$0xff] %v2029_v19  ;;  %v2033_v28 = vsel %vm2001_vm4, %v2000_v31, %v1770_v52 }
  0xf5   : > { %2062 = vst [vmem:[%s2749_s15 + $0xe0] sm:$0xff] %v2030_v20  ;;  %2063 = vst [vmem:[%s2749_s15 + $0xe8] sm:$0xff] %v2031_v25 }
  0xf6   : > { %2064 = vst [vmem:[%s2749_s15 + $0xf0] sm:$0xff] %v2032_v26  ;;  %2065 = vst [vmem:[%s2749_s15 + $0xf8] sm:$0xff] %v2033_v28 }
  0xf7 PF: > { %s11_s6 = sadd.s32 1, %s2242_s6  }
  0xf8   : > { %p8_p4 = scmp.ge.s32.totalorder %s11_s6, 6  }
  0xfa   :  { %10 = sbr.rel (!%p8_p4) target bundleno = 1 (0x1), region = 85 }

// kernel: tm_mixing_time_forward.18
= control target key start
LH: loop header
LB: loop body
LE: loop exit
PB: predicated region body
PF: predicated region fallthrough
CT: control target
= control target key end

     0   :  { %s844_s6 = smov 0   ;;  %s1084_s0 = inlined_call_operand.vmem [shape: f32[2,8192], index: 0, kind: input, shape index: {}]   ;;  %s1085_s1 = inlined_call_operand.vmem [shape: f32[2,8192], index: 1, kind: output, shape index: {}]  }
   0x1 LB: > { %s788_s7 = sadd.s32 4294967295, %s830_s6   ;;  %p792_p0 = scmp.ge.s32.totalorder %s830_s6, 1  ;;  %s830_s6 = sphi %s844_s6, %s11_s6  }
   0x2   : > { %p88_p1 = scmp.lt.s32.totalorder %s830_s6, 3 }
   0x4   : > { %p89_p2 = pnand %p792_p0, %p88_p1 }
   0x5   : > { %s793_s8 = sshll.u32 (!%p89_p2), %s788_s7, 5 }
   0x6   : > { %92 = sbr.rel (%p89_p2) target bundleno = 69 (0x45), region = 24  ;;  %p109_p3 = scmp.lt.s32.totalorder (!%p89_p2), %s793_s8, 63 }
   0xb   : > { %v191_v0 = vlaneseq  ;;  %s1087_s8 = smov (!%p109_p3, %s793_s8), 63  ;;  %v832_v2 = vmov 1983009808   ;;  %v833_v12 = vmov 0.0   ;;  %vm515_vm2 = vcmask 1040384  }
   0xc   : > { %s794_s9 = sshll.u32 %s1087_s8, 1  ;;  %v583_v3 = vunpack.c.l.s4 %v832_v2 }
   0xd   : > { %v192_v1 = vshrl.u32 %v191_v0, 7  ;;  %s860_s12 = scalar_lea.vmem %s1084_s0, %s794_s9  ;;  %s971_s15 = scalar_lea.vmem %s1085_s1, %s794_s9 }
   0xe   : > { %v120_v4 = vld [vmem:[%s860_s12] ss:$2 sm:$0xff]  ;;  %v797_v5 = vld [vmem:[%s860_s12 + $0x10] ss:$2 sm:$0xff]  ;;  %v584_v9 = vunpack.c.0.s8 %v583_v3  ;;  %v804_v21 = vld [vmem:[%s860_s12 + $0x1] ss:$2 sm:$0xff] }
   0xf   : > { %v127_v6 = vmul.f32 0.5714286, %v120_v4  ;;  %v128_v7 = vmul.f32 0.5714286, %v797_v5  ;;  %v864_v8 = vsub.s32 0, %v192_v1  ;;  %v871_v14 = vsub.s32 1, %v192_v1 }
  0x10   : > { %v798_v10 = vld [vmem:[%s860_s12 + $0x20] ss:$2 sm:$0xff]  ;;  %v799_v11 = vld [vmem:[%s860_s12 + $0x30] ss:$2 sm:$0xff]  ;;  %v873_v15 = vsub.s32 2, %v192_v1  ;;  %v879_v18 = vsub.s32 3, %v192_v1  ;;  %v895_v29 = vsub.s32 %v584_v9, %v192_v1 }
  0x11   : > { %vm135_vm0 = vcmp.ge.f32.partialorder %v127_v6, 0.75  ;;  %vm136_vm1 = vcmp.ge.f32.partialorder %v128_v7, 0.75  ;;  %v881_v19 = vsub.s32 4, %v192_v1  ;;  %v883_v20 = vsub.s32 5, %v192_v1  ;;  %v805_v31 = vld [vmem:[%s860_s12 + $0x11] ss:$2 sm:$0xff] }
  0x12   : > { %v869_v13 = vsel %vm135_vm0, 1.0, %v833_v12  ;;  %v876_v16 = vsel %vm136_vm1, 1.0, %v833_v12  ;;  %v129_v22 = vmul.f32 0.5714286, %v798_v10  ;;  %v886_v23 = vmul.f32 0.5714286, %v799_v11 }
  0x13   : > { %v147_v17 = vsub.f32 1.0, %v869_v13  ;;  %v888_v25 = vsub.s32 6, %v192_v1  ;;  %v148_v26 = vsub.f32 1.0, %v876_v16  ;;  %v194_v27 = vrot.slane %v869_v13, %v864_v8  ;;  %v924_v49 = vld [vmem:[%s860_s12 + $0x21] ss:$2 sm:$0xff] }
  0x14   : > { %v198_v28 = vrot.slane %v869_v13, %v871_v14  ;;  %v897_v30 = vsub.s32 7, %v192_v1  ;;  %v202_v33 = vrot.slane %v869_v13, %v873_v15  ;;  %v206_v34 = vrot.slane %v869_v13, %v879_v18 }
  0x15   : > { %v151_v24 = vmul.f32 %v147_v17, %v127_v6  ;;  %v152_v35 = vmul.f32 %v148_v26, %v128_v7  ;;  %v210_v36 = vrot.slane %v869_v13, %v881_v19  ;;  %v214_v37 = vrot.slane %v869_v13, %v883_v20 }
  0x16   : > { %vm137_vm3 = vcmp.ge.f32.partialorder %v129_v22, 0.75  ;;  %vm138_vm4 = vcmp.ge.f32.partialorder %v886_v23, 0.75  ;;  %v218_v39 = vrot.slane %v869_v13, %v888_v25  ;;  %v222_v42 = vrot.slane %v869_v13, %v897_v30 }
  0x17   : > { %v163_v32 = vsub.f32 %v804_v21, %v151_v24  ;;  %v164_v40 = vsub.f32 %v805_v31, %v152_v35  ;;  %v912_v41 = vsel %vm137_vm3, 1.0, %v833_v12  ;;  %v226_v43 = vrot.slane %v876_v16, %v864_v8 }
  0x18   : > { %v230_v44 = vrot.slane %v876_v16, %v871_v14  ;;  %v149_v45 = vsub.f32 1.0, %v912_v41  ;;  %v234_v48 = vrot.slane %v876_v16, %v873_v15  ;;  %v927_v50 = vsel %vm138_vm4, 1.0, %v833_v12 }
  0x19   : > { %v167_v38 = vmul.f32 0.5714286, %v163_v32  ;;  %v168_v47 = vmul.f32 0.5714286, %v164_v40  ;;  %v238_v51 = vrot.slane %v876_v16, %v879_v18  ;;  %v242_v52 = vrot.slane %v876_v16, %v881_v19 }
  0x1a   : > { %v246_v53 = vrot.slane %v876_v16, %v883_v20  ;;  %v935_v54 = vmul.f32 %v149_v45, %v129_v22  ;;  %v250_v55 = vrot.slane %v876_v16, %v888_v25  ;;  %v254_v56 = vrot.slane %v876_v16, %v897_v30 }
  0x1b   : > { %v171_v46 = vadd.f32 %v167_v38, %v151_v24  ;;  %v258_v57 = vrot.slane %v912_v41, %v864_v8  ;;  %v172_v59 = vadd.f32 %v168_v47, %v152_v35  ;;  %v150_v61 = vsub.f32 1.0, %v927_v50 }
  0x1c   : > { %v165_v60 = vsub.f32 %v924_v49, %v935_v54 }
  0x1d   : > { %vm175_vm5 = vcmp.ge.f32.partialorder %v171_v46, 0.75  ;;  %vm176_vm6 = vcmp.ge.f32.partialorder %v172_v59, 0.75 }
  0x1e   : > { %v808_v58 = vsel %vm175_vm5, 1.0, %v833_v12  ;;  %v809_v31 = vsel %vm176_vm6, 1.0, %v833_v12 }
  0x1f   : > { %v358_v62 = vrot.slane %v808_v58, %v864_v8  ;;  %v362_v63 = vrot.slane %v808_v58, %v871_v14  ;;  %v366_v0 = vrot.slane %v808_v58, %v873_v15  ;;  %v370_v1 = vrot.slane %v808_v58, %v879_v18 }
  0x20   : > { %v374_v2 = vrot.slane %v808_v58, %v881_v19  ;;  %v378_v3 = vrot.slane %v808_v58, %v883_v20  ;;  %v382_v4 = vrot.slane %v808_v58, %v888_v25  ;;  %v386_v5 = vrot.slane %v808_v58, %v897_v30 }
  0x21   : > { %v516_v6 = vsel %vm515_vm2, %v194_v27, %v358_v62  ;;  %v517_v7 = vsel %vm515_vm2, %v198_v28, %v362_v63  ;;  %v518_v9 = vsel %vm515_vm2, %v202_v33, %v366_v0  ;;  %v519_v10 = vsel %vm515_vm2, %v206_v34, %v370_v1 }
  0x22   : > { %v580_v11 = vcombine.low %v516_v6, %v517_v7  ;;  %v581_v13 = vcombine.low %v518_v9, %v519_v10  ;;  %v520_v16 = vsel %vm515_vm2, %v210_v36, %v374_v2  ;;  %v521_v17 = vsel %vm515_vm2, %v214_v37, %v378_v3  ;;  %v807_v3 = vld [vmem:[%s860_s12 + $0x31] ss:$2 sm:$0xff] }
  0x23   : > { %v522_v21 = vsel %vm515_vm2, %v218_v39, %v382_v4  ;;  %v523_v22 = vsel %vm515_vm2, %v222_v42, %v386_v5  ;;  %v597_v24 = vcombine.low %v520_v16, %v521_v17  ;;  %v390_v33 = vrot.slane %v809_v31, %v864_v8 }
  0x24   : > { %v588_v26 = vrot.slane %v580_v11, %v895_v29  ;;  %v595_v27 = vrot.slane %v581_v13, %v895_v29  ;;  %v598_v28 = vcombine.low %v522_v21, %v523_v22  ;;  %v394_v34 = vrot.slane %v809_v31, %v871_v14 }
  0x25   : > { %v605_v32 = vrot.slane %v597_v24, %v895_v29  ;;  %v398_v35 = vrot.slane %v809_v31, %v873_v15  ;;  %v402_v38 = vrot.slane %v809_v31, %v879_v18  ;;  %v406_v39 = vrot.slane %v809_v31, %v881_v19 }
  0x26   : > { %v596_v36 = vcombine.low %v588_v26, %v595_v27  ;;  %v612_v37 = vrot.slane %v598_v28, %v895_v29  ;;  %v524_v40 = vsel %vm515_vm2, %v226_v43, %v390_v33  ;;  %v525_v42 = vsel %vm515_vm2, %v230_v44, %v394_v34 }
  0x27   : > { %v526_v45 = vsel %vm515_vm2, %v234_v48, %v398_v35  ;;  %v410_v46 = vrot.slane %v809_v31, %v883_v20  ;;  %v527_v49 = vsel %vm515_vm2, %v238_v51, %v402_v38  ;;  %v614_v58 = vcombine.low %v524_v40, %v525_v42 }
  0x28   : > { %724 = vst [vmem:[%s971_s15] sm:$0xff] %v596_v36  ;;  %v613_v47 = vcombine.low %v605_v32, %v612_v37  ;;  %v414_v59 = vrot.slane %v809_v31, %v888_v25  ;;  %v615_v62 = vcombine.low %v526_v45, %v527_v49  ;;  %v418_v63 = vrot.slane %v809_v31, %v897_v30 }
  0x29   : > { %v528_v0 = vsel %vm515_vm2, %v242_v52, %v406_v39  ;;  %v529_v43 = vsel %vm515_vm2, %v246_v53, %v410_v46  ;;  %v622_v44 = vrot.slane %v614_v58, %v895_v29  ;;  %v169_v2 = vmul.f32 0.5714286, %v165_v60 }
  0x2a   : > { %725 = vst [vmem:[%s971_s15 + $0x8] sm:$0xff] %v613_v47  ;;  %v530_v48 = vsel %vm515_vm2, %v250_v55, %v414_v59  ;;  %v631_v1 = vcombine.low %v528_v0, %v529_v43  ;;  %v629_v51 = vrot.slane %v615_v62, %v895_v29  ;;  %v531_v4 = vsel %vm515_vm2, %v254_v56, %v418_v63 }
  0x2b   : > { %v262_v5 = vrot.slane %v912_v41, %v871_v14  ;;  %v154_v52 = vmul.f32 %v150_v61, %v886_v23  ;;  %v632_v6 = vcombine.low %v530_v48, %v531_v4  ;;  %v173_v7 = vadd.f32 %v169_v2, %v935_v54 }
  0x2c   : > { %v639_v53 = vrot.slane %v631_v1, %v895_v29  ;;  %v266_v55 = vrot.slane %v912_v41, %v873_v15  ;;  %v630_v60 = vcombine.low %v622_v44, %v629_v51  ;;  %v270_v9 = vrot.slane %v912_v41, %v879_v18 }
  0x2d   : > { %v274_v56 = vrot.slane %v912_v41, %v881_v19  ;;  %v166_v10 = vsub.f32 %v807_v3, %v154_v52  ;;  %v646_v11 = vrot.slane %v632_v6, %v895_v29  ;;  %vm177_vm7 = vcmp.ge.f32.partialorder %v173_v7, 0.75 }
  0x2e   : > { %v278_v23 = vrot.slane %v912_v41, %v883_v20  ;;  %v282_v54 = vrot.slane %v912_v41, %v888_v25  ;;  %726 = vst [vmem:[%s971_s15 + $0x10] sm:$0xff] %v630_v60  ;;  %v810_v61 = vsel %vm177_vm7, 1.0, %v833_v12  ;;  %v286_v13 = vrot.slane %v912_v41, %v897_v30 }
  0x2f   : > { %v170_v16 = vmul.f32 0.5714286, %v166_v10  ;;  %v290_v17 = vrot.slane %v927_v50, %v864_v8  ;;  %v647_v21 = vcombine.low %v639_v53, %v646_v11  ;;  %v422_v22 = vrot.slane %v810_v61, %v864_v8 }
  0x30   : > { %v426_v24 = vrot.slane %v810_v61, %v871_v14  ;;  %v430_v26 = vrot.slane %v810_v61, %v873_v15  ;;  %v434_v27 = vrot.slane %v810_v61, %v879_v18  ;;  %v438_v28 = vrot.slane %v810_v61, %v881_v19 }
  0x31   : > { %v442_v31 = vrot.slane %v810_v61, %v883_v20  ;;  %v446_v32 = vrot.slane %v810_v61, %v888_v25  ;;  %727 = vst [vmem:[%s971_s15 + $0x18] sm:$0xff] %v647_v21  ;;  %v532_v33 = vsel %vm515_vm2, %v258_v57, %v422_v22  ;;  %v450_v36 = vrot.slane %v810_v61, %v897_v30 }
  0x32   : > { %v533_v34 = vsel %vm515_vm2, %v262_v5, %v426_v24  ;;  %v534_v35 = vsel %vm515_vm2, %v266_v55, %v430_v26  ;;  %v535_v37 = vsel %vm515_vm2, %v270_v9, %v434_v27  ;;  %v536_v39 = vsel %vm515_vm2, %v274_v56, %v438_v28 }
  0x33   : > { %v648_v38 = vcombine.low %v532_v33, %v533_v34  ;;  %v537_v40 = vsel %vm515_vm2, %v278_v23, %v442_v31  ;;  %v649_v42 = vcombine.low %v534_v35, %v535_v37  ;;  %v538_v45 = vsel %vm515_vm2, %v282_v54, %v446_v32 }
  0x34   : > { %v539_v41 = vsel %vm515_vm2, %v286_v13, %v450_v36  ;;  %v665_v46 = vcombine.low %v536_v39, %v537_v40  ;;  %v174_v49 = vadd.f32 %v170_v16, %v154_v52  ;;  %v294_v58 = vrot.slane %v927_v50, %v871_v14 }
  0x35   : > { %v656_v57 = vrot.slane %v648_v38, %v895_v29  ;;  %v666_v47 = vcombine.low %v538_v45, %v539_v41  ;;  %v663_v59 = vrot.slane %v649_v42, %v895_v29  ;;  %v298_v63 = vrot.slane %v927_v50, %v873_v15 }
  0x36   : > { %v673_v62 = vrot.slane %v665_v46, %v895_v29  ;;  %v302_v0 = vrot.slane %v927_v50, %v879_v18  ;;  %vm178_vm8 = vcmp.ge.f32.partialorder %v174_v49, 0.75  ;;  %v306_v44 = vrot.slane %v927_v50, %v881_v19 }
  0x37   : > { %v680_v43 = vrot.slane %v666_v47, %v895_v29  ;;  %v310_v48 = vrot.slane %v927_v50, %v883_v20  ;;  %v664_v1 = vcombine.low %v656_v57, %v663_v59  ;;  %v811_v2 = vsel %vm178_vm8, 1.0, %v833_v12 }
  0x38   : > { %v314_v3 = vrot.slane %v927_v50, %v888_v25  ;;  %v318_v51 = vrot.slane %v927_v50, %v897_v30  ;;  %v454_v5 = vrot.slane %v811_v2, %v864_v8  ;;  %v458_v52 = vrot.slane %v811_v2, %v871_v14 }
  0x39   : > { %v681_v4 = vcombine.low %v673_v62, %v680_v43  ;;  %v462_v6 = vrot.slane %v811_v2, %v873_v15  ;;  %728 = vst [vmem:[%s971_s15 + $0x20] sm:$0xff] %v664_v1  ;;  %v466_v53 = vrot.slane %v811_v2, %v879_v18  ;;  %v470_v7 = vrot.slane %v811_v2, %v881_v19 }
  0x3a   : > { %v474_v12 = vrot.slane %v811_v2, %v883_v20  ;;  %v478_v55 = vrot.slane %v811_v2, %v888_v25  ;;  %v540_v60 = vsel %vm515_vm2, %v290_v17, %v454_v5  ;;  %v541_v50 = vsel %vm515_vm2, %v294_v58, %v458_v52 }
  0x3b   : > { %729 = vst [vmem:[%s971_s15 + $0x28] sm:$0xff] %v681_v4  ;;  %v542_v8 = vsel %vm515_vm2, %v298_v63, %v462_v6  ;;  %v482_v14 = vrot.slane %v811_v2, %v897_v30  ;;  %v543_v15 = vsel %vm515_vm2, %v302_v0, %v466_v53  ;;  %v682_v18 = vcombine.low %v540_v60, %v541_v50 }
  0x3c   : > { %v544_v19 = vsel %vm515_vm2, %v306_v44, %v470_v7  ;;  %v545_v20 = vsel %vm515_vm2, %v310_v48, %v474_v12  ;;  %v683_v9 = vcombine.low %v542_v8, %v543_v15  ;;  %v546_v25 = vsel %vm515_vm2, %v314_v3, %v478_v55 }
  0x3d   : > { %v547_v56 = vsel %vm515_vm2, %v318_v51, %v482_v14  ;;  %v699_v10 = vcombine.low %v544_v19, %v545_v20  ;;  %v690_v11 = vrot.slane %v682_v18, %v895_v29 }
  0x3e   : > { %v700_v23 = vcombine.low %v546_v25, %v547_v56  ;;  %v697_v30 = vrot.slane %v683_v9, %v895_v29 }
  0x3f   : > { %v707_v54 = vrot.slane %v699_v10, %v895_v29 }
  0x40   : > { %v714_v61 = vrot.slane %v700_v23, %v895_v29  ;;  %v698_v13 = vcombine.low %v690_v11, %v697_v30 }
  0x42   : > { %v715_v16 = vcombine.low %v707_v54, %v714_v61  ;;  %730 = vst [vmem:[%s971_s15 + $0x30] sm:$0xff] %v698_v13 }
  0x44   : > { %731 = vst [vmem:[%s971_s15 + $0x38] sm:$0xff] %v715_v16 }
  0x45 PF: > { %s11_s6 = sadd.s32 1, %s830_s6  }
  0x46   : > { %p8_p4 = scmp.ge.s32.totalorder %s11_s6, 4  }
  0x48   :  { %10 = sbr.rel (!%p8_p4) target bundleno = 1 (0x1), region = 61 }

// kernel: tm_mixing_time_forward.21
= control target key start
LH: loop header
LB: loop body
LE: loop exit
PB: predicated region body
PF: predicated region fallthrough
CT: control target
= control target key end

     0   :  { %s2148_s18 = smov 0   ;;  %s2150_s19 = smov 0   ;;  %s2845_s0 = inlined_call_operand.vmem [shape: f32[2,224,32], index: 0, kind: input, shape index: {}]   ;;  %s2846_s1 = inlined_call_operand.vmem [shape: f32[32,32], index: 1, kind: input, shape index: {}]   ;;  %s2847_s2 = inlined_call_operand.vmem [shape: f32[1,32], index: 2, kind: input, shape index: {}]   ;;  %s2848_s3 = inlined_call_operand.vmem [shape: f32[32,32], index: 3, kind: input, shape index: {}]   ;;  %s2849_s4 = inlined_call_operand.vmem [shape: f32[1,32], index: 4, kind: input, shape index: {}]   ;;  %s2850_s5 = inlined_call_operand.vmem [shape: f32[2,224,32], index: 5, kind: output, shape index: {}]  }
   0x1   :  { %s2152_s20 = smov 0  }
   0x2 LB: > { %s1725_s21 = sadd.s32 4294967295, %s2115_s20   ;;  %s2165_s22 = sadd.s32 1, %s2115_s20   ;;  %s2115_s20 = sphi %s2152_s20, %s2854_s20   ;;  %s2111_s19 = sphi %s2150_s19, %s2853_s19   ;;  %s2107_s18 = sphi %s2148_s18, %s2852_s18  }
   0x3   : > { %s19_s23 = ssub.s32 %s2115_s20, %s2165_s22  ;;  %s22_s24 = sadd.s32 1, %s2111_s19 }
   0x4   : > { %p20_p0 = scmp.eq.s32.totalorder %s19_s23, 0  ;;  %p29_p1 = scmp.ne.s32.totalorder %s2111_s19, %s2107_s18 }
   0x5   : > { %p30_p2 = scmp.eq.s32.totalorder %s2115_s20, 0  ;;  %p143_p3 = scmp.eq.s32.totalorder %s1725_s21, 1 }
   0x6   : > { %s2176_s25 = scalar_select %p20_p0, %s2111_s19, %s22_s24  }
   0x7   : > { %p31_p4 = por %p30_p2, %p29_p1  ;;  %p2178_p5 = por %p143_p3, %p29_p1 }
   0x8   : > { %p1728_p6 = scmp.ge.s32.totalorder %s2115_s20, 2 }
   0xa   : > { %177 = sbr.rel (%p1728_p6) target bundleno = 34 (0x22), region = 32 }
   0xf   : > { %180 = sbr.rel (!%p31_p4) target bundleno = 34 (0x22), region = 36  ;;  %s182_s27 = sand.u32 (%p31_p4), 1, %s2111_s19  }
  0x10   : > { %s1876_s28 = smul.u32 (%p31_p4), 112, %s2115_s20 }
  0x11   : > { %s2066_s29 = smul.u32 (%p31_p4), 224, %s182_s27 }
  0x12   : > { %s2188_s7 = scalar_lea.vmem (%p31_p4), %s2845_s0, %s1876_s28 }
  0x13   : > { %v270_v0 = vld [vmem:[%s2188_s7] sm:$0xff] (%p31_p4)  ;;  %v272_v1 = vld [vmem:[%s2188_s7 + $0x8] sm:$0xff] (%p31_p4)  ;;  %v274_v2 = vld [vmem:[%s2188_s7 + $0x10] sm:$0xff] (%p31_p4)  ;;  %s2193_s8 = scalar_lea.vmem (%p31_p4), [#allocation2], %s2066_s29 }
  0x14   : > { %271 = vst [vmem:[%s2193_s8] sm:$0xff] %v270_v0  ;;  %273 = vst [vmem:[%s2193_s8 + $0x8] sm:$0xff] %v272_v1  ;;  %v276_v3 = vld [vmem:[%s2188_s7 + $0x18] sm:$0xff]  ;;  %v278_v4 = vld [vmem:[%s2188_s7 + $0x20] sm:$0xff] }
  0x15   : > { %275 = vst [vmem:[%s2193_s8 + $0x10] sm:$0xff] %v274_v2  ;;  %v280_v5 = vld [vmem:[%s2188_s7 + $0x28] sm:$0xff]  ;;  %277 = vst [vmem:[%s2193_s8 + $0x18] sm:$0xff] %v276_v3  ;;  %v282_v6 = vld [vmem:[%s2188_s7 + $0x30] sm:$0xff] }
  0x16   : > { %279 = vst [vmem:[%s2193_s8 + $0x20] sm:$0xff] %v278_v4  ;;  %281 = vst [vmem:[%s2193_s8 + $0x28] sm:$0xff] %v280_v5  ;;  %v284_v7 = vld [vmem:[%s2188_s7 + $0x38] sm:$0xff]  ;;  %v286_v8 = vld [vmem:[%s2188_s7 + $0x40] sm:$0xff] }
  0x17   : > { %283 = vst [vmem:[%s2193_s8 + $0x30] sm:$0xff] %v282_v6  ;;  %285 = vst [vmem:[%s2193_s8 + $0x38] sm:$0xff] %v284_v7  ;;  %v288_v9 = vld [vmem:[%s2188_s7 + $0x48] sm:$0xff]  ;;  %v290_v10 = vld [vmem:[%s2188_s7 + $0x50] sm:$0xff] }
  0x18   : > { %287 = vst [vmem:[%s2193_s8 + $0x40] sm:$0xff] %v286_v8  ;;  %v292_v11 = vld [vmem:[%s2188_s7 + $0x58] sm:$0xff]  ;;  %289 = vst [vmem:[%s2193_s8 + $0x48] sm:$0xff] %v288_v9  ;;  %v294_v12 = vld [vmem:[%s2188_s7 + $0x60] sm:$0xff] }
  0x19   : > { %291 = vst [vmem:[%s2193_s8 + $0x50] sm:$0xff] %v290_v10  ;;  %293 = vst [vmem:[%s2193_s8 + $0x58] sm:$0xff] %v292_v11  ;;  %v296_v13 = vld [vmem:[%s2188_s7 + $0x68] sm:$0xff]  ;;  %v298_v14 = vld [vmem:[%s2188_s7 + $0xe0] sm:$0xff] }
  0x1a   : > { %295 = vst [vmem:[%s2193_s8 + $0x60] sm:$0xff] %v294_v12  ;;  %297 = vst [vmem:[%s2193_s8 + $0x68] sm:$0xff] %v296_v13  ;;  %v300_v15 = vld [vmem:[%s2188_s7 + $0xe8] sm:$0xff]  ;;  %v302_v16 = vld [vmem:[%s2188_s7 + $0xf0] sm:$0xff] }
  0x1b   : > { %299 = vst [vmem:[%s2193_s8 + $0x70] sm:$0xff] %v298_v14  ;;  %v304_v17 = vld [vmem:[%s2188_s7 + $0xf8] sm:$0xff]  ;;  %301 = vst [vmem:[%s2193_s8 + $0x78] sm:$0xff] %v300_v15  ;;  %v306_v18 = vld [vmem:[%s2188_s7 + $0x100] sm:$0xff] }
  0x1c   : > { %303 = vst [vmem:[%s2193_s8 + $0x80] sm:$0xff] %v302_v16  ;;  %305 = vst [vmem:[%s2193_s8 + $0x88] sm:$0xff] %v304_v17  ;;  %v308_v19 = vld [vmem:[%s2188_s7 + $0x108] sm:$0xff]  ;;  %v310_v20 = vld [vmem:[%s2188_s7 + $0x110] sm:$0xff] }
  0x1d   : > { %307 = vst [vmem:[%s2193_s8 + $0x90] sm:$0xff] %v306_v18  ;;  %309 = vst [vmem:[%s2193_s8 + $0x98] sm:$0xff] %v308_v19  ;;  %v312_v21 = vld [vmem:[%s2188_s7 + $0x118] sm:$0xff]  ;;  %v314_v22 = vld [vmem:[%s2188_s7 + $0x120] sm:$0xff] }
  0x1e   : > { %311 = vst [vmem:[%s2193_s8 + $0xa0] sm:$0xff] %v310_v20  ;;  %v316_v23 = vld [vmem:[%s2188_s7 + $0x128] sm:$0xff]  ;;  %313 = vst [vmem:[%s2193_s8 + $0xa8] sm:$0xff] %v312_v21  ;;  %v318_v24 = vld [vmem:[%s2188_s7 + $0x130] sm:$0xff] }
  0x1f   : > { %315 = vst [vmem:[%s2193_s8 + $0xb0] sm:$0xff] %v314_v22  ;;  %317 = vst [vmem:[%s2193_s8 + $0xb8] sm:$0xff] %v316_v23  ;;  %v320_v25 = vld [vmem:[%s2188_s7 + $0x138] sm:$0xff]  ;;  %v322_v26 = vld [vmem:[%s2188_s7 + $0x140] sm:$0xff] }
  0x20   : > { %319 = vst [vmem:[%s2193_s8 + $0xc0] sm:$0xff] %v318_v24  ;;  %321 = vst [vmem:[%s2193_s8 + $0xc8] sm:$0xff] %v320_v25  ;;  %v324_v27 = vld [vmem:[%s2188_s7 + $0x148] sm:$0xff] }
  0x21   : > { %323 = vst [vmem:[%s2193_s8 + $0xd0] sm:$0xff] %v322_v26  ;;  %325 = vst [vmem:[%s2193_s8 + $0xd8] sm:$0xff] %v324_v27 }
  0x22 PF: > { %p1730_p7 = scmp.ge.s32.totalorder %s2115_s20, 1  ;;  %p330_p8 = scmp.lt.s32.totalorder %s2115_s20, 3 }
  0x24   : > { %p331_p9 = pnand %p1730_p7, %p330_p8 }
  0x25   : > { %s337_s13 = sand.u32 (!%p331_p9), 1, %s2107_s18  }
  0x26   : > { %334 = sbr.rel (%p331_p9) target bundleno = 526 (0x20e), region = 74 }
  0x27   : > { %s2257_s14 = smul.u32 (!%p331_p9), 224, %s337_s13 }
  0x29   : > { %s2266_s24 = scalar_lea.vmem (!%p331_p9), [#allocation2], %s2257_s14  ;;  %s2555_s13 = scalar_lea.vmem (!%p331_p9), [#allocation3], %s2257_s14 }
  0x2b   : > { %v368_v28 = vld [vmem:[%s2846_s1 + $0x18] sm:$0xff]  ;;  %v367_v29 = vld [vmem:[%s2846_s1 + $0x10] sm:$0xff]  ;;  %v366_v30 = vld [vmem:[%s2846_s1 + $0x8] sm:$0xff]  ;;  %vm395_vm0 = vcmask 261120   ;;  %v2117_v13 = vmov 0.0   ;;  %s1877_s14 = smul.u32 (%p2178_p5), 112, %s1725_s21 }
  0x2c   : > { %1950 = vmatprep.subr.mxu0 %v368_v28  ;;  %v365_v31 = vld [vmem:[%s2846_s1] sm:$0xff]  ;;  %v376_v33 = vld [vmem:[%s2266_s24 + $0x8] sm:$0xff]  ;;  %v377_v34 = vld [vmem:[%s2266_s24 + $0x10] sm:$0xff] }
  0x2d   : > { %1951 = vmatpush3.msra.mxu0 %v368_v28  ;;  %v375_v32 = vld [vmem:[%s2266_s24] sm:$0xff]  ;;  %v378_v35 = vld [vmem:[%s2266_s24 + $0x18] sm:$0xff]  ;;  %v380_v37 = vld [vmem:[%s2266_s24 + $0x28] sm:$0xff]  ;;  %s2783_s15 = scalar_lea.vmem (%p2178_p5), %s2850_s5, %s1877_s14 }
  0x2e   : > { %1952 = vmatprep.subr.mxu0 %v367_v29  ;;  %1958 = vmatprep.mubr.msk.f32.mxu0 %vm395_vm0, %v375_v32  ;;  %v379_v36 = vld [vmem:[%s2266_s24 + $0x20] sm:$0xff]  ;;  %v381_v38 = vld [vmem:[%s2266_s24 + $0x30] sm:$0xff]  ;;  %v382_v39 = vld [vmem:[%s2266_s24 + $0x38] sm:$0xff] }
  0x2f   : > { %1953 = vmatpush3.msra.mxu0 %v367_v29  ;;  %v383_v40 = vld [vmem:[%s2266_s24 + $0x40] sm:$0xff]  ;;  %v384_v41 = vld [vmem:[%s2266_s24 + $0x48] sm:$0xff]  ;;  %v385_v42 = vld [vmem:[%s2266_s24 + $0x50] sm:$0xff] }
  0x30   : > { %1954 = vmatprep.subr.mxu0 %v366_v30  ;;  %v386_v43 = vld [vmem:[%s2266_s24 + $0x58] sm:$0xff]  ;;  %v387_v44 = vld [vmem:[%s2266_s24 + $0x60] sm:$0xff]  ;;  %v388_v45 = vld [vmem:[%s2266_s24 + $0x68] sm:$0xff] }
  0x31   : > { %1955 = vmatpush3.msra.mxu0 %v366_v30  ;;  %v1789_v46 = vld [vmem:[%s2266_s24 + $0x70] sm:$0xff]  ;;  %v1790_v47 = vld [vmem:[%s2266_s24 + $0x78] sm:$0xff]  ;;  %v1791_v48 = vld [vmem:[%s2266_s24 + $0x80] sm:$0xff] }
  0x32   : > { %1956 = vmatprep.subr.mxu0 %v365_v31  ;;  %v1792_v49 = vld [vmem:[%s2266_s24 + $0x88] sm:$0xff]  ;;  %v1793_v50 = vld [vmem:[%s2266_s24 + $0x90] sm:$0xff]  ;;  %v1794_v51 = vld [vmem:[%s2266_s24 + $0x98] sm:$0xff] }
  0x33   : > { %1957 = vmatpush3.msra.mxu0 %v365_v31  ;;  %v1795_v52 = vld [vmem:[%s2266_s24 + $0xa0] sm:$0xff]  ;;  %v1796_v53 = vld [vmem:[%s2266_s24 + $0xa8] sm:$0xff]  ;;  %v1797_v54 = vld [vmem:[%s2266_s24 + $0xb0] sm:$0xff] }
  0x34   : > { %1959 = vmatmul.mubr.msk.f32.vlgmr.msra.gmra.mxu0 %vm395_vm0, %v376_v33  ;;  %2008 = vmatprep.subr.mxu0 %v368_v28  ;;  %v1798_v55 = vld [vmem:[%s2266_s24 + $0xb8] sm:$0xff]  ;;  %v1799_v56 = vld [vmem:[%s2266_s24 + $0xc0] sm:$0xff]  ;;  %v1800_v57 = vld [vmem:[%s2266_s24 + $0xc8] sm:$0xff] }
  0x35   : > { %2009 = vmatpush3.msra.mxu0 %v368_v28  ;;  %1961 = vmatprep.mubr.msk.f32.mxu0 %vm395_vm0, %v377_v34  ;;  %v1801_v58 = vld [vmem:[%s2266_s24 + $0xd0] sm:$0xff]  ;;  %v1802_v59 = vld [vmem:[%s2266_s24 + $0xd8] sm:$0xff]  ;;  %v371_v62 = vld [vmem:[%s2848_s3 + $0x8] sm:$0xff] }
  0x36   : > { %2010 = vmatprep.subr.mxu0 %v367_v29  ;;  %v373_v60 = vld [vmem:[%s2848_s3 + $0x18] sm:$0xff]  ;;  %v372_v61 = vld [vmem:[%s2848_s3 + $0x10] sm:$0xff]  ;;  %v370_v63 = vld [vmem:[%s2848_s3] sm:$0xff] }
  0x37   : > { %2011 = vmatpush3.msra.mxu0 %v367_v29  ;;  %1979 = vmatprep.subr.mxu1 %v373_v60  ;;  %v2339_v0 = vld [vmem:[%s2847_s2] ss:$0 sm:$0xff] }
  0x38   : > { %1962 = vmatmul.mubr.msk.f32.gmra.mxu0 %vm395_vm0, %v378_v35  ;;  %2012 = vmatprep.subr.mxu0 %v366_v30 }
  0x39   : > { %1964 = vmatprep.mubr.msk.f32.mxu0 %vm395_vm0, %v379_v36  ;;  %2013 = vmatpush3.msra.mxu0 %v366_v30 }
  0x3a   : > { %2014 = vmatprep.subr.mxu0 %v365_v31  ;;  %1980 = vmatpush3.msra.mxu1 %v373_v60 }
  0x3b   : > { %2015 = vmatpush3.msra.mxu0 %v365_v31  ;;  %1981 = vmatprep.subr.mxu1 %v372_v61 }
  0x3c   : > { %1965 = vmatmul.mubr.msk.f32.gmra.mxu0 %vm395_vm0, %v380_v37  ;;  %1982 = vmatpush3.msra.mxu1 %v372_v61 }
  0x3d   : > { %1967 = vmatprep.mubr.msk.f32.mxu0 %vm395_vm0, %v381_v38  ;;  %1983 = vmatprep.subr.mxu1 %v371_v62 }
  0x3e   : > { %1984 = vmatpush3.msra.mxu1 %v371_v62 }
  0x3f   : > { %1985 = vmatprep.subr.mxu1 %v370_v63 }
  0x40   : > { %1968 = vmatmul.mubr.msk.f32.gmra.mxu0 %vm395_vm0, %v382_v39  ;;  %1986 = vmatpush3.msra.mxu1 %v370_v63 }
  0x41   : > { %1970 = vmatprep.mubr.msk.f32.mxu0 %vm395_vm0, %v383_v40  ;;  %2037 = vmatprep.subr.mxu1 %v373_v60 }
  0x44   : > { %1971 = vmatmul.mubr.msk.f32.gmra.mxu0 %vm395_vm0, %v384_v41 }
  0x45   : > { %1973 = vmatprep.mubr.msk.f32.mxu0 %vm395_vm0, %v385_v42 }
  0x48   : > { %1974 = vmatmul.mubr.msk.f32.gmra.mxu0 %vm395_vm0, %v386_v43 }
  0x49   : > { %1976 = vmatprep.mubr.msk.f32.mxu0 %vm395_vm0, %v387_v44 }
  0x4c   : > { %1977 = vmatmul.mubr.msk.f32.gmra.mxu0 %vm395_vm0, %v388_v45 }
  0x4d   : > { %2016 = vmatprep.mubr.msk.f32.mxu0 %vm395_vm0, %v1789_v46 }
  0x50   : > { %2017 = vmatmul.mubr.msk.f32.vlgmr.msra.gmra.mxu0 %vm395_vm0, %v1790_v47 }
  0x51   : > { %2019 = vmatprep.mubr.msk.f32.mxu0 %vm395_vm0, %v1791_v48 }
  0x54   : > { %2020 = vmatmul.mubr.msk.f32.gmra.mxu0 %vm395_vm0, %v1792_v49 }
  0x55   : > { %2022 = vmatprep.mubr.msk.f32.mxu0 %vm395_vm0, %v1793_v50 }
  0x58   : > { %2023 = vmatmul.mubr.msk.f32.gmra.mxu0 %vm395_vm0, %v1794_v51 }
  0x59   : > { %2025 = vmatprep.mubr.msk.f32.mxu0 %vm395_vm0, %v1795_v52 }
  0x5c   : > { %2026 = vmatmul.mubr.msk.f32.gmra.mxu0 %vm395_vm0, %v1796_v53 }
  0x5d   : > { %2028 = vmatprep.mubr.msk.f32.mxu0 %vm395_vm0, %v1797_v54 }
  0x60   : > { %2029 = vmatmul.mubr.msk.f32.gmra.mxu0 %vm395_vm0, %v1798_v55 }
  0x61   : > { %2031 = vmatprep.mubr.msk.f32.mxu0 %vm395_vm0, %v1799_v56 }
  0x64   : > { %2032 = vmatmul.mubr.msk.f32.gmra.mxu0 %vm395_vm0, %v1800_v57 }
  0x65   : > { %2034 = vmatprep.mubr.msk.f32.mxu0 %vm395_vm0, %v1801_v58 }
  0x68   : > { %2035 = vmatmul.mubr.msk.f32.gmra.mxu0 %vm395_vm0, %v1802_v59 }
  0xf4   : > { %v1960_v1 = vpop.f32.mrf.mxu0 }
  0xf5   : > { %v510_v2 = vadd.f32 %v1960_v1, %v2339_v0 }
  0xf6   : > { %v504_v3 = vpop.f32.mrf.mxu0 }
  0xf7   : > { %v2342_v4 = vmul.f32 0.5714286, %v510_v2  ;;  %v505_v5 = vadd.f32 %v2339_v0, %v504_v3 }
  0xf8   : > { %v1963_v6 = vpop.f32.mrf.mxu0 }
  0xf9   : > { %v2345_v7 = vmul.f32 0.5714286, %v505_v5  ;;  %v520_v8 = vadd.f32 %v1963_v6, %v2339_v0  ;;  %vm602_vm1 = vcmp.ge.f32.partialorder %v2342_v4, 0.75 }
  0xfa   : > { %v514_v9 = vpop.f32.mrf.mxu0  ;;  %v2357_v15 = vsel %vm602_vm1, 1.0, %v2117_v13 }
  0xfb   : > { %v2349_v10 = vmul.f32 0.5714286, %v520_v8  ;;  %v515_v11 = vadd.f32 %v2339_v0, %v514_v9  ;;  %vm601_vm2 = vcmp.ge.f32.partialorder %v2345_v7, 0.75  ;;  %v644_v46 = vsub.f32 1.0, %v2357_v15 }
  0xfc   : > { %v1966_v12 = vpop.f32.mrf.mxu0  ;;  %v2354_v14 = vsel %vm601_vm2, 1.0, %v2117_v13 }
  0xfd   : > { %v2359_v16 = vmul.f32 0.5714286, %v515_v11  ;;  %v530_v17 = vadd.f32 %v1966_v12, %v2339_v0  ;;  %1987 = vmatprep.mubr.msk.f32.mxu1 %vm395_vm0, %v2354_v14  ;;  %vm604_vm3 = vcmp.ge.f32.partialorder %v2349_v10, 0.75  ;;  %v643_v53 = vsub.f32 1.0, %v2354_v14 }
  0xfe   : > { %v524_v18 = vpop.f32.mrf.mxu0  ;;  %1988 = vmatmul.mubr.msk.f32.vlgmr.msra.gmra.mxu1 %vm395_vm0, %v2357_v15  ;;  %v2375_v23 = vsel %vm604_vm3, 1.0, %v2117_v13  ;;  %v658_v57 = vmul.f32 %v644_v46, %v2342_v4 }
  0xff   : > { %vm603_vm4 = vcmp.ge.f32.partialorder %v2359_v16, 0.75  ;;  %v2368_v19 = vmul.f32 0.5714286, %v530_v17  ;;  %v525_v20 = vadd.f32 %v2339_v0, %v524_v18  ;;  %2038 = vmatpush3.msra.mxu1 %v373_v60  ;;  %v646_v58 = vsub.f32 1.0, %v2375_v23 }
 0x100   : > { %v2372_v21 = vsel %vm603_vm4, 1.0, %v2117_v13  ;;  %v1969_v22 = vpop.f32.mrf.mxu0  ;;  %2039 = vmatprep.subr.mxu1 %v372_v61  ;;  %v657_v2 = vmul.f32 %v643_v53, %v2345_v7 }
 0x101   : > { %v2377_v24 = vmul.f32 0.5714286, %v525_v20  ;;  %1990 = vmatprep.mubr.msk.f32.mxu1 %vm395_vm0, %v2372_v21  ;;  %2040 = vmatpush3.msra.mxu1 %v372_v61  ;;  %vm606_vm5 = vcmp.ge.f32.partialorder %v2368_v19, 0.75  ;;  %v540_v25 = vadd.f32 %v1969_v22, %v2339_v0  ;;  %v660_v6 = vmul.f32 %v646_v58, %v2349_v10 }
 0x102   : > { %v534_v26 = vpop.f32.mrf.mxu0  ;;  %1991 = vmatmul.mubr.msk.f32.gmra.mxu1 %vm395_vm0, %v2375_v23  ;;  %2041 = vmatprep.subr.mxu1 %v371_v62  ;;  %v2393_v31 = vsel %vm606_vm5, 1.0, %v2117_v13 }
 0x103   : > { %vm605_vm6 = vcmp.ge.f32.partialorder %v2377_v24, 0.75  ;;  %v535_v27 = vadd.f32 %v2339_v0, %v534_v26  ;;  %2042 = vmatpush3.msra.mxu1 %v371_v62  ;;  %v2390_v29 = vmul.f32 0.5714286, %v540_v25  ;;  %v648_v8 = vsub.f32 1.0, %v2393_v31 }
 0x104   : > { %v2388_v28 = vsel %vm605_vm6, 1.0, %v2117_v13  ;;  %v1972_v30 = vpop.f32.mrf.mxu0  ;;  %2043 = vmatprep.subr.mxu1 %v370_v63 }
 0x105   : > { %v2395_v32 = vmul.f32 0.5714286, %v535_v27  ;;  %v550_v33 = vadd.f32 %v1972_v30, %v2339_v0  ;;  %1993 = vmatprep.mubr.msk.f32.mxu1 %vm395_vm0, %v2388_v28  ;;  %2044 = vmatpush3.msra.mxu1 %v370_v63  ;;  %vm608_vm7 = vcmp.ge.f32.partialorder %v2390_v29, 0.75  ;;  %v645_v63 = vsub.f32 1.0, %v2372_v21 }
 0x106   : > { %v544_v34 = vpop.f32.mrf.mxu0  ;;  %1994 = vmatmul.mubr.msk.f32.gmra.mxu1 %vm395_vm0, %v2393_v31  ;;  %v2411_v39 = vsel %vm608_vm7, 1.0, %v2117_v13  ;;  %v647_v12 = vsub.f32 1.0, %v2388_v28  ;;  %v662_v25 = vmul.f32 %v648_v8, %v2368_v19 }
 0x107   : > { %vm607_vm8 = vcmp.ge.f32.partialorder %v2395_v32, 0.75  ;;  %v2404_v35 = vmul.f32 0.5714286, %v550_v33  ;;  %v545_v37 = vadd.f32 %v2339_v0, %v544_v34  ;;  %v659_v17 = vmul.f32 %v645_v63, %v2359_v16 }
 0x108   : > { %v2407_v36 = vsel %vm607_vm8, 1.0, %v2117_v13  ;;  %v1975_v38 = vpop.f32.mrf.mxu0  ;;  %v650_v21 = vsub.f32 1.0, %v2411_v39  ;;  %v661_v30 = vmul.f32 %v647_v12, %v2377_v24 }
 0x109   : > { %v560_v40 = vadd.f32 %v1975_v38, %v2339_v0  ;;  %1996 = vmatprep.mubr.msk.f32.mxu1 %vm395_vm0, %v2407_v36  ;;  %v2416_v41 = vmul.f32 0.5714286, %v545_v37  ;;  %vm610_vm9 = vcmp.ge.f32.partialorder %v2404_v35, 0.75  ;;  %v649_v16 = vsub.f32 1.0, %v2407_v36 }
 0x10a   : > { %v554_v42 = vpop.f32.mrf.mxu0  ;;  %1997 = vmatmul.mubr.msk.f32.gmra.mxu1 %vm395_vm0, %v2411_v39  ;;  %v2432_v49 = vsel %vm610_vm9, 1.0, %v2117_v13 }
 0x10b   : > { %v2421_v43 = vmul.f32 0.5714286, %v560_v40  ;;  %v555_v44 = vadd.f32 %v2339_v0, %v554_v42  ;;  %vm609_vm10 = vcmp.ge.f32.partialorder %v2416_v41, 0.75  ;;  %v664_v40 = vmul.f32 %v650_v21, %v2390_v29 }
 0x10c   : > { %v1978_v45 = vpop.f32.mrf.mxu0  ;;  %v2427_v47 = vsel %vm609_vm10, 1.0, %v2117_v13  ;;  %v652_v19 = vsub.f32 1.0, %v2432_v49  ;;  %v663_v46 = vmul.f32 %v649_v16, %v2395_v32 }
 0x10d   : > { %v2429_v48 = vmul.f32 0.5714286, %v555_v44  ;;  %v570_v50 = vadd.f32 %v1978_v45, %v2339_v0  ;;  %1999 = vmatprep.mubr.msk.f32.mxu1 %vm395_vm0, %v2427_v47  ;;  %vm612_vm11 = vcmp.ge.f32.partialorder %v2421_v43, 0.75 }
 0x10e   : > { %v564_v51 = vpop.f32.mrf.mxu0  ;;  %2000 = vmatmul.mubr.msk.f32.gmra.mxu1 %vm395_vm0, %v2432_v49  ;;  %v2456_v61 = vsel %vm612_vm11, 1.0, %v2117_v13 }
 0x10f   : > { %vm611_vm12 = vcmp.ge.f32.partialorder %v2429_v48, 0.75  ;;  %v565_v52 = vadd.f32 %v2339_v0, %v564_v51  ;;  %v2446_v55 = vmul.f32 0.5714286, %v570_v50  ;;  %v651_v50 = vsub.f32 1.0, %v2427_v47 }
 0x110   : > { %v2444_v54 = vsel %vm611_vm12, 1.0, %v2117_v13  ;;  %v2018_v56 = vpop.f32.mrf.mxu0  ;;  %v654_v32 = vsub.f32 1.0, %v2456_v61 }
 0x111   : > { %v2450_v59 = vmul.f32 0.5714286, %v565_v52  ;;  %v1095_v60 = vadd.f32 %v2018_v56, %v2339_v0  ;;  %2002 = vmatprep.mubr.msk.f32.mxu1 %vm395_vm0, %v2444_v54  ;;  %vm614_vm13 = vcmp.ge.f32.partialorder %v2446_v55, 0.75 }
 0x112   : > { %v1089_v62 = vpop.f32.mrf.mxu0  ;;  %2003 = vmatmul.mubr.msk.f32.gmra.mxu1 %vm395_vm0, %v2456_v61  ;;  %v2475_v7 = vsel %vm614_vm13, 1.0, %v2117_v13 }
 0x113   : > { %vm613_vm14 = vcmp.ge.f32.partialorder %v2450_v59, 0.75  ;;  %v1159_v1 = vsub.f32 %v1095_v60, %v658_v57  ;;  %v1090_v4 = vadd.f32 %v2339_v0, %v1089_v62  ;;  %v656_v12 = vsub.f32 1.0, %v2475_v7 }
 0x114   : > { %v2465_v3 = vsel %vm613_vm14, 1.0, %v2117_v13  ;;  %v2021_v5 = vpop.f32.mrf.mxu0 }
 0x115   : > { %v1173_v9 = vmul.f32 0.5714286, %v1159_v1  ;;  %v1105_v11 = vadd.f32 %v2021_v5, %v2339_v0  ;;  %2005 = vmatprep.mubr.msk.f32.mxu1 %vm395_vm0, %v2465_v3  ;;  %v1158_v14 = vsub.f32 %v1090_v4, %v657_v2  ;;  %v653_v4 = vsub.f32 1.0, %v2444_v54 }
 0x116   : > { %v1099_v15 = vpop.f32.mrf.mxu0  ;;  %2006 = vmatmul.mubr.msk.f32.gmra.mxu1 %vm395_vm0, %v2475_v7 }
 0x117   : > { %v1187_v18 = vadd.f32 %v1173_v9, %v658_v57  ;;  %v1161_v20 = vsub.f32 %v1105_v11, %v660_v6  ;;  %v1100_v10 = vadd.f32 %v2339_v0, %v1099_v15  ;;  %v1172_v22 = vmul.f32 0.5714286, %v1158_v14 }
 0x118   : > { %v2024_v23 = vpop.f32.mrf.mxu0  ;;  %v666_v57 = vmul.f32 %v652_v19, %v2404_v35  ;;  %v668_v11 = vmul.f32 %v654_v32, %v2421_v43 }
 0x119   : > { %v1175_v26 = vmul.f32 0.5714286, %v1161_v20  ;;  %v1160_v27 = vsub.f32 %v1100_v10, %v659_v17  ;;  %v1115_v28 = vadd.f32 %v2024_v23, %v2339_v0  ;;  %vm1201_vm15 = vcmp.ge.f32.partialorder %v1187_v18, 0.75 }
 0x11a   : > { %v1109_v31 = vpop.f32.mrf.mxu0  ;;  %v1186_v33 = vadd.f32 %v1172_v22, %v657_v2  ;;  %v1818_v51 = vsel %vm1201_vm15, 1.0, %v2117_v13  ;;  %v665_v2 = vmul.f32 %v651_v50, %v2416_v41  ;;  %v667_v20 = vmul.f32 %v653_v4, %v2429_v48 }
 0x11b   : > { %v1174_v34 = vmul.f32 0.5714286, %v1160_v27  ;;  %v1163_v37 = vsub.f32 %v1115_v28, %v662_v25  ;;  %v1110_v38 = vadd.f32 %v2339_v0, %v1109_v31  ;;  %v1189_v39 = vadd.f32 %v1175_v26, %v660_v6 }
 0x11c   : > { %v2027_v42 = vpop.f32.mrf.mxu0  ;;  %vm1200_vm1 = vcmp.ge.f32.partialorder %v1186_v33, 0.75  ;;  %v655_v10 = vsub.f32 1.0, %v2465_v3  ;;  %v670_v26 = vmul.f32 %v656_v12, %v2446_v55 }
 0x11d   : > { %v1177_v44 = vmul.f32 0.5714286, %v1163_v37  ;;  %v1162_v45 = vsub.f32 %v1110_v38, %v661_v30  ;;  %v1125_v24 = vadd.f32 %v2027_v42, %v2339_v0  ;;  %v1817_v36 = vsel %vm1200_vm1, 1.0, %v2117_v13 }
 0x11e   : > { %2045 = vmatprep.mubr.msk.f32.mxu1 %vm395_vm0, %v1817_v36  ;;  %v1119_v29 = vpop.f32.mrf.mxu0  ;;  %v1188_v52 = vadd.f32 %v1174_v34, %v659_v17  ;;  %vm1203_vm2 = vcmp.ge.f32.partialorder %v1189_v39, 0.75  ;;  %v669_v31 = vmul.f32 %v655_v10, %v2450_v59 }
 0x11f   : > { %v1176_v49 = vmul.f32 0.5714286, %v1162_v45  ;;  %v1165_v53 = vsub.f32 %v1125_v24, %v664_v40  ;;  %v1120_v56 = vadd.f32 %v2339_v0, %v1119_v29  ;;  %2046 = vmatmul.mubr.msk.f32.vlgmr.msra.gmra.mxu1 %vm395_vm0, %v1818_v51  ;;  %v1191_v47 = vadd.f32 %v1177_v44, %v662_v25 }
 0x120   : > { %v2030_v58 = vpop.f32.mrf.mxu0  ;;  %vm1202_vm3 = vcmp.ge.f32.partialorder %v1188_v52, 0.75  ;;  %v1820_v35 = vsel %vm1203_vm2, 1.0, %v2117_v13  ;;  %v2541_v52 = vld [vmem:[%s2849_s4] ss:$0 sm:$0xff] }
 0x121   : > { %v1179_v60 = vmul.f32 0.5714286, %v1165_v53  ;;  %v1164_v62 = vsub.f32 %v1120_v56, %v663_v46  ;;  %v1135_v63 = vadd.f32 %v2030_v58, %v2339_v0  ;;  %v1819_v1 = vsel %vm1202_vm3, 1.0, %v2117_v13 }
 0x122   : > { %2048 = vmatprep.mubr.msk.f32.mxu1 %vm395_vm0, %v1819_v1  ;;  %v1129_v5 = vpop.f32.mrf.mxu0  ;;  %v1190_v6 = vadd.f32 %v1176_v49, %v661_v30  ;;  %vm1205_vm4 = vcmp.ge.f32.partialorder %v1191_v47, 0.75 }
 0x123   : > { %v1178_v61 = vmul.f32 0.5714286, %v1164_v62  ;;  %v1167_v8 = vsub.f32 %v1135_v63, %v666_v57  ;;  %v1130_v9 = vadd.f32 %v2339_v0, %v1129_v5  ;;  %2049 = vmatmul.mubr.msk.f32.gmra.mxu1 %vm395_vm0, %v1820_v35  ;;  %v1193_v54 = vadd.f32 %v1179_v60, %v664_v40 }
 0x124   : > { %v2033_v41 = vpop.f32.mrf.mxu0  ;;  %vm1204_vm5 = vcmp.ge.f32.partialorder %v1190_v6, 0.75  ;;  %v1822_v43 = vsel %vm1205_vm4, 1.0, %v2117_v13 }
 0x125   : > { %v1181_v14 = vmul.f32 0.5714286, %v1167_v8  ;;  %v1166_v15 = vsub.f32 %v1130_v9, %v665_v2  ;;  %v1145_v17 = vadd.f32 %v2033_v41, %v2339_v0  ;;  %v1821_v18 = vsel %vm1204_vm5, 1.0, %v2117_v13 }
 0x126   : > { %2051 = vmatprep.mubr.msk.f32.mxu1 %vm395_vm0, %v1821_v18  ;;  %v1139_v21 = vpop.f32.mrf.mxu0  ;;  %v1192_v22 = vadd.f32 %v1178_v61, %v663_v46  ;;  %vm1207_vm6 = vcmp.ge.f32.partialorder %v1193_v54, 0.75 }
 0x127   : > { %v1180_v7 = vmul.f32 0.5714286, %v1166_v15  ;;  %v1169_v23 = vsub.f32 %v1145_v17, %v668_v11  ;;  %v1140_v25 = vadd.f32 %v2339_v0, %v1139_v21  ;;  %2052 = vmatmul.mubr.msk.f32.gmra.mxu1 %vm395_vm0, %v1822_v43  ;;  %v1195_v48 = vadd.f32 %v1181_v14, %v666_v57 }
 0x128   : > { %v2036_v27 = vpop.f32.mrf.mxu0  ;;  %vm1206_vm7 = vcmp.ge.f32.partialorder %v1192_v22, 0.75  ;;  %v1824_v34 = vsel %vm1207_vm6, 1.0, %v2117_v13 }
 0x129   : > { %v1183_v28 = vmul.f32 0.5714286, %v1169_v23  ;;  %v1168_v3 = vsub.f32 %v1140_v25, %v667_v20  ;;  %v1155_v30 = vadd.f32 %v2036_v27, %v2339_v0  ;;  %v1823_v16 = vsel %vm1206_vm7, 1.0, %v2117_v13 }
 0x12a   : > { %2054 = vmatprep.mubr.msk.f32.mxu1 %vm395_vm0, %v1823_v16  ;;  %v1149_v33 = vpop.f32.mrf.mxu0  ;;  %v1194_v37 = vadd.f32 %v1180_v7, %v665_v2  ;;  %vm1209_vm8 = vcmp.ge.f32.partialorder %v1195_v48, 0.75 }
 0x12b   : > { %v1182_v38 = vmul.f32 0.5714286, %v1168_v3  ;;  %v1171_v39 = vsub.f32 %v1155_v30, %v670_v26  ;;  %v1150_v55 = vadd.f32 %v2339_v0, %v1149_v33  ;;  %2055 = vmatmul.mubr.msk.f32.gmra.mxu1 %vm395_vm0, %v1824_v34  ;;  %v1197_v40 = vadd.f32 %v1183_v28, %v668_v11 }
 0x12c   : > { %vm1208_vm9 = vcmp.ge.f32.partialorder %v1194_v37, 0.75  ;;  %v1826_v45 = vsel %vm1209_vm8, 1.0, %v2117_v13 }
 0x12d   : > { %v1185_v19 = vmul.f32 0.5714286, %v1171_v39  ;;  %v1170_v42 = vsub.f32 %v1150_v55, %v669_v31  ;;  %v1825_v44 = vsel %vm1208_vm9, 1.0, %v2117_v13  ;;  %v1196_v59 = vadd.f32 %v1182_v38, %v667_v20 }
 0x12e   : > { %2057 = vmatprep.mubr.msk.f32.mxu1 %vm395_vm0, %v1825_v44  ;;  %vm1211_vm11 = vcmp.ge.f32.partialorder %v1197_v40, 0.75 }
 0x12f   : > { %v1184_v24 = vmul.f32 0.5714286, %v1170_v42  ;;  %2058 = vmatmul.mubr.msk.f32.gmra.mxu1 %vm395_vm0, %v1826_v45  ;;  %vm1210_vm10 = vcmp.ge.f32.partialorder %v1196_v59, 0.75  ;;  %v1199_v0 = vadd.f32 %v1185_v19, %v670_v26  ;;  %v1828_v50 = vsel %vm1211_vm11, 1.0, %v2117_v13 }
 0x130   : > { %v1827_v36 = vsel %vm1210_vm10, 1.0, %v2117_v13 }
 0x131   : > { %2060 = vmatprep.mubr.msk.f32.mxu1 %vm395_vm0, %v1827_v36  ;;  %v1198_v46 = vadd.f32 %v1184_v24, %v669_v31  ;;  %vm1213_vm13 = vcmp.ge.f32.partialorder %v1199_v0, 0.75 }
 0x132   : > { %v1830_v29 = vsel %vm1213_vm13, 1.0, %v2117_v13 }
 0x133   : > { %2061 = vmatmul.mubr.msk.f32.gmra.mxu1 %vm395_vm0, %v1828_v50  ;;  %vm1212_vm12 = vcmp.ge.f32.partialorder %v1198_v46, 0.75 }
 0x134   : > { %v1829_v51 = vsel %vm1212_vm12, 1.0, %v2117_v13 }
 0x135   : > { %2063 = vmatprep.mubr.msk.f32.mxu1 %vm395_vm0, %v1829_v51 }
 0x137   : > { %2064 = vmatmul.mubr.msk.f32.gmra.mxu1 %vm395_vm0, %v1830_v29 }
 0x1be   : > { %v1989_v49 = vpop.f32.mrf.mxu1 }
 0x1bf   : > { %v791_v53 = vadd.f32 %v1989_v49, %v2541_v52 }
 0x1c0   : > { %v785_v56 = vpop.f32.mrf.mxu1 }
 0x1c1   : > { %v2544_v57 = vmul.f32 0.5714286, %v791_v53  ;;  %v786_v32 = vadd.f32 %v2541_v52, %v785_v56 }
 0x1c2   : > { %v1992_v58 = vpop.f32.mrf.mxu1 }
 0x1c3   : > { %vm883_vm14 = vcmp.ge.f32.partialorder %v2544_v57, 0.75  ;;  %v2548_v47 = vmul.f32 0.5714286, %v786_v32  ;;  %v801_v60 = vadd.f32 %v1992_v58, %v2541_v52 }
 0x1c4   : > { %v2552_v62 = vsel %vm883_vm14, 1.0, %v2117_v13  ;;  %v795_v63 = vpop.f32.mrf.mxu1 }
 0x1c5   : > { %953 = vst.msk [vmem:[%s2555_s13 + $0x8] sm:$0xff] %vm395_vm0, %v2552_v62  ;;  %vm882_vm15 = vcmp.ge.f32.partialorder %v2548_v47, 0.75  ;;  %v2561_v1 = vmul.f32 0.5714286, %v801_v60  ;;  %v796_v2 = vadd.f32 %v2541_v52, %v795_v63  ;;  %v925_v44 = vsub.f32 1.0, %v2552_v62 }
 0x1c6   : > { %v2565_v4 = vsel %vm882_vm15, 1.0, %v2117_v13  ;;  %v1995_v5 = vpop.f32.mrf.mxu1 }
 0x1c7   : > { %952 = vst.msk [vmem:[%s2555_s13] sm:$0xff] %vm395_vm0, %v2565_v4  ;;  %vm885_vm1 = vcmp.ge.f32.partialorder %v2561_v1, 0.75  ;;  %v2571_v35 = vmul.f32 0.5714286, %v796_v2  ;;  %v811_v61 = vadd.f32 %v1995_v5, %v2541_v52  ;;  %v924_v0 = vsub.f32 1.0, %v2565_v4 }
 0x1c8   : > { %v2574_v6 = vsel %vm885_vm1, 1.0, %v2117_v13  ;;  %v805_v8 = vpop.f32.mrf.mxu1  ;;  %v939_v50 = vmul.f32 %v925_v44, %v2544_v57 }
 0x1c9   : > { %955 = vst.msk [vmem:[%s2555_s13 + $0x18] sm:$0xff] %vm395_vm0, %v2574_v6  ;;  %vm884_vm2 = vcmp.ge.f32.partialorder %v2571_v35, 0.75  ;;  %v806_v9 = vadd.f32 %v2541_v52, %v805_v8  ;;  %v2585_v12 = vmul.f32 0.5714286, %v811_v61  ;;  %v927_v51 = vsub.f32 1.0, %v2574_v6 }
 0x1ca   : > { %v2583_v11 = vsel %vm884_vm2, 1.0, %v2117_v13  ;;  %v1998_v41 = vpop.f32.mrf.mxu1  ;;  %v938_v56 = vmul.f32 %v924_v0, %v2548_v47 }
 0x1cb   : > { %954 = vst.msk [vmem:[%s2555_s13 + $0x10] sm:$0xff] %vm395_vm0, %v2583_v11  ;;  %v2590_v54 = vmul.f32 0.5714286, %v806_v9  ;;  %v821_v14 = vadd.f32 %v1998_v41, %v2541_v52  ;;  %vm887_vm3 = vcmp.ge.f32.partialorder %v2585_v12, 0.75  ;;  %v926_v49 = vsub.f32 1.0, %v2583_v11 }
 0x1cc   : > { %v815_v15 = vpop.f32.mrf.mxu1  ;;  %v2595_v17 = vsel %vm887_vm3, 1.0, %v2117_v13  ;;  %v941_v62 = vmul.f32 %v927_v51, %v2561_v1 }
 0x1cd   : > { %vm886_vm4 = vcmp.ge.f32.partialorder %v2590_v54, 0.75  ;;  %v2598_v18 = vmul.f32 0.5714286, %v821_v14  ;;  %957 = vst.msk [vmem:[%s2555_s13 + $0x28] sm:$0xff] %vm395_vm0, %v2595_v17  ;;  %v816_v10 = vadd.f32 %v2541_v52, %v815_v15  ;;  %v940_v4 = vmul.f32 %v926_v49, %v2571_v35 }
 0x1ce   : > { %v2604_v20 = vsel %vm886_vm4, 1.0, %v2117_v13  ;;  %v2001_v21 = vpop.f32.mrf.mxu1  ;;  %v929_v5 = vsub.f32 1.0, %v2595_v17 }
 0x1cf   : > { %956 = vst.msk [vmem:[%s2555_s13 + $0x20] sm:$0xff] %vm395_vm0, %v2604_v20  ;;  %vm889_vm5 = vcmp.ge.f32.partialorder %v2598_v18, 0.75  ;;  %v2614_v22 = vmul.f32 0.5714286, %v816_v10  ;;  %v831_v7 = vadd.f32 %v2001_v21, %v2541_v52  ;;  %v928_v6 = vsub.f32 1.0, %v2604_v20 }
 0x1d0   : > { %v2612_v43 = vsel %vm889_vm5, 1.0, %v2117_v13  ;;  %v825_v23 = vpop.f32.mrf.mxu1  ;;  %v943_v17 = vmul.f32 %v929_v5, %v2585_v12 }
 0x1d1   : > { %959 = vst.msk [vmem:[%s2555_s13 + $0x38] sm:$0xff] %vm395_vm0, %v2612_v43  ;;  %vm888_vm6 = vcmp.ge.f32.partialorder %v2614_v22, 0.75  ;;  %v2621_v25 = vmul.f32 0.5714286, %v831_v7  ;;  %v826_v26 = vadd.f32 %v2541_v52, %v825_v23  ;;  %v931_v41 = vsub.f32 1.0, %v2612_v43 }
 0x1d2   : > { %v2625_v27 = vsel %vm888_vm6, 1.0, %v2117_v13  ;;  %v2004_v48 = vpop.f32.mrf.mxu1  ;;  %v942_v20 = vmul.f32 %v928_v6, %v2590_v54 }
 0x1d3   : > { %958 = vst.msk [vmem:[%s2555_s13 + $0x30] sm:$0xff] %vm395_vm0, %v2625_v27  ;;  %vm891_vm7 = vcmp.ge.f32.partialorder %v2621_v25, 0.75  ;;  %v2631_v28 = vmul.f32 0.5714286, %v826_v26  ;;  %v841_v3 = vadd.f32 %v2004_v48, %v2541_v52  ;;  %v930_v1 = vsub.f32 1.0, %v2625_v27 }
 0x1d4   : > { %v2635_v30 = vsel %vm891_vm7, 1.0, %v2117_v13  ;;  %v835_v16 = vpop.f32.mrf.mxu1  ;;  %v945_v48 = vmul.f32 %v931_v41, %v2598_v18 }
 0x1d5   : > { %961 = vst.msk [vmem:[%s2555_s13 + $0x48] sm:$0xff] %vm395_vm0, %v2635_v30  ;;  %vm890_vm8 = vcmp.ge.f32.partialorder %v2631_v28, 0.75  ;;  %v2641_v31 = vmul.f32 0.5714286, %v841_v3  ;;  %v836_v34 = vadd.f32 %v2541_v52, %v835_v16  ;;  %v944_v3 = vmul.f32 %v930_v1, %v2614_v22 }
 0x1d6   : > { %v2644_v33 = vsel %vm890_vm8, 1.0, %v2117_v13  ;;  %v2007_v37 = vpop.f32.mrf.mxu1 }
 0x1d7   : > { %960 = vst.msk [vmem:[%s2555_s13 + $0x40] sm:$0xff] %vm395_vm0, %v2644_v33  ;;  %vm893_vm9 = vcmp.ge.f32.partialorder %v2641_v31, 0.75  ;;  %v851_v38 = vadd.f32 %v2007_v37, %v2541_v52  ;;  %v2655_v55 = vmul.f32 0.5714286, %v836_v34 }
 0x1d8   : > { %v2653_v39 = vsel %vm893_vm9, 1.0, %v2117_v13  ;;  %v845_v40 = vpop.f32.mrf.mxu1 }
 0x1d9   : > { %963 = vst.msk [vmem:[%s2555_s13 + $0x58] sm:$0xff] %vm395_vm0, %v2653_v39  ;;  %v2660_v19 = vmul.f32 0.5714286, %v851_v38  ;;  %v846_v42 = vadd.f32 %v2541_v52, %v845_v40  ;;  %vm892_vm10 = vcmp.ge.f32.partialorder %v2655_v55, 0.75  ;;  %v933_v40 = vsub.f32 1.0, %v2635_v30 }
 0x1da   : > { %v2666_v59 = vsel %vm892_vm10, 1.0, %v2117_v13  ;;  %v935_v51 = vsub.f32 1.0, %v2653_v39 }
 0x1db   : > { %vm895_vm11 = vcmp.ge.f32.partialorder %v2660_v19, 0.75  ;;  %v2669_v45 = vmul.f32 0.5714286, %v846_v42  ;;  %962 = vst.msk [vmem:[%s2555_s13 + $0x50] sm:$0xff] %vm395_vm0, %v2666_v59  ;;  %v932_v42 = vsub.f32 1.0, %v2644_v33 }
 0x1dc   : > { %v2675_v24 = vsel %vm895_vm11, 1.0, %v2117_v13 }
 0x1dd   : > { %965 = vst.msk [vmem:[%s2555_s13 + $0x68] sm:$0xff] %vm395_vm0, %v2675_v24  ;;  %vm894_vm12 = vcmp.ge.f32.partialorder %v2669_v45, 0.75 }
 0x1de   : > { %v2683_v36 = vsel %vm894_vm12, 1.0, %v2117_v13 }
 0x1df   : > { %v2047_v46 = vpop.f32.mrf.mxu1  ;;  %964 = vst.msk [vmem:[%s2555_s13 + $0x60] sm:$0xff] %vm395_vm0, %v2683_v36 }
 0x1e0   : > { %v1356_v29 = vadd.f32 %v2047_v46, %v2541_v52 }
 0x1e1   : > { %v1350_v53 = vpop.f32.mrf.mxu1 }
 0x1e2   : > { %v1420_v32 = vsub.f32 %v1356_v29, %v939_v50  ;;  %v1351_v58 = vadd.f32 %v2541_v52, %v1350_v53 }
 0x1e3   : > { %v2050_v60 = vpop.f32.mrf.mxu1 }
 0x1e4   : > { %v1434_v63 = vmul.f32 0.5714286, %v1420_v32  ;;  %v1419_v57 = vsub.f32 %v1351_v58, %v938_v56  ;;  %v1366_v2 = vadd.f32 %v2050_v60, %v2541_v52  ;;  %v947_v58 = vmul.f32 %v933_v40, %v2621_v25 }
 0x1e5   : > { %v1360_v61 = vpop.f32.mrf.mxu1  ;;  %v946_v60 = vmul.f32 %v932_v42, %v2631_v28 }
 0x1e6   : > { %v1448_v8 = vadd.f32 %v1434_v63, %v939_v50  ;;  %v1433_v47 = vmul.f32 0.5714286, %v1419_v57  ;;  %v1422_v9 = vsub.f32 %v1366_v2, %v941_v62  ;;  %v1361_v11 = vadd.f32 %v2541_v52, %v1360_v61 }
 0x1e7   : > { %v2053_v14 = vpop.f32.mrf.mxu1 }
 0x1e8   : > { %vm1462_vm13 = vcmp.ge.f32.partialorder %v1448_v8, 0.75  ;;  %v1447_v15 = vadd.f32 %v1433_v47, %v938_v56  ;;  %v1436_v10 = vmul.f32 0.5714286, %v1422_v9  ;;  %v1421_v35 = vsub.f32 %v1361_v11, %v940_v4 }
 0x1e9   : > { %v1846_v21 = vsel %vm1462_vm13, 1.0, %v2117_v13  ;;  %v1376_v7 = vadd.f32 %v2053_v14, %v2541_v52  ;;  %v1370_v23 = vpop.f32.mrf.mxu1  ;;  %v936_v14 = vsub.f32 1.0, %v2683_v36 }
 0x1ea   : > { %1860 = vst.msk [vmem:[%s2555_s13 + $0x78] sm:$0xff] %vm395_vm0, %v1846_v21  ;;  %vm1461_vm14 = vcmp.ge.f32.partialorder %v1447_v15, 0.75  ;;  %v1450_v43 = vadd.f32 %v1436_v10, %v941_v62  ;;  %v1435_v26 = vmul.f32 0.5714286, %v1421_v35  ;;  %v1371_v27 = vadd.f32 %v2541_v52, %v1370_v23 }
 0x1eb   : > { %v1845_v12 = vsel %vm1461_vm14, 1.0, %v2117_v13  ;;  %v1424_v54 = vsub.f32 %v1376_v7, %v943_v17  ;;  %v2056_v16 = vpop.f32.mrf.mxu1  ;;  %v934_v62 = vsub.f32 1.0, %v2666_v59  ;;  %v937_v59 = vsub.f32 1.0, %v2675_v24 }
 0x1ec   : > { %1859 = vst.msk [vmem:[%s2555_s13 + $0x70] sm:$0xff] %vm395_vm0, %v1845_v12  ;;  %vm1464_vm15 = vcmp.ge.f32.partialorder %v1450_v43, 0.75  ;;  %v1449_v34 = vadd.f32 %v1435_v26, %v940_v4  ;;  %v1423_v37 = vsub.f32 %v1371_v27, %v942_v20  ;;  %v1386_v38 = vadd.f32 %v2056_v16, %v2541_v52 }
 0x1ed   : > { %v1848_v18 = vsel %vm1464_vm15, 1.0, %v2117_v13  ;;  %v1438_v44 = vmul.f32 0.5714286, %v1424_v54  ;;  %v1380_v22 = vpop.f32.mrf.mxu1  ;;  %v949_v4 = vmul.f32 %v935_v51, %v2641_v31  ;;  %v948_v41 = vmul.f32 %v934_v62, %v2655_v55  ;;  %v1622_v51 = vld [vmem:[%s2555_s13 + $0x30] sm:$0xff] (%p2178_p5) }
 0x1ee   : > { %1862 = vst.msk [vmem:[%s2555_s13 + $0x88] sm:$0xff] %vm395_vm0, %v1848_v18  ;;  %vm1463_vm1 = vcmp.ge.f32.partialorder %v1449_v34, 0.75  ;;  %v1437_v0 = vmul.f32 0.5714286, %v1423_v37  ;;  %v1426_v46 = vsub.f32 %v1386_v38, %v945_v48  ;;  %v1381_v50 = vadd.f32 %v2541_v52, %v1380_v22  ;;  %v1612_v22 = vld [vmem:[%s2555_s13 + $0x8] sm:$0xff] (%p2178_p5)  ;;  %1623 = vst [vmem:[%s2783_s15 + $0x30] sm:$0xff] (%p2178_p5), %v1622_v51 }
 0x1ef   : > { %v1847_v29 = vsel %vm1463_vm1, 1.0, %v2117_v13  ;;  %v1452_v49 = vadd.f32 %v1438_v44, %v943_v17  ;;  %v2059_v53 = vpop.f32.mrf.mxu1  ;;  %v1610_v44 = vld [vmem:[%s2555_s13] sm:$0xff] (%p2178_p5)  ;;  %1613 = vst [vmem:[%s2783_s15 + $0x8] sm:$0xff] (%p2178_p5), %v1612_v22 }
 0x1f0   : > { %1861 = vst.msk [vmem:[%s2555_s13 + $0x80] sm:$0xff] %vm395_vm0, %v1847_v29  ;;  %v1451_v30 = vadd.f32 %v1437_v0, %v942_v20  ;;  %v1440_v33 = vmul.f32 0.5714286, %v1426_v46  ;;  %v1425_v56 = vsub.f32 %v1381_v50, %v944_v3  ;;  %v1396_v32 = vadd.f32 %v2059_v53, %v2541_v52  ;;  %v1616_v0 = vld [vmem:[%s2555_s13 + $0x18] sm:$0xff] (%p2178_p5)  ;;  %v1618_v46 = vld [vmem:[%s2555_s13 + $0x20] sm:$0xff] (%p2178_p5)  ;;  %v1620_v50 = vld [vmem:[%s2555_s13 + $0x28] sm:$0xff] (%p2178_p5) }
 0x1f1   : > { %vm1466_vm2 = vcmp.ge.f32.partialorder %v1452_v49, 0.75  ;;  %v1390_v39 = vpop.f32.mrf.mxu1  ;;  %v951_v20 = vmul.f32 %v937_v59, %v2660_v19  ;;  %v1624_v29 = vld [vmem:[%s2555_s13 + $0x38] sm:$0xff] (%p2178_p5)  ;;  %v1626_v49 = vld [vmem:[%s2555_s13 + $0x40] sm:$0xff] (%p2178_p5)  ;;  %1611 = vst [vmem:[%s2783_s15] sm:$0xff] (%p2178_p5), %v1610_v44  ;;  %1617 = vst [vmem:[%s2783_s15 + $0x18] sm:$0xff] (%p2178_p5), %v1616_v0 }
 0x1f2   : > { %v1850_v63 = vsel %vm1466_vm2, 1.0, %v2117_v13  ;;  %vm1465_vm3 = vcmp.ge.f32.partialorder %v1451_v30, 0.75  ;;  %v1454_v57 = vadd.f32 %v1440_v33, %v945_v48  ;;  %v1439_v2 = vmul.f32 0.5714286, %v1425_v56  ;;  %1619 = vst [vmem:[%s2783_s15 + $0x20] sm:$0xff] (%p2178_p5), %v1618_v46  ;;  %1621 = vst [vmem:[%s2783_s15 + $0x28] sm:$0xff] (%p2178_p5), %v1620_v50 }
 0x1f3   : > { %1864 = vst.msk [vmem:[%s2555_s13 + $0x98] sm:$0xff] %vm395_vm0, %v1850_v63  ;;  %v1849_v5 = vsel %vm1465_vm3, 1.0, %v2117_v13  ;;  %v1428_v25 = vsub.f32 %v1396_v32, %v947_v58  ;;  %v1391_v6 = vadd.f32 %v2541_v52, %v1390_v39  ;;  %v2062_v28 = vpop.f32.mrf.mxu1  ;;  %1625 = vst [vmem:[%s2783_s15 + $0x38] sm:$0xff] (%p2178_p5), %v1624_v29  ;;  %v1628_v53 = vld [vmem:[%s2555_s13 + $0x48] sm:$0xff] (%p2178_p5)  ;;  %v1630_v30 = vld [vmem:[%s2555_s13 + $0x50] sm:$0xff] (%p2178_p5) }
 0x1f4   : > { %1863 = vst.msk [vmem:[%s2555_s13 + $0x90] sm:$0xff] %vm395_vm0, %v1849_v5  ;;  %vm1468_vm4 = vcmp.ge.f32.partialorder %v1454_v57, 0.75  ;;  %v1453_v61 = vadd.f32 %v1439_v2, %v944_v3  ;;  %v1406_v8 = vadd.f32 %v2062_v28, %v2541_v52  ;;  %v950_v3 = vmul.f32 %v936_v14, %v2669_v45  ;;  %1627 = vst [vmem:[%s2783_s15 + $0x40] sm:$0xff] (%p2178_p5), %v1626_v49  ;;  %v1632_v33 = vld [vmem:[%s2555_s13 + $0x58] sm:$0xff] (%p2178_p5)  ;;  %v1634_v56 = vld [vmem:[%s2555_s13 + $0x60] sm:$0xff] (%p2178_p5) }
 0x1f5   : > { %v1852_v31 = vsel %vm1468_vm4, 1.0, %v2117_v13  ;;  %v1442_v47 = vmul.f32 0.5714286, %v1428_v25  ;;  %v1427_v9 = vsub.f32 %v1391_v6, %v946_v60  ;;  %v1400_v11 = vpop.f32.mrf.mxu1  ;;  %1629 = vst [vmem:[%s2783_s15 + $0x48] sm:$0xff] (%p2178_p5), %v1628_v53  ;;  %1631 = vst [vmem:[%s2783_s15 + $0x50] sm:$0xff] (%p2178_p5), %v1630_v30  ;;  %v1636_v32 = vld [vmem:[%s2555_s13 + $0x68] sm:$0xff] (%p2178_p5) }
 0x1f6   : > { %1866 = vst.msk [vmem:[%s2555_s13 + $0xa8] sm:$0xff] %vm395_vm0, %v1852_v31  ;;  %vm1467_vm5 = vcmp.ge.f32.partialorder %v1453_v61, 0.75  ;;  %v1430_v1 = vsub.f32 %v1406_v8, %v949_v4  ;;  %v1401_v24 = vadd.f32 %v2541_v52, %v1400_v11  ;;  %1633 = vst [vmem:[%s2783_s15 + $0x58] sm:$0xff] (%p2178_p5), %v1632_v33  ;;  %v1644_v39 = vld [vmem:[%s2555_s13 + $0x88] sm:$0xff] (%p2178_p5) }
 0x1f7   : > { %v1851_v15 = vsel %vm1467_vm5, 1.0, %v2117_v13  ;;  %v1456_v10 = vadd.f32 %v1442_v47, %v947_v58  ;;  %v1441_v35 = vmul.f32 0.5714286, %v1427_v9  ;;  %v2065_v17 = vpop.f32.mrf.mxu1  ;;  %v1638_v58 = vld [vmem:[%s2555_s13 + $0x70] sm:$0xff] (%p2178_p5)  ;;  %1635 = vst [vmem:[%s2783_s15 + $0x60] sm:$0xff] (%p2178_p5), %v1634_v56  ;;  %1637 = vst [vmem:[%s2783_s15 + $0x68] sm:$0xff] (%p2178_p5), %v1636_v32 }
 0x1f8   : > { %1865 = vst.msk [vmem:[%s2555_s13 + $0xa0] sm:$0xff] %vm395_vm0, %v1851_v15  ;;  %v1444_v21 = vmul.f32 0.5714286, %v1430_v1  ;;  %v1429_v55 = vsub.f32 %v1401_v24, %v948_v41  ;;  %v1416_v7 = vadd.f32 %v2065_v17, %v2541_v52  ;;  %1639 = vst [vmem:[%s2783_s15 + $0xe0] sm:$0xff] (%p2178_p5), %v1638_v58  ;;  %v1642_v62 = vld [vmem:[%s2555_s13 + $0x80] sm:$0xff] (%p2178_p5) }
 0x1f9   : > { %vm1470_vm6 = vcmp.ge.f32.partialorder %v1456_v10, 0.75  ;;  %v1455_v23 = vadd.f32 %v1441_v35, %v946_v60  ;;  %v1410_v43 = vpop.f32.mrf.mxu1  ;;  %v1640_v60 = vld [vmem:[%s2555_s13 + $0x78] sm:$0xff] (%p2178_p5)  ;;  %1643 = vst [vmem:[%s2783_s15 + $0xf0] sm:$0xff] (%p2178_p5), %v1642_v62  ;;  %1645 = vst [vmem:[%s2783_s15 + $0xf8] sm:$0xff] (%p2178_p5), %v1644_v39 }
 0x1fa   : > { %v1854_v36 = vsel %vm1470_vm6, 1.0, %v2117_v13  ;;  %v1458_v26 = vadd.f32 %v1444_v21, %v949_v4  ;;  %v1443_v27 = vmul.f32 0.5714286, %v1429_v55  ;;  %v1432_v48 = vsub.f32 %v1416_v7, %v951_v20  ;;  %1641 = vst [vmem:[%s2783_s15 + $0xe8] sm:$0xff] (%p2178_p5), %v1640_v60  ;;  %v1648_v57 = vld [vmem:[%s2555_s13 + $0x98] sm:$0xff] (%p2178_p5) }
 0x1fb   : > { %1868 = vst.msk [vmem:[%s2555_s13 + $0xb8] sm:$0xff] %vm395_vm0, %v1854_v36  ;;  %vm1469_vm7 = vcmp.ge.f32.partialorder %v1455_v23, 0.75  ;;  %v1411_v19 = vadd.f32 %v2541_v52, %v1410_v43  ;;  %v1646_v63 = vld [vmem:[%s2555_s13 + $0x90] sm:$0xff] (%p2178_p5)  ;;  %1649 = vst [vmem:[%s2783_s15 + $0x108] sm:$0xff] (%p2178_p5), %v1648_v57 }
 0x1fc   : > { %v1853_v12 = vsel %vm1469_vm7, 1.0, %v2117_v13  ;;  %vm1472_vm8 = vcmp.ge.f32.partialorder %v1458_v26, 0.75  ;;  %v1457_v54 = vadd.f32 %v1443_v27, %v948_v41  ;;  %v1446_v16 = vmul.f32 0.5714286, %v1432_v48  ;;  %1647 = vst [vmem:[%s2783_s15 + $0x100] sm:$0xff] (%p2178_p5), %v1646_v63 }
 0x1fd   : > { %1867 = vst.msk [vmem:[%s2555_s13 + $0xb0] sm:$0xff] %vm395_vm0, %v1853_v12  ;;  %v1856_v34 = vsel %vm1472_vm8, 1.0, %v2117_v13  ;;  %v1431_v37 = vsub.f32 %v1411_v19, %v950_v3  ;;  %v1652_v4 = vld [vmem:[%s2555_s13 + $0xa8] sm:$0xff] (%p2178_p5) }
 0x1fe   : > { %1870 = vst.msk [vmem:[%s2555_s13 + $0xc8] sm:$0xff] %vm395_vm0, %v1856_v34  ;;  %vm1471_vm9 = vcmp.ge.f32.partialorder %v1457_v54, 0.75  ;;  %v1460_v45 = vadd.f32 %v1446_v16, %v951_v20  ;;  %1653 = vst [vmem:[%s2783_s15 + $0x118] sm:$0xff] (%p2178_p5), %v1652_v4 }
 0x1ff   : > { %v1855_v38 = vsel %vm1471_vm9, 1.0, %v2117_v13  ;;  %v1445_v40 = vmul.f32 0.5714286, %v1431_v37  ;;  %v1650_v2 = vld [vmem:[%s2555_s13 + $0xa0] sm:$0xff] (%p2178_p5) }
 0x200   : > { %1869 = vst.msk [vmem:[%s2555_s13 + $0xc0] sm:$0xff] %vm395_vm0, %v1855_v38  ;;  %vm1474_vm10 = vcmp.ge.f32.partialorder %v1460_v45, 0.75  ;;  %1651 = vst [vmem:[%s2783_s15 + $0x110] sm:$0xff] (%p2178_p5), %v1650_v2 }
 0x201   : > { %v1858_v52 = vsel %vm1474_vm10, 1.0, %v2117_v13  ;;  %v1459_v42 = vadd.f32 %v1445_v40, %v950_v3  ;;  %1524 = sbr.rel (!%p2178_p5) target bundleno = 526 (0x20e), region = 82 }
 0x202   : > { %1872 = vst.msk [vmem:[%s2555_s13 + $0xd8] sm:$0xff] %vm395_vm0, %v1858_v52  ;;  %v1656_v25 = vld [vmem:[%s2555_s13 + $0xb8] sm:$0xff] (%p2178_p5) }
 0x203   : > { %vm1473_vm11 = vcmp.ge.f32.partialorder %v1459_v42, 0.75  ;;  %1657 = vst [vmem:[%s2783_s15 + $0x128] sm:$0xff] (%p2178_p5), %v1656_v25 }
 0x204   : > { %v1857_v18 = vsel %vm1473_vm11, 1.0, %v2117_v13  ;;  %v1614_v13 = vld [vmem:[%s2555_s13 + $0x10] sm:$0xff] (%p2178_p5) }
 0x205   : > { %1871 = vst.msk [vmem:[%s2555_s13 + $0xd0] sm:$0xff] %vm395_vm0, %v1857_v18  ;;  %1615 = vst [vmem:[%s2783_s15 + $0x10] sm:$0xff] (%p2178_p5), %v1614_v13  ;;  %v1654_v5 = vld [vmem:[%s2555_s13 + $0xb0] sm:$0xff] (%p2178_p5)  ;;  %v1660_v28 = vld [vmem:[%s2555_s13 + $0xc8] sm:$0xff] (%p2178_p5) }
 0x206   : > { %1655 = vst [vmem:[%s2783_s15 + $0x120] sm:$0xff] %v1654_v5  ;;  %1661 = vst [vmem:[%s2783_s15 + $0x138] sm:$0xff] %v1660_v28 }
 0x207   : > { %v1658_v6 = vld [vmem:[%s2555_s13 + $0xc0] sm:$0xff] }
 0x208   : > { %1659 = vst [vmem:[%s2783_s15 + $0x130] sm:$0xff] %v1658_v6 }
 0x209   : > { %v1664_v61 = vld [vmem:[%s2555_s13 + $0xd8] sm:$0xff] }
 0x20a   : > { %1665 = vst [vmem:[%s2783_s15 + $0x148] sm:$0xff] %v1664_v61 }
 0x20c   : > { %v1662_v59 = vld [vmem:[%s2555_s13 + $0xd0] sm:$0xff] }
 0x20d   : > { %1663 = vst [vmem:[%s2783_s15 + $0x140] sm:$0xff] %v1662_v59 }
 0x20e PF: > { %p12_p10 = scmp.ge.s32.totalorder %s2165_s22, 4   ;;  %s2852_s18 = smov %s2111_s19 }
 0x20f   : > { %s2853_s19 = smov %s2176_s25  ;;  %s2854_s20 = smov %s2165_s22 }
 0x210   :  { %14 = sbr.rel (!%p12_p10) target bundleno = 2 (0x2), region = 153 }

// kernel: tm_mixing_time_forward.12
= control target key start
LH: loop header
LB: loop body
LE: loop exit
PB: predicated region body
PF: predicated region fallthrough
CT: control target
= control target key end

     0   :  { %v25_v2 = vlaneseq  ;;  %v170_v3 = vmov 0.0   ;;  %v171_v8 = vmov 1983009808   ;;  %vm106_vm1 = vcmask 1040384   ;;  %s202_s0 = inlined_call_operand.vmem [shape: f32[2,1024], index: 0, kind: input, shape index: {}]   ;;  %s203_s1 = inlined_call_operand.vmem [shape: f32[2,1024], index: 1, kind: output, shape index: {}]  }
   0x1   :  { %v8_v0 = vld [vmem:[%s202_s0] ss:$2 sm:$0xff]  ;;  %v166_v6 = vld [vmem:[%s202_s0 + $0x1] ss:$2 sm:$0xff]  ;;  %v126_v9 = vunpack.c.l.s4 %v171_v8 }
   0x2   :  { %v9_v1 = vmul.f32 0.5714286, %v8_v0  ;;  %v26_v7 = vshrl.u32 %v25_v2, 7 }
   0x3   :  { %v127_v14 = vunpack.c.0.s8 %v126_v9 }
   0x4   :  { %vm11_vm0 = vcmp.ge.f32.partialorder %v9_v1, 0.55  ;;  %v27_v12 = vsub.s32 0, %v26_v7  ;;  %v31_v13 = vsub.s32 1, %v26_v7  ;;  %v35_v16 = vsub.s32 2, %v26_v7 }
   0x5   :  { %v165_v4 = vsel %vm11_vm0, 1.0, %v170_v3  ;;  %v39_v17 = vsub.s32 3, %v26_v7  ;;  %v43_v18 = vsub.s32 4, %v26_v7  ;;  %v47_v19 = vsub.s32 5, %v26_v7 }
   0x6   :  { %v14_v5 = vsub.f32 1.0, %v165_v4  ;;  %v51_v20 = vsub.s32 6, %v26_v7  ;;  %v55_v21 = vsub.s32 7, %v26_v7  ;;  %v28_v23 = vrot.slane %v165_v4, %v27_v12 }
   0x7   :  { %v32_v24 = vrot.slane %v165_v4, %v31_v13  ;;  %v130_v25 = vsub.s32 %v127_v14, %v26_v7  ;;  %v36_v26 = vrot.slane %v165_v4, %v35_v16  ;;  %v40_v27 = vrot.slane %v165_v4, %v39_v17 }
   0x8   :  { %v15_v10 = vmul.f32 %v14_v5, %v9_v1  ;;  %v44_v28 = vrot.slane %v165_v4, %v43_v18  ;;  %v48_v30 = vrot.slane %v165_v4, %v47_v19  ;;  %v52_v31 = vrot.slane %v165_v4, %v51_v20 }
   0x9   :  { %v56_v32 = vrot.slane %v165_v4, %v55_v21 }
   0xa   :  { %v18_v11 = vsub.f32 %v166_v6, %v15_v10 }
   0xc   :  { %v19_v15 = vmul.f32 0.5714286, %v18_v11 }
   0xe   :  { %v20_v22 = vadd.f32 %v19_v15, %v15_v10 }
  0x10   :  { %vm21_vm2 = vcmp.ge.f32.partialorder %v20_v22, 0.55 }
  0x11   :  { %v167_v29 = vsel %vm21_vm2, 1.0, %v170_v3 }
  0x12   :  { %v69_v33 = vrot.slane %v167_v29, %v27_v12  ;;  %v73_v34 = vrot.slane %v167_v29, %v31_v13  ;;  %v77_v35 = vrot.slane %v167_v29, %v35_v16  ;;  %v81_v36 = vrot.slane %v167_v29, %v39_v17 }
  0x13   :  { %v85_v37 = vrot.slane %v167_v29, %v43_v18  ;;  %v89_v38 = vrot.slane %v167_v29, %v47_v19  ;;  %v93_v39 = vrot.slane %v167_v29, %v51_v20  ;;  %v97_v40 = vrot.slane %v167_v29, %v55_v21 }
  0x14   :  { %v107_v41 = vsel %vm106_vm1, %v28_v23, %v69_v33  ;;  %v108_v42 = vsel %vm106_vm1, %v32_v24, %v73_v34  ;;  %v109_v43 = vsel %vm106_vm1, %v36_v26, %v77_v35  ;;  %v110_v44 = vsel %vm106_vm1, %v40_v27, %v81_v36 }
  0x15   :  { %v123_v45 = vcombine.low %v107_v41, %v108_v42  ;;  %v124_v46 = vcombine.low %v109_v43, %v110_v44  ;;  %v111_v47 = vsel %vm106_vm1, %v44_v28, %v85_v37  ;;  %v112_v48 = vsel %vm106_vm1, %v48_v30, %v89_v38 }
  0x16   :  { %v113_v49 = vsel %vm106_vm1, %v52_v31, %v93_v39  ;;  %v114_v50 = vsel %vm106_vm1, %v56_v32, %v97_v40  ;;  %v140_v51 = vcombine.low %v111_v47, %v112_v48 }
  0x17   :  { %v131_v52 = vrot.slane %v123_v45, %v130_v25  ;;  %v138_v53 = vrot.slane %v124_v46, %v130_v25  ;;  %v141_v54 = vcombine.low %v113_v49, %v114_v50 }
  0x18   :  { %v148_v55 = vrot.slane %v140_v51, %v130_v25 }
  0x19   :  { %v139_v56 = vcombine.low %v131_v52, %v138_v53  ;;  %v155_v57 = vrot.slane %v141_v54, %v130_v25 }
  0x1b   :  { %159 = vst [vmem:[%s203_s1] sm:$0xff] %v139_v56  ;;  %v156_v58 = vcombine.low %v148_v55, %v155_v57 }
  0x1d   :  { %160 = vst [vmem:[%s203_s1 + $0x8] sm:$0xff] %v156_v58 }

// kernel: mul.0
= control target key start
LH: loop header
LB: loop body
LE: loop exit
PB: predicated region body
PF: predicated region fallthrough
CT: control target
= control target key end

     0   :  { %s188_s0 = inlined_call_operand.vmem [shape: f32[2,1024], index: 0, kind: input, shape index: {}]   ;;  %s189_s1 = inlined_call_operand.vmem [shape: f32[2,1024], index: 1, kind: input, shape index: {}]   ;;  %s190_s2 = inlined_call_operand.vmem [shape: f32[2,1024], index: 2, kind: output, shape index: {}]  }
   0x1   :  { %v3_v0 = vld [vmem:[%s188_s0] sm:$0x3]  ;;  %v80_v2 = vld [vmem:[%s188_s0 + $0x2] sm:$0x3]  ;;  %v83_v5 = vld [vmem:[%s188_s0 + $0x4] sm:$0x3] }
   0x2   :  { %v4_v1 = vld [vmem:[%s189_s1] sm:$0x3]  ;;  %v81_v4 = vld [vmem:[%s189_s1 + $0x2] sm:$0x3]  ;;  %v84_v6 = vld [vmem:[%s189_s1 + $0x4] sm:$0x3] }
   0x3   :  { %v7_v3 = vmul.f32 %v4_v1, %v3_v0  ;;  %v16_v7 = vmul.f32 %v81_v4, %v80_v2  ;;  %v26_v8 = vmul.f32 %v84_v6, %v83_v5  ;;  %v86_v9 = vld [vmem:[%s188_s0 + $0x6] sm:$0x3]  ;;  %v89_v11 = vld [vmem:[%s188_s0 + $0x8] sm:$0x3]  ;;  %v92_v14 = vld [vmem:[%s188_s0 + $0xa] sm:$0x3] }
   0x4   :  { %v87_v10 = vld [vmem:[%s189_s1 + $0x6] sm:$0x3]  ;;  %v90_v13 = vld [vmem:[%s189_s1 + $0x8] sm:$0x3]  ;;  %v93_v15 = vld [vmem:[%s189_s1 + $0xa] sm:$0x3] }
   0x5   :  { %9 = vst [vmem:[%s190_s2] sm:$0x3] %v7_v3  ;;  %v36_v12 = vmul.f32 %v87_v10, %v86_v9  ;;  %82 = vst [vmem:[%s190_s2 + $0x2] sm:$0x3] %v16_v7  ;;  %v46_v16 = vmul.f32 %v90_v13, %v89_v11  ;;  %v56_v17 = vmul.f32 %v93_v15, %v92_v14  ;;  %v95_v18 = vld [vmem:[%s188_s0 + $0xc] sm:$0x3] }
   0x6   :  { %85 = vst [vmem:[%s190_s2 + $0x4] sm:$0x3] %v26_v8  ;;  %v96_v19 = vld [vmem:[%s189_s1 + $0xc] sm:$0x3]  ;;  %v98_v20 = vld [vmem:[%s188_s0 + $0xe] sm:$0x3] }
   0x7   :  { %88 = vst [vmem:[%s190_s2 + $0x6] sm:$0x3] %v36_v12  ;;  %v66_v21 = vmul.f32 %v96_v19, %v95_v18  ;;  %v99_v22 = vld [vmem:[%s189_s1 + $0xe] sm:$0x3]  ;;  %91 = vst [vmem:[%s190_s2 + $0x8] sm:$0x3] %v46_v16 }
   0x8   :  { %94 = vst [vmem:[%s190_s2 + $0xa] sm:$0x3] %v56_v17  ;;  %v76_v23 = vmul.f32 %v99_v22, %v98_v20 }
   0x9   :  { %97 = vst [vmem:[%s190_s2 + $0xc] sm:$0x3] %v66_v21 }
   0xa   :  { %100 = vst [vmem:[%s190_s2 + $0xe] sm:$0x3] %v76_v23 }

// kernel: tm_mixing_time_forward.14
= control target key start
LH: loop header
LB: loop body
LE: loop exit
PB: predicated region body
PF: predicated region fallthrough
CT: control target
= control target key end

     0   :  { %s1228_s6 = smov 0   ;;  %s1699_s0 = inlined_call_operand.vmem [shape: f32[4,28672], index: 0, kind: input, shape index: {}]   ;;  %s1700_s1 = inlined_call_operand.vmem [shape: f32[4,28672], index: 1, kind: output, shape index: {}]  }
   0x1 LB: > { %s1158_s7 = sadd.s32 4294967295, %s1215_s6   ;;  %p1162_p0 = scmp.ge.s32.totalorder %s1215_s6, 1  ;;  %s1215_s6 = sphi %s1228_s6, %s11_s6  }
   0x2   : > { %p88_p1 = scmp.lt.s32.totalorder %s1215_s6, 8 }
   0x4   : > { %p89_p2 = pnand %p1162_p0, %p88_p1 }
   0x5   : > { %s1163_s8 = sshll.u32 (!%p89_p2), %s1158_s7, 5 }
   0x6   : > { %92 = sbr.rel (%p89_p2) target bundleno = 118 (0x76), region = 24  ;;  %p109_p3 = scmp.lt.s32.totalorder (!%p89_p2), %s1163_s8, 223 }
   0xb   : > { %s1702_s8 = smov (!%p109_p3, %s1163_s8), 223  ;;  %v271_v3 = vlaneseq  ;;  %v1217_v6 = vmov 0.0   ;;  %vm923_vm3 = vcmask 1040384   ;;  %vm956_vm7 = vcmask 1041408  }
   0xc   : > { %s1164_s9 = sshll.u32 %s1702_s8, 2  ;;  %vm989_vm9 = vcmask 1042432  }
   0xd   : > { %s1244_s12 = scalar_lea.vmem %s1699_s0, %s1164_s9  ;;  %v272_v11 = vshrl.u32 %v271_v3, 7  ;;  %s1437_s15 = scalar_lea.vmem %s1700_s1, %s1164_s9 }
   0xe   : > { %v120_v0 = vld [vmem:[%s1244_s12] ss:$4 sm:$0xff]  ;;  %v1174_v10 = vld [vmem:[%s1244_s12 + $0x1] ss:$4 sm:$0xff]  ;;  %v1182_v45 = vld [vmem:[%s1244_s12 + $0x2] ss:$4 sm:$0xff] }
   0xf   : > { %v127_v1 = vmul.f32 0.5714286, %v120_v0  ;;  %v1167_v2 = vld [vmem:[%s1244_s12 + $0x20] ss:$4 sm:$0xff]  ;;  %v1175_v16 = vld [vmem:[%s1244_s12 + $0x21] ss:$4 sm:$0xff] }
  0x10   : > { %v128_v4 = vmul.f32 0.5714286, %v1167_v2  ;;  %v1168_v5 = vld [vmem:[%s1244_s12 + $0x40] ss:$4 sm:$0xff]  ;;  %v1259_v17 = vsub.s32 0, %v272_v11  ;;  %v1261_v18 = vsub.s32 1, %v272_v11 }
  0x11   : > { %vm135_vm0 = vcmp.ge.f32.partialorder %v127_v1, 0.75  ;;  %v129_v8 = vmul.f32 0.5714286, %v1168_v5  ;;  %v1263_v21 = vsub.s32 2, %v272_v11  ;;  %v1265_v22 = vsub.s32 3, %v272_v11 }
  0x12   : > { %v1250_v7 = vsel %vm135_vm0, 1.0, %v1217_v6  ;;  %vm136_vm1 = vcmp.ge.f32.partialorder %v128_v4, 0.75  ;;  %v1270_v24 = vsub.s32 4, %v272_v11  ;;  %v1272_v25 = vsub.s32 5, %v272_v11  ;;  %v1169_v44 = vld [vmem:[%s1244_s12 + $0x60] ss:$4 sm:$0xff] }
  0x13   : > { %v147_v9 = vsub.f32 1.0, %v1250_v7  ;;  %v1255_v13 = vsel %vm136_vm1, 1.0, %v1217_v6  ;;  %vm137_vm2 = vcmp.ge.f32.partialorder %v129_v8, 0.75  ;;  %v1274_v26 = vsub.s32 6, %v272_v11  ;;  %v1176_v54 = vld [vmem:[%s1244_s12 + $0x41] ss:$4 sm:$0xff] }
  0x14   : > { %v148_v14 = vsub.f32 1.0, %v1255_v13  ;;  %v1268_v23 = vsel %vm137_vm2, 1.0, %v1217_v6  ;;  %v1276_v29 = vsub.s32 7, %v272_v11  ;;  %v274_v30 = vrot.slane %v1250_v7, %v1259_v17 }
  0x15   : > { %v151_v12 = vmul.f32 %v147_v9, %v127_v1  ;;  %v149_v32 = vsub.f32 1.0, %v1268_v23  ;;  %v278_v33 = vrot.slane %v1250_v7, %v1261_v18  ;;  %v282_v34 = vrot.slane %v1250_v7, %v1263_v21 }
  0x16   : > { %v152_v19 = vmul.f32 %v148_v14, %v128_v4  ;;  %v286_v35 = vrot.slane %v1250_v7, %v1265_v22  ;;  %v290_v37 = vrot.slane %v1250_v7, %v1270_v24  ;;  %v294_v38 = vrot.slane %v1250_v7, %v1272_v25 }
  0x17   : > { %v163_v15 = vsub.f32 %v1174_v10, %v151_v12  ;;  %v298_v39 = vrot.slane %v1250_v7, %v1274_v26  ;;  %v302_v41 = vrot.slane %v1250_v7, %v1276_v29  ;;  %v306_v43 = vrot.slane %v1255_v13, %v1259_v17 }
  0x18   : > { %v164_v27 = vsub.f32 %v1175_v16, %v152_v19  ;;  %v310_v46 = vrot.slane %v1255_v13, %v1261_v18  ;;  %v314_v47 = vrot.slane %v1255_v13, %v1263_v21  ;;  %v318_v48 = vrot.slane %v1255_v13, %v1265_v22 }
  0x19   : > { %v167_v20 = vmul.f32 0.5714286, %v163_v15  ;;  %v153_v49 = vmul.f32 %v149_v32, %v129_v8  ;;  %v322_v51 = vrot.slane %v1255_v13, %v1270_v24  ;;  %v326_v52 = vrot.slane %v1255_v13, %v1272_v25 }
  0x1a   : > { %v168_v31 = vmul.f32 0.5714286, %v164_v27  ;;  %v330_v53 = vrot.slane %v1255_v13, %v1274_v26  ;;  %v334_v55 = vrot.slane %v1255_v13, %v1276_v29  ;;  %v338_v56 = vrot.slane %v1268_v23, %v1259_v17 }
  0x1b   : > { %v171_v28 = vadd.f32 %v167_v20, %v151_v12  ;;  %v342_v57 = vrot.slane %v1268_v23, %v1261_v18  ;;  %v1322_v58 = vmul.f32 0.5714286, %v1169_v44  ;;  %v346_v61 = vrot.slane %v1268_v23, %v1263_v21  ;;  %v1183_v20 = vld [vmem:[%s1244_s12 + $0x22] ss:$4 sm:$0xff] }
  0x1c   : > { %v172_v42 = vadd.f32 %v168_v31, %v152_v19  ;;  %v165_v1 = vsub.f32 %v1176_v54, %v153_v49  ;;  %v350_v5 = vrot.slane %v1268_v23, %v1265_v22  ;;  %v354_v9 = vrot.slane %v1268_v23, %v1270_v24 }
  0x1d   : > { %vm175_vm4 = vcmp.ge.f32.partialorder %v171_v28, 0.75  ;;  %vm138_vm6 = vcmp.ge.f32.partialorder %v1322_v58, 0.75 }
  0x1e   : > { %v1288_v36 = vsel %vm175_vm4, 1.0, %v1217_v6  ;;  %vm176_vm5 = vcmp.ge.f32.partialorder %v172_v42, 0.75  ;;  %v169_v27 = vmul.f32 0.5714286, %v165_v1 }
  0x1f   : > { %v187_v40 = vsub.f32 1.0, %v1288_v36  ;;  %v438_v60 = vrot.slane %v1288_v36, %v1259_v17  ;;  %v442_v62 = vrot.slane %v1288_v36, %v1261_v18  ;;  %v446_v63 = vrot.slane %v1288_v36, %v1263_v21 }
  0x20   : > { %v1333_v0 = vsel %vm176_vm5, 1.0, %v1217_v6  ;;  %v450_v3 = vrot.slane %v1288_v36, %v1265_v22  ;;  %v454_v7 = vrot.slane %v1288_v36, %v1270_v24  ;;  %v458_v8 = vrot.slane %v1288_v36, %v1272_v25 }
  0x21   : > { %v191_v50 = vmul.f32 %v187_v40, %v171_v28  ;;  %v188_v4 = vsub.f32 1.0, %v1333_v0  ;;  %v924_v11 = vsel %vm923_vm3, %v274_v30, %v438_v60  ;;  %v462_v12 = vrot.slane %v1288_v36, %v1274_v26 }
  0x22   : > { %v925_v15 = vsel %vm923_vm3, %v278_v33, %v442_v62  ;;  %v926_v16 = vsel %vm923_vm3, %v282_v34, %v446_v63  ;;  %v466_v19 = vrot.slane %v1288_v36, %v1276_v29  ;;  %v927_v28 = vsel %vm923_vm3, %v286_v35, %v450_v3 }
  0x23   : > { %v203_v59 = vsub.f32 %v1182_v45, %v191_v50  ;;  %v192_v14 = vmul.f32 %v188_v4, %v172_v42  ;;  %v470_v30 = vrot.slane %v1333_v0, %v1259_v17  ;;  %v474_v31 = vrot.slane %v1333_v0, %v1261_v18  ;;  %v1190_v45 = vld [vmem:[%s1244_s12 + $0x3] ss:$4 sm:$0xff] }
  0x24   : > { %v478_v33 = vrot.slane %v1333_v0, %v1263_v21  ;;  %v482_v34 = vrot.slane %v1333_v0, %v1265_v22  ;;  %v486_v36 = vrot.slane %v1333_v0, %v1270_v24  ;;  %v928_v35 = vsel %vm923_vm3, %v290_v37, %v454_v7 }
  0x25   : > { %v207_v2 = vmul.f32 0.5714286, %v203_v59  ;;  %v929_v42 = vsel %vm923_vm3, %v294_v38, %v458_v8  ;;  %v204_v44 = vsub.f32 %v1183_v20, %v192_v14  ;;  %v931_v54 = vsel %vm923_vm3, %v302_v41, %v466_v19 }
  0x26   : > { %v173_v59 = vadd.f32 %v169_v27, %v153_v49  ;;  %v1375_v60 = vsel %vm138_vm6, 1.0, %v1217_v6  ;;  %v1378_v63 = vsel %vm923_vm3, %v306_v43, %v470_v30  ;;  %v1381_v37 = vsel %vm923_vm3, %v310_v46, %v474_v31 }
  0x27   : > { %v211_v10 = vadd.f32 %v207_v2, %v191_v50  ;;  %v930_v50 = vsel %vm923_vm3, %v298_v39, %v462_v12  ;;  %v490_v38 = vrot.slane %v1333_v0, %v1272_v25  ;;  %v1387_v41 = vsel %vm923_vm3, %v314_v47, %v478_v33 }
  0x28   : > { %v1390_v49 = vsel %vm923_vm3, %v318_v48, %v482_v34  ;;  %v1393_v1 = vsel %vm923_vm3, %v322_v51, %v486_v36  ;;  %v208_v3 = vmul.f32 0.5714286, %v204_v44  ;;  %vm177_vm10 = vcmp.ge.f32.partialorder %v173_v59, 0.75 }
  0x29   : > { %vm215_vm8 = vcmp.ge.f32.partialorder %v211_v10, 0.75  ;;  %v1402_v51 = vsel %vm177_vm10, 1.0, %v1217_v6  ;;  %v494_v19 = vrot.slane %v1333_v0, %v1274_v26  ;;  %v498_v20 = vrot.slane %v1333_v0, %v1276_v29 }
  0x2a   : > { %v1186_v32 = vsel %vm215_vm8, 1.0, %v1217_v6  ;;  %v189_v27 = vsub.f32 1.0, %v1402_v51  ;;  %v150_v33 = vsub.f32 1.0, %v1375_v60 }
  0x2b   : > { %v227_v40 = vsub.f32 1.0, %v1186_v32  ;;  %v602_v39 = vrot.slane %v1186_v32, %v1259_v17  ;;  %v606_v2 = vrot.slane %v1186_v32, %v1261_v18  ;;  %v610_v46 = vrot.slane %v1186_v32, %v1263_v21 }
  0x2c   : > { %v614_v4 = vrot.slane %v1186_v32, %v1265_v22  ;;  %v618_v7 = vrot.slane %v1186_v32, %v1270_v24  ;;  %v622_v8 = vrot.slane %v1186_v32, %v1272_v25  ;;  %v626_v48 = vrot.slane %v1186_v32, %v1274_v26 }
  0x2d   : > { %v231_v62 = vmul.f32 %v227_v40, %v211_v10  ;;  %v212_v10 = vadd.f32 %v208_v3, %v192_v14  ;;  %v630_v12 = vrot.slane %v1186_v32, %v1276_v29  ;;  %v957_v31 = vsel %vm956_vm7, %v924_v11, %v602_v39 }
  0x2e   : > { %v958_v14 = vsel %vm956_vm7, %v925_v15, %v606_v2  ;;  %v959_v34 = vsel %vm956_vm7, %v926_v16, %v610_v46  ;;  %v960_v32 = vsel %vm956_vm7, %v927_v28, %v614_v4  ;;  %v961_v40 = vsel %vm956_vm7, %v928_v35, %v618_v7 }
  0x2f   : > { %v243_v43 = vsub.f32 %v1190_v45, %v231_v62  ;;  %vm216_vm11 = vcmp.ge.f32.partialorder %v212_v10, 0.75  ;;  %v962_v44 = vsel %vm956_vm7, %v929_v42, %v622_v8  ;;  %v963_v11 = vsel %vm956_vm7, %v930_v50, %v626_v48 }
  0x30   : > { %v1416_v36 = vsel %vm216_vm11, 1.0, %v1217_v6  ;;  %v193_v16 = vmul.f32 %v189_v27, %v173_v59 }
  0x31   : > { %v247_v47 = vmul.f32 0.5714286, %v243_v43  ;;  %v228_v15 = vsub.f32 1.0, %v1416_v36  ;;  %v634_v0 = vrot.slane %v1416_v36, %v1259_v17  ;;  %v642_v13 = vrot.slane %v1416_v36, %v1263_v21 }
  0x33   : > { %v251_v30 = vadd.f32 %v247_v47, %v231_v62  ;;  %v964_v62 = vsel %vm956_vm7, %v931_v54, %v630_v12  ;;  %v1191_v12 = vld [vmem:[%s1244_s12 + $0x23] ss:$4 sm:$0xff] }
  0x35   : > { %vm255_vm12 = vcmp.ge.f32.partialorder %v251_v30, 0.75 }
  0x36   : > { %v1194_v45 = vsel %vm255_vm12, 1.0, %v1217_v6 }
  0x37   : > { %v766_v28 = vrot.slane %v1194_v45, %v1259_v17  ;;  %v770_v39 = vrot.slane %v1194_v45, %v1261_v18  ;;  %v774_v43 = vrot.slane %v1194_v45, %v1263_v21  ;;  %v778_v35 = vrot.slane %v1194_v45, %v1265_v22 }
  0x38   : > { %v782_v42 = vrot.slane %v1194_v45, %v1270_v24  ;;  %v786_v50 = vrot.slane %v1194_v45, %v1272_v25  ;;  %v790_v2 = vrot.slane %v1194_v45, %v1274_v26  ;;  %v794_v54 = vrot.slane %v1194_v45, %v1276_v29 }
  0x39   : > { %v990_v59 = vsel %vm989_vm9, %v957_v31, %v766_v28  ;;  %v991_v46 = vsel %vm989_vm9, %v958_v14, %v770_v39  ;;  %v992_v3 = vsel %vm989_vm9, %v959_v34, %v774_v43  ;;  %v993_v4 = vsel %vm989_vm9, %v960_v32, %v778_v35  ;;  %v1184_v14 = vld [vmem:[%s1244_s12 + $0x42] ss:$4 sm:$0xff] }
  0x3a   : > { %v1054_v7 = vcombine.low %v990_v59, %v991_v46  ;;  %v1055_v8 = vcombine.low %v992_v3, %v993_v4  ;;  %v994_v47 = vsel %vm989_vm9, %v961_v40, %v782_v42  ;;  %v995_v48 = vsel %vm989_vm9, %v962_v44, %v786_v50 }
  0x3b   : > { %v1056_v27 = vcombine.low %v994_v47, %v995_v48  ;;  %v996_v30 = vsel %vm989_vm9, %v963_v11, %v790_v2  ;;  %v997_v31 = vsel %vm989_vm9, %v964_v62, %v794_v54  ;;  %v232_v45 = vmul.f32 %v228_v15, %v212_v10  ;;  %v1177_v2 = vld [vmem:[%s1244_s12 + $0x61] ss:$4 sm:$0xff] }
  0x3c   : > { %1086 = vst [vmem:[%s1437_s15] sm:$0xff] %v1054_v7  ;;  %1087 = vst [vmem:[%s1437_s15 + $0x8] sm:$0xff] %v1055_v8  ;;  %v1057_v34 = vcombine.low %v996_v30, %v997_v31  ;;  %v937_v32 = vsel %vm923_vm3, %v326_v52, %v490_v38  ;;  %v938_v40 = vsel %vm923_vm3, %v330_v53, %v494_v19 }
  0x3d   : > { %v939_v10 = vsel %vm923_vm3, %v334_v55, %v498_v20  ;;  %1088 = vst [vmem:[%s1437_s15 + $0x10] sm:$0xff] %v1056_v27  ;;  %v244_v44 = vsub.f32 %v1191_v12, %v232_v45  ;;  %v502_v11 = vrot.slane %v1402_v51, %v1259_v17  ;;  %v1472_v52 = vmul.f32 %v150_v33, %v1322_v58 }
  0x3e   : > { %1089 = vst [vmem:[%s1437_s15 + $0x18] sm:$0xff] %v1057_v34  ;;  %v638_v53 = vrot.slane %v1416_v36, %v1261_v18  ;;  %v646_v55 = vrot.slane %v1416_v36, %v1265_v22  ;;  %v205_v38 = vsub.f32 %v1184_v14, %v193_v16  ;;  %v650_v20 = vrot.slane %v1416_v36, %v1270_v24 }
  0x3f   : > { %v248_v19 = vmul.f32 0.5714286, %v244_v44  ;;  %v654_v58 = vrot.slane %v1416_v36, %v1272_v25  ;;  %v658_v33 = vrot.slane %v1416_v36, %v1274_v26  ;;  %v662_v62 = vrot.slane %v1416_v36, %v1276_v29 }
  0x40   : > { %v209_v15 = vmul.f32 0.5714286, %v205_v38  ;;  %v506_v28 = vrot.slane %v1402_v51, %v1261_v18  ;;  %v510_v39 = vrot.slane %v1402_v51, %v1263_v21  ;;  %v965_v35 = vsel %vm956_vm7, %v1378_v63, %v634_v0 }
  0x41   : > { %v252_v43 = vadd.f32 %v248_v19, %v232_v45  ;;  %v514_v42 = vrot.slane %v1402_v51, %v1265_v22  ;;  %v518_v50 = vrot.slane %v1402_v51, %v1270_v24  ;;  %v966_v36 = vsel %vm956_vm7, %v1381_v37, %v638_v53 }
  0x42   : > { %v967_v54 = vsel %vm956_vm7, %v1387_v41, %v642_v13  ;;  %v968_v59 = vsel %vm956_vm7, %v1390_v49, %v646_v55  ;;  %v213_v46 = vadd.f32 %v209_v15, %v193_v16  ;;  %v969_v63 = vsel %vm956_vm7, %v1393_v1, %v650_v20  ;;  %v1192_v20 = vld [vmem:[%s1244_s12 + $0x43] ss:$4 sm:$0xff] }
  0x43   : > { %vm256_vm13 = vcmp.ge.f32.partialorder %v252_v43, 0.75  ;;  %v970_v3 = vsel %vm956_vm7, %v937_v32, %v654_v58  ;;  %v971_v4 = vsel %vm956_vm7, %v938_v40, %v658_v33  ;;  %v972_v8 = vsel %vm956_vm7, %v939_v10, %v662_v62 }
  0x44   : > { %v1195_v7 = vsel %vm256_vm13, 1.0, %v1217_v6  ;;  %vm217_vm14 = vcmp.ge.f32.partialorder %v213_v46, 0.75  ;;  %v166_v37 = vsub.f32 %v1177_v2, %v1472_v52  ;;  %v358_v58 = vrot.slane %v1268_v23, %v1272_v25 }
  0x45   : > { %v798_v41 = vrot.slane %v1195_v7, %v1259_v17  ;;  %v802_v49 = vrot.slane %v1195_v7, %v1261_v18  ;;  %v806_v16 = vrot.slane %v1195_v7, %v1263_v21  ;;  %v810_v47 = vrot.slane %v1195_v7, %v1265_v22 }
  0x46   : > { %v814_v1 = vrot.slane %v1195_v7, %v1270_v24  ;;  %v818_v48 = vrot.slane %v1195_v7, %v1272_v25  ;;  %v822_v12 = vrot.slane %v1195_v7, %v1274_v26  ;;  %v826_v27 = vrot.slane %v1195_v7, %v1276_v29 }
  0x47   : > { %v998_v30 = vsel %vm989_vm9, %v965_v35, %v798_v41  ;;  %v999_v31 = vsel %vm989_vm9, %v966_v36, %v802_v49  ;;  %v1000_v45 = vsel %vm989_vm9, %v967_v54, %v806_v16  ;;  %v1001_v14 = vsel %vm989_vm9, %v968_v59, %v810_v47 }
  0x48   : > { %v1058_v34 = vcombine.low %v998_v30, %v999_v31  ;;  %v1059_v32 = vcombine.low %v1000_v45, %v1001_v14  ;;  %v1002_v40 = vsel %vm989_vm9, %v969_v63, %v814_v1  ;;  %v1003_v10 = vsel %vm989_vm9, %v970_v3, %v818_v48 }
  0x49   : > { %v1060_v44 = vcombine.low %v1002_v40, %v1003_v10  ;;  %v1004_v0 = vsel %vm989_vm9, %v971_v4, %v822_v12  ;;  %v1005_v53 = vsel %vm989_vm9, %v972_v8, %v826_v27  ;;  %v1188_v13 = vsel %vm217_vm14, 1.0, %v1217_v6 }
  0x4a   : > { %1090 = vst [vmem:[%s1437_s15 + $0x20] sm:$0xff] %v1058_v34  ;;  %1091 = vst [vmem:[%s1437_s15 + $0x28] sm:$0xff] %v1059_v32  ;;  %v1061_v55 = vcombine.low %v1004_v0, %v1005_v53  ;;  %v229_v38 = vsub.f32 1.0, %v1188_v13  ;;  %v170_v19 = vmul.f32 0.5714286, %v166_v37  ;;  %v362_v33 = vrot.slane %v1268_v23, %v1274_v26 }
  0x4b   : > { %1092 = vst [vmem:[%s1437_s15 + $0x30] sm:$0xff] %v1060_v44  ;;  %v940_v15 = vsel %vm923_vm3, %v338_v56, %v502_v11  ;;  %v941_v43 = vsel %vm923_vm3, %v342_v57, %v506_v28  ;;  %v366_v35 = vrot.slane %v1268_v23, %v1276_v29  ;;  %v942_v2 = vsel %vm923_vm3, %v346_v61, %v510_v39  ;;  %v1185_v0 = vld [vmem:[%s1244_s12 + $0x62] ss:$4 sm:$0xff] }
  0x4c   : > { %1093 = vst [vmem:[%s1437_s15 + $0x38] sm:$0xff] %v1061_v55  ;;  %v233_v62 = vmul.f32 %v229_v38, %v213_v46  ;;  %v943_v36 = vsel %vm923_vm3, %v350_v5, %v514_v42  ;;  %v522_v56 = vrot.slane %v1402_v51, %v1272_v25  ;;  %v944_v57 = vsel %vm923_vm3, %v354_v9, %v518_v50 }
  0x4d   : > { %v526_v28 = vrot.slane %v1402_v51, %v1274_v26  ;;  %v530_v61 = vrot.slane %v1402_v51, %v1276_v29  ;;  %v174_v39 = vadd.f32 %v170_v19, %v1472_v52  ;;  %v666_v54 = vrot.slane %v1188_v13, %v1259_v17 }
  0x4e   : > { %v245_v11 = vsub.f32 %v1192_v20, %v233_v62  ;;  %v670_v5 = vrot.slane %v1188_v13, %v1261_v18  ;;  %v674_v42 = vrot.slane %v1188_v13, %v1263_v21  ;;  %v678_v59 = vrot.slane %v1188_v13, %v1265_v22 }
  0x4f   : > { %v682_v9 = vrot.slane %v1188_v13, %v1270_v24  ;;  %v686_v50 = vrot.slane %v1188_v13, %v1272_v25  ;;  %vm178_vm15 = vcmp.ge.f32.partialorder %v174_v39, 0.75  ;;  %v945_v46 = vsel %vm923_vm3, %v358_v58, %v522_v56 }
  0x50   : > { %v249_v23 = vmul.f32 0.5714286, %v245_v11  ;;  %v690_v51 = vrot.slane %v1188_v13, %v1274_v26  ;;  %v694_v52 = vrot.slane %v1188_v13, %v1276_v29  ;;  %v1582_v63 = vsel %vm178_vm15, 1.0, %v1217_v6 }
  0x51   : > { %v946_v4 = vsel %vm923_vm3, %v362_v33, %v526_v28  ;;  %v947_v7 = vsel %vm923_vm3, %v366_v35, %v530_v61  ;;  %v190_v8 = vsub.f32 1.0, %v1582_v63  ;;  %v973_v37 = vsel %vm956_vm7, %v940_v15, %v666_v54 }
  0x52   : > { %v253_v3 = vadd.f32 %v249_v23, %v233_v62  ;;  %v974_v41 = vsel %vm956_vm7, %v941_v43, %v670_v5  ;;  %v975_v49 = vsel %vm956_vm7, %v942_v2, %v674_v42  ;;  %v976_v16 = vsel %vm956_vm7, %v943_v36, %v678_v59  ;;  %v1193_v5 = vld [vmem:[%s1244_s12 + $0x63] ss:$4 sm:$0xff] }
  0x53   : > { %v977_v47 = vsel %vm956_vm7, %v944_v57, %v682_v9  ;;  %v978_v1 = vsel %vm956_vm7, %v945_v46, %v686_v50  ;;  %v979_v12 = vsel %vm956_vm7, %v946_v4, %v690_v51  ;;  %v980_v27 = vsel %vm956_vm7, %v947_v7, %v694_v52 }
  0x54   : > { %vm257_vm0 = vcmp.ge.f32.partialorder %v253_v3, 0.75  ;;  %v194_v30 = vmul.f32 %v190_v8, %v174_v39  ;;  %v370_v11 = vrot.slane %v1375_v60, %v1259_v17  ;;  %v534_v28 = vrot.slane %v1582_v63, %v1259_v17 }
  0x55   : > { %v1196_v48 = vsel %vm257_vm0, 1.0, %v1217_v6  ;;  %v374_v39 = vrot.slane %v1375_v60, %v1261_v18  ;;  %v538_v54 = vrot.slane %v1582_v63, %v1261_v18  ;;  %v378_v42 = vrot.slane %v1375_v60, %v1263_v21 }
  0x56   : > { %v830_v31 = vrot.slane %v1196_v48, %v1259_v17  ;;  %v834_v45 = vrot.slane %v1196_v48, %v1261_v18  ;;  %v838_v14 = vrot.slane %v1196_v48, %v1263_v21  ;;  %v842_v34 = vrot.slane %v1196_v48, %v1265_v22 }
  0x57   : > { %v846_v32 = vrot.slane %v1196_v48, %v1270_v24  ;;  %v850_v40 = vrot.slane %v1196_v48, %v1272_v25  ;;  %v854_v10 = vrot.slane %v1196_v48, %v1274_v26  ;;  %v858_v44 = vrot.slane %v1196_v48, %v1276_v29 }
  0x58   : > { %v1006_v53 = vsel %vm989_vm9, %v973_v37, %v830_v31  ;;  %v1007_v13 = vsel %vm989_vm9, %v974_v41, %v834_v45  ;;  %v1008_v55 = vsel %vm989_vm9, %v975_v49, %v838_v14  ;;  %v1009_v38 = vsel %vm989_vm9, %v976_v16, %v842_v34 }
  0x59   : > { %v1062_v19 = vcombine.low %v1006_v53, %v1007_v13  ;;  %v1063_v20 = vcombine.low %v1008_v55, %v1009_v38  ;;  %v1010_v58 = vsel %vm989_vm9, %v977_v47, %v846_v32  ;;  %v1011_v33 = vsel %vm989_vm9, %v978_v1, %v850_v40 }
  0x5a   : > { %v1064_v62 = vcombine.low %v1010_v58, %v1011_v33  ;;  %v1012_v15 = vsel %vm989_vm9, %v979_v12, %v854_v10  ;;  %v1013_v43 = vsel %vm989_vm9, %v980_v27, %v858_v44  ;;  %v206_v35 = vsub.f32 %v1185_v0, %v194_v30 }
  0x5b   : > { %1094 = vst [vmem:[%s1437_s15 + $0x40] sm:$0xff] %v1062_v19  ;;  %1095 = vst [vmem:[%s1437_s15 + $0x48] sm:$0xff] %v1063_v20  ;;  %v1065_v2 = vcombine.low %v1012_v15, %v1013_v43  ;;  %v382_v59 = vrot.slane %v1375_v60, %v1265_v22  ;;  %v542_v23 = vrot.slane %v1582_v63, %v1263_v21 }
  0x5c   : > { %1096 = vst [vmem:[%s1437_s15 + $0x50] sm:$0xff] %v1064_v62  ;;  %v210_v36 = vmul.f32 0.5714286, %v206_v35  ;;  %v546_v9 = vrot.slane %v1582_v63, %v1265_v22  ;;  %v386_v46 = vrot.slane %v1375_v60, %v1270_v24  ;;  %v390_v51 = vrot.slane %v1375_v60, %v1272_v25 }
  0x5d   : > { %1097 = vst [vmem:[%s1437_s15 + $0x58] sm:$0xff] %v1065_v2  ;;  %v394_v52 = vrot.slane %v1375_v60, %v1274_v26  ;;  %v948_v3 = vsel %vm923_vm3, %v370_v11, %v534_v28  ;;  %v550_v4 = vrot.slane %v1582_v63, %v1270_v24  ;;  %v554_v7 = vrot.slane %v1582_v63, %v1272_v25 }
  0x5e   : > { %v214_v56 = vadd.f32 %v210_v36, %v194_v30  ;;  %v398_v8 = vrot.slane %v1375_v60, %v1276_v29  ;;  %v949_v41 = vsel %vm923_vm3, %v374_v39, %v538_v54  ;;  %v558_v49 = vrot.slane %v1582_v63, %v1274_v26 }
  0x5f   : > { %v562_v16 = vrot.slane %v1582_v63, %v1276_v29  ;;  %v950_v48 = vsel %vm923_vm3, %v378_v42, %v542_v23  ;;  %v951_v12 = vsel %vm923_vm3, %v382_v59, %v546_v9  ;;  %v952_v14 = vsel %vm923_vm3, %v386_v46, %v550_v4 }
  0x60   : > { %vm218_vm1 = vcmp.ge.f32.partialorder %v214_v56, 0.75  ;;  %v953_v40 = vsel %vm923_vm3, %v390_v51, %v554_v7  ;;  %v954_v10 = vsel %vm923_vm3, %v394_v52, %v558_v49 }
  0x61   : > { %v1189_v57 = vsel %vm218_vm1, 1.0, %v1217_v6  ;;  %v955_v44 = vsel %vm923_vm3, %v398_v8, %v562_v16 }
  0x62   : > { %v230_v61 = vsub.f32 1.0, %v1189_v57  ;;  %v698_v47 = vrot.slane %v1189_v57, %v1259_v17  ;;  %v702_v1 = vrot.slane %v1189_v57, %v1261_v18  ;;  %v706_v60 = vrot.slane %v1189_v57, %v1263_v21 }
  0x63   : > { %v710_v30 = vrot.slane %v1189_v57, %v1265_v22  ;;  %v714_v31 = vrot.slane %v1189_v57, %v1270_v24  ;;  %v718_v45 = vrot.slane %v1189_v57, %v1272_v25  ;;  %v722_v63 = vrot.slane %v1189_v57, %v1274_v26 }
  0x64   : > { %v234_v50 = vmul.f32 %v230_v61, %v214_v56  ;;  %v726_v34 = vrot.slane %v1189_v57, %v1276_v29  ;;  %v981_v0 = vsel %vm956_vm7, %v948_v3, %v698_v47  ;;  %v982_v53 = vsel %vm956_vm7, %v949_v41, %v702_v1 }
  0x65   : > { %v983_v13 = vsel %vm956_vm7, %v950_v48, %v706_v60  ;;  %v984_v55 = vsel %vm956_vm7, %v951_v12, %v710_v30  ;;  %v985_v38 = vsel %vm956_vm7, %v952_v14, %v714_v31  ;;  %v986_v20 = vsel %vm956_vm7, %v953_v40, %v718_v45 }
  0x66   : > { %v246_v37 = vsub.f32 %v1193_v5, %v234_v50  ;;  %v987_v58 = vsel %vm956_vm7, %v954_v10, %v722_v63  ;;  %v988_v33 = vsel %vm956_vm7, %v955_v44, %v726_v34 }
  0x68   : > { %v250_v27 = vmul.f32 0.5714286, %v246_v37 }
  0x6a   : > { %v254_v32 = vadd.f32 %v250_v27, %v234_v50 }
  0x6c   : > { %vm258_vm2 = vcmp.ge.f32.partialorder %v254_v32, 0.75 }
  0x6d   : > { %v1197_v19 = vsel %vm258_vm2, 1.0, %v1217_v6 }
  0x6e   : > { %v862_v62 = vrot.slane %v1197_v19, %v1259_v17  ;;  %v866_v15 = vrot.slane %v1197_v19, %v1261_v18  ;;  %v870_v43 = vrot.slane %v1197_v19, %v1263_v21  ;;  %v874_v35 = vrot.slane %v1197_v19, %v1265_v22 }
  0x6f   : > { %v878_v2 = vrot.slane %v1197_v19, %v1270_v24  ;;  %v882_v6 = vrot.slane %v1197_v19, %v1272_v25  ;;  %v886_v36 = vrot.slane %v1197_v19, %v1274_v26  ;;  %v890_v56 = vrot.slane %v1197_v19, %v1276_v29 }
  0x70   : > { %v1014_v17 = vsel %vm989_vm9, %v981_v0, %v862_v62  ;;  %v1015_v18 = vsel %vm989_vm9, %v982_v53, %v866_v15  ;;  %v1016_v21 = vsel %vm989_vm9, %v983_v13, %v870_v43  ;;  %v1017_v22 = vsel %vm989_vm9, %v984_v55, %v874_v35 }
  0x71   : > { %v1066_v57 = vcombine.low %v1014_v17, %v1015_v18  ;;  %v1067_v11 = vcombine.low %v1016_v21, %v1017_v22  ;;  %v1018_v24 = vsel %vm989_vm9, %v985_v38, %v878_v2  ;;  %v1019_v25 = vsel %vm989_vm9, %v986_v20, %v882_v6 }
  0x72   : > { %v1068_v28 = vcombine.low %v1018_v24, %v1019_v25  ;;  %v1020_v26 = vsel %vm989_vm9, %v987_v58, %v886_v36  ;;  %v1021_v29 = vsel %vm989_vm9, %v988_v33, %v890_v56 }
  0x73   : > { %1098 = vst [vmem:[%s1437_s15 + $0x60] sm:$0xff] %v1066_v57  ;;  %1099 = vst [vmem:[%s1437_s15 + $0x68] sm:$0xff] %v1067_v11  ;;  %v1069_v61 = vcombine.low %v1020_v26, %v1021_v29 }
  0x74   : > { %1100 = vst [vmem:[%s1437_s15 + $0x70] sm:$0xff] %v1068_v28 }
  0x75   : > { %1101 = vst [vmem:[%s1437_s15 + $0x78] sm:$0xff] %v1069_v61 }
  0x76 PF: > { %s11_s6 = sadd.s32 1, %s1215_s6  }
  0x77   : > { %p8_p4 = scmp.ge.s32.totalorder %s11_s6, 9  }
  0x79   :  { %10 = sbr.rel (!%p8_p4) target bundleno = 1 (0x1), region = 69 }

// kernel: tm_mixing_time_forward.17
= control target key start
LH: loop header
LB: loop body
LE: loop exit
PB: predicated region body
PF: predicated region fallthrough
CT: control target
= control target key end

     0   :  { %s6808_s18 = smov 0   ;;  %s6810_s19 = smov 0   ;;  %s9967_s0 = inlined_call_operand.vmem [shape: f32[4,896,32], index: 0, kind: input, shape index: {}]   ;;  %s9968_s1 = inlined_call_operand.vmem [shape: f32[32,32], index: 1, kind: input, shape index: {}]   ;;  %s9969_s2 = inlined_call_operand.vmem [shape: f32[1,32], index: 2, kind: input, shape index: {}]   ;;  %s9970_s3 = inlined_call_operand.vmem [shape: f32[32,32], index: 3, kind: input, shape index: {}]   ;;  %s9971_s4 = inlined_call_operand.vmem [shape: f32[1,32], index: 4, kind: input, shape index: {}]   ;;  %s9972_s5 = inlined_call_operand.vmem [shape: f32[4,896,32], index: 5, kind: output, shape index: {}]  }
   0x1   :  { %s6812_s20 = smov 0  }
   0x2 LB: > { %s5433_s21 = sadd.s32 4294967295, %s6775_s20   ;;  %s6825_s22 = sadd.s32 1, %s6775_s20   ;;  %s6775_s20 = sphi %s6812_s20, %s10051_s20   ;;  %s6771_s19 = sphi %s6810_s19, %s10050_s19   ;;  %s6767_s18 = sphi %s6808_s18, %s10049_s18  }
   0x3   : > { %s19_s23 = ssub.s32 %s6775_s20, %s6825_s22  ;;  %s22_s24 = sadd.s32 1, %s6771_s19 }
   0x4   : > { %p20_p0 = scmp.eq.s32.totalorder %s19_s23, 0  ;;  %p29_p1 = scmp.ne.s32.totalorder %s6771_s19, %s6767_s18 }
   0x5   : > { %p30_p2 = scmp.eq.s32.totalorder %s6775_s20, 0  ;;  %p143_p3 = scmp.eq.s32.totalorder %s5433_s21, 3 }
   0x6   : > { %s6836_s25 = scalar_select %p20_p0, %s6771_s19, %s22_s24  }
   0x7   : > { %p31_p4 = por %p30_p2, %p29_p1  ;;  %p6838_p5 = por %p143_p3, %p29_p1 }
   0x8   : > { %p5436_p6 = scmp.ge.s32.totalorder %s6775_s20, 4 }
   0xa   : > { %177 = sbr.rel (%p5436_p6) target bundleno = 76 (0x4c), region = 32 }
   0xf   : > { %180 = sbr.rel (!%p31_p4) target bundleno = 76 (0x4c), region = 36  ;;  %s182_s27 = sand.u32 (%p31_p4), 1, %s6771_s19  }
  0x10   : > { %s6060_s28 = smul.u32 (%p31_p4), 224, %s6775_s20 }
  0x11   : > { %s6718_s29 = smul.u32 (%p31_p4), 896, %s182_s27 }
  0x12   : > { %s6848_s7 = scalar_lea.vmem (%p31_p4), %s9967_s0, %s6060_s28 }
  0x13   : > { %v438_v0 = vld [vmem:[%s6848_s7] sm:$0xff] (%p31_p4)  ;;  %v440_v1 = vld [vmem:[%s6848_s7 + $0x8] sm:$0xff] (%p31_p4)  ;;  %v442_v2 = vld [vmem:[%s6848_s7 + $0x10] sm:$0xff] (%p31_p4)  ;;  %s6853_s8 = scalar_lea.vmem (%p31_p4), [#allocation2], %s6718_s29 }
  0x14   : > { %439 = vst [vmem:[%s6853_s8] sm:$0xff] %v438_v0  ;;  %441 = vst [vmem:[%s6853_s8 + $0x8] sm:$0xff] %v440_v1  ;;  %v444_v3 = vld [vmem:[%s6848_s7 + $0x18] sm:$0xff]  ;;  %v446_v4 = vld [vmem:[%s6848_s7 + $0x20] sm:$0xff] }
  0x15   : > { %443 = vst [vmem:[%s6853_s8 + $0x10] sm:$0xff] %v442_v2  ;;  %v448_v5 = vld [vmem:[%s6848_s7 + $0x28] sm:$0xff]  ;;  %445 = vst [vmem:[%s6853_s8 + $0x18] sm:$0xff] %v444_v3  ;;  %v450_v6 = vld [vmem:[%s6848_s7 + $0x30] sm:$0xff] }
  0x16   : > { %447 = vst [vmem:[%s6853_s8 + $0x20] sm:$0xff] %v446_v4  ;;  %449 = vst [vmem:[%s6853_s8 + $0x28] sm:$0xff] %v448_v5  ;;  %v452_v7 = vld [vmem:[%s6848_s7 + $0x38] sm:$0xff]  ;;  %v454_v8 = vld [vmem:[%s6848_s7 + $0x40] sm:$0xff] }
  0x17   : > { %451 = vst [vmem:[%s6853_s8 + $0x30] sm:$0xff] %v450_v6  ;;  %453 = vst [vmem:[%s6853_s8 + $0x38] sm:$0xff] %v452_v7  ;;  %v456_v9 = vld [vmem:[%s6848_s7 + $0x48] sm:$0xff]  ;;  %v458_v10 = vld [vmem:[%s6848_s7 + $0x50] sm:$0xff] }
  0x18   : > { %455 = vst [vmem:[%s6853_s8 + $0x40] sm:$0xff] %v454_v8  ;;  %v460_v11 = vld [vmem:[%s6848_s7 + $0x58] sm:$0xff]  ;;  %457 = vst [vmem:[%s6853_s8 + $0x48] sm:$0xff] %v456_v9  ;;  %v462_v12 = vld [vmem:[%s6848_s7 + $0x60] sm:$0xff] }
  0x19   : > { %459 = vst [vmem:[%s6853_s8 + $0x50] sm:$0xff] %v458_v10  ;;  %461 = vst [vmem:[%s6853_s8 + $0x58] sm:$0xff] %v460_v11  ;;  %v464_v13 = vld [vmem:[%s6848_s7 + $0x68] sm:$0xff]  ;;  %v466_v14 = vld [vmem:[%s6848_s7 + $0x70] sm:$0xff] }
  0x1a   : > { %463 = vst [vmem:[%s6853_s8 + $0x60] sm:$0xff] %v462_v12  ;;  %465 = vst [vmem:[%s6853_s8 + $0x68] sm:$0xff] %v464_v13  ;;  %v468_v15 = vld [vmem:[%s6848_s7 + $0x78] sm:$0xff]  ;;  %v470_v16 = vld [vmem:[%s6848_s7 + $0x80] sm:$0xff] }
  0x1b   : > { %467 = vst [vmem:[%s6853_s8 + $0x70] sm:$0xff] %v466_v14  ;;  %v472_v17 = vld [vmem:[%s6848_s7 + $0x88] sm:$0xff]  ;;  %469 = vst [vmem:[%s6853_s8 + $0x78] sm:$0xff] %v468_v15  ;;  %v474_v18 = vld [vmem:[%s6848_s7 + $0x90] sm:$0xff] }
  0x1c   : > { %471 = vst [vmem:[%s6853_s8 + $0x80] sm:$0xff] %v470_v16  ;;  %473 = vst [vmem:[%s6853_s8 + $0x88] sm:$0xff] %v472_v17  ;;  %v476_v19 = vld [vmem:[%s6848_s7 + $0x98] sm:$0xff]  ;;  %v478_v20 = vld [vmem:[%s6848_s7 + $0xa0] sm:$0xff] }
  0x1d   : > { %475 = vst [vmem:[%s6853_s8 + $0x90] sm:$0xff] %v474_v18  ;;  %477 = vst [vmem:[%s6853_s8 + $0x98] sm:$0xff] %v476_v19  ;;  %v480_v21 = vld [vmem:[%s6848_s7 + $0xa8] sm:$0xff]  ;;  %v482_v22 = vld [vmem:[%s6848_s7 + $0xb0] sm:$0xff] }
  0x1e   : > { %479 = vst [vmem:[%s6853_s8 + $0xa0] sm:$0xff] %v478_v20  ;;  %v484_v23 = vld [vmem:[%s6848_s7 + $0xb8] sm:$0xff]  ;;  %481 = vst [vmem:[%s6853_s8 + $0xa8] sm:$0xff] %v480_v21  ;;  %v486_v24 = vld [vmem:[%s6848_s7 + $0xc0] sm:$0xff] }
  0x1f   : > { %483 = vst [vmem:[%s6853_s8 + $0xb0] sm:$0xff] %v482_v22  ;;  %485 = vst [vmem:[%s6853_s8 + $0xb8] sm:$0xff] %v484_v23  ;;  %v488_v25 = vld [vmem:[%s6848_s7 + $0xc8] sm:$0xff]  ;;  %v490_v26 = vld [vmem:[%s6848_s7 + $0xd0] sm:$0xff] }
  0x20   : > { %487 = vst [vmem:[%s6853_s8 + $0xc0] sm:$0xff] %v486_v24  ;;  %489 = vst [vmem:[%s6853_s8 + $0xc8] sm:$0xff] %v488_v25  ;;  %v492_v27 = vld [vmem:[%s6848_s7 + $0xd8] sm:$0xff]  ;;  %v494_v28 = vld [vmem:[%s6848_s7 + $0x380] sm:$0xff] }
  0x21   : > { %491 = vst [vmem:[%s6853_s8 + $0xd0] sm:$0xff] %v490_v26  ;;  %v496_v29 = vld [vmem:[%s6848_s7 + $0x388] sm:$0xff]  ;;  %493 = vst [vmem:[%s6853_s8 + $0xd8] sm:$0xff] %v492_v27  ;;  %v498_v30 = vld [vmem:[%s6848_s7 + $0x390] sm:$0xff] }
  0x22   : > { %495 = vst [vmem:[%s6853_s8 + $0xe0] sm:$0xff] %v494_v28  ;;  %497 = vst [vmem:[%s6853_s8 + $0xe8] sm:$0xff] %v496_v29  ;;  %v500_v31 = vld [vmem:[%s6848_s7 + $0x398] sm:$0xff]  ;;  %v502_v32 = vld [vmem:[%s6848_s7 + $0x3a0] sm:$0xff] }
  0x23   : > { %499 = vst [vmem:[%s6853_s8 + $0xf0] sm:$0xff] %v498_v30  ;;  %501 = vst [vmem:[%s6853_s8 + $0xf8] sm:$0xff] %v500_v31  ;;  %v504_v33 = vld [vmem:[%s6848_s7 + $0x3a8] sm:$0xff]  ;;  %v506_v34 = vld [vmem:[%s6848_s7 + $0x3b0] sm:$0xff] }
  0x24   : > { %503 = vst [vmem:[%s6853_s8 + $0x100] sm:$0xff] %v502_v32  ;;  %v508_v35 = vld [vmem:[%s6848_s7 + $0x3b8] sm:$0xff]  ;;  %505 = vst [vmem:[%s6853_s8 + $0x108] sm:$0xff] %v504_v33  ;;  %v510_v36 = vld [vmem:[%s6848_s7 + $0x3c0] sm:$0xff] }
  0x25   : > { %507 = vst [vmem:[%s6853_s8 + $0x110] sm:$0xff] %v506_v34  ;;  %509 = vst [vmem:[%s6853_s8 + $0x118] sm:$0xff] %v508_v35  ;;  %v512_v37 = vld [vmem:[%s6848_s7 + $0x3c8] sm:$0xff]  ;;  %v514_v38 = vld [vmem:[%s6848_s7 + $0x3d0] sm:$0xff] }
  0x26   : > { %511 = vst [vmem:[%s6853_s8 + $0x120] sm:$0xff] %v510_v36  ;;  %513 = vst [vmem:[%s6853_s8 + $0x128] sm:$0xff] %v512_v37  ;;  %v516_v39 = vld [vmem:[%s6848_s7 + $0x3d8] sm:$0xff]  ;;  %v518_v40 = vld [vmem:[%s6848_s7 + $0x3e0] sm:$0xff] }
  0x27   : > { %515 = vst [vmem:[%s6853_s8 + $0x130] sm:$0xff] %v514_v38  ;;  %v520_v41 = vld [vmem:[%s6848_s7 + $0x3e8] sm:$0xff]  ;;  %517 = vst [vmem:[%s6853_s8 + $0x138] sm:$0xff] %v516_v39  ;;  %v522_v42 = vld [vmem:[%s6848_s7 + $0x3f0] sm:$0xff] }
  0x28   : > { %519 = vst [vmem:[%s6853_s8 + $0x140] sm:$0xff] %v518_v40  ;;  %521 = vst [vmem:[%s6853_s8 + $0x148] sm:$0xff] %v520_v41  ;;  %v524_v43 = vld [vmem:[%s6848_s7 + $0x3f8] sm:$0xff]  ;;  %v526_v44 = vld [vmem:[%s6848_s7 + $0x400] sm:$0xff] }
  0x29   : > { %523 = vst [vmem:[%s6853_s8 + $0x150] sm:$0xff] %v522_v42  ;;  %525 = vst [vmem:[%s6853_s8 + $0x158] sm:$0xff] %v524_v43  ;;  %v528_v45 = vld [vmem:[%s6848_s7 + $0x408] sm:$0xff]  ;;  %v530_v46 = vld [vmem:[%s6848_s7 + $0x410] sm:$0xff] }
  0x2a   : > { %527 = vst [vmem:[%s6853_s8 + $0x160] sm:$0xff] %v526_v44  ;;  %v532_v47 = vld [vmem:[%s6848_s7 + $0x418] sm:$0xff]  ;;  %529 = vst [vmem:[%s6853_s8 + $0x168] sm:$0xff] %v528_v45  ;;  %v534_v48 = vld [vmem:[%s6848_s7 + $0x420] sm:$0xff] }
  0x2b   : > { %531 = vst [vmem:[%s6853_s8 + $0x170] sm:$0xff] %v530_v46  ;;  %533 = vst [vmem:[%s6853_s8 + $0x178] sm:$0xff] %v532_v47  ;;  %v536_v49 = vld [vmem:[%s6848_s7 + $0x428] sm:$0xff]  ;;  %v538_v50 = vld [vmem:[%s6848_s7 + $0x430] sm:$0xff] }
  0x2c   : > { %535 = vst [vmem:[%s6853_s8 + $0x180] sm:$0xff] %v534_v48  ;;  %537 = vst [vmem:[%s6853_s8 + $0x188] sm:$0xff] %v536_v49  ;;  %v540_v51 = vld [vmem:[%s6848_s7 + $0x438] sm:$0xff]  ;;  %v542_v52 = vld [vmem:[%s6848_s7 + $0x440] sm:$0xff] }
  0x2d   : > { %539 = vst [vmem:[%s6853_s8 + $0x190] sm:$0xff] %v538_v50  ;;  %v544_v53 = vld [vmem:[%s6848_s7 + $0x448] sm:$0xff]  ;;  %541 = vst [vmem:[%s6853_s8 + $0x198] sm:$0xff] %v540_v51  ;;  %v546_v54 = vld [vmem:[%s6848_s7 + $0x450] sm:$0xff] }
  0x2e   : > { %543 = vst [vmem:[%s6853_s8 + $0x1a0] sm:$0xff] %v542_v52  ;;  %545 = vst [vmem:[%s6853_s8 + $0x1a8] sm:$0xff] %v544_v53  ;;  %v548_v55 = vld [vmem:[%s6848_s7 + $0x458] sm:$0xff]  ;;  %v550_v56 = vld [vmem:[%s6848_s7 + $0x700] sm:$0xff] }
  0x2f   : > { %547 = vst [vmem:[%s6853_s8 + $0x1b0] sm:$0xff] %v546_v54  ;;  %549 = vst [vmem:[%s6853_s8 + $0x1b8] sm:$0xff] %v548_v55  ;;  %v552_v57 = vld [vmem:[%s6848_s7 + $0x708] sm:$0xff]  ;;  %v554_v58 = vld [vmem:[%s6848_s7 + $0x710] sm:$0xff] }
  0x30   : > { %551 = vst [vmem:[%s6853_s8 + $0x1c0] sm:$0xff] %v550_v56  ;;  %v556_v59 = vld [vmem:[%s6848_s7 + $0x718] sm:$0xff]  ;;  %553 = vst [vmem:[%s6853_s8 + $0x1c8] sm:$0xff] %v552_v57  ;;  %v558_v60 = vld [vmem:[%s6848_s7 + $0x720] sm:$0xff] }
  0x31   : > { %555 = vst [vmem:[%s6853_s8 + $0x1d0] sm:$0xff] %v554_v58  ;;  %557 = vst [vmem:[%s6853_s8 + $0x1d8] sm:$0xff] %v556_v59  ;;  %v560_v61 = vld [vmem:[%s6848_s7 + $0x728] sm:$0xff]  ;;  %v562_v62 = vld [vmem:[%s6848_s7 + $0x730] sm:$0xff] }
  0x32   : > { %559 = vst [vmem:[%s6853_s8 + $0x1e0] sm:$0xff] %v558_v60  ;;  %561 = vst [vmem:[%s6853_s8 + $0x1e8] sm:$0xff] %v560_v61  ;;  %v564_v63 = vld [vmem:[%s6848_s7 + $0x738] sm:$0xff]  ;;  %v566_v0 = vld [vmem:[%s6848_s7 + $0x740] sm:$0xff] }
  0x33   : > { %563 = vst [vmem:[%s6853_s8 + $0x1f0] sm:$0xff] %v562_v62  ;;  %v568_v1 = vld [vmem:[%s6848_s7 + $0x748] sm:$0xff]  ;;  %565 = vst [vmem:[%s6853_s8 + $0x1f8] sm:$0xff] %v564_v63  ;;  %v570_v2 = vld [vmem:[%s6848_s7 + $0x750] sm:$0xff] }
  0x34   : > { %567 = vst [vmem:[%s6853_s8 + $0x200] sm:$0xff] %v566_v0  ;;  %569 = vst [vmem:[%s6853_s8 + $0x208] sm:$0xff] %v568_v1  ;;  %v572_v3 = vld [vmem:[%s6848_s7 + $0x758] sm:$0xff]  ;;  %v574_v4 = vld [vmem:[%s6848_s7 + $0x760] sm:$0xff] }
  0x35   : > { %571 = vst [vmem:[%s6853_s8 + $0x210] sm:$0xff] %v570_v2  ;;  %573 = vst [vmem:[%s6853_s8 + $0x218] sm:$0xff] %v572_v3  ;;  %v576_v5 = vld [vmem:[%s6848_s7 + $0x768] sm:$0xff]  ;;  %v578_v6 = vld [vmem:[%s6848_s7 + $0x770] sm:$0xff] }
  0x36   : > { %575 = vst [vmem:[%s6853_s8 + $0x220] sm:$0xff] %v574_v4  ;;  %v580_v7 = vld [vmem:[%s6848_s7 + $0x778] sm:$0xff]  ;;  %577 = vst [vmem:[%s6853_s8 + $0x228] sm:$0xff] %v576_v5  ;;  %v582_v8 = vld [vmem:[%s6848_s7 + $0x780] sm:$0xff] }
  0x37   : > { %579 = vst [vmem:[%s6853_s8 + $0x230] sm:$0xff] %v578_v6  ;;  %581 = vst [vmem:[%s6853_s8 + $0x238] sm:$0xff] %v580_v7  ;;  %v584_v9 = vld [vmem:[%s6848_s7 + $0x788] sm:$0xff]  ;;  %v586_v10 = vld [vmem:[%s6848_s7 + $0x790] sm:$0xff] }
  0x38   : > { %583 = vst [vmem:[%s6853_s8 + $0x240] sm:$0xff] %v582_v8  ;;  %585 = vst [vmem:[%s6853_s8 + $0x248] sm:$0xff] %v584_v9  ;;  %v588_v11 = vld [vmem:[%s6848_s7 + $0x798] sm:$0xff]  ;;  %v590_v12 = vld [vmem:[%s6848_s7 + $0x7a0] sm:$0xff] }
  0x39   : > { %587 = vst [vmem:[%s6853_s8 + $0x250] sm:$0xff] %v586_v10  ;;  %v592_v13 = vld [vmem:[%s6848_s7 + $0x7a8] sm:$0xff]  ;;  %589 = vst [vmem:[%s6853_s8 + $0x258] sm:$0xff] %v588_v11  ;;  %v594_v14 = vld [vmem:[%s6848_s7 + $0x7b0] sm:$0xff] }
  0x3a   : > { %591 = vst [vmem:[%s6853_s8 + $0x260] sm:$0xff] %v590_v12  ;;  %593 = vst [vmem:[%s6853_s8 + $0x268] sm:$0xff] %v592_v13  ;;  %v596_v15 = vld [vmem:[%s6848_s7 + $0x7b8] sm:$0xff]  ;;  %v598_v16 = vld [vmem:[%s6848_s7 + $0x7c0] sm:$0xff] }
  0x3b   : > { %595 = vst [vmem:[%s6853_s8 + $0x270] sm:$0xff] %v594_v14  ;;  %597 = vst [vmem:[%s6853_s8 + $0x278] sm:$0xff] %v596_v15  ;;  %v600_v17 = vld [vmem:[%s6848_s7 + $0x7c8] sm:$0xff]  ;;  %v602_v18 = vld [vmem:[%s6848_s7 + $0x7d0] sm:$0xff] }
  0x3c   : > { %599 = vst [vmem:[%s6853_s8 + $0x280] sm:$0xff] %v598_v16  ;;  %v604_v19 = vld [vmem:[%s6848_s7 + $0x7d8] sm:$0xff]  ;;  %601 = vst [vmem:[%s6853_s8 + $0x288] sm:$0xff] %v600_v17  ;;  %v606_v20 = vld [vmem:[%s6848_s7 + $0xa80] sm:$0xff] }
  0x3d   : > { %603 = vst [vmem:[%s6853_s8 + $0x290] sm:$0xff] %v602_v18  ;;  %605 = vst [vmem:[%s6853_s8 + $0x298] sm:$0xff] %v604_v19  ;;  %v608_v21 = vld [vmem:[%s6848_s7 + $0xa88] sm:$0xff]  ;;  %v610_v22 = vld [vmem:[%s6848_s7 + $0xa90] sm:$0xff] }
  0x3e   : > { %607 = vst [vmem:[%s6853_s8 + $0x2a0] sm:$0xff] %v606_v20  ;;  %609 = vst [vmem:[%s6853_s8 + $0x2a8] sm:$0xff] %v608_v21  ;;  %v612_v23 = vld [vmem:[%s6848_s7 + $0xa98] sm:$0xff]  ;;  %v614_v24 = vld [vmem:[%s6848_s7 + $0xaa0] sm:$0xff] }
  0x3f   : > { %611 = vst [vmem:[%s6853_s8 + $0x2b0] sm:$0xff] %v610_v22  ;;  %v616_v25 = vld [vmem:[%s6848_s7 + $0xaa8] sm:$0xff]  ;;  %613 = vst [vmem:[%s6853_s8 + $0x2b8] sm:$0xff] %v612_v23  ;;  %v618_v26 = vld [vmem:[%s6848_s7 + $0xab0] sm:$0xff] }
  0x40   : > { %615 = vst [vmem:[%s6853_s8 + $0x2c0] sm:$0xff] %v614_v24  ;;  %617 = vst [vmem:[%s6853_s8 + $0x2c8] sm:$0xff] %v616_v25  ;;  %v620_v27 = vld [vmem:[%s6848_s7 + $0xab8] sm:$0xff]  ;;  %v622_v28 = vld [vmem:[%s6848_s7 + $0xac0] sm:$0xff] }
  0x41   : > { %619 = vst [vmem:[%s6853_s8 + $0x2d0] sm:$0xff] %v618_v26  ;;  %621 = vst [vmem:[%s6853_s8 + $0x2d8] sm:$0xff] %v620_v27  ;;  %v624_v29 = vld [vmem:[%s6848_s7 + $0xac8] sm:$0xff]  ;;  %v626_v30 = vld [vmem:[%s6848_s7 + $0xad0] sm:$0xff] }
  0x42   : > { %623 = vst [vmem:[%s6853_s8 + $0x2e0] sm:$0xff] %v622_v28  ;;  %v628_v31 = vld [vmem:[%s6848_s7 + $0xad8] sm:$0xff]  ;;  %625 = vst [vmem:[%s6853_s8 + $0x2e8] sm:$0xff] %v624_v29  ;;  %v630_v32 = vld [vmem:[%s6848_s7 + $0xae0] sm:$0xff] }
  0x43   : > { %627 = vst [vmem:[%s6853_s8 + $0x2f0] sm:$0xff] %v626_v30  ;;  %629 = vst [vmem:[%s6853_s8 + $0x2f8] sm:$0xff] %v628_v31  ;;  %v632_v33 = vld [vmem:[%s6848_s7 + $0xae8] sm:$0xff]  ;;  %v634_v34 = vld [vmem:[%s6848_s7 + $0xaf0] sm:$0xff] }
  0x44   : > { %631 = vst [vmem:[%s6853_s8 + $0x300] sm:$0xff] %v630_v32  ;;  %633 = vst [vmem:[%s6853_s8 + $0x308] sm:$0xff] %v632_v33  ;;  %v636_v35 = vld [vmem:[%s6848_s7 + $0xaf8] sm:$0xff]  ;;  %v638_v36 = vld [vmem:[%s6848_s7 + $0xb00] sm:$0xff] }
  0x45   : > { %635 = vst [vmem:[%s6853_s8 + $0x310] sm:$0xff] %v634_v34  ;;  %v640_v37 = vld [vmem:[%s6848_s7 + $0xb08] sm:$0xff]  ;;  %637 = vst [vmem:[%s6853_s8 + $0x318] sm:$0xff] %v636_v35  ;;  %v642_v38 = vld [vmem:[%s6848_s7 + $0xb10] sm:$0xff] }
  0x46   : > { %639 = vst [vmem:[%s6853_s8 + $0x320] sm:$0xff] %v638_v36  ;;  %641 = vst [vmem:[%s6853_s8 + $0x328] sm:$0xff] %v640_v37  ;;  %v644_v39 = vld [vmem:[%s6848_s7 + $0xb18] sm:$0xff]  ;;  %v646_v40 = vld [vmem:[%s6848_s7 + $0xb20] sm:$0xff] }
  0x47   : > { %643 = vst [vmem:[%s6853_s8 + $0x330] sm:$0xff] %v642_v38  ;;  %645 = vst [vmem:[%s6853_s8 + $0x338] sm:$0xff] %v644_v39  ;;  %v648_v41 = vld [vmem:[%s6848_s7 + $0xb28] sm:$0xff]  ;;  %v650_v42 = vld [vmem:[%s6848_s7 + $0xb30] sm:$0xff] }
  0x48   : > { %647 = vst [vmem:[%s6853_s8 + $0x340] sm:$0xff] %v646_v40  ;;  %v652_v43 = vld [vmem:[%s6848_s7 + $0xb38] sm:$0xff]  ;;  %649 = vst [vmem:[%s6853_s8 + $0x348] sm:$0xff] %v648_v41  ;;  %v654_v44 = vld [vmem:[%s6848_s7 + $0xb40] sm:$0xff] }
  0x49   : > { %651 = vst [vmem:[%s6853_s8 + $0x350] sm:$0xff] %v650_v42  ;;  %653 = vst [vmem:[%s6853_s8 + $0x358] sm:$0xff] %v652_v43  ;;  %v656_v45 = vld [vmem:[%s6848_s7 + $0xb48] sm:$0xff]  ;;  %v658_v46 = vld [vmem:[%s6848_s7 + $0xb50] sm:$0xff] }
  0x4a   : > { %655 = vst [vmem:[%s6853_s8 + $0x360] sm:$0xff] %v654_v44  ;;  %657 = vst [vmem:[%s6853_s8 + $0x368] sm:$0xff] %v656_v45  ;;  %v660_v47 = vld [vmem:[%s6848_s7 + $0xb58] sm:$0xff] }
  0x4b   : > { %659 = vst [vmem:[%s6853_s8 + $0x370] sm:$0xff] %v658_v46  ;;  %661 = vst [vmem:[%s6853_s8 + $0x378] sm:$0xff] %v660_v47 }
  0x4c PF: > { %p5438_p7 = scmp.ge.s32.totalorder %s6775_s20, 1  ;;  %p666_p8 = scmp.lt.s32.totalorder %s6775_s20, 5 }
  0x4e   : > { %p667_p9 = pnand %p5438_p7, %p666_p8 }
  0x50   : > { %670 = sbr.rel (%p667_p9) target bundleno = 773 (0x305), region = 74 }
  0x55   : > { %v7081_v48 = vld [vmem:[%s9968_s1 + $0x18] sm:$0xff]  ;;  %v7086_v49 = vld [vmem:[%s9968_s1 + $0x10] sm:$0xff]  ;;  %s673_s13 = sand.u32 1, %s6767_s18   ;;  %v7096_v50 = vld [vmem:[%s9968_s1 + $0x8] sm:$0xff]  ;;  %vm745_vm0 = vcmask 261120   ;;  %s6061_s11 = smul.u32 (%p6838_p5), 224, %s5433_s21 }
  0x56   : > { %6318 = vmatprep.subr.mxu0 %v7081_v48  ;;  %s7090_s14 = smul.u32 896, %s673_s13  ;;  %v7103_v51 = vld [vmem:[%s9968_s1] sm:$0xff]  ;;  %v7203_v24 = vld [vmem:[%s9970_s3 + $0x18] sm:$0xff]  ;;  %v7211_v26 = vld [vmem:[%s9970_s3 + $0x10] sm:$0xff] }
  0x57   : > { %6319 = vmatpush3.msra.mxu0 %v7081_v48  ;;  %6368 = vmatprep.subr.mxu1 %v7203_v24  ;;  %v7221_v28 = vld [vmem:[%s9970_s3 + $0x8] sm:$0xff]  ;;  %v7229_v30 = vld [vmem:[%s9970_s3] sm:$0xff]  ;;  %s9737_s12 = scalar_lea.vmem (%p6838_p5), %s9972_s5, %s6061_s11 }
  0x58   : > { %6320 = vmatprep.subr.mxu0 %v7086_v49  ;;  %s7106_s18 = scalar_lea.vmem [#allocation2], %s7090_s14  ;;  %6369 = vmatpush3.msra.mxu1 %v7203_v24  ;;  %s8447_s30 = scalar_lea.vmem [#allocation3], %s7090_s14 }
  0x59   : > { %6321 = vmatpush3.msra.mxu0 %v7086_v49  ;;  %v711_v52 = vld [vmem:[%s7106_s18] sm:$0xff]  ;;  %v712_v53 = vld [vmem:[%s7106_s18 + $0x8] sm:$0xff]  ;;  %v713_v54 = vld [vmem:[%s7106_s18 + $0x10] sm:$0xff]  ;;  %6370 = vmatprep.subr.mxu1 %v7211_v26 }
  0x5a   : > { %6322 = vmatprep.subr.mxu0 %v7096_v50  ;;  %6326 = vmatprep.mubr.msk.f32.mxu0 %vm745_vm0, %v711_v52  ;;  %v714_v55 = vld [vmem:[%s7106_s18 + $0x18] sm:$0xff]  ;;  %v715_v56 = vld [vmem:[%s7106_s18 + $0x20] sm:$0xff]  ;;  %v716_v57 = vld [vmem:[%s7106_s18 + $0x28] sm:$0xff] }
  0x5b   : > { %6323 = vmatpush3.msra.mxu0 %v7096_v50  ;;  %v717_v58 = vld [vmem:[%s7106_s18 + $0x30] sm:$0xff]  ;;  %v718_v59 = vld [vmem:[%s7106_s18 + $0x38] sm:$0xff]  ;;  %v719_v60 = vld [vmem:[%s7106_s18 + $0x40] sm:$0xff]  ;;  %6371 = vmatpush3.msra.mxu1 %v7211_v26 }
  0x5c   : > { %6324 = vmatprep.subr.mxu0 %v7103_v51  ;;  %v720_v61 = vld [vmem:[%s7106_s18 + $0x48] sm:$0xff]  ;;  %v721_v62 = vld [vmem:[%s7106_s18 + $0x50] sm:$0xff]  ;;  %v722_v63 = vld [vmem:[%s7106_s18 + $0x58] sm:$0xff]  ;;  %6372 = vmatprep.subr.mxu1 %v7221_v28 }
  0x5d   : > { %6325 = vmatpush3.msra.mxu0 %v7103_v51  ;;  %v723_v0 = vld [vmem:[%s7106_s18 + $0x60] sm:$0xff]  ;;  %v724_v1 = vld [vmem:[%s7106_s18 + $0x68] sm:$0xff]  ;;  %v725_v2 = vld [vmem:[%s7106_s18 + $0x70] sm:$0xff]  ;;  %6373 = vmatpush3.msra.mxu1 %v7221_v28 }
  0x5e   : > { %6327 = vmatmul.mubr.msk.f32.vlgmr.msra.gmra.mxu0 %vm745_vm0, %v712_v53  ;;  %6418 = vmatprep.subr.mxu0 %v7081_v48  ;;  %v726_v3 = vld [vmem:[%s7106_s18 + $0x78] sm:$0xff]  ;;  %v727_v4 = vld [vmem:[%s7106_s18 + $0x80] sm:$0xff]  ;;  %v728_v5 = vld [vmem:[%s7106_s18 + $0x88] sm:$0xff] }
  0x5f   : > { %6419 = vmatpush3.msra.mxu0 %v7081_v48  ;;  %6329 = vmatprep.mubr.msk.f32.mxu0 %vm745_vm0, %v713_v54  ;;  %v729_v6 = vld [vmem:[%s7106_s18 + $0x90] sm:$0xff]  ;;  %v730_v7 = vld [vmem:[%s7106_s18 + $0x98] sm:$0xff]  ;;  %v731_v8 = vld [vmem:[%s7106_s18 + $0xa0] sm:$0xff] }
  0x60   : > { %6420 = vmatprep.subr.mxu0 %v7086_v49  ;;  %v732_v9 = vld [vmem:[%s7106_s18 + $0xa8] sm:$0xff]  ;;  %v733_v10 = vld [vmem:[%s7106_s18 + $0xb0] sm:$0xff]  ;;  %v734_v11 = vld [vmem:[%s7106_s18 + $0xb8] sm:$0xff]  ;;  %6374 = vmatprep.subr.mxu1 %v7229_v30 }
  0x61   : > { %6421 = vmatpush3.msra.mxu0 %v7086_v49  ;;  %v735_v12 = vld [vmem:[%s7106_s18 + $0xc0] sm:$0xff]  ;;  %v736_v13 = vld [vmem:[%s7106_s18 + $0xc8] sm:$0xff]  ;;  %v737_v14 = vld [vmem:[%s7106_s18 + $0xd0] sm:$0xff]  ;;  %6375 = vmatpush3.msra.mxu1 %v7229_v30 }
  0x62   : > { %6330 = vmatmul.mubr.msk.f32.gmra.mxu0 %vm745_vm0, %v714_v55  ;;  %6422 = vmatprep.subr.mxu0 %v7096_v50  ;;  %v738_v15 = vld [vmem:[%s7106_s18 + $0xd8] sm:$0xff]  ;;  %v5553_v16 = vld [vmem:[%s7106_s18 + $0xe0] sm:$0xff]  ;;  %v5554_v17 = vld [vmem:[%s7106_s18 + $0xe8] sm:$0xff] }
  0x63   : > { %6332 = vmatprep.mubr.msk.f32.mxu0 %vm745_vm0, %v715_v56  ;;  %6423 = vmatpush3.msra.mxu0 %v7096_v50  ;;  %v5555_v18 = vld [vmem:[%s7106_s18 + $0xf0] sm:$0xff]  ;;  %v5556_v19 = vld [vmem:[%s7106_s18 + $0xf8] sm:$0xff]  ;;  %v5557_v20 = vld [vmem:[%s7106_s18 + $0x100] sm:$0xff] }
  0x64   : > { %6424 = vmatprep.subr.mxu0 %v7103_v51  ;;  %v5558_v21 = vld [vmem:[%s7106_s18 + $0x108] sm:$0xff]  ;;  %v5559_v22 = vld [vmem:[%s7106_s18 + $0x110] sm:$0xff]  ;;  %v5560_v23 = vld [vmem:[%s7106_s18 + $0x118] sm:$0xff]  ;;  %6468 = vmatprep.subr.mxu1 %v7203_v24 }
  0x65   : > { %6425 = vmatpush3.msra.mxu0 %v7103_v51  ;;  %v5561_v25 = vld [vmem:[%s7106_s18 + $0x120] sm:$0xff]  ;;  %v5562_v27 = vld [vmem:[%s7106_s18 + $0x128] sm:$0xff]  ;;  %v5563_v29 = vld [vmem:[%s7106_s18 + $0x130] sm:$0xff] }
  0x66   : > { %6333 = vmatmul.mubr.msk.f32.gmra.mxu0 %vm745_vm0, %v716_v57  ;;  %6518 = vmatprep.subr.mxu0 %v7081_v48  ;;  %v5564_v31 = vld [vmem:[%s7106_s18 + $0x138] sm:$0xff]  ;;  %v5565_v32 = vld [vmem:[%s7106_s18 + $0x140] sm:$0xff]  ;;  %v5566_v33 = vld [vmem:[%s7106_s18 + $0x148] sm:$0xff] }
  0x67   : > { %6335 = vmatprep.mubr.msk.f32.mxu0 %vm745_vm0, %v717_v58  ;;  %v5567_v34 = vld [vmem:[%s7106_s18 + $0x150] sm:$0xff]  ;;  %v5568_v35 = vld [vmem:[%s7106_s18 + $0x158] sm:$0xff]  ;;  %v5569_v36 = vld [vmem:[%s7106_s18 + $0x160] sm:$0xff] }
  0x68   : > { %v5570_v37 = vld [vmem:[%s7106_s18 + $0x168] sm:$0xff]  ;;  %v5571_v38 = vld [vmem:[%s7106_s18 + $0x170] sm:$0xff]  ;;  %v5572_v39 = vld [vmem:[%s7106_s18 + $0x178] sm:$0xff] }
  0x69   : > { %v5573_v40 = vld [vmem:[%s7106_s18 + $0x180] sm:$0xff]  ;;  %v5574_v41 = vld [vmem:[%s7106_s18 + $0x188] sm:$0xff]  ;;  %v5575_v42 = vld [vmem:[%s7106_s18 + $0x190] sm:$0xff] }
  0x6a   : > { %6336 = vmatmul.mubr.msk.f32.gmra.mxu0 %vm745_vm0, %v718_v59  ;;  %v5576_v43 = vld [vmem:[%s7106_s18 + $0x198] sm:$0xff]  ;;  %v5577_v44 = vld [vmem:[%s7106_s18 + $0x1a0] sm:$0xff]  ;;  %v5578_v45 = vld [vmem:[%s7106_s18 + $0x1a8] sm:$0xff] }
  0x6b   : > { %6338 = vmatprep.mubr.msk.f32.mxu0 %vm745_vm0, %v719_v60  ;;  %v5579_v46 = vld [vmem:[%s7106_s18 + $0x1b0] sm:$0xff]  ;;  %v5580_v47 = vld [vmem:[%s7106_s18 + $0x1b8] sm:$0xff]  ;;  %v5721_v52 = vld [vmem:[%s7106_s18 + $0x1c0] sm:$0xff] }
  0x6c   : > { %v5722_v53 = vld [vmem:[%s7106_s18 + $0x1c8] sm:$0xff]  ;;  %v5723_v54 = vld [vmem:[%s7106_s18 + $0x1d0] sm:$0xff]  ;;  %v5724_v55 = vld [vmem:[%s7106_s18 + $0x1d8] sm:$0xff] }
  0x6d   : > { %v5725_v56 = vld [vmem:[%s7106_s18 + $0x1e0] sm:$0xff]  ;;  %v5727_v57 = vld [vmem:[%s7106_s18 + $0x1f0] sm:$0xff] }
  0x6e   : > { %6339 = vmatmul.mubr.msk.f32.gmra.mxu0 %vm745_vm0, %v720_v61  ;;  %v5729_v58 = vld [vmem:[%s7106_s18 + $0x200] sm:$0xff]  ;;  %v5731_v59 = vld [vmem:[%s7106_s18 + $0x210] sm:$0xff]  ;;  %v5734_v61 = vld [vmem:[%s7106_s18 + $0x228] sm:$0xff] }
  0x6f   : > { %6341 = vmatprep.mubr.msk.f32.mxu0 %vm745_vm0, %v721_v62  ;;  %v5733_v60 = vld [vmem:[%s7106_s18 + $0x220] sm:$0xff]  ;;  %v5735_v62 = vld [vmem:[%s7106_s18 + $0x230] sm:$0xff] }
  0x72   : > { %6342 = vmatmul.mubr.msk.f32.gmra.mxu0 %vm745_vm0, %v722_v63  ;;  %v5736_v63 = vld [vmem:[%s7106_s18 + $0x238] sm:$0xff] }
  0x73   : > { %6344 = vmatprep.mubr.msk.f32.mxu0 %vm745_vm0, %v723_v0  ;;  %v5737_v0 = vld [vmem:[%s7106_s18 + $0x240] sm:$0xff] }
  0x76   : > { %6345 = vmatmul.mubr.msk.f32.gmra.mxu0 %vm745_vm0, %v724_v1  ;;  %v5738_v1 = vld [vmem:[%s7106_s18 + $0x248] sm:$0xff] }
  0x77   : > { %6347 = vmatprep.mubr.msk.f32.mxu0 %vm745_vm0, %v725_v2  ;;  %v5739_v2 = vld [vmem:[%s7106_s18 + $0x250] sm:$0xff] }
  0x7a   : > { %6348 = vmatmul.mubr.msk.f32.gmra.mxu0 %vm745_vm0, %v726_v3  ;;  %v5740_v3 = vld [vmem:[%s7106_s18 + $0x258] sm:$0xff] }
  0x7b   : > { %6350 = vmatprep.mubr.msk.f32.mxu0 %vm745_vm0, %v727_v4  ;;  %v5741_v4 = vld [vmem:[%s7106_s18 + $0x260] sm:$0xff] }
  0x7e   : > { %6351 = vmatmul.mubr.msk.f32.gmra.mxu0 %vm745_vm0, %v728_v5  ;;  %v5742_v5 = vld [vmem:[%s7106_s18 + $0x268] sm:$0xff] }
  0x7f   : > { %6353 = vmatprep.mubr.msk.f32.mxu0 %vm745_vm0, %v729_v6  ;;  %v5743_v6 = vld [vmem:[%s7106_s18 + $0x270] sm:$0xff] }
  0x82   : > { %6354 = vmatmul.mubr.msk.f32.gmra.mxu0 %vm745_vm0, %v730_v7  ;;  %v5744_v7 = vld [vmem:[%s7106_s18 + $0x278] sm:$0xff] }
  0x83   : > { %6356 = vmatprep.mubr.msk.f32.mxu0 %vm745_vm0, %v731_v8  ;;  %v5745_v8 = vld [vmem:[%s7106_s18 + $0x280] sm:$0xff] }
  0x86   : > { %6357 = vmatmul.mubr.msk.f32.gmra.mxu0 %vm745_vm0, %v732_v9  ;;  %v5746_v9 = vld [vmem:[%s7106_s18 + $0x288] sm:$0xff] }
  0x87   : > { %6359 = vmatprep.mubr.msk.f32.mxu0 %vm745_vm0, %v733_v10  ;;  %v5747_v10 = vld [vmem:[%s7106_s18 + $0x290] sm:$0xff] }
  0x8a   : > { %6360 = vmatmul.mubr.msk.f32.gmra.mxu0 %vm745_vm0, %v734_v11  ;;  %v5748_v11 = vld [vmem:[%s7106_s18 + $0x298] sm:$0xff] }
  0x8b   : > { %6362 = vmatprep.mubr.msk.f32.mxu0 %vm745_vm0, %v735_v12  ;;  %v5889_v12 = vld [vmem:[%s7106_s18 + $0x2a0] sm:$0xff] }
  0x8e   : > { %6363 = vmatmul.mubr.msk.f32.gmra.mxu0 %vm745_vm0, %v736_v13  ;;  %v5890_v13 = vld [vmem:[%s7106_s18 + $0x2a8] sm:$0xff] }
  0x8f   : > { %6365 = vmatprep.mubr.msk.f32.mxu0 %vm745_vm0, %v737_v14  ;;  %v5891_v14 = vld [vmem:[%s7106_s18 + $0x2b0] sm:$0xff] }
  0x92   : > { %6366 = vmatmul.mubr.msk.f32.gmra.mxu0 %vm745_vm0, %v738_v15  ;;  %v5892_v15 = vld [vmem:[%s7106_s18 + $0x2b8] sm:$0xff] }
  0x93   : > { %6426 = vmatprep.mubr.msk.f32.mxu0 %vm745_vm0, %v5553_v16  ;;  %v5893_v16 = vld [vmem:[%s7106_s18 + $0x2c0] sm:$0xff] }
  0x96   : > { %6427 = vmatmul.mubr.msk.f32.vlgmr.msra.gmra.mxu0 %vm745_vm0, %v5554_v17  ;;  %v5894_v17 = vld [vmem:[%s7106_s18 + $0x2c8] sm:$0xff] }
  0x97   : > { %6519 = vmatpush3.msra.mxu0 %v7081_v48  ;;  %6429 = vmatprep.mubr.msk.f32.mxu0 %vm745_vm0, %v5555_v18  ;;  %v5895_v18 = vld [vmem:[%s7106_s18 + $0x2d0] sm:$0xff] }
  0x98   : > { %6520 = vmatprep.subr.mxu0 %v7086_v49 }
  0x99   : > { %6521 = vmatpush3.msra.mxu0 %v7086_v49 }
  0x9a   : > { %6430 = vmatmul.mubr.msk.f32.gmra.mxu0 %vm745_vm0, %v5556_v19  ;;  %6522 = vmatprep.subr.mxu0 %v7096_v50  ;;  %v5896_v19 = vld [vmem:[%s7106_s18 + $0x2d8] sm:$0xff] }
  0x9b   : > { %6432 = vmatprep.mubr.msk.f32.mxu0 %vm745_vm0, %v5557_v20  ;;  %6523 = vmatpush3.msra.mxu0 %v7096_v50  ;;  %v5897_v20 = vld [vmem:[%s7106_s18 + $0x2e0] sm:$0xff] }
  0x9c   : > { %6524 = vmatprep.subr.mxu0 %v7103_v51 }
  0x9d   : > { %6525 = vmatpush3.msra.mxu0 %v7103_v51 }
  0x9e   : > { %6433 = vmatmul.mubr.msk.f32.gmra.mxu0 %vm745_vm0, %v5558_v21  ;;  %6618 = vmatprep.subr.mxu0 %v7081_v48  ;;  %v5898_v21 = vld [vmem:[%s7106_s18 + $0x2e8] sm:$0xff] }
  0x9f   : > { %6435 = vmatprep.mubr.msk.f32.mxu0 %vm745_vm0, %v5559_v22  ;;  %v5899_v22 = vld [vmem:[%s7106_s18 + $0x2f0] sm:$0xff] }
  0xa2   : > { %6436 = vmatmul.mubr.msk.f32.gmra.mxu0 %vm745_vm0, %v5560_v23  ;;  %v5900_v23 = vld [vmem:[%s7106_s18 + $0x2f8] sm:$0xff] }
  0xa3   : > { %6438 = vmatprep.mubr.msk.f32.mxu0 %vm745_vm0, %v5561_v25  ;;  %v5901_v25 = vld [vmem:[%s7106_s18 + $0x300] sm:$0xff] }
  0xa6   : > { %6439 = vmatmul.mubr.msk.f32.gmra.mxu0 %vm745_vm0, %v5562_v27  ;;  %v5902_v27 = vld [vmem:[%s7106_s18 + $0x308] sm:$0xff] }
  0xa7   : > { %6441 = vmatprep.mubr.msk.f32.mxu0 %vm745_vm0, %v5563_v29  ;;  %v7363_v29 = vld [vmem:[%s9969_s2] ss:$0 sm:$0xff] }
  0xaa   : > { %6442 = vmatmul.mubr.msk.f32.gmra.mxu0 %vm745_vm0, %v5564_v31  ;;  %v5903_v31 = vld [vmem:[%s7106_s18 + $0x310] sm:$0xff] }
  0xab   : > { %6444 = vmatprep.mubr.msk.f32.mxu0 %vm745_vm0, %v5565_v32 }
  0xae   : > { %6445 = vmatmul.mubr.msk.f32.gmra.mxu0 %vm745_vm0, %v5566_v33 }
  0xaf   : > { %6447 = vmatprep.mubr.msk.f32.mxu0 %vm745_vm0, %v5567_v34  ;;  %v5904_v34 = vld [vmem:[%s7106_s18 + $0x318] sm:$0xff] }
  0xb2   : > { %6448 = vmatmul.mubr.msk.f32.gmra.mxu0 %vm745_vm0, %v5568_v35 }
  0xb3   : > { %6450 = vmatprep.mubr.msk.f32.mxu0 %vm745_vm0, %v5569_v36  ;;  %v5905_v36 = vld [vmem:[%s7106_s18 + $0x320] sm:$0xff] }
  0xb6   : > { %6451 = vmatmul.mubr.msk.f32.gmra.mxu0 %vm745_vm0, %v5570_v37 }
  0xb7   : > { %6453 = vmatprep.mubr.msk.f32.mxu0 %vm745_vm0, %v5571_v38 }
  0xba   : > { %6454 = vmatmul.mubr.msk.f32.gmra.mxu0 %vm745_vm0, %v5572_v39 }
  0xbb   : > { %6456 = vmatprep.mubr.msk.f32.mxu0 %vm745_vm0, %v5573_v40 }
  0xbe   : > { %6457 = vmatmul.mubr.msk.f32.gmra.mxu0 %vm745_vm0, %v5574_v41 }
  0xbf   : > { %6459 = vmatprep.mubr.msk.f32.mxu0 %vm745_vm0, %v5575_v42  ;;  %v5906_v42 = vld [vmem:[%s7106_s18 + $0x328] sm:$0xff] }
  0xc2   : > { %6460 = vmatmul.mubr.msk.f32.gmra.mxu0 %vm745_vm0, %v5576_v43 }
  0xc3   : > { %6462 = vmatprep.mubr.msk.f32.mxu0 %vm745_vm0, %v5577_v44  ;;  %v5907_v44 = vld [vmem:[%s7106_s18 + $0x330] sm:$0xff] }
  0xc6   : > { %6463 = vmatmul.mubr.msk.f32.gmra.mxu0 %vm745_vm0, %v5578_v45 }
  0xc7   : > { %6465 = vmatprep.mubr.msk.f32.mxu0 %vm745_vm0, %v5579_v46 }
  0xca   : > { %6466 = vmatmul.mubr.msk.f32.gmra.mxu0 %vm745_vm0, %v5580_v47 }
  0xcb   : > { %6526 = vmatprep.mubr.msk.f32.mxu0 %vm745_vm0, %v5721_v52  ;;  %v9981_v52 = vmov 0.0  }
  0xce   : > { %6527 = vmatmul.mubr.msk.f32.vlgmr.msra.gmra.mxu0 %vm745_vm0, %v5722_v53 }
  0xcf   : > { %6619 = vmatpush3.msra.mxu0 %v7081_v48  ;;  %6529 = vmatprep.mubr.msk.f32.mxu0 %vm745_vm0, %v5723_v54  ;;  %v5726_v48 = vld [vmem:[%s7106_s18 + $0x1e8] sm:$0xff] }
  0xd0   : > { %6620 = vmatprep.subr.mxu0 %v7086_v49 }
  0xd1   : > { %6621 = vmatpush3.msra.mxu0 %v7086_v49  ;;  %v5728_v49 = vld [vmem:[%s7106_s18 + $0x1f8] sm:$0xff] }
  0xd2   : > { %6530 = vmatmul.mubr.msk.f32.gmra.mxu0 %vm745_vm0, %v5724_v55  ;;  %6622 = vmatprep.subr.mxu0 %v7096_v50 }
  0xd3   : > { %6532 = vmatprep.mubr.msk.f32.mxu0 %vm745_vm0, %v5725_v56  ;;  %6623 = vmatpush3.msra.mxu0 %v7096_v50  ;;  %v5730_v50 = vld [vmem:[%s7106_s18 + $0x208] sm:$0xff] }
  0xd4   : > { %6624 = vmatprep.subr.mxu0 %v7103_v51 }
  0xd5   : > { %6625 = vmatpush3.msra.mxu0 %v7103_v51  ;;  %v5732_v51 = vld [vmem:[%s7106_s18 + $0x218] sm:$0xff] }
  0xd6   : > { %6533 = vmatmul.mubr.msk.f32.gmra.mxu0 %vm745_vm0, %v5726_v48  ;;  %v5908_v48 = vld [vmem:[%s7106_s18 + $0x338] sm:$0xff] }
  0xd7   : > { %6535 = vmatprep.mubr.msk.f32.mxu0 %vm745_vm0, %v5727_v57 }
  0xda   : > { %6536 = vmatmul.mubr.msk.f32.gmra.mxu0 %vm745_vm0, %v5728_v49  ;;  %v5909_v49 = vld [vmem:[%s7106_s18 + $0x340] sm:$0xff] }
  0xdb   : > { %6538 = vmatprep.mubr.msk.f32.mxu0 %vm745_vm0, %v5729_v58 }
  0xde   : > { %6539 = vmatmul.mubr.msk.f32.gmra.mxu0 %vm745_vm0, %v5730_v50 }
  0xdf   : > { %6541 = vmatprep.mubr.msk.f32.mxu0 %vm745_vm0, %v5731_v59 }
  0xe2   : > { %6542 = vmatmul.mubr.msk.f32.gmra.mxu0 %vm745_vm0, %v5732_v51 }
  0xe3   : > { %6544 = vmatprep.mubr.msk.f32.mxu0 %vm745_vm0, %v5733_v60 }
  0xe6   : > { %6545 = vmatmul.mubr.msk.f32.gmra.mxu0 %vm745_vm0, %v5734_v61 }
  0xe7   : > { %6547 = vmatprep.mubr.msk.f32.mxu0 %vm745_vm0, %v5735_v62  ;;  %v5910_v62 = vld [vmem:[%s7106_s18 + $0x348] sm:$0xff] }
  0xea   : > { %6548 = vmatmul.mubr.msk.f32.gmra.mxu0 %vm745_vm0, %v5736_v63 }
  0xeb   : > { %6550 = vmatprep.mubr.msk.f32.mxu0 %vm745_vm0, %v5737_v0 }
  0xee   : > { %6551 = vmatmul.mubr.msk.f32.gmra.mxu0 %vm745_vm0, %v5738_v1  ;;  %v5911_v1 = vld [vmem:[%s7106_s18 + $0x350] sm:$0xff] }
  0xef   : > { %6553 = vmatprep.mubr.msk.f32.mxu0 %vm745_vm0, %v5739_v2 }
  0xf2   : > { %6554 = vmatmul.mubr.msk.f32.gmra.mxu0 %vm745_vm0, %v5740_v3 }
  0xf3   : > { %6556 = vmatprep.mubr.msk.f32.mxu0 %vm745_vm0, %v5741_v4 }
  0xf6   : > { %6557 = vmatmul.mubr.msk.f32.gmra.mxu0 %vm745_vm0, %v5742_v5 }
  0xf7   : > { %6559 = vmatprep.mubr.msk.f32.mxu0 %vm745_vm0, %v5743_v6 }
  0xfa   : > { %6560 = vmatmul.mubr.msk.f32.gmra.mxu0 %vm745_vm0, %v5744_v7 }
  0xfb   : > { %6562 = vmatprep.mubr.msk.f32.mxu0 %vm745_vm0, %v5745_v8 }
  0xfe   : > { %6563 = vmatmul.mubr.msk.f32.gmra.mxu0 %vm745_vm0, %v5746_v9  ;;  %v5912_v9 = vld [vmem:[%s7106_s18 + $0x358] sm:$0xff] }
  0xff   : > { %6565 = vmatprep.mubr.msk.f32.mxu0 %vm745_vm0, %v5747_v10 }
 0x102   : > { %6566 = vmatmul.mubr.msk.f32.gmra.mxu0 %vm745_vm0, %v5748_v11  ;;  %v5913_v11 = vld [vmem:[%s7106_s18 + $0x360] sm:$0xff] }
 0x103   : > { %6626 = vmatprep.mubr.msk.f32.mxu0 %vm745_vm0, %v5889_v12 }
 0x106   : > { %6627 = vmatmul.mubr.msk.f32.vlgmr.msra.gmra.mxu0 %vm745_vm0, %v5890_v13 }
 0x107   : > { %6629 = vmatprep.mubr.msk.f32.mxu0 %vm745_vm0, %v5891_v14 }
 0x10a   : > { %6630 = vmatmul.mubr.msk.f32.gmra.mxu0 %vm745_vm0, %v5892_v15 }
 0x10b   : > { %6632 = vmatprep.mubr.msk.f32.mxu0 %vm745_vm0, %v5893_v16 }
 0x10e   : > { %6633 = vmatmul.mubr.msk.f32.gmra.mxu0 %vm745_vm0, %v5894_v17 }
 0x10f   : > { %6635 = vmatprep.mubr.msk.f32.mxu0 %vm745_vm0, %v5895_v18  ;;  %v5914_v18 = vld [vmem:[%s7106_s18 + $0x368] sm:$0xff] }
 0x112   : > { %6636 = vmatmul.mubr.msk.f32.gmra.mxu0 %vm745_vm0, %v5896_v19 }
 0x113   : > { %6638 = vmatprep.mubr.msk.f32.mxu0 %vm745_vm0, %v5897_v20 }
 0x116   : > { %6639 = vmatmul.mubr.msk.f32.gmra.mxu0 %vm745_vm0, %v5898_v21  ;;  %v5915_v21 = vld [vmem:[%s7106_s18 + $0x370] sm:$0xff] }
 0x117   : > { %6641 = vmatprep.mubr.msk.f32.mxu0 %vm745_vm0, %v5899_v22 }
 0x11a   : > { %6642 = vmatmul.mubr.msk.f32.gmra.mxu0 %vm745_vm0, %v5900_v23 }
 0x11b   : > { %6644 = vmatprep.mubr.msk.f32.mxu0 %vm745_vm0, %v5901_v25 }
 0x11e   : > { %v6328_v32 = vpop.f32.mrf.mxu0  ;;  %6645 = vmatmul.mubr.msk.f32.gmra.mxu0 %vm745_vm0, %v5902_v27 }
 0x11f   : > { %v902_v33 = vadd.f32 %v6328_v32, %v7363_v29  ;;  %6647 = vmatprep.mubr.msk.f32.mxu0 %vm745_vm0, %v5903_v31  ;;  %v5916_v32 = vld [vmem:[%s7106_s18 + $0x378] sm:$0xff] }
 0x120   : > { %v896_v35 = vpop.f32.mrf.mxu0 }
 0x121   : > { %v7371_v37 = vmul.f32 0.5714286, %v902_v33  ;;  %v897_v38 = vadd.f32 %v7363_v29, %v896_v35 }
 0x122   : > { %v6331_v39 = vpop.f32.mrf.mxu0  ;;  %6648 = vmatmul.mubr.msk.f32.gmra.mxu0 %vm745_vm0, %v5904_v34 }
 0x123   : > { %v7375_v40 = vmul.f32 0.5714286, %v897_v38  ;;  %v912_v41 = vadd.f32 %v6331_v39, %v7363_v29  ;;  %6650 = vmatprep.mubr.msk.f32.mxu0 %vm745_vm0, %v5905_v36  ;;  %vm1092_vm1 = vcmp.ge.f32.partialorder %v7371_v37, 0.75 }
 0x124   : > { %v906_v43 = vpop.f32.mrf.mxu0  ;;  %v7391_v54 = vsel %vm1092_vm1, 1.0, %v9981_v52 }
 0x125   : > { %v7382_v45 = vmul.f32 0.5714286, %v912_v41  ;;  %v907_v46 = vadd.f32 %v7363_v29, %v906_v43  ;;  %vm1091_vm2 = vcmp.ge.f32.partialorder %v7375_v40, 0.75 }
 0x126   : > { %v6334_v47 = vpop.f32.mrf.mxu0  ;;  %6651 = vmatmul.mubr.msk.f32.gmra.mxu0 %vm745_vm0, %v5906_v42  ;;  %v7388_v53 = vsel %vm1091_vm2, 1.0, %v9981_v52 }
 0x127   : > { %v7393_v55 = vmul.f32 0.5714286, %v907_v46  ;;  %v922_v56 = vadd.f32 %v6334_v47, %v7363_v29  ;;  %6376 = vmatprep.mubr.msk.f32.mxu1 %vm745_vm0, %v7388_v53  ;;  %6653 = vmatprep.mubr.msk.f32.mxu0 %vm745_vm0, %v5907_v44  ;;  %vm1094_vm3 = vcmp.ge.f32.partialorder %v7382_v45, 0.75 }
 0x128   : > { %v916_v57 = vpop.f32.mrf.mxu0  ;;  %6377 = vmatmul.mubr.msk.f32.vlgmr.msra.gmra.mxu1 %vm745_vm0, %v7391_v54  ;;  %v7415_v60 = vsel %vm1094_vm3, 1.0, %v9981_v52 }
 0x129   : > { %vm1093_vm4 = vcmp.ge.f32.partialorder %v7393_v55, 0.75  ;;  %v7405_v58 = vmul.f32 0.5714286, %v922_v56  ;;  %v917_v50 = vadd.f32 %v7363_v29, %v916_v57  ;;  %6469 = vmatpush3.msra.mxu1 %v7203_v24 }
 0x12a   : > { %v7410_v59 = vsel %vm1093_vm4, 1.0, %v9981_v52  ;;  %v6337_v51 = vpop.f32.mrf.mxu0  ;;  %6654 = vmatmul.mubr.msk.f32.gmra.mxu0 %vm745_vm0, %v5908_v48  ;;  %6470 = vmatprep.subr.mxu1 %v7211_v26 }
 0x12b   : > { %v7417_v61 = vmul.f32 0.5714286, %v917_v50  ;;  %6379 = vmatprep.mubr.msk.f32.mxu1 %vm745_vm0, %v7410_v59  ;;  %6656 = vmatprep.mubr.msk.f32.mxu0 %vm745_vm0, %v5909_v49  ;;  %vm1096_vm5 = vcmp.ge.f32.partialorder %v7405_v58, 0.75  ;;  %v932_v63 = vadd.f32 %v6337_v51, %v7363_v29 }
 0x12c   : > { %v926_v0 = vpop.f32.mrf.mxu0  ;;  %6380 = vmatmul.mubr.msk.f32.gmra.mxu1 %vm745_vm0, %v7415_v60  ;;  %v7439_v6 = vsel %vm1096_vm5, 1.0, %v9981_v52 }
 0x12d   : > { %vm1095_vm6 = vcmp.ge.f32.partialorder %v7417_v61, 0.75  ;;  %v927_v2 = vadd.f32 %v7363_v29, %v926_v0  ;;  %6471 = vmatpush3.msra.mxu1 %v7211_v26  ;;  %v7434_v4 = vmul.f32 0.5714286, %v932_v63 }
 0x12e   : > { %v7432_v3 = vsel %vm1095_vm6, 1.0, %v9981_v52  ;;  %v6340_v5 = vpop.f32.mrf.mxu0  ;;  %6657 = vmatmul.mubr.msk.f32.gmra.mxu0 %vm745_vm0, %v5910_v62  ;;  %6472 = vmatprep.subr.mxu1 %v7221_v28 }
 0x12f   : > { %v7441_v7 = vmul.f32 0.5714286, %v927_v2  ;;  %v942_v8 = vadd.f32 %v6340_v5, %v7363_v29  ;;  %6382 = vmatprep.mubr.msk.f32.mxu1 %vm745_vm0, %v7432_v3  ;;  %6659 = vmatprep.mubr.msk.f32.mxu0 %vm745_vm0, %v5911_v1  ;;  %vm1098_vm7 = vcmp.ge.f32.partialorder %v7434_v4, 0.75 }
 0x130   : > { %v936_v10 = vpop.f32.mrf.mxu0  ;;  %6383 = vmatmul.mubr.msk.f32.gmra.mxu1 %vm745_vm0, %v7439_v6  ;;  %v7463_v16 = vsel %vm1098_vm7, 1.0, %v9981_v52 }
 0x131   : > { %vm1097_vm8 = vcmp.ge.f32.partialorder %v7441_v7, 0.75  ;;  %v7453_v12 = vmul.f32 0.5714286, %v942_v8  ;;  %6473 = vmatpush3.msra.mxu1 %v7221_v28  ;;  %v937_v14 = vadd.f32 %v7363_v29, %v936_v10 }
 0x132   : > { %v7457_v13 = vsel %vm1097_vm8, 1.0, %v9981_v52  ;;  %v6343_v15 = vpop.f32.mrf.mxu0  ;;  %6660 = vmatmul.mubr.msk.f32.gmra.mxu0 %vm745_vm0, %v5912_v9  ;;  %6474 = vmatprep.subr.mxu1 %v7229_v30 }
 0x133   : > { %v952_v17 = vadd.f32 %v6343_v15, %v7363_v29  ;;  %6385 = vmatprep.mubr.msk.f32.mxu1 %vm745_vm0, %v7457_v13  ;;  %6662 = vmatprep.mubr.msk.f32.mxu0 %vm745_vm0, %v5913_v11  ;;  %v7470_v19 = vmul.f32 0.5714286, %v937_v14  ;;  %vm1100_vm9 = vcmp.ge.f32.partialorder %v7453_v12, 0.75 }
 0x134   : > { %v946_v20 = vpop.f32.mrf.mxu0  ;;  %6386 = vmatmul.mubr.msk.f32.gmra.mxu1 %vm745_vm0, %v7463_v16  ;;  %v7491_v33 = vsel %vm1100_vm9, 1.0, %v9981_v52 }
 0x135   : > { %v7476_v22 = vmul.f32 0.5714286, %v952_v17  ;;  %v947_v23 = vadd.f32 %v7363_v29, %v946_v20  ;;  %6475 = vmatpush3.msra.mxu1 %v7229_v30  ;;  %vm1099_vm10 = vcmp.ge.f32.partialorder %v7470_v19, 0.75 }
 0x136   : > { %v6346_v25 = vpop.f32.mrf.mxu0  ;;  %6663 = vmatmul.mubr.msk.f32.gmra.mxu0 %vm745_vm0, %v5914_v18  ;;  %6568 = vmatprep.subr.mxu1 %v7203_v24  ;;  %v7484_v27 = vsel %vm1099_vm10, 1.0, %v9981_v52 }
 0x137   : > { %v7486_v31 = vmul.f32 0.5714286, %v947_v23  ;;  %6665 = vmatprep.mubr.msk.f32.mxu0 %vm745_vm0, %v5915_v21  ;;  %v962_v34 = vadd.f32 %v6346_v25, %v7363_v29  ;;  %6388 = vmatprep.mubr.msk.f32.mxu1 %vm745_vm0, %v7484_v27  ;;  %vm1102_vm11 = vcmp.ge.f32.partialorder %v7476_v22, 0.75 }
 0x138   : > { %v956_v35 = vpop.f32.mrf.mxu0  ;;  %6389 = vmatmul.mubr.msk.f32.gmra.mxu1 %vm745_vm0, %v7491_v33  ;;  %v7513_v44 = vsel %vm1102_vm11, 1.0, %v9981_v52 }
 0x139   : > { %vm1101_vm12 = vcmp.ge.f32.partialorder %v7486_v31, 0.75  ;;  %v957_v36 = vadd.f32 %v7363_v29, %v956_v35  ;;  %v7504_v39 = vmul.f32 0.5714286, %v962_v34 }
 0x13a   : > { %v7502_v38 = vsel %vm1101_vm12, 1.0, %v9981_v52  ;;  %v6349_v41 = vpop.f32.mrf.mxu0  ;;  %6666 = vmatmul.mubr.msk.f32.gmra.mxu0 %vm745_vm0, %v5916_v32 }
 0x13b   : > { %v7507_v42 = vmul.f32 0.5714286, %v957_v36  ;;  %v972_v43 = vadd.f32 %v6349_v41, %v7363_v29  ;;  %6391 = vmatprep.mubr.msk.f32.mxu1 %vm745_vm0, %v7502_v38  ;;  %vm1104_vm13 = vcmp.ge.f32.partialorder %v7504_v39, 0.75 }
 0x13c   : > { %v966_v46 = vpop.f32.mrf.mxu0  ;;  %6392 = vmatmul.mubr.msk.f32.gmra.mxu1 %vm745_vm0, %v7513_v44  ;;  %v7529_v50 = vsel %vm1104_vm13, 1.0, %v9981_v52 }
 0x13d   : > { %vm1103_vm14 = vcmp.ge.f32.partialorder %v7507_v42, 0.75  ;;  %v7517_v47 = vmul.f32 0.5714286, %v972_v43  ;;  %v967_v48 = vadd.f32 %v7363_v29, %v966_v46 }
 0x13e   : > { %v7522_v56 = vsel %vm1103_vm14, 1.0, %v9981_v52  ;;  %v6352_v57 = vpop.f32.mrf.mxu0 }
 0x13f   : > { %v982_v49 = vadd.f32 %v6352_v57, %v7363_v29  ;;  %6394 = vmatprep.mubr.msk.f32.mxu1 %vm745_vm0, %v7522_v56  ;;  %v7531_v51 = vmul.f32 0.5714286, %v967_v48  ;;  %vm1106_vm15 = vcmp.ge.f32.partialorder %v7517_v47, 0.75 }
 0x140   : > { %v976_v62 = vpop.f32.mrf.mxu0  ;;  %6395 = vmatmul.mubr.msk.f32.gmra.mxu1 %vm745_vm0, %v7529_v50  ;;  %v7546_v8 = vsel %vm1106_vm15, 1.0, %v9981_v52 }
 0x141   : > { %v7534_v63 = vmul.f32 0.5714286, %v982_v49  ;;  %v977_v0 = vadd.f32 %v7363_v29, %v976_v62  ;;  %vm1105_vm1 = vcmp.ge.f32.partialorder %v7531_v51, 0.75 }
 0x142   : > { %v6355_v1 = vpop.f32.mrf.mxu0  ;;  %v7541_v2 = vsel %vm1105_vm1, 1.0, %v9981_v52 }
 0x143   : > { %v7543_v5 = vmul.f32 0.5714286, %v977_v0  ;;  %v992_v9 = vadd.f32 %v6355_v1, %v7363_v29  ;;  %6397 = vmatprep.mubr.msk.f32.mxu1 %vm745_vm0, %v7541_v2  ;;  %vm1108_vm2 = vcmp.ge.f32.partialorder %v7534_v63, 0.75 }
 0x144   : > { %v986_v10 = vpop.f32.mrf.mxu0  ;;  %6398 = vmatmul.mubr.msk.f32.gmra.mxu1 %vm745_vm0, %v7546_v8  ;;  %v7567_v21 = vsel %vm1108_vm2, 1.0, %v9981_v52 }
 0x145   : > { %vm1107_vm3 = vcmp.ge.f32.partialorder %v7543_v5, 0.75  ;;  %v987_v11 = vadd.f32 %v7363_v29, %v986_v10  ;;  %v7559_v15 = vmul.f32 0.5714286, %v992_v9 }
 0x146   : > { %v7557_v14 = vsel %vm1107_vm3, 1.0, %v9981_v52  ;;  %v6358_v17 = vpop.f32.mrf.mxu0 }
 0x147   : > { %v7561_v18 = vmul.f32 0.5714286, %v987_v11  ;;  %v1002_v20 = vadd.f32 %v6358_v17, %v7363_v29  ;;  %6400 = vmatprep.mubr.msk.f32.mxu1 %vm745_vm0, %v7557_v14  ;;  %vm1110_vm4 = vcmp.ge.f32.partialorder %v7559_v15, 0.75 }
 0x148   : > { %v996_v23 = vpop.f32.mrf.mxu0  ;;  %6401 = vmatmul.mubr.msk.f32.gmra.mxu1 %vm745_vm0, %v7567_v21  ;;  %v7583_v41 = vsel %vm1110_vm4, 1.0, %v9981_v52 }
 0x149   : > { %vm1109_vm5 = vcmp.ge.f32.partialorder %v7561_v18, 0.75  ;;  %v7571_v25 = vmul.f32 0.5714286, %v1002_v20  ;;  %v997_v34 = vadd.f32 %v7363_v29, %v996_v23 }
 0x14a   : > { %v7576_v32 = vsel %vm1109_vm5, 1.0, %v9981_v52  ;;  %v6361_v35 = vpop.f32.mrf.mxu0 }
 0x14b   : > { %v1012_v36 = vadd.f32 %v6361_v35, %v7363_v29  ;;  %6403 = vmatprep.mubr.msk.f32.mxu1 %vm745_vm0, %v7576_v32  ;;  %v7585_v43 = vmul.f32 0.5714286, %v997_v34  ;;  %vm1112_vm6 = vcmp.ge.f32.partialorder %v7571_v25, 0.75  ;;  %v1176_v34 = vsub.f32 1.0, %v7391_v54 }
 0x14c   : > { %v1006_v46 = vpop.f32.mrf.mxu0  ;;  %6404 = vmatmul.mubr.msk.f32.gmra.mxu1 %vm745_vm0, %v7583_v41  ;;  %v7600_v1 = vsel %vm1112_vm6, 1.0, %v9981_v52 }
 0x14d   : > { %v7588_v48 = vmul.f32 0.5714286, %v1012_v36  ;;  %v1007_v57 = vadd.f32 %v7363_v29, %v1006_v46  ;;  %vm1111_vm7 = vcmp.ge.f32.partialorder %v7585_v43, 0.75  ;;  %v1175_v46 = vsub.f32 1.0, %v7388_v53 }
 0x14e   : > { %v6364_v49 = vpop.f32.mrf.mxu0  ;;  %v7595_v62 = vsel %vm1111_vm7, 1.0, %v9981_v52  ;;  %v1204_v53 = vmul.f32 %v1176_v34, %v7371_v37 }
 0x14f   : > { %10000 = vst [vmem:[#allocation4_spill] sm:$0xff] %v7588_v48  ;;  %v7597_v0 = vmul.f32 0.5714286, %v1007_v57  ;;  %v1022_v9 = vadd.f32 %v6364_v49, %v7363_v29  ;;  %6406 = vmatprep.mubr.msk.f32.mxu1 %vm745_vm0, %v7595_v62  ;;  %vm1114_vm8 = vcmp.ge.f32.partialorder %v7588_v48, 0.75 }
 0x150   : > { %v1016_v10 = vpop.f32.mrf.mxu0  ;;  %6407 = vmatmul.mubr.msk.f32.gmra.mxu1 %vm745_vm0, %v7600_v1  ;;  %v7623_v57 = vsel %vm1114_vm8, 1.0, %v9981_v52 }
 0x151   : > { %10001 = vst [vmem:[#allocation5_spill] sm:$0xff] %v7597_v0  ;;  %vm1113_vm9 = vcmp.ge.f32.partialorder %v7597_v0, 0.75  ;;  %v1017_v11 = vadd.f32 %v7363_v29, %v1016_v10  ;;  %v7613_v20 = vmul.f32 0.5714286, %v1022_v9 }
 0x152   : > { %v7611_v17 = vsel %vm1113_vm9, 1.0, %v9981_v52  ;;  %v6367_v23 = vpop.f32.mrf.mxu0 }
 0x153   : > { %10002 = vst [vmem:[#allocation6_spill] sm:$0xff] %v7613_v20  ;;  %v7616_v35 = vmul.f32 0.5714286, %v1017_v11  ;;  %v1032_v36 = vadd.f32 %v6367_v23, %v7363_v29  ;;  %6409 = vmatprep.mubr.msk.f32.mxu1 %vm745_vm0, %v7611_v17  ;;  %vm1116_vm10 = vcmp.ge.f32.partialorder %v7613_v20, 0.75 }
 0x154   : > { %v1026_v49 = vpop.f32.mrf.mxu0  ;;  %6410 = vmatmul.mubr.msk.f32.gmra.mxu1 %vm745_vm0, %v7623_v57  ;;  %v7642_v20 = vsel %vm1116_vm10, 1.0, %v9981_v52 }
 0x155   : > { %10003 = vst [vmem:[#allocation7_spill] sm:$0xff] %v7616_v35  ;;  %vm1115_vm11 = vcmp.ge.f32.partialorder %v7616_v35, 0.75  ;;  %v7627_v9 = vmul.f32 0.5714286, %v1032_v36  ;;  %v1027_v10 = vadd.f32 %v7363_v29, %v1026_v49  ;;  %v1178_v35 = vsub.f32 1.0, %v7415_v60  ;;  %10006 = vst [vmem:[#allocation10_spill] sm:$0xff] %v7642_v20 }
 0x156   : > { %v7632_v54 = vsel %vm1115_vm11, 1.0, %v9981_v52  ;;  %v6428_v11 = vpop.f32.mrf.mxu0  ;;  %v1203_v36 = vmul.f32 %v1175_v46, %v7375_v40  ;;  %v1177_v49 = vsub.f32 1.0, %v7410_v59  ;;  %v1180_v60 = vsub.f32 1.0, %v7439_v6 }
 0x157   : > { %10004 = vst [vmem:[#allocation8_spill] sm:$0xff] %v7627_v9  ;;  %10005 = vst [vmem:[#allocation9_spill] sm:$0xff] %v7632_v54  ;;  %v1935_v23 = vadd.f32 %v6428_v11, %v7363_v29  ;;  %6412 = vmatprep.mubr.msk.f32.mxu1 %vm745_vm0, %v7632_v54  ;;  %v7644_v0 = vmul.f32 0.5714286, %v1027_v10  ;;  %vm1118_vm12 = vcmp.ge.f32.partialorder %v7627_v9, 0.75  ;;  %v1179_v40 = vsub.f32 1.0, %v7432_v3 }
 0x158   : > { %v1929_v48 = vpop.f32.mrf.mxu0  ;;  %6413 = vmatmul.mubr.msk.f32.gmra.mxu1 %vm745_vm0, %v7642_v20  ;;  %v1206_v9 = vmul.f32 %v1178_v35, %v7382_v45  ;;  %v7660_v54 = vsel %vm1118_vm12, 1.0, %v9981_v52  ;;  %v1205_v6 = vmul.f32 %v1177_v49, %v7393_v55  ;;  %v1181_v49 = vsub.f32 1.0, %v7457_v13 }
 0x159   : > { %10007 = vst [vmem:[#allocation11_spill] sm:$0xff] %v7644_v0  ;;  %v2069_v37 = vsub.f32 %v1935_v23, %v1204_v53  ;;  %v1930_v34 = vadd.f32 %v7363_v29, %v1929_v48  ;;  %vm1117_vm13 = vcmp.ge.f32.partialorder %v7644_v0, 0.75  ;;  %v1182_v23 = vsub.f32 1.0, %v7463_v16 }
 0x15a   : > { %v6431_v46 = vpop.f32.mrf.mxu0  ;;  %v7655_v10 = vsel %vm1117_vm13, 1.0, %v9981_v52  ;;  %v1208_v16 = vmul.f32 %v1180_v60, %v7405_v58  ;;  %v1207_v35 = vmul.f32 %v1179_v40, %v7417_v61 }
 0x15b   : > { %v2097_v11 = vmul.f32 0.5714286, %v2069_v37  ;;  %v2068_v59 = vsub.f32 %v1930_v34, %v1203_v36  ;;  %v1945_v48 = vadd.f32 %v6431_v46, %v7363_v29  ;;  %6415 = vmatprep.mubr.msk.f32.mxu1 %vm745_vm0, %v7655_v10 }
 0x15c   : > { %v1939_v3 = vpop.f32.mrf.mxu0  ;;  %6416 = vmatmul.mubr.msk.f32.gmra.mxu1 %vm745_vm0, %v7660_v54 }
 0x15d   : > { %v7666_v0 = vadd.f32 %v2097_v11, %v1204_v53  ;;  %v2096_v20 = vmul.f32 0.5714286, %v2068_v59  ;;  %v1940_v45 = vadd.f32 %v7363_v29, %v1939_v3  ;;  %v2071_v37 = vsub.f32 %v1945_v48, %v1206_v9 }
 0x15e   : > { %v6434_v34 = vpop.f32.mrf.mxu0  ;;  %v1210_v53 = vmul.f32 %v1182_v23, %v7434_v4  ;;  %v1184_v11 = vsub.f32 1.0, %v7491_v33 }
 0x15f   : > { %vm2153_vm14 = vcmp.ge.f32.partialorder %v7666_v0, 0.75  ;;  %v7674_v46 = vadd.f32 %v2096_v20, %v1203_v36  ;;  %v2070_v52 = vsub.f32 %v1940_v45, %v1205_v6  ;;  %v1955_v55 = vadd.f32 %v6434_v34, %v7363_v29 }
 0x160   : > { %v2099_v59 = vmul.f32 0.5714286, %v2071_v37  ;;  %v1949_v3 = vpop.f32.mrf.mxu0  ;;  %v1183_v20 = vsub.f32 1.0, %v7484_v27  ;;  %v10008_v36 = vmov 0.0   ;;  %v1209_v27 = vmul.f32 %v1181_v49, %v7441_v7 }
 0x161   : > { %v2098_v58 = vmul.f32 0.5714286, %v2070_v52  ;;  %v2073_v60 = vsub.f32 %v1955_v55, %v1208_v16  ;;  %v1950_v61 = vadd.f32 %v7363_v29, %v1949_v3  ;;  %vm2152_vm15 = vcmp.ge.f32.partialorder %v7674_v46, 0.75 }
 0x162   : > { %v7684_v40 = vsel %vm2153_vm14, 1.0, %v10008_v36  ;;  %v7686_v48 = vadd.f32 %v2099_v59, %v1206_v9  ;;  %v6437_v4 = vpop.f32.mrf.mxu0  ;;  %v7689_v13 = vsel %vm2152_vm15, 1.0, %v10008_v36  ;;  %v1186_v37 = vsub.f32 1.0, %v7513_v44 }
 0x163   : > { %v7691_v33 = vadd.f32 %v2098_v58, %v1205_v6  ;;  %v2101_v23 = vmul.f32 0.5714286, %v2073_v60  ;;  %v2072_v52 = vsub.f32 %v1950_v61, %v1207_v35  ;;  %v1965_v45 = vadd.f32 %v6437_v4, %v7363_v29  ;;  %6476 = vmatprep.mubr.msk.f32.mxu1 %vm745_vm0, %v7689_v13 }
 0x164   : > { %v1959_v34 = vpop.f32.mrf.mxu0  ;;  %6477 = vmatmul.mubr.msk.f32.vlgmr.msra.gmra.mxu1 %vm745_vm0, %v7684_v40  ;;  %vm2155_vm1 = vcmp.ge.f32.partialorder %v7686_v48, 0.75  ;;  %v1212_v3 = vmul.f32 %v1184_v11, %v7453_v12  ;;  %v1211_v7 = vmul.f32 %v1183_v20, %v7470_v19  ;;  %v1185_v44 = vsub.f32 1.0, %v7502_v38 }
 0x165   : > { %v7701_v9 = vadd.f32 %v2101_v23, %v1208_v16  ;;  %v2100_v6 = vmul.f32 0.5714286, %v2072_v52  ;;  %v2075_v55 = vsub.f32 %v1965_v45, %v1210_v53  ;;  %v1960_v59 = vadd.f32 %v7363_v29, %v1959_v34  ;;  %6569 = vmatpush3.msra.mxu1 %v7203_v24 }
 0x166   : > { %v6440_v49 = vpop.f32.mrf.mxu0  ;;  %vm2154_vm2 = vcmp.ge.f32.partialorder %v7691_v33, 0.75  ;;  %6570 = vmatprep.subr.mxu1 %v7211_v26  ;;  %v1214_v4 = vmul.f32 %v1186_v37, %v7476_v22  ;;  %v1188_v12 = vsub.f32 1.0, %v7529_v50  ;;  %v7722_v11 = vsel %vm2155_vm1, 1.0, %v10008_v36 }
 0x167   : > { %v7710_v58 = vadd.f32 %v2100_v6, %v1207_v35  ;;  %v2103_v16 = vmul.f32 0.5714286, %v2075_v55  ;;  %v2074_v60 = vsub.f32 %v1960_v59, %v1209_v27  ;;  %v1975_v61 = vadd.f32 %v6440_v49, %v7363_v29  ;;  %6571 = vmatpush3.msra.mxu1 %v7211_v26 }
 0x168   : > { %v7717_v19 = vsel %vm2154_vm2, 1.0, %v10008_v36  ;;  %v1969_v38 = vpop.f32.mrf.mxu0  ;;  %6572 = vmatprep.subr.mxu1 %v7221_v28  ;;  %vm2157_vm3 = vcmp.ge.f32.partialorder %v7701_v9, 0.75  ;;  %v1213_v26 = vmul.f32 %v1185_v44, %v7486_v31  ;;  %v1187_v22 = vsub.f32 1.0, %v7522_v56 }
 0x169   : > { %v7725_v35 = vadd.f32 %v2103_v16, %v1210_v53  ;;  %v2102_v20 = vmul.f32 0.5714286, %v2074_v60  ;;  %v2077_v23 = vsub.f32 %v1975_v61, %v1212_v3  ;;  %6479 = vmatprep.mubr.msk.f32.mxu1 %vm745_vm0, %v7717_v19  ;;  %6573 = vmatpush3.msra.mxu1 %v7221_v28  ;;  %v1970_v50 = vadd.f32 %v7363_v29, %v1969_v38 }
 0x16a   : > { %6480 = vmatmul.mubr.msk.f32.gmra.mxu1 %vm745_vm0, %v7722_v11  ;;  %v6443_v53 = vpop.f32.mrf.mxu0  ;;  %vm2156_vm4 = vcmp.ge.f32.partialorder %v7710_v58, 0.75  ;;  %6574 = vmatprep.subr.mxu1 %v7229_v30  ;;  %v1216_v31 = vmul.f32 %v1188_v12, %v7504_v39  ;;  %v1190_v39 = vsub.f32 1.0, %v7546_v8  ;;  %v1189_v59 = vsub.f32 1.0, %v7541_v2 }
 0x16b   : > { %v7738_v52 = vadd.f32 %v2102_v20, %v1209_v27  ;;  %v2105_v45 = vmul.f32 0.5714286, %v2077_v23  ;;  %v1985_v37 = vadd.f32 %v6443_v53, %v7363_v29  ;;  %v7742_v28 = vsel %vm2156_vm4, 1.0, %v10008_v36  ;;  %6575 = vmatpush3.msra.mxu1 %v7229_v30 }
 0x16c   : > { %v2076_v56 = vsub.f32 %v1970_v50, %v1211_v7  ;;  %6482 = vmatprep.mubr.msk.f32.mxu1 %vm745_vm0, %v7742_v28  ;;  %v1979_v34 = vpop.f32.mrf.mxu0  ;;  %v7751_v27 = vsel %vm2157_vm3, 1.0, %v10008_v36  ;;  %vm2159_vm5 = vcmp.ge.f32.partialorder %v7725_v35, 0.75  ;;  %6668 = vmatprep.subr.mxu1 %v7203_v24  ;;  %v1215_v24 = vmul.f32 %v1187_v22, %v7507_v42 }
 0x16d   : > { %v7755_v6 = vadd.f32 %v2105_v45, %v1212_v3  ;;  %v2079_v55 = vsub.f32 %v1985_v37, %v1214_v4  ;;  %v1980_v30 = vadd.f32 %v7363_v29, %v1979_v34  ;;  %vm2158_vm6 = vcmp.ge.f32.partialorder %v7738_v52, 0.75 }
 0x16e   : > { %v2104_v44 = vmul.f32 0.5714286, %v2076_v56  ;;  %6483 = vmatmul.mubr.msk.f32.gmra.mxu1 %vm745_vm0, %v7751_v27  ;;  %v6446_v49 = vpop.f32.mrf.mxu0  ;;  %v7764_v16 = vsel %vm2158_vm6, 1.0, %v10008_v36  ;;  %v1192_v8 = vsub.f32 1.0, %v7567_v21  ;;  %v7776_v38 = vsel %vm2159_vm5, 1.0, %v10008_v36 }
 0x16f   : > { %v2107_v3 = vmul.f32 0.5714286, %v2079_v55  ;;  %v2078_v60 = vsub.f32 %v1980_v30, %v1213_v26  ;;  %v1995_v61 = vadd.f32 %v6446_v49, %v7363_v29  ;;  %6485 = vmatprep.mubr.msk.f32.mxu1 %vm745_vm0, %v7764_v16  ;;  %vm2161_vm7 = vcmp.ge.f32.partialorder %v7755_v6, 0.75 }
 0x170   : > { %v7771_v2 = vadd.f32 %v2104_v44, %v1211_v7  ;;  %v1989_v12 = vpop.f32.mrf.mxu0  ;;  %v1218_v50 = vmul.f32 %v1190_v39, %v7517_v47  ;;  %v1217_v21 = vmul.f32 %v1189_v59, %v7531_v51  ;;  %v1191_v7 = vsub.f32 1.0, %v7557_v14 }
 0x171   : > { %v7779_v42 = vadd.f32 %v2107_v3, %v1214_v4  ;;  %v2106_v20 = vmul.f32 0.5714286, %v2078_v60  ;;  %v2081_v23 = vsub.f32 %v1995_v61, %v1216_v31  ;;  %v1990_v22 = vadd.f32 %v7363_v29, %v1989_v12 }
 0x172   : > { %6486 = vmatmul.mubr.msk.f32.gmra.mxu1 %vm745_vm0, %v7776_v38  ;;  %v6449_v53 = vpop.f32.mrf.mxu0  ;;  %vm2160_vm8 = vcmp.ge.f32.partialorder %v7771_v2, 0.75  ;;  %v1220_v34 = vmul.f32 %v1192_v8, %v7534_v63  ;;  %v1194_v47 = vsub.f32 1.0, %v7583_v41  ;;  %v7799_v55 = vsel %vm2161_vm7, 1.0, %v10008_v36 }
 0x173   : > { %v7788_v45 = vadd.f32 %v2106_v20, %v1213_v26  ;;  %v2109_v4 = vmul.f32 0.5714286, %v2081_v23  ;;  %v2080_v37 = vsub.f32 %v1990_v22, %v1215_v24  ;;  %v2005_v56 = vadd.f32 %v6449_v53, %v7363_v29 }
 0x174   : > { %v7794_v51 = vsel %vm2160_vm8, 1.0, %v10008_v36  ;;  %v1999_v14 = vpop.f32.mrf.mxu0  ;;  %vm2163_vm9 = vcmp.ge.f32.partialorder %v7779_v42, 0.75  ;;  %v1219_v63 = vmul.f32 %v1191_v7, %v7543_v5  ;;  %v1193_v41 = vsub.f32 1.0, %v7576_v32 }
 0x175   : > { %v7801_v30 = vadd.f32 %v2109_v4, %v1216_v31  ;;  %v2108_v26 = vmul.f32 0.5714286, %v2080_v37  ;;  %v2083_v39 = vsub.f32 %v2005_v56, %v1218_v50  ;;  %6488 = vmatprep.mubr.msk.f32.mxu1 %vm745_vm0, %v7794_v51  ;;  %v2000_v59 = vadd.f32 %v7363_v29, %v1999_v14 }
 0x176   : > { %6489 = vmatmul.mubr.msk.f32.gmra.mxu1 %vm745_vm0, %v7799_v55  ;;  %v6452_v44 = vpop.f32.mrf.mxu0  ;;  %vm2162_vm10 = vcmp.ge.f32.partialorder %v7788_v45, 0.75  ;;  %v1222_v5 = vmul.f32 %v1194_v47, %v7559_v15  ;;  %v7822_v8 = vsel %vm2163_vm9, 1.0, %v10008_v36  ;;  %v1196_v23 = vsub.f32 1.0, %v7600_v1 }
 0x177   : > { %v7812_v31 = vadd.f32 %v2108_v26, %v1215_v24  ;;  %v2111_v49 = vmul.f32 0.5714286, %v2083_v39  ;;  %v2015_v3 = vadd.f32 %v6452_v44, %v7363_v29  ;;  %v7816_v60 = vsel %vm2162_vm10, 1.0, %v10008_v36 }
 0x178   : > { %v2082_v61 = vsub.f32 %v2000_v59, %v1217_v21  ;;  %6491 = vmatprep.mubr.msk.f32.mxu1 %vm745_vm0, %v7816_v60  ;;  %v2009_v32 = vpop.f32.mrf.mxu0  ;;  %vm2165_vm11 = vcmp.ge.f32.partialorder %v7801_v30, 0.75  ;;  %v1195_v15 = vsub.f32 1.0, %v7595_v62  ;;  %v1198_v1 = vsub.f32 1.0, %v7623_v57 }
 0x179   : > { %v7825_v24 = vadd.f32 %v2111_v49, %v1218_v50  ;;  %v2085_v12 = vsub.f32 %v2015_v3, %v1220_v34  ;;  %v2010_v20 = vadd.f32 %v7363_v29, %v2009_v32  ;;  %vm2164_vm12 = vcmp.ge.f32.partialorder %v7812_v31, 0.75  ;;  %v10009_v32 = vld [vmem:[#allocation4_spill] sm:$0xff] }
 0x17a   : > { %v2110_v22 = vmul.f32 0.5714286, %v2082_v61  ;;  %6492 = vmatmul.mubr.msk.f32.gmra.mxu1 %vm745_vm0, %v7822_v8  ;;  %v6455_v7 = vpop.f32.mrf.mxu0  ;;  %v7834_v53 = vsel %vm2164_vm12, 1.0, %v10008_v36  ;;  %v1221_v50 = vmul.f32 %v1193_v41, %v7561_v18  ;;  %v7846_v14 = vsel %vm2165_vm11, 1.0, %v10008_v36 }
 0x17b   : > { %v2113_v4 = vmul.f32 0.5714286, %v2085_v12  ;;  %v2084_v37 = vsub.f32 %v2010_v20, %v1219_v63  ;;  %v2025_v56 = vadd.f32 %v6455_v7, %v7363_v29  ;;  %6494 = vmatprep.mubr.msk.f32.mxu1 %vm745_vm0, %v7834_v53  ;;  %vm2167_vm13 = vcmp.ge.f32.partialorder %v7825_v24, 0.75  ;;  %v10010_v20 = vld [vmem:[#allocation10_spill] sm:$0xff]  ;;  %v10012_v7 = vld [vmem:[#allocation5_spill] sm:$0xff] }
 0x17c   : > { %v7841_v62 = vadd.f32 %v2110_v22, %v1217_v21  ;;  %v2019_v47 = vpop.f32.mrf.mxu0  ;;  %v1224_v59 = vmul.f32 %v1196_v23, %v7571_v25  ;;  %v1223_v57 = vmul.f32 %v1195_v15, %v7585_v43  ;;  %v1197_v21 = vsub.f32 1.0, %v7611_v17 }
 0x17d   : > { %v7849_v18 = vadd.f32 %v2113_v4, %v1220_v34  ;;  %v2112_v26 = vmul.f32 0.5714286, %v2084_v37  ;;  %v2087_v39 = vsub.f32 %v2025_v56, %v1222_v5  ;;  %v2020_v41 = vadd.f32 %v7363_v29, %v2019_v47  ;;  %v10013_v37 = vld [vmem:[#allocation9_spill] sm:$0xff] }
 0x17e   : > { %6495 = vmatmul.mubr.msk.f32.gmra.mxu1 %vm745_vm0, %v7846_v14  ;;  %v6458_v44 = vpop.f32.mrf.mxu0  ;;  %vm2166_vm14 = vcmp.ge.f32.partialorder %v7841_v62, 0.75  ;;  %v1226_v12 = vmul.f32 %v1198_v1, %v10009_v32  ;;  %v1200_v25 = vsub.f32 1.0, %v10010_v20  ;;  %v7869_v23 = vsel %vm2167_vm13, 1.0, %v10008_v36 }
 0x17f   : > { %v7858_v49 = vadd.f32 %v2112_v26, %v1219_v63  ;;  %v2115_v34 = vmul.f32 0.5714286, %v2087_v39  ;;  %v2086_v3 = vsub.f32 %v2020_v41, %v1221_v50  ;;  %v2035_v61 = vadd.f32 %v6458_v44, %v7363_v29  ;;  %v10015_v44 = vld [vmem:[#allocation6_spill] sm:$0xff] }
 0x180   : > { %v7864_v43 = vsel %vm2166_vm14, 1.0, %v10008_v36  ;;  %v2029_v17 = vpop.f32.mrf.mxu0  ;;  %vm2169_vm15 = vcmp.ge.f32.partialorder %v7849_v18, 0.75  ;;  %v1225_v4 = vmul.f32 %v1197_v21, %v10012_v7  ;;  %v1199_v56 = vsub.f32 1.0, %v10013_v37  ;;  %v10016_v37 = vld [vmem:[#allocation7_spill] sm:$0xff] }
 0x181   : > { %v7871_v15 = vadd.f32 %v2115_v34, %v1222_v5  ;;  %v2114_v63 = vmul.f32 0.5714286, %v2086_v3  ;;  %v2089_v22 = vsub.f32 %v2035_v61, %v1224_v59  ;;  %6497 = vmatprep.mubr.msk.f32.mxu1 %vm745_vm0, %v7864_v43  ;;  %v2030_v1 = vadd.f32 %v7363_v29, %v2029_v17 }
 0x182   : > { %6498 = vmatmul.mubr.msk.f32.gmra.mxu1 %vm745_vm0, %v7869_v23  ;;  %v6461_v47 = vpop.f32.mrf.mxu0  ;;  %vm2168_vm1 = vcmp.ge.f32.partialorder %v7858_v49, 0.75  ;;  %v1228_v21 = vmul.f32 %v1200_v25, %v10015_v44  ;;  %v7892_v61 = vsel %vm2169_vm15, 1.0, %v10008_v36  ;;  %v1202_v17 = vsub.f32 1.0, %v7660_v54 }
 0x183   : > { %10011 = vst [vmem:[#allocation4_spill] sm:$0xff] %v7871_v15  ;;  %v7882_v5 = vadd.f32 %v2114_v63, %v1221_v50  ;;  %v2117_v26 = vmul.f32 0.5714286, %v2089_v22  ;;  %v2045_v39 = vadd.f32 %v6461_v47, %v7363_v29  ;;  %v7886_v41 = vsel %vm2168_vm1, 1.0, %v10008_v36 }
 0x184   : > { %v2088_v34 = vsub.f32 %v2030_v1, %v1223_v57  ;;  %6500 = vmatprep.mubr.msk.f32.mxu1 %vm745_vm0, %v7886_v41  ;;  %v2039_v3 = vpop.f32.mrf.mxu0  ;;  %vm2171_vm2 = vcmp.ge.f32.partialorder %v7871_v15, 0.75  ;;  %v1201_v25 = vsub.f32 1.0, %v7655_v10  ;;  %v2237_v44 = vsub.f32 1.0, %v7684_v40 }
 0x185   : > { %10014 = vst [vmem:[#allocation10_spill] sm:$0xff] %v7882_v5  ;;  %v7895_v50 = vadd.f32 %v2117_v26, %v1224_v59  ;;  %v2091_v32 = vsub.f32 %v2045_v39, %v1226_v12  ;;  %v2040_v20 = vadd.f32 %v7363_v29, %v2039_v3  ;;  %vm2170_vm3 = vcmp.ge.f32.partialorder %v7882_v5, 0.75 }
 0x186   : > { %v2116_v63 = vmul.f32 0.5714286, %v2088_v34  ;;  %6501 = vmatmul.mubr.msk.f32.gmra.mxu1 %vm745_vm0, %v7892_v61  ;;  %v6464_v22 = vpop.f32.mrf.mxu0  ;;  %v7904_v7 = vsel %vm2170_vm3, 1.0, %v10008_v36  ;;  %v1227_v59 = vmul.f32 %v1199_v56, %v10016_v37  ;;  %v7915_v39 = vsel %vm2171_vm2, 1.0, %v10008_v36 }
 0x187   : > { %v2119_v1 = vmul.f32 0.5714286, %v2091_v32  ;;  %v2090_v47 = vsub.f32 %v2040_v20, %v1225_v4  ;;  %v2055_v26 = vadd.f32 %v6464_v22, %v7363_v29  ;;  %6503 = vmatprep.mubr.msk.f32.mxu1 %vm745_vm0, %v7904_v7  ;;  %vm2173_vm4 = vcmp.ge.f32.partialorder %v7895_v50, 0.75  ;;  %v10017_v20 = vld [vmem:[#allocation8_spill] sm:$0xff] }
 0x188   : > { %v7910_v54 = vadd.f32 %v2116_v63, %v1223_v57  ;;  %v2049_v10 = vpop.f32.mrf.mxu0  ;;  %v1230_v22 = vmul.f32 %v1202_v17, %v10017_v20  ;;  %v10018_v57 = vld [vmem:[#allocation11_spill] sm:$0xff]  ;;  %v2236_v37 = vsub.f32 1.0, %v7689_v13  ;;  %v7938_v13 = vsel %vm2173_vm4, 1.0, %v10008_v36 }
 0x189   : > { %v7919_v56 = vadd.f32 %v2119_v1, %v1226_v12  ;;  %v2118_v34 = vmul.f32 0.5714286, %v2090_v47  ;;  %v2093_v3 = vsub.f32 %v2055_v26, %v1228_v21  ;;  %v2050_v32 = vadd.f32 %v7363_v29, %v2049_v10 }
 0x18a   : > { %v1229_v63 = vmul.f32 %v1201_v25, %v10018_v57  ;;  %6504 = vmatmul.mubr.msk.f32.gmra.mxu1 %vm745_vm0, %v7915_v39  ;;  %v6467_v5 = vpop.f32.mrf.mxu0  ;;  %vm2172_vm5 = vcmp.ge.f32.partialorder %v7910_v54, 0.75  ;;  %v2239_v47 = vsub.f32 1.0, %v7722_v11  ;;  %v2265_v26 = vmul.f32 %v2237_v44, %v7666_v0 }
 0x18b   : > { %v7928_v15 = vadd.f32 %v2118_v34, %v1225_v4  ;;  %v2121_v40 = vmul.f32 0.5714286, %v2093_v3  ;;  %v2092_v12 = vsub.f32 %v2050_v32, %v1227_v59  ;;  %v2065_v1 = vadd.f32 %v6467_v5, %v7363_v29 }
 0x18c   : > { %v7933_v17 = vsel %vm2172_vm5, 1.0, %v10008_v36  ;;  %v2059_v25 = vpop.f32.mrf.mxu0  ;;  %vm2175_vm6 = vcmp.ge.f32.partialorder %v7919_v56, 0.75  ;;  %v2238_v11 = vsub.f32 1.0, %v7717_v19  ;;  %v2264_v0 = vmul.f32 %v2236_v37, %v7674_v46 }
 0x18d   : > { %v7941_v10 = vadd.f32 %v2121_v40, %v1228_v21  ;;  %v2120_v4 = vmul.f32 0.5714286, %v2092_v12  ;;  %v2095_v34 = vsub.f32 %v2065_v1, %v1230_v22  ;;  %6506 = vmatprep.mubr.msk.f32.mxu1 %vm745_vm0, %v7933_v17  ;;  %v2060_v5 = vadd.f32 %v7363_v29, %v2059_v25 }
 0x18e   : > { %6507 = vmatmul.mubr.msk.f32.gmra.mxu1 %vm745_vm0, %v7938_v13  ;;  %v6528_v3 = vpop.f32.mrf.mxu0  ;;  %vm2174_vm7 = vcmp.ge.f32.partialorder %v7928_v15, 0.75  ;;  %v7961_v19 = vsel %vm2175_vm6, 1.0, %v10008_v36  ;;  %v2267_v12 = vmul.f32 %v2239_v47, %v7686_v48  ;;  %v2240_v1 = vsub.f32 1.0, %v7742_v28 }
 0x18f   : > { %v7952_v21 = vadd.f32 %v2120_v4, %v1227_v59  ;;  %v2123_v44 = vmul.f32 0.5714286, %v2095_v34  ;;  %v3019_v32 = vadd.f32 %v6528_v3, %v7363_v29  ;;  %v7956_v20 = vsel %vm2174_vm7, 1.0, %v10008_v36 }
 0x190   : > { %v2094_v57 = vsub.f32 %v2060_v5, %v1229_v63  ;;  %6509 = vmatprep.mubr.msk.f32.mxu1 %vm745_vm0, %v7956_v20  ;;  %v3013_v40 = vpop.f32.mrf.mxu0  ;;  %vm2177_vm8 = vcmp.ge.f32.partialorder %v7941_v10, 0.75  ;;  %v2241_v25 = vsub.f32 1.0, %v7751_v27 }
 0x191   : > { %v7965_v46 = vadd.f32 %v2123_v44, %v1230_v22  ;;  %v3153_v59 = vsub.f32 %v3019_v32, %v2265_v26  ;;  %v3014_v37 = vadd.f32 %v7363_v29, %v3013_v40  ;;  %vm2176_vm9 = vcmp.ge.f32.partialorder %v7952_v21, 0.75 }
 0x192   : > { %v2122_v4 = vmul.f32 0.5714286, %v2094_v57  ;;  %6510 = vmatmul.mubr.msk.f32.gmra.mxu1 %vm745_vm0, %v7961_v19  ;;  %v6531_v34 = vpop.f32.mrf.mxu0  ;;  %v7974_v48 = vsel %vm2176_vm9, 1.0, %v10008_v36  ;;  %v2243_v22 = vsub.f32 1.0, %v7776_v38  ;;  %v7985_v27 = vsel %vm2177_vm8, 1.0, %v10008_v36 }
 0x193   : > { %v3181_v47 = vmul.f32 0.5714286, %v3153_v59  ;;  %v3152_v5 = vsub.f32 %v3014_v37, %v2264_v0  ;;  %v3029_v3 = vadd.f32 %v6531_v34, %v7363_v29  ;;  %6512 = vmatprep.mubr.msk.f32.mxu1 %vm745_vm0, %v7974_v48  ;;  %v2266_v44 = vmul.f32 %v2238_v11, %v7691_v33  ;;  %v7994_v29 = vld [vmem:[%s9969_s2] ss:$0 sm:$0xff] }
 0x194   : > { %v7980_v28 = vadd.f32 %v2122_v4, %v1229_v63  ;;  %v3023_v32 = vpop.f32.mrf.mxu0  ;;  %vm2179_vm10 = vcmp.ge.f32.partialorder %v7965_v46, 0.75  ;;  %v2242_v59 = vsub.f32 1.0, %v7764_v16  ;;  %v2269_v33 = vmul.f32 %v2241_v25, %v7701_v9 }
 0x195   : > { %v7989_v38 = vadd.f32 %v3181_v47, %v2265_v26  ;;  %v3180_v57 = vmul.f32 0.5714286, %v3152_v5  ;;  %v3155_v40 = vsub.f32 %v3029_v3, %v2267_v12  ;;  %v3024_v63 = vadd.f32 %v7994_v29, %v3023_v32 }
 0x196   : > { %6513 = vmatmul.mubr.msk.f32.gmra.mxu1 %vm745_vm0, %v7985_v27  ;;  %v6534_v11 = vpop.f32.mrf.mxu0  ;;  %vm2178_vm11 = vcmp.ge.f32.partialorder %v7980_v28, 0.75  ;;  %v2268_v26 = vmul.f32 %v2240_v1, %v7710_v58  ;;  %v2271_v47 = vmul.f32 %v2243_v22, %v7725_v35  ;;  %v2245_v5 = vsub.f32 1.0, %v7799_v55 }
 0x197   : > { %v8003_v37 = vadd.f32 %v3180_v57, %v2264_v0  ;;  %v3183_v4 = vmul.f32 0.5714286, %v3155_v40  ;;  %v3154_v34 = vsub.f32 %v3024_v63, %v2266_v44  ;;  %v3039_v16 = vadd.f32 %v7994_v29, %v6534_v11 }
 0x198   : > { %v8009_v3 = vsel %vm2178_vm11, 1.0, %v10008_v36  ;;  %v8014_v9 = vsel %vm2179_vm10, 1.0, %v10008_v36  ;;  %v3033_v25 = vpop.f32.mrf.mxu0  ;;  %vm3237_vm12 = vcmp.ge.f32.partialorder %v7989_v38, 0.75  ;;  %v2244_v55 = vsub.f32 1.0, %v7794_v51 }
 0x199   : > { %v8017_v58 = vadd.f32 %v3183_v4, %v2267_v12  ;;  %v3182_v0 = vmul.f32 0.5714286, %v3154_v34  ;;  %6515 = vmatprep.mubr.msk.f32.mxu1 %vm745_vm0, %v8009_v3  ;;  %v3034_v35 = vadd.f32 %v7994_v29, %v3033_v25  ;;  %v3157_v1 = vsub.f32 %v3039_v16, %v2269_v33 }
 0x19a   : > { %6516 = vmatmul.mubr.msk.f32.gmra.mxu1 %vm745_vm0, %v8014_v9  ;;  %v6537_v22 = vpop.f32.mrf.mxu0  ;;  %vm3236_vm13 = vcmp.ge.f32.partialorder %v8003_v37, 0.75  ;;  %v2270_v32 = vmul.f32 %v2242_v59, %v7738_v52  ;;  %v8034_v11 = vsel %vm3237_vm12, 1.0, %v10008_v36  ;;  %v2273_v34 = vmul.f32 %v2245_v5, %v7755_v6 }
 0x19b   : > { %v8027_v57 = vadd.f32 %v3182_v0, %v2266_v44  ;;  %v3156_v12 = vsub.f32 %v3034_v35, %v2268_v26  ;;  %v3049_v40 = vadd.f32 %v7994_v29, %v6537_v22  ;;  %v8031_v63 = vsel %vm3236_vm13, 1.0, %v10008_v36 }
 0x19c   : > { %v3185_v51 = vmul.f32 0.5714286, %v3157_v1  ;;  %6576 = vmatprep.mubr.msk.f32.mxu1 %vm745_vm0, %v8031_v63  ;;  %v3043_v4 = vpop.f32.mrf.mxu0  ;;  %vm3239_vm14 = vcmp.ge.f32.partialorder %v8017_v58, 0.75  ;;  %v2246_v16 = vsub.f32 1.0, %v7816_v60  ;;  %v2247_v25 = vsub.f32 1.0, %v7822_v8 }
 0x19d   : > { %v3184_v52 = vmul.f32 0.5714286, %v3156_v12  ;;  %v3159_v44 = vsub.f32 %v3049_v40, %v2271_v47  ;;  %v3044_v59 = vadd.f32 %v7994_v29, %v3043_v4  ;;  %vm3238_vm15 = vcmp.ge.f32.partialorder %v8027_v57, 0.75  ;;  %v6746_v12 = vld [vmem:[%s9970_s3 + $0x18] sm:$0xff] }
 0x19e   : > { %v8044_v0 = vadd.f32 %v3185_v51, %v2269_v33  ;;  %6577 = vmatmul.mubr.msk.f32.vlgmr.msra.gmra.mxu1 %vm745_vm0, %v8034_v11  ;;  %v6540_v35 = vpop.f32.mrf.mxu0  ;;  %v8049_v6 = vsel %vm3238_vm15, 1.0, %v10008_v36  ;;  %v2249_v8 = vsub.f32 1.0, %v7846_v14  ;;  %v2272_v33 = vmul.f32 %v2244_v55, %v7771_v2  ;;  %v6747_v51 = vld [vmem:[%s9970_s3 + $0x10] sm:$0xff] }
 0x19f   : > { %v8051_v5 = vadd.f32 %v3184_v52, %v2268_v26  ;;  %v3187_v1 = vmul.f32 0.5714286, %v3159_v44  ;;  %v3158_v22 = vsub.f32 %v3044_v59, %v2270_v32  ;;  %6669 = vmatpush3.msra.mxu1 %v6746_v12  ;;  %v3059_v60 = vadd.f32 %v7994_v29, %v6540_v35  ;;  %6579 = vmatprep.mubr.msk.f32.mxu1 %vm745_vm0, %v8049_v6 }
 0x1a0   : > { %v3053_v40 = vpop.f32.mrf.mxu0  ;;  %v8064_v26 = vsel %vm3239_vm14, 1.0, %v10008_v36  ;;  %vm3241_vm1 = vcmp.ge.f32.partialorder %v8044_v0, 0.75  ;;  %6670 = vmatprep.subr.mxu1 %v6747_v51  ;;  %v2248_v2 = vsub.f32 1.0, %v7834_v53  ;;  %v2275_v55 = vmul.f32 %v2247_v25, %v7779_v42 }
 0x1a1   : > { %v8070_v4 = vadd.f32 %v3187_v1, %v2271_v47  ;;  %v3186_v52 = vmul.f32 0.5714286, %v3158_v22  ;;  %v3161_v44 = vsub.f32 %v3059_v60, %v2273_v34  ;;  %v3054_v14 = vadd.f32 %v7994_v29, %v3053_v40  ;;  %6671 = vmatpush3.msra.mxu1 %v6747_v51  ;;  %v6748_v47 = vld [vmem:[%s9970_s3 + $0x8] sm:$0xff] }
 0x1a2   : > { %6580 = vmatmul.mubr.msk.f32.gmra.mxu1 %vm745_vm0, %v8064_v26  ;;  %v6543_v59 = vpop.f32.mrf.mxu0  ;;  %vm3240_vm2 = vcmp.ge.f32.partialorder %v8051_v5, 0.75  ;;  %v2274_v35 = vmul.f32 %v2246_v16, %v7788_v45  ;;  %6672 = vmatprep.subr.mxu1 %v6748_v47  ;;  %v2251_v60 = vsub.f32 1.0, %v7869_v23  ;;  %v8092_v45 = vsel %vm3241_vm1, 1.0, %v10008_v36 }
 0x1a3   : > { %v8082_v1 = vadd.f32 %v3186_v52, %v2270_v32  ;;  %v3189_v22 = vmul.f32 0.5714286, %v3161_v44  ;;  %v3160_v12 = vsub.f32 %v3054_v14, %v2272_v33  ;;  %v3069_v53 = vadd.f32 %v7994_v29, %v6543_v59  ;;  %6673 = vmatpush3.msra.mxu1 %v6748_v47  ;;  %v6749_v32 = vld [vmem:[%s9970_s3] sm:$0xff] }
 0x1a4   : > { %v8087_v42 = vsel %vm3240_vm2, 1.0, %v10008_v36  ;;  %v3063_v25 = vpop.f32.mrf.mxu0  ;;  %v2277_v16 = vmul.f32 %v2249_v8, %v7801_v30  ;;  %6674 = vmatprep.subr.mxu1 %v6749_v32  ;;  %vm3243_vm3 = vcmp.ge.f32.partialorder %v8070_v4, 0.75  ;;  %v2250_v52 = vsub.f32 1.0, %v7864_v43 }
 0x1a5   : > { %v8098_v40 = vadd.f32 %v3189_v22, %v2273_v34  ;;  %v3188_v51 = vmul.f32 0.5714286, %v3160_v12  ;;  %v3163_v23 = vsub.f32 %v3069_v53, %v2275_v55  ;;  %6582 = vmatprep.mubr.msk.f32.mxu1 %vm745_vm0, %v8087_v42  ;;  %6675 = vmatpush3.msra.mxu1 %v6749_v32  ;;  %v3064_v44 = vadd.f32 %v7994_v29, %v3063_v25 }
 0x1a6   : > { %6583 = vmatmul.mubr.msk.f32.gmra.mxu1 %vm745_vm0, %v8092_v45  ;;  %v6546_v30 = vpop.f32.mrf.mxu0  ;;  %vm3242_vm4 = vcmp.ge.f32.partialorder %v8082_v1, 0.75  ;;  %v2276_v34 = vmul.f32 %v2248_v2, %v7812_v31  ;;  %v8118_v12 = vsel %vm3243_vm3, 1.0, %v10008_v36  ;;  %v2279_v53 = vmul.f32 %v2251_v60, %v7825_v24 }
 0x1a7   : > { %v8109_v8 = vadd.f32 %v3188_v51, %v2272_v33  ;;  %v3191_v14 = vmul.f32 0.5714286, %v3163_v23  ;;  %v3079_v59 = vadd.f32 %v7994_v29, %v6546_v30  ;;  %v8113_v47 = vsel %vm3242_vm4, 1.0, %v10008_v36 }
 0x1a8   : > { %v3162_v22 = vsub.f32 %v3064_v44, %v2274_v35  ;;  %6585 = vmatprep.mubr.msk.f32.mxu1 %vm745_vm0, %v8113_v47  ;;  %v3073_v43 = vpop.f32.mrf.mxu0  ;;  %vm3245_vm5 = vcmp.ge.f32.partialorder %v8098_v40, 0.75  ;;  %v2252_v25 = vsub.f32 1.0, %v7886_v41  ;;  %v2253_v32 = vsub.f32 1.0, %v7892_v61 }
 0x1a9   : > { %v8122_v31 = vadd.f32 %v3191_v14, %v2275_v55  ;;  %v3165_v33 = vsub.f32 %v3079_v59, %v2277_v16  ;;  %v3074_v2 = vadd.f32 %v7994_v29, %v3073_v43  ;;  %vm3244_vm6 = vcmp.ge.f32.partialorder %v8109_v8, 0.75 }
 0x1aa   : > { %v3190_v51 = vmul.f32 0.5714286, %v3162_v22  ;;  %6586 = vmatmul.mubr.msk.f32.gmra.mxu1 %vm745_vm0, %v8118_v12  ;;  %v6549_v23 = vpop.f32.mrf.mxu0  ;;  %v8131_v24 = vsel %vm3244_vm6, 1.0, %v10008_v36  ;;  %v2278_v30 = vmul.f32 %v2250_v52, %v7841_v62  ;;  %v2255_v41 = vsub.f32 1.0, %v7915_v39 }
 0x1ab   : > { %v3193_v60 = vmul.f32 0.5714286, %v3165_v33  ;;  %v3164_v55 = vsub.f32 %v3074_v2, %v2276_v34  ;;  %v3089_v44 = vadd.f32 %v7994_v29, %v6549_v23  ;;  %6588 = vmatprep.mubr.msk.f32.mxu1 %vm745_vm0, %v8131_v24  ;;  %v8143_v59 = vsel %vm3245_vm5, 1.0, %v10008_v36 }
 0x1ac   : > { %v8138_v61 = vadd.f32 %v3190_v51, %v2274_v35  ;;  %v3083_v14 = vpop.f32.mrf.mxu0  ;;  %vm3247_vm7 = vcmp.ge.f32.partialorder %v8122_v31, 0.75  ;;  %v2254_v62 = vsub.f32 1.0, %v7904_v7  ;;  %v2281_v39 = vmul.f32 %v2253_v32, %v7849_v18  ;;  %v10019_v32 = vld [vmem:[#allocation4_spill] sm:$0xff] }
 0x1ad   : > { %v8146_v22 = vadd.f32 %v3193_v60, %v2277_v16  ;;  %v3192_v43 = vmul.f32 0.5714286, %v3164_v55  ;;  %v3167_v33 = vsub.f32 %v3089_v44, %v2279_v53  ;;  %v3084_v2 = vadd.f32 %v7994_v29, %v3083_v14 }
 0x1ae   : > { %6589 = vmatmul.mubr.msk.f32.gmra.mxu1 %vm745_vm0, %v8143_v59  ;;  %v6552_v35 = vpop.f32.mrf.mxu0  ;;  %vm3246_vm8 = vcmp.ge.f32.partialorder %v8138_v61, 0.75  ;;  %v2280_v52 = vmul.f32 %v2252_v25, %v7858_v49  ;;  %v2257_v55 = vsub.f32 1.0, %v7938_v13  ;;  %v8165_v18 = vsel %vm3247_vm7, 1.0, %v10008_v36 }
 0x1af   : > { %v8155_v51 = vadd.f32 %v3192_v43, %v2276_v34  ;;  %v3195_v16 = vmul.f32 0.5714286, %v3167_v33  ;;  %v3166_v23 = vsub.f32 %v3084_v2, %v2278_v30  ;;  %v3099_v60 = vadd.f32 %v7994_v29, %v6552_v35 }
 0x1b0   : > { %v8160_v7 = vsel %vm3246_vm8, 1.0, %v10008_v36  ;;  %v3093_v44 = vpop.f32.mrf.mxu0  ;;  %v2283_v14 = vmul.f32 %v2255_v41, %v10019_v32  ;;  %vm3249_vm9 = vcmp.ge.f32.partialorder %v8146_v22, 0.75  ;;  %v2256_v13 = vsub.f32 1.0, %v7933_v17  ;;  %v10020_v41 = vld [vmem:[#allocation10_spill] sm:$0xff] }
 0x1b1   : > { %v8168_v49 = vadd.f32 %v3195_v16, %v2279_v53  ;;  %v3194_v34 = vmul.f32 0.5714286, %v3166_v23  ;;  %v3169_v25 = vsub.f32 %v3099_v60, %v2281_v39  ;;  %6591 = vmatprep.mubr.msk.f32.mxu1 %vm745_vm0, %v8160_v7  ;;  %v3094_v43 = vadd.f32 %v7994_v29, %v3093_v44 }
 0x1b2   : > { %6592 = vmatmul.mubr.msk.f32.gmra.mxu1 %vm745_vm0, %v8165_v18  ;;  %v6555_v33 = vpop.f32.mrf.mxu0  ;;  %vm3248_vm10 = vcmp.ge.f32.partialorder %v8155_v51, 0.75  ;;  %v2282_v53 = vmul.f32 %v2254_v62, %v10020_v41  ;;  %v8188_v44 = vsel %vm3249_vm9, 1.0, %v10008_v36  ;;  %v2285_v32 = vmul.f32 %v2257_v55, %v7895_v50 }
 0x1b3   : > { %v8179_v2 = vadd.f32 %v3194_v34, %v2278_v30  ;;  %v3197_v35 = vmul.f32 0.5714286, %v3169_v25  ;;  %v3109_v16 = vadd.f32 %v7994_v29, %v6555_v33  ;;  %v8183_v23 = vsel %vm3248_vm10, 1.0, %v10008_v36 }
 0x1b4   : > { %v3168_v60 = vsub.f32 %v3094_v43, %v2280_v52  ;;  %6594 = vmatprep.mubr.msk.f32.mxu1 %vm745_vm0, %v8183_v23  ;;  %v3103_v17 = vpop.f32.mrf.mxu0  ;;  %vm3251_vm11 = vcmp.ge.f32.partialorder %v8168_v49, 0.75  ;;  %v2258_v25 = vsub.f32 1.0, %v7956_v20  ;;  %v2259_v43 = vsub.f32 1.0, %v7961_v19 }
 0x1b5   : > { %10021 = vst [vmem:[#allocation5_spill] sm:$0xff] %v8179_v2  ;;  %v8192_v30 = vadd.f32 %v3197_v35, %v2281_v39  ;;  %v3171_v62 = vsub.f32 %v3109_v16, %v2283_v14  ;;  %v3104_v34 = vadd.f32 %v7994_v29, %v3103_v17  ;;  %vm3250_vm12 = vcmp.ge.f32.partialorder %v8179_v2, 0.75 }
 0x1b6   : > { %v3196_v33 = vmul.f32 0.5714286, %v3168_v60  ;;  %6595 = vmatmul.mubr.msk.f32.gmra.mxu1 %vm745_vm0, %v8188_v44  ;;  %v6558_v41 = vpop.f32.mrf.mxu0  ;;  %v8201_v50 = vsel %vm3250_vm12, 1.0, %v10008_v36  ;;  %v2284_v16 = vmul.f32 %v2256_v13, %v7910_v54  ;;  %v2261_v20 = vsub.f32 1.0, %v7985_v27 }
 0x1b7   : > { %v3199_v55 = vmul.f32 0.5714286, %v3171_v62  ;;  %v3170_v39 = vsub.f32 %v3104_v34, %v2282_v53  ;;  %v3119_v35 = vadd.f32 %v7994_v29, %v6558_v41  ;;  %6597 = vmatprep.mubr.msk.f32.mxu1 %vm745_vm0, %v8201_v50  ;;  %v8213_v17 = vsel %vm3251_vm11, 1.0, %v10008_v36 }
 0x1b8   : > { %v8208_v19 = vadd.f32 %v3196_v33, %v2280_v52  ;;  %v3113_v60 = vpop.f32.mrf.mxu0  ;;  %vm3253_vm13 = vcmp.ge.f32.partialorder %v8192_v30, 0.75  ;;  %v2260_v54 = vsub.f32 1.0, %v7974_v48  ;;  %v2287_v27 = vmul.f32 %v2259_v43, %v7919_v56 }
 0x1b9   : > { %v8216_v62 = vadd.f32 %v3199_v55, %v2283_v14  ;;  %v3198_v34 = vmul.f32 0.5714286, %v3170_v39  ;;  %v3173_v41 = vsub.f32 %v3119_v35, %v2285_v32  ;;  %v3114_v2 = vadd.f32 %v7994_v29, %v3113_v60 }
 0x1ba   : > { %6598 = vmatmul.mubr.msk.f32.gmra.mxu1 %vm745_vm0, %v8213_v17  ;;  %v6561_v52 = vpop.f32.mrf.mxu0  ;;  %vm3252_vm14 = vcmp.ge.f32.partialorder %v8208_v19, 0.75  ;;  %v2286_v13 = vmul.f32 %v2258_v25, %v7928_v15  ;;  %v2263_v35 = vsub.f32 1.0, %v8014_v9  ;;  %v8235_v56 = vsel %vm3253_vm13, 1.0, %v10008_v36 }
 0x1bb   : > { %v8225_v33 = vadd.f32 %v3198_v34, %v2282_v53  ;;  %v3201_v14 = vmul.f32 0.5714286, %v3173_v41  ;;  %v3172_v55 = vsub.f32 %v3114_v2, %v2284_v16  ;;  %v3129_v39 = vadd.f32 %v7994_v29, %v6561_v52 }
 0x1bc   : > { %v8230_v48 = vsel %vm3252_vm14, 1.0, %v10008_v36  ;;  %v3123_v60 = vpop.f32.mrf.mxu0  ;;  %v2289_v43 = vmul.f32 %v2261_v20, %v7941_v10  ;;  %vm3255_vm15 = vcmp.ge.f32.partialorder %v8216_v62, 0.75  ;;  %v2262_v9 = vsub.f32 1.0, %v8009_v3 }
 0x1bd   : > { %v8238_v15 = vadd.f32 %v3201_v14, %v2285_v32  ;;  %v3200_v53 = vmul.f32 0.5714286, %v3172_v55  ;;  %v3175_v25 = vsub.f32 %v3129_v39, %v2287_v27  ;;  %6600 = vmatprep.mubr.msk.f32.mxu1 %vm745_vm0, %v8230_v48  ;;  %v3124_v2 = vadd.f32 %v7994_v29, %v3123_v60 }
 0x1be   : > { %6601 = vmatmul.mubr.msk.f32.gmra.mxu1 %vm745_vm0, %v8235_v56  ;;  %v6564_v34 = vpop.f32.mrf.mxu0  ;;  %vm3254_vm1 = vcmp.ge.f32.partialorder %v8225_v33, 0.75  ;;  %v2288_v10 = vmul.f32 %v2260_v54, %v7952_v21  ;;  %v8258_v55 = vsel %vm3255_vm15, 1.0, %v10008_v36  ;;  %v2291_v39 = vmul.f32 %v2263_v35, %v7965_v46 }
 0x1bf   : > { %v8249_v32 = vadd.f32 %v3200_v53, %v2284_v16  ;;  %v3203_v20 = vmul.f32 0.5714286, %v3175_v25  ;;  %v3139_v41 = vadd.f32 %v7994_v29, %v6564_v34  ;;  %v8253_v52 = vsel %vm3254_vm1, 1.0, %v10008_v36 }
 0x1c0   : > { %v3174_v14 = vsub.f32 %v3124_v2, %v2286_v13  ;;  %6603 = vmatprep.mubr.msk.f32.mxu1 %vm745_vm0, %v8253_v52  ;;  %v3133_v3 = vpop.f32.mrf.mxu0  ;;  %vm3257_vm2 = vcmp.ge.f32.partialorder %v8238_v15, 0.75  ;;  %v3320_v60 = vsub.f32 1.0, %v8031_v63  ;;  %v3321_v46 = vsub.f32 1.0, %v8034_v11 }
 0x1c1   : > { %v8262_v21 = vadd.f32 %v3203_v20, %v2287_v27  ;;  %v3177_v16 = vsub.f32 %v3139_v41, %v2289_v43  ;;  %v3134_v54 = vadd.f32 %v7994_v29, %v3133_v3  ;;  %vm3256_vm3 = vcmp.ge.f32.partialorder %v8249_v32, 0.75 }
 0x1c2   : > { %v3202_v53 = vmul.f32 0.5714286, %v3174_v14  ;;  %6604 = vmatmul.mubr.msk.f32.gmra.mxu1 %vm745_vm0, %v8258_v55  ;;  %v6567_v25 = vpop.f32.mrf.mxu0  ;;  %v8270_v2 = vsel %vm3256_vm3, 1.0, %v10008_v36  ;;  %v2290_v20 = vmul.f32 %v2262_v9, %v7980_v28  ;;  %v3323_v63 = vsub.f32 1.0, %v8064_v26 }
 0x1c3   : > { %10022 = vst [vmem:[#allocation9_spill] sm:$0xff] %v8262_v21  ;;  %v3205_v35 = vmul.f32 0.5714286, %v3177_v16  ;;  %v3176_v27 = vsub.f32 %v3134_v54, %v2288_v10  ;;  %v3149_v34 = vadd.f32 %v7994_v29, %v6567_v25  ;;  %6606 = vmatprep.mubr.msk.f32.mxu1 %vm745_vm0, %v8270_v2  ;;  %v8283_v3 = vsel %vm3257_vm2, 1.0, %v10008_v36 }
 0x1c4   : > { %v8278_v41 = vadd.f32 %v3202_v53, %v2286_v13  ;;  %v3143_v14 = vpop.f32.mrf.mxu0  ;;  %vm3259_vm4 = vcmp.ge.f32.partialorder %v8262_v21, 0.75  ;;  %v3322_v28 = vsub.f32 1.0, %v8049_v6  ;;  %v3349_v26 = vmul.f32 %v3321_v46, %v7989_v38 }
 0x1c5   : > { %v8286_v11 = vadd.f32 %v3205_v35, %v2289_v43  ;;  %v3204_v16 = vmul.f32 0.5714286, %v3176_v27  ;;  %v3179_v54 = vsub.f32 %v3149_v34, %v2291_v39  ;;  %v3144_v25 = vadd.f32 %v7994_v29, %v3143_v14 }
 0x1c6   : > { %6607 = vmatmul.mubr.msk.f32.gmra.mxu1 %vm745_vm0, %v8283_v3  ;;  %v6628_v13 = vpop.f32.mrf.mxu0  ;;  %vm3258_vm5 = vcmp.ge.f32.partialorder %v8278_v41, 0.75  ;;  %v8301_v27 = vsel %vm3259_vm4, 1.0, %v10008_v36  ;;  %v3348_v6 = vmul.f32 %v3320_v60, %v8003_v37  ;;  %v3351_v38 = vmul.f32 %v3323_v63, %v8017_v58 }
 0x1c7   : > { %v8294_v9 = vadd.f32 %v3204_v16, %v2288_v10  ;;  %v3207_v53 = vmul.f32 0.5714286, %v3179_v54  ;;  %v3178_v21 = vsub.f32 %v3144_v25, %v2290_v20  ;;  %v4103_v43 = vadd.f32 %v7994_v29, %v6628_v13 }
 0x1c8   : > { %v8298_v35 = vsel %vm3258_vm5, 1.0, %v10008_v36  ;;  %v4097_v34 = vpop.f32.mrf.mxu0  ;;  %vm3261_vm6 = vcmp.ge.f32.partialorder %v8286_v11, 0.75  ;;  %v3325_v16 = vsub.f32 1.0, %v8092_v45  ;;  %v3350_v58 = vmul.f32 %v3322_v28, %v8027_v57 }
 0x1c9   : > { %10023 = vst [vmem:[#allocation6_spill] sm:$0xff] %v8294_v9  ;;  %v8305_v46 = vadd.f32 %v3207_v53, %v2291_v39  ;;  %v3206_v14 = vmul.f32 0.5714286, %v3178_v21  ;;  %v4237_v10 = vsub.f32 %v4103_v43, %v3349_v26  ;;  %6609 = vmatprep.mubr.msk.f32.mxu1 %vm745_vm0, %v8298_v35  ;;  %v4098_v54 = vadd.f32 %v7994_v29, %v4097_v34 }
 0x1ca   : > { %6610 = vmatmul.mubr.msk.f32.gmra.mxu1 %vm745_vm0, %v8301_v27  ;;  %v6631_v37 = vpop.f32.mrf.mxu0  ;;  %vm3260_vm7 = vcmp.ge.f32.partialorder %v8294_v9, 0.75  ;;  %v3324_v45 = vsub.f32 1.0, %v8087_v42  ;;  %v8326_v13 = vsel %vm3261_vm6, 1.0, %v10008_v36  ;;  %v3327_v43 = vsub.f32 1.0, %v8118_v12 }
 0x1cb   : > { %10024 = vst [vmem:[#allocation7_spill] sm:$0xff] %v8305_v46  ;;  %v8316_v39 = vadd.f32 %v3206_v14, %v2290_v20  ;;  %v4265_v21 = vmul.f32 0.5714286, %v4237_v10  ;;  %v4113_v60 = vadd.f32 %v7994_v29, %v6631_v37  ;;  %v8320_v63 = vsel %vm3260_vm7, 1.0, %v10008_v36 }
 0x1cc   : > { %v4236_v25 = vsub.f32 %v4098_v54, %v3348_v6  ;;  %6612 = vmatprep.mubr.msk.f32.mxu1 %vm745_vm0, %v8320_v63  ;;  %v4107_v53 = vpop.f32.mrf.mxu0  ;;  %vm3263_vm8 = vcmp.ge.f32.partialorder %v8305_v46, 0.75  ;;  %v3353_v42 = vmul.f32 %v3325_v16, %v8044_v0  ;;  %v3326_v54 = vsub.f32 1.0, %v8113_v47 }
 0x1cd   : > { %10025 = vst [vmem:[#allocation8_spill] sm:$0xff] %v8316_v39  ;;  %v4293_v57 = vadd.f32 %v4265_v21, %v3349_v26  ;;  %v4239_v20 = vsub.f32 %v4113_v60, %v3351_v38  ;;  %v4108_v28 = vadd.f32 %v7994_v29, %v4107_v53  ;;  %vm3262_vm9 = vcmp.ge.f32.partialorder %v8316_v39, 0.75 }
 0x1ce   : > { %v4264_v34 = vmul.f32 0.5714286, %v4236_v25  ;;  %6613 = vmatmul.mubr.msk.f32.gmra.mxu1 %vm745_vm0, %v8326_v13  ;;  %v6634_v14 = vpop.f32.mrf.mxu0  ;;  %v8336_v10 = vsel %vm3262_vm9, 1.0, %v10008_v36  ;;  %v8345_v12 = vsel %vm3263_vm8, 1.0, %v10008_v36  ;;  %v3352_v0 = vmul.f32 %v3324_v45, %v8051_v5 }
 0x1cf   : > { %v4267_v26 = vmul.f32 0.5714286, %v4239_v20  ;;  %v4238_v37 = vsub.f32 %v4108_v28, %v3350_v58  ;;  %v4123_v21 = vadd.f32 %v7994_v29, %v6634_v14  ;;  %6615 = vmatprep.mubr.msk.f32.mxu1 %vm745_vm0, %v8336_v10  ;;  %vm4321_vm10 = vcmp.ge.f32.partialorder %v4293_v57, 0.75 }
 0x1d0   : > { %v4117_v16 = vpop.f32.mrf.mxu0  ;;  %v4292_v60 = vadd.f32 %v4264_v34, %v3348_v6  ;;  %v3329_v28 = vsub.f32 1.0, %v8143_v59  ;;  %v3355_v14 = vmul.f32 %v3327_v43, %v8070_v4  ;;  %v3328_v45 = vsub.f32 1.0, %v8131_v24 }
 0x1d1   : > { %v4266_v25 = vmul.f32 0.5714286, %v4238_v37  ;;  %v4241_v53 = vsub.f32 %v4123_v21, %v3353_v42  ;;  %v4118_v47 = vadd.f32 %v7994_v29, %v4117_v16  ;;  %v4295_v20 = vadd.f32 %v4267_v26, %v3351_v38 }
 0x1d2   : > { %6616 = vmatmul.mubr.msk.f32.gmra.mxu1 %vm745_vm0, %v8345_v12  ;;  %v6637_v39 = vpop.f32.mrf.mxu0  ;;  %vm4320_vm11 = vcmp.ge.f32.partialorder %v4292_v60, 0.75  ;;  %v5946_v38 = vsel %vm4321_vm10, 1.0, %v10008_v36  ;;  %v3354_v59 = vmul.f32 %v3326_v54, %v8082_v1  ;;  %v3357_v24 = vmul.f32 %v3329_v28, %v8098_v40 }
 0x1d3   : > { %v4269_v46 = vmul.f32 0.5714286, %v4241_v53  ;;  %v4240_v9 = vsub.f32 %v4118_v47, %v3352_v0  ;;  %v4133_v5 = vadd.f32 %v7994_v29, %v6637_v39  ;;  %v5945_v6 = vsel %vm4320_vm11, 1.0, %v10008_v36 }
 0x1d4   : > { %6676 = vmatprep.mubr.msk.f32.mxu1 %vm745_vm0, %v5945_v6  ;;  %v4127_v34 = vpop.f32.mrf.mxu0  ;;  %v4294_v26 = vadd.f32 %v4266_v25, %v3350_v58  ;;  %vm4323_vm12 = vcmp.ge.f32.partialorder %v4295_v20, 0.75  ;;  %v3331_v39 = vsub.f32 1.0, %v8165_v18  ;;  %v3356_v54 = vmul.f32 %v3328_v45, %v8109_v8 }
 0x1d5   : > { %v4268_v4 = vmul.f32 0.5714286, %v4240_v9  ;;  %v4243_v43 = vsub.f32 %v4133_v5, %v3355_v14  ;;  %v4128_v37 = vadd.f32 %v7994_v29, %v4127_v34  ;;  %v4297_v57 = vadd.f32 %v4269_v46, %v3353_v42 }
 0x1d6   : > { %6677 = vmatmul.mubr.msk.f32.vlgmr.msra.gmra.mxu1 %vm745_vm0, %v5946_v38  ;;  %v6640_v21 = vpop.f32.mrf.mxu0  ;;  %vm4322_vm13 = vcmp.ge.f32.partialorder %v4294_v26, 0.75  ;;  %v3330_v9 = vsub.f32 1.0, %v8160_v7  ;;  %v5948_v25 = vsel %vm4323_vm12, 1.0, %v10008_v36  ;;  %v3333_v42 = vsub.f32 1.0, %v8188_v44 }
 0x1d7   : > { %v4271_v16 = vmul.f32 0.5714286, %v4243_v43  ;;  %v4242_v60 = vsub.f32 %v4128_v37, %v3354_v59  ;;  %v4143_v1 = vadd.f32 %v7994_v29, %v6640_v21  ;;  %v5947_v58 = vsel %vm4322_vm13, 1.0, %v10008_v36 }
 0x1d8   : > { %6679 = vmatprep.mubr.msk.f32.mxu1 %vm745_vm0, %v5947_v58  ;;  %v4137_v18 = vpop.f32.mrf.mxu0  ;;  %v4296_v53 = vadd.f32 %v4268_v4, %v3352_v0  ;;  %vm4325_vm14 = vcmp.ge.f32.partialorder %v4297_v57, 0.75  ;;  %v3359_v20 = vmul.f32 %v3331_v39, %v8122_v31  ;;  %v3332_v45 = vsub.f32 1.0, %v8183_v23 }
 0x1d9   : > { %v4270_v40 = vmul.f32 0.5714286, %v4242_v60  ;;  %v4245_v47 = vsub.f32 %v4143_v1, %v3357_v24  ;;  %v4138_v46 = vadd.f32 %v7994_v29, %v4137_v18  ;;  %v4299_v28 = vadd.f32 %v4271_v16, %v3355_v14 }
 0x1da   : > { %6680 = vmatmul.mubr.msk.f32.gmra.mxu1 %vm745_vm0, %v5948_v25  ;;  %v6643_v7 = vpop.f32.mrf.mxu0  ;;  %vm4324_vm15 = vcmp.ge.f32.partialorder %v4296_v53, 0.75  ;;  %v3358_v38 = vmul.f32 %v3330_v9, %v8138_v61  ;;  %v5950_v34 = vsel %vm4325_vm14, 1.0, %v10008_v36  ;;  %v3335_v43 = vsub.f32 1.0, %v8213_v17 }
 0x1db   : > { %v4273_v5 = vmul.f32 0.5714286, %v4245_v47  ;;  %v4244_v8 = vsub.f32 %v4138_v46, %v3356_v54  ;;  %v4153_v6 = vadd.f32 %v7994_v29, %v6643_v7  ;;  %v5949_v0 = vsel %vm4324_vm15, 1.0, %v10008_v36  ;;  %v10026_v46 = vld [vmem:[#allocation5_spill] sm:$0xff] }
 0x1dc   : > { %6682 = vmatprep.mubr.msk.f32.mxu1 %vm745_vm0, %v5949_v0  ;;  %v4147_v44 = vpop.f32.mrf.mxu0  ;;  %v4298_v26 = vadd.f32 %v4270_v40, %v3354_v59  ;;  %vm4327_vm1 = vcmp.ge.f32.partialorder %v4299_v28, 0.75  ;;  %v3361_v37 = vmul.f32 %v3333_v42, %v8146_v22  ;;  %v3334_v16 = vsub.f32 1.0, %v8201_v50 }
 0x1dd   : > { %v4272_v31 = vmul.f32 0.5714286, %v4244_v8  ;;  %v4247_v4 = vsub.f32 %v4153_v6, %v3359_v20  ;;  %v4148_v14 = vadd.f32 %v7994_v29, %v4147_v44  ;;  %v4301_v39 = vadd.f32 %v4273_v5, %v3357_v24 }
 0x1de   : > { %6683 = vmatmul.mubr.msk.f32.gmra.mxu1 %vm745_vm0, %v5950_v34  ;;  %v6646_v23 = vpop.f32.mrf.mxu0  ;;  %vm4326_vm2 = vcmp.ge.f32.partialorder %v4298_v26, 0.75  ;;  %v3360_v60 = vmul.f32 %v3332_v45, %v8155_v51  ;;  %v5952_v1 = vsel %vm4327_vm1, 1.0, %v10008_v36  ;;  %v3363_v18 = vmul.f32 %v3335_v43, %v8168_v49 }
 0x1df   : > { %v4275_v21 = vmul.f32 0.5714286, %v4247_v4  ;;  %v4246_v61 = vsub.f32 %v4148_v14, %v3358_v38  ;;  %v4163_v57 = vadd.f32 %v7994_v29, %v6646_v23  ;;  %v5951_v59 = vsel %vm4326_vm2, 1.0, %v10008_v36 }
 0x1e0   : > { %6685 = vmatprep.mubr.msk.f32.mxu1 %vm745_vm0, %v5951_v59  ;;  %v4157_v17 = vpop.f32.mrf.mxu0  ;;  %v4300_v58 = vadd.f32 %v4272_v31, %v3356_v54  ;;  %vm4329_vm3 = vcmp.ge.f32.partialorder %v4301_v39, 0.75  ;;  %v3337_v54 = vsub.f32 1.0, %v8235_v56  ;;  %v3362_v42 = vmul.f32 %v3334_v16, %v10026_v46  ;;  %v8405_v56 = vld [vmem:[%s9971_s4] ss:$0 sm:$0xff] }
 0x1e1   : > { %v4274_v22 = vmul.f32 0.5714286, %v4246_v61  ;;  %v4249_v9 = vsub.f32 %v4163_v57, %v3361_v37  ;;  %v4158_v24 = vadd.f32 %v7994_v29, %v4157_v17  ;;  %v4303_v50 = vadd.f32 %v4275_v21, %v3359_v20 }
 0x1e2   : > { %6686 = vmatmul.mubr.msk.f32.gmra.mxu1 %vm745_vm0, %v5952_v1  ;;  %v6649_v25 = vpop.f32.mrf.mxu0  ;;  %vm4328_vm4 = vcmp.ge.f32.partialorder %v4300_v58, 0.75  ;;  %v5954_v28 = vsel %vm4329_vm3, 1.0, %v10008_v36  ;;  %v3336_v6 = vsub.f32 1.0, %v8230_v48  ;;  %v3338_v34 = vsub.f32 1.0, %v8253_v52 }
 0x1e3   : > { %v4277_v53 = vmul.f32 0.5714286, %v4249_v9  ;;  %v4248_v40 = vsub.f32 %v4158_v24, %v3360_v60  ;;  %v4173_v51 = vadd.f32 %v7994_v29, %v6649_v25  ;;  %v5953_v47 = vsel %vm4328_vm4, 1.0, %v10008_v36 }
 0x1e4   : > { %6688 = vmatprep.mubr.msk.f32.mxu1 %vm745_vm0, %v5953_v47  ;;  %v4167_v7 = vpop.f32.mrf.mxu0  ;;  %v4302_v5 = vadd.f32 %v4274_v22, %v3358_v38  ;;  %vm4331_vm5 = vcmp.ge.f32.partialorder %v4303_v50, 0.75  ;;  %v8410_v26 = vmul.f32 %v3337_v54, %v8192_v30  ;;  %v8417_v21 = vmul.f32 %v3336_v6, %v8208_v19 }
 0x1e5   : > { %v4276_v49 = vmul.f32 0.5714286, %v4248_v40  ;;  %v4251_v8 = vsub.f32 %v4173_v51, %v3363_v18  ;;  %v4168_v20 = vadd.f32 %v7994_v29, %v4167_v7  ;;  %v4305_v45 = vadd.f32 %v4277_v53, %v3361_v37 }
 0x1e6   : > { %6689 = vmatmul.mubr.msk.f32.gmra.mxu1 %vm745_vm0, %v5954_v28  ;;  %v6652_v0 = vpop.f32.mrf.mxu0  ;;  %vm4330_vm6 = vcmp.ge.f32.partialorder %v4302_v5, 0.75  ;;  %v5956_v4 = vsel %vm4331_vm5, 1.0, %v10008_v36  ;;  %v3339_v37 = vsub.f32 1.0, %v8258_v55  ;;  %v3340_v57 = vsub.f32 1.0, %v8270_v2 }
 0x1e7   : > { %v4250_v44 = vsub.f32 %v4168_v20, %v3362_v42  ;;  %v5955_v38 = vsel %vm4330_vm6, 1.0, %v10008_v36  ;;  %v4304_v14 = vadd.f32 %v4276_v49, %v3360_v60  ;;  %v4279_v43 = vmul.f32 0.5714286, %v4251_v8 }
 0x1e8   : > { %6691 = vmatprep.mubr.msk.f32.mxu1 %vm745_vm0, %v5955_v38  ;;  %v6378_v48 = vpop.f32.mrf.mxu1  ;;  %v4177_v31 = vpop.f32.mrf.mxu0  ;;  %vm4333_vm7 = vcmp.ge.f32.partialorder %v4305_v45, 0.75  ;;  %v3341_v59 = vsub.f32 1.0, %v8283_v3  ;;  %v4183_v55 = vadd.f32 %v7994_v29, %v6652_v0  ;;  %v8440_v50 = vmul.f32 %v3339_v37, %v8216_v62 }
 0x1e9   : > { %v4278_v23 = vmul.f32 0.5714286, %v4250_v44  ;;  %v1393_v39 = vadd.f32 %v6378_v48, %v8405_v56  ;;  %v4178_v30 = vadd.f32 %v7994_v29, %v4177_v31  ;;  %vm4332_vm8 = vcmp.ge.f32.partialorder %v4304_v14, 0.75  ;;  %v10027_v48 = vld [vmem:[#allocation9_spill] sm:$0xff] }
 0x1ea   : > { %6692 = vmatmul.mubr.msk.f32.gmra.mxu1 %vm745_vm0, %v5956_v4  ;;  %v1387_v52 = vpop.f32.mrf.mxu1  ;;  %v6655_v61 = vpop.f32.mrf.mxu0  ;;  %v5957_v19 = vsel %vm4332_vm8, 1.0, %v10008_v36  ;;  %v5958_v58 = vsel %vm4333_vm7, 1.0, %v10008_v36  ;;  %v4307_v9 = vadd.f32 %v4279_v43, %v3363_v18  ;;  %v8443_v53 = vmul.f32 %v3338_v34, %v8225_v33 }
 0x1eb   : > { %v8423_v16 = vmul.f32 0.5714286, %v1393_v39  ;;  %v1388_v60 = vadd.f32 %v8405_v56, %v1387_v52  ;;  %v4306_v22 = vadd.f32 %v4278_v23, %v3362_v42  ;;  %6694 = vmatprep.mubr.msk.f32.mxu1 %vm745_vm0, %v5957_v19  ;;  %v4252_v25 = vsub.f32 %v4178_v30, %v8417_v21 }
 0x1ec   : > { %v6381_v17 = vpop.f32.mrf.mxu1  ;;  %v4187_v1 = vpop.f32.mrf.mxu0  ;;  %v3343_v33 = vsub.f32 1.0, %v8301_v27  ;;  %v8461_v54 = vmul.f32 %v3341_v59, %v8238_v15  ;;  %v8464_v42 = vmul.f32 %v3340_v57, %v8249_v32  ;;  %v4253_v28 = vsub.f32 %v4183_v55, %v8410_v26 }
 0x1ed   : > { %vm1583_vm9 = vcmp.ge.f32.partialorder %v8423_v16, 0.75  ;;  %v8431_v2 = vmul.f32 0.5714286, %v1388_v60  ;;  %v1403_v3 = vadd.f32 %v6381_v17, %v8405_v56  ;;  %vm4334_vm11 = vcmp.ge.f32.partialorder %v4306_v22, 0.75 }
 0x1ee   : > { %v8436_v24 = vsel %vm1583_vm9, 1.0, %v10008_v36  ;;  %6695 = vmatmul.mubr.msk.f32.gmra.mxu1 %vm745_vm0, %v5958_v58  ;;  %v1397_v40 = vpop.f32.mrf.mxu1  ;;  %v6658_v51 = vpop.f32.mrf.mxu0  ;;  %vm4335_vm13 = vcmp.ge.f32.partialorder %v4307_v9, 0.75  ;;  %v4280_v5 = vmul.f32 0.5714286, %v4252_v25  ;;  %v4188_v49 = vadd.f32 %v7994_v29, %v4187_v1  ;;  %v6750_v9 = vld [vmem:[%s9969_s2] ss:$0 sm:$0xff] }
 0x1ef   : > { %1723 = vst.msk [vmem:[%s8447_s30 + $0x8] sm:$0xff] %vm745_vm0, %v8436_v24  ;;  %vm1582_vm10 = vcmp.ge.f32.partialorder %v8431_v2, 0.75  ;;  %v8453_v18 = vmul.f32 0.5714286, %v1403_v3  ;;  %v1398_v62 = vadd.f32 %v8405_v56, %v1397_v40  ;;  %v5959_v32 = vsel %vm4334_vm11, 1.0, %v10008_v36 }
 0x1f0   : > { %v8458_v47 = vsel %vm1582_vm10, 1.0, %v10008_v36  ;;  %v6384_v46 = vpop.f32.mrf.mxu1  ;;  %v4197_v7 = vpop.f32.mrf.mxu0  ;;  %v3342_v6 = vsub.f32 1.0, %v8298_v35  ;;  %v4193_v0 = vadd.f32 %v7994_v29, %v6655_v61  ;;  %6697 = vmatprep.mubr.msk.f32.mxu1 %vm745_vm0, %v5959_v32  ;;  %v3344_v44 = vsub.f32 1.0, %v8320_v63 }
 0x1f1   : > { %1722 = vst.msk [vmem:[%s8447_s30] sm:$0xff] %vm745_vm0, %v8458_v47  ;;  %vm1585_vm12 = vcmp.ge.f32.partialorder %v8453_v18, 0.75  ;;  %v8471_v27 = vmul.f32 0.5714286, %v1398_v62  ;;  %v1413_v45 = vadd.f32 %v6384_v46, %v8405_v56  ;;  %v5960_v34 = vsel %vm4335_vm13, 1.0, %v10008_v36 }
 0x1f2   : > { %v8474_v15 = vsel %vm1585_vm12, 1.0, %v10008_v36  ;;  %v1407_v8 = vpop.f32.mrf.mxu1  ;;  %v6661_v20 = vpop.f32.mrf.mxu0  ;;  %v8492_v35 = vmul.f32 %v3343_v33, %v10027_v48  ;;  %v3345_v14 = vsub.f32 1.0, %v8326_v13  ;;  %v4198_v23 = vadd.f32 %v7994_v29, %v4197_v7  ;;  %6698 = vmatmul.mubr.msk.f32.gmra.mxu1 %vm745_vm0, %v5960_v34 }
 0x1f3   : > { %1725 = vst.msk [vmem:[%s8447_s30 + $0x18] sm:$0xff] %vm745_vm0, %v8474_v15  ;;  %vm1584_vm14 = vcmp.ge.f32.partialorder %v8471_v27, 0.75  ;;  %v8498_v43 = vmul.f32 0.5714286, %v1413_v45  ;;  %v1408_v39 = vadd.f32 %v8405_v56, %v1407_v8  ;;  %v4281_v37 = vmul.f32 0.5714286, %v4253_v28 }
 0x1f4   : > { %v8488_v38 = vsel %vm1584_vm14, 1.0, %v10008_v36  ;;  %v6387_v31 = vpop.f32.mrf.mxu1  ;;  %v4207_v4 = vpop.f32.mrf.mxu0  ;;  %v4254_v30 = vsub.f32 %v4188_v49, %v8443_v53  ;;  %v4308_v52 = vadd.f32 %v4280_v5, %v8417_v21  ;;  %v4255_v59 = vsub.f32 %v4193_v0, %v8440_v50 }
 0x1f5   : > { %1724 = vst.msk [vmem:[%s8447_s30 + $0x10] sm:$0xff] %vm745_vm0, %v8488_v38  ;;  %v1423_v61 = vadd.f32 %v6387_v31, %v8405_v56  ;;  %vm1587_vm15 = vcmp.ge.f32.partialorder %v8498_v43, 0.75  ;;  %v8508_v60 = vmul.f32 0.5714286, %v1408_v39  ;;  %v8511_v55 = vmul.f32 %v3342_v6, %v8278_v41 }
 0x1f6   : > { %v1417_v13 = vpop.f32.mrf.mxu1  ;;  %v6664_v57 = vpop.f32.mrf.mxu0  ;;  %v3346_v19 = vsub.f32 1.0, %v8336_v10  ;;  %v4203_v17 = vadd.f32 %v7994_v29, %v6658_v51  ;;  %v8516_v1 = vsel %vm1587_vm15, 1.0, %v10008_v36  ;;  %vm4336_vm1 = vcmp.ge.f32.partialorder %v4308_v52, 0.75  ;;  %v10028_v52 = vld [vmem:[#allocation6_spill] sm:$0xff] }
 0x1f7   : > { %1727 = vst.msk [vmem:[%s8447_s30 + $0x28] sm:$0xff] %vm745_vm0, %v8516_v1  ;;  %v4256_v21 = vsub.f32 %v4198_v23, %v8464_v42  ;;  %vm1586_vm2 = vcmp.ge.f32.partialorder %v8508_v60, 0.75  ;;  %v5961_v58 = vsel %vm4336_vm1, 1.0, %v10008_v36  ;;  %v8524_v41 = vmul.f32 0.5714286, %v1423_v61 }
 0x1f8   : > { %v6390_v22 = vpop.f32.mrf.mxu1  ;;  %v4282_v3 = vmul.f32 0.5714286, %v4254_v30  ;;  %v8527_v29 = vsel %vm1586_vm2, 1.0, %v10008_v36  ;;  %v4213_v25 = vadd.f32 %v6750_v9, %v6661_v20  ;;  %6700 = vmatprep.mubr.msk.f32.mxu1 %vm745_vm0, %v5961_v58  ;;  %v4309_v40 = vadd.f32 %v4281_v37, %v8410_v26  ;;  %v4217_v51 = vpop.f32.mrf.mxu0 }
 0x1f9   : > { %v3347_v62 = vsub.f32 1.0, %v8345_v12  ;;  %v4283_v33 = vmul.f32 0.5714286, %v4255_v59  ;;  %1726 = vst.msk [vmem:[%s8447_s30 + $0x20] sm:$0xff] %vm745_vm0, %v8527_v29  ;;  %vm1589_vm3 = vcmp.ge.f32.partialorder %v8524_v41, 0.75  ;;  %v1418_v46 = vadd.f32 %v8405_v56, %v1417_v13 }
 0x1fa   : > { %v1427_v7 = vpop.f32.mrf.mxu1  ;;  %v8541_v28 = vsel %vm1589_vm3, 1.0, %v10008_v36  ;;  %v4208_v5 = vadd.f32 %v6750_v9, %v4207_v4  ;;  %vm4337_vm4 = vcmp.ge.f32.partialorder %v4309_v40, 0.75  ;;  %v8544_v49 = vmul.f32 %v3345_v14, %v8286_v11  ;;  %v6667_v34 = vpop.f32.mrf.mxu0 }
 0x1fb   : > { %v4257_v26 = vsub.f32 %v4203_v17, %v8461_v54  ;;  %v4284_v12 = vmul.f32 0.5714286, %v4256_v21  ;;  %1729 = vst.msk [vmem:[%s8447_s30 + $0x38] sm:$0xff] %vm745_vm0, %v8541_v28  ;;  %v5962_v32 = vsel %vm4337_vm4, 1.0, %v10008_v36  ;;  %v8551_v8 = vmul.f32 0.5714286, %v1418_v46 }
 0x1fc   : > { %v6393_v20 = vpop.f32.mrf.mxu1  ;;  %v4259_v6 = vsub.f32 %v4213_v25, %v8492_v35  ;;  %6701 = vmatmul.mubr.msk.f32.gmra.mxu1 %vm745_vm0, %v5962_v32  ;;  %v4223_v0 = vadd.f32 %v6750_v9, %v6664_v57  ;;  %v4310_v11 = vadd.f32 %v4282_v3, %v8443_v53  ;;  %v1433_v45 = vadd.f32 %v6390_v22, %v8405_v56  ;;  %v4227_v17 = vpop.f32.mrf.mxu0  ;;  %v10030_v32 = vld [vmem:[#allocation8_spill] sm:$0xff] }
 0x1fd   : > { %vm1588_vm5 = vcmp.ge.f32.partialorder %v8551_v8, 0.75  ;;  %v4218_v48 = vadd.f32 %v6750_v9, %v4217_v51  ;;  %v4311_v31 = vadd.f32 %v4283_v33, %v8440_v50  ;;  %v1428_v4 = vadd.f32 %v8405_v56, %v1427_v7 }
 0x1fe   : > { %v1437_v14 = vpop.f32.mrf.mxu1  ;;  %v4258_v23 = vsub.f32 %v4208_v5, %v8511_v55  ;;  %v8562_v39 = vsel %vm1588_vm5, 1.0, %v10008_v36  ;;  %vm4338_vm6 = vcmp.ge.f32.partialorder %v4310_v11, 0.75  ;;  %v8564_v37 = vmul.f32 0.5714286, %v1433_v45 }
 0x1ff   : > { %v4285_v53 = vmul.f32 0.5714286, %v4257_v26  ;;  %1728 = vst.msk [vmem:[%s8447_s30 + $0x30] sm:$0xff] %vm745_vm0, %v8562_v39  ;;  %v5963_v30 = vsel %vm4338_vm6, 1.0, %v10008_v36  ;;  %v8573_v50 = vmul.f32 %v3344_v44, %v10028_v52  ;;  %vm4339_vm7 = vcmp.ge.f32.partialorder %v4311_v31, 0.75 }
 0x200   : > { %v6396_v61 = vpop.f32.mrf.mxu1  ;;  %v4261_v13 = vsub.f32 %v4223_v0, %v8544_v49  ;;  %6703 = vmatprep.mubr.msk.f32.mxu1 %vm745_vm0, %v5963_v30  ;;  %vm1591_vm8 = vcmp.ge.f32.partialorder %v8564_v37, 0.75  ;;  %v5964_v57 = vsel %vm4339_vm7, 1.0, %v10008_v36  ;;  %v8579_v59 = vmul.f32 0.5714286, %v1428_v4 }
 0x201   : > { %v4287_v21 = vmul.f32 0.5714286, %v4259_v6  ;;  %v8582_v58 = vsel %vm1591_vm8, 1.0, %v10008_v36  ;;  %v4260_v63 = vsub.f32 %v4218_v48, %v8573_v50  ;;  %6704 = vmatmul.mubr.msk.f32.gmra.mxu1 %vm745_vm0, %v5964_v57  ;;  %v4312_v44 = vadd.f32 %v4284_v12, %v8464_v42  ;;  %v10029_v42 = vld [vmem:[#allocation7_spill] sm:$0xff] }
 0x202   : > { %v1447_v22 = vpop.f32.mrf.mxu1  ;;  %v4286_v3 = vmul.f32 0.5714286, %v4258_v23  ;;  %1731 = vst.msk [vmem:[%s8447_s30 + $0x48] sm:$0xff] %vm745_vm0, %v8582_v58  ;;  %vm1590_vm9 = vcmp.ge.f32.partialorder %v8579_v59, 0.75  ;;  %v4233_v25 = vadd.f32 %v6750_v9, %v6667_v34  ;;  %v1443_v40 = vadd.f32 %v6393_v20, %v8405_v56 }
 0x203   : > { %v8593_v51 = vsel %vm1590_vm9, 1.0, %v10008_v36  ;;  %vm4340_vm10 = vcmp.ge.f32.partialorder %v4312_v44, 0.75  ;;  %v4228_v33 = vadd.f32 %v6750_v9, %v4227_v17  ;;  %v4313_v46 = vadd.f32 %v4285_v53, %v8461_v54 }
 0x204   : > { %v6399_v7 = vpop.f32.mrf.mxu1  ;;  %v4289_v5 = vmul.f32 0.5714286, %v4261_v13  ;;  %1730 = vst.msk [vmem:[%s8447_s30 + $0x40] sm:$0xff] %vm745_vm0, %v8593_v51  ;;  %v3375_v26 = vmul.f32 %v3347_v62, %v10029_v42  ;;  %v5965_v12 = vsel %vm4340_vm10, 1.0, %v10008_v36  ;;  %v3374_v20 = vmul.f32 %v3346_v19, %v10030_v32 }
 0x205   : > { %v4288_v6 = vmul.f32 0.5714286, %v4260_v63  ;;  %6706 = vmatprep.mubr.msk.f32.mxu1 %vm745_vm0, %v5965_v12  ;;  %v8605_v0 = vmul.f32 0.5714286, %v1443_v40  ;;  %vm4341_vm11 = vcmp.ge.f32.partialorder %v4313_v46, 0.75  ;;  %v1438_v54 = vadd.f32 %v8405_v56, %v1437_v14 }
 0x206   : > { %v1457_v9 = vpop.f32.mrf.mxu1  ;;  %v4263_v11 = vsub.f32 %v4233_v25, %v3375_v26  ;;  %v5966_v45 = vsel %vm4341_vm11, 1.0, %v10008_v36  ;;  %v4314_v62 = vadd.f32 %v4286_v3, %v8511_v55  ;;  %v1453_v34 = vadd.f32 %v6396_v61, %v8405_v56 }
 0x207   : > { %vm1593_vm12 = vcmp.ge.f32.partialorder %v8605_v0, 0.75  ;;  %v4262_v10 = vsub.f32 %v4228_v33, %v3374_v20  ;;  %6707 = vmatmul.mubr.msk.f32.gmra.mxu1 %vm745_vm0, %v5966_v45  ;;  %v8613_v19 = vmul.f32 0.5714286, %v1438_v54  ;;  %v4315_v48 = vadd.f32 %v4287_v21, %v8492_v35 }
 0x208   : > { %v6402_v31 = vpop.f32.mrf.mxu1  ;;  %v8617_v4 = vsel %vm1593_vm12, 1.0, %v10008_v36  ;;  %vm4342_vm13 = vcmp.ge.f32.partialorder %v4314_v62, 0.75  ;;  %v8619_v14 = vmul.f32 0.5714286, %v1453_v34  ;;  %v1448_v55 = vadd.f32 %v8405_v56, %v1447_v22 }
 0x209   : > { %1733 = vst.msk [vmem:[%s8447_s30 + $0x58] sm:$0xff] %vm745_vm0, %v8617_v4  ;;  %vm1592_vm14 = vcmp.ge.f32.partialorder %v8613_v19, 0.75  ;;  %v5967_v23 = vsel %vm4342_vm13, 1.0, %v10008_v36  ;;  %vm4343_vm15 = vcmp.ge.f32.partialorder %v4315_v48, 0.75  ;;  %v4290_v61 = vmul.f32 0.5714286, %v4262_v10 }
 0x20a   : > { %v1467_v35 = vpop.f32.mrf.mxu1  ;;  %v8628_v53 = vsel %vm1592_vm14, 1.0, %v10008_v36  ;;  %6709 = vmatprep.mubr.msk.f32.mxu1 %vm745_vm0, %v5967_v23  ;;  %vm1595_vm1 = vcmp.ge.f32.partialorder %v8619_v14, 0.75  ;;  %v5968_v30 = vsel %vm4343_vm15, 1.0, %v10008_v36  ;;  %v8633_v52 = vmul.f32 0.5714286, %v1448_v55 }
 0x20b   : > { %1732 = vst.msk [vmem:[%s8447_s30 + $0x50] sm:$0xff] %vm745_vm0, %v8628_v53  ;;  %v8639_v13 = vsel %vm1595_vm1, 1.0, %v10008_v36  ;;  %6710 = vmatmul.mubr.msk.f32.gmra.mxu1 %vm745_vm0, %v5968_v30  ;;  %v4316_v57 = vadd.f32 %v4288_v6, %v8573_v50  ;;  %v4291_v21 = vmul.f32 0.5714286, %v4263_v11  ;;  %v1463_v63 = vadd.f32 %v6399_v7, %v8405_v56 }
 0x20c   : > { %v6405_v17 = vpop.f32.mrf.mxu1  ;;  %1735 = vst.msk [vmem:[%s8447_s30 + $0x68] sm:$0xff] %vm745_vm0, %v8639_v13  ;;  %vm1594_vm2 = vcmp.ge.f32.partialorder %v8633_v52, 0.75  ;;  %v4317_v44 = vadd.f32 %v4289_v5, %v8544_v49  ;;  %v1458_v3 = vadd.f32 %v8405_v56, %v1457_v9  ;;  %v4318_v49 = vadd.f32 %v4290_v61, %v3374_v20 }
 0x20d   : > { %v8650_v22 = vsel %vm1594_vm2, 1.0, %v10008_v36  ;;  %vm4344_vm3 = vcmp.ge.f32.partialorder %v4316_v57, 0.75  ;;  %v8657_v40 = vmul.f32 0.5714286, %v1463_v63  ;;  %v1473_v46 = vadd.f32 %v6402_v31, %v8405_v56 }
 0x20e   : > { %v1477_v25 = vpop.f32.mrf.mxu1  ;;  %1734 = vst.msk [vmem:[%s8447_s30 + $0x60] sm:$0xff] %vm745_vm0, %v8650_v22  ;;  %v5969_v50 = vsel %vm4344_vm3, 1.0, %v10008_v36  ;;  %vm4345_vm4 = vcmp.ge.f32.partialorder %v4317_v44, 0.75  ;;  %v8660_v33 = vmul.f32 0.5714286, %v1458_v3  ;;  %v4319_v42 = vadd.f32 %v4291_v21, %v3375_v26 }
 0x20f   : > { %6712 = vmatprep.mubr.msk.f32.mxu1 %vm745_vm0, %v5969_v50  ;;  %vm1597_vm5 = vcmp.ge.f32.partialorder %v8657_v40, 0.75  ;;  %v5970_v5 = vsel %vm4345_vm4, 1.0, %v10008_v36  ;;  %vm4346_vm7 = vcmp.ge.f32.partialorder %v4318_v49, 0.75  ;;  %v8670_v32 = vmul.f32 0.5714286, %v1473_v46 }
 0x210   : > { %v6408_v7 = vpop.f32.mrf.mxu1  ;;  %v8666_v12 = vsel %vm1597_vm5, 1.0, %v10008_v36  ;;  %6713 = vmatmul.mubr.msk.f32.gmra.mxu1 %vm745_vm0, %v5970_v5  ;;  %vm1596_vm6 = vcmp.ge.f32.partialorder %v8660_v33, 0.75  ;;  %v5971_v26 = vsel %vm4346_vm7, 1.0, %v10008_v36  ;;  %vm4347_vm8 = vcmp.ge.f32.partialorder %v4319_v42, 0.75 }
 0x211   : > { %1737 = vst.msk [vmem:[%s8447_s30 + $0x78] sm:$0xff] %vm745_vm0, %v8666_v12  ;;  %v8676_v6 = vsel %vm1596_vm6, 1.0, %v10008_v36  ;;  %6715 = vmatprep.mubr.msk.f32.mxu1 %vm745_vm0, %v5971_v26  ;;  %vm1599_vm9 = vcmp.ge.f32.partialorder %v8670_v32, 0.75  ;;  %v1468_v54 = vadd.f32 %v8405_v56, %v1467_v35  ;;  %v5972_v45 = vsel %vm4347_vm8, 1.0, %v10008_v36 }
 0x212   : > { %v1487_v20 = vpop.f32.mrf.mxu1  ;;  %1736 = vst.msk [vmem:[%s8447_s30 + $0x70] sm:$0xff] %vm745_vm0, %v8676_v6  ;;  %v8686_v11 = vsel %vm1599_vm9, 1.0, %v10008_v36  ;;  %v1483_v62 = vadd.f32 %v6405_v17, %v8405_v56  ;;  %v1478_v34 = vadd.f32 %v8405_v56, %v1477_v25  ;;  %v1493_v48 = vadd.f32 %v6408_v7, %v8405_v56 }
 0x213   : > { %1739 = vst.msk [vmem:[%s8447_s30 + $0x88] sm:$0xff] %vm745_vm0, %v8686_v11  ;;  %v8695_v10 = vmul.f32 0.5714286, %v1468_v54  ;;  %v1488_v35 = vadd.f32 %v8405_v56, %v1487_v20 }
 0x214   : > { %v6411_v9 = vpop.f32.mrf.mxu1  ;;  %6716 = vmatmul.mubr.msk.f32.gmra.mxu1 %vm745_vm0, %v5972_v45  ;;  %v8698_v55 = vmul.f32 0.5714286, %v1483_v62  ;;  %v8700_v23 = vmul.f32 0.5714286, %v1478_v34  ;;  %v8704_v30 = vmul.f32 0.5714286, %v1493_v48 }
 0x215   : > { %vm1598_vm10 = vcmp.ge.f32.partialorder %v8695_v10, 0.75  ;;  %v1503_v61 = vadd.f32 %v6411_v9, %v8405_v56  ;;  %v8713_v63 = vmul.f32 0.5714286, %v1488_v35  ;;  %v1667_v48 = vsub.f32 1.0, %v8436_v24 }
 0x216   : > { %v1497_v31 = vpop.f32.mrf.mxu1  ;;  %v8709_v21 = vsel %vm1598_vm10, 1.0, %v10008_v36  ;;  %vm1601_vm11 = vcmp.ge.f32.partialorder %v8698_v55, 0.75  ;;  %vm1600_vm12 = vcmp.ge.f32.partialorder %v8700_v23, 0.75  ;;  %vm1603_vm13 = vcmp.ge.f32.partialorder %v8704_v30, 0.75 }
 0x217   : > { %v1498_v57 = vadd.f32 %v8405_v56, %v1497_v31  ;;  %1738 = vst.msk [vmem:[%s8447_s30 + $0x80] sm:$0xff] %vm745_vm0, %v8709_v21  ;;  %v8719_v44 = vsel %vm1601_vm11, 1.0, %v10008_v36  ;;  %v8722_v3 = vsel %vm1600_vm12, 1.0, %v10008_v36  ;;  %v8732_v50 = vsel %vm1603_vm13, 1.0, %v10008_v36 }
 0x218   : > { %v6414_v17 = vpop.f32.mrf.mxu1  ;;  %1741 = vst.msk [vmem:[%s8447_s30 + $0x98] sm:$0xff] %vm745_vm0, %v8719_v44  ;;  %1740 = vst.msk [vmem:[%s8447_s30 + $0x90] sm:$0xff] %vm745_vm0, %v8722_v3  ;;  %vm1602_vm14 = vcmp.ge.f32.partialorder %v8713_v63, 0.75  ;;  %v8741_v46 = vmul.f32 0.5714286, %v1503_v61  ;;  %v1666_v61 = vsub.f32 1.0, %v8458_v47 }
 0x219   : > { %1743 = vst.msk [vmem:[%s8447_s30 + $0xa8] sm:$0xff] %vm745_vm0, %v8732_v50  ;;  %v8739_v49 = vsel %vm1602_vm14, 1.0, %v10008_v36  ;;  %v8746_v5 = vmul.f32 0.5714286, %v1498_v57  ;;  %v1513_v42 = vadd.f32 %v6414_v17, %v8405_v56 }
 0x21a   : > { %v1507_v25 = vpop.f32.mrf.mxu1  ;;  %1742 = vst.msk [vmem:[%s8447_s30 + $0xa0] sm:$0xff] %vm745_vm0, %v8739_v49  ;;  %vm1605_vm15 = vcmp.ge.f32.partialorder %v8741_v46, 0.75 }
 0x21b   : > { %v1508_v20 = vadd.f32 %v8405_v56, %v1507_v25  ;;  %v8752_v54 = vsel %vm1605_vm15, 1.0, %v10008_v36  ;;  %vm1604_vm1 = vcmp.ge.f32.partialorder %v8746_v5, 0.75  ;;  %v8762_v62 = vmul.f32 0.5714286, %v1513_v42 }
 0x21c   : > { %v6417_v7 = vpop.f32.mrf.mxu1  ;;  %1745 = vst.msk [vmem:[%s8447_s30 + $0xb8] sm:$0xff] %vm745_vm0, %v8752_v54  ;;  %v8760_v45 = vsel %vm1604_vm1, 1.0, %v10008_v36 }
 0x21d   : > { %v1523_v9 = vadd.f32 %v6417_v7, %v8405_v56  ;;  %10031 = vst [vmem:[#allocation11_spill] sm:$0xff] %v8762_v62  ;;  %v8764_v34 = vmul.f32 0.5714286, %v1508_v20  ;;  %1744 = vst.msk [vmem:[%s8447_s30 + $0xb0] sm:$0xff] %vm745_vm0, %v8760_v45  ;;  %vm1607_vm2 = vcmp.ge.f32.partialorder %v8762_v62, 0.75  ;;  %v1695_v7 = vmul.f32 %v1667_v48, %v8423_v16 }
 0x21e   : > { %v1517_v26 = vpop.f32.mrf.mxu1  ;;  %v8777_v57 = vsel %vm1607_vm2, 1.0, %v10008_v36  ;;  %v1668_v16 = vsub.f32 1.0, %v8488_v38 }
 0x21f   : > { %10032 = vst [vmem:[#allocation4_spill] sm:$0xff] %v8764_v34  ;;  %v8770_v31 = vmul.f32 0.5714286, %v1523_v9  ;;  %v1518_v35 = vadd.f32 %v8405_v56, %v1517_v26  ;;  %vm1606_vm3 = vcmp.ge.f32.partialorder %v8764_v34, 0.75  ;;  %1747 = vst.msk [vmem:[%s8447_s30 + $0xc8] sm:$0xff] %vm745_vm0, %v8777_v57  ;;  %v1694_v26 = vmul.f32 %v1666_v61, %v8431_v2 }
 0x220   : > { %v8780_v17 = vsel %vm1606_vm3, 1.0, %v10008_v36  ;;  %v1669_v9 = vsub.f32 1.0, %v8474_v15  ;;  %v1696_v38 = vmul.f32 %v1668_v16, %v8471_v27 }
 0x221   : > { %10033 = vst [vmem:[#allocation10_spill] sm:$0xff] %v8770_v31  ;;  %10034 = vst [vmem:[#allocation5_spill] sm:$0xff] %v8780_v17  ;;  %vm1609_vm4 = vcmp.ge.f32.partialorder %v8770_v31, 0.75  ;;  %v8792_v25 = vmul.f32 0.5714286, %v1518_v35 }
 0x222   : > { %1746 = vst.msk [vmem:[%s8447_s30 + $0xc0] sm:$0xff] %vm745_vm0, %v8780_v17  ;;  %v8790_v47 = vsel %vm1609_vm4, 1.0, %v10008_v36  ;;  %v1697_v15 = vmul.f32 %v1669_v9, %v8453_v18  ;;  %v1672_v18 = vsub.f32 1.0, %v8562_v39 }
 0x223   : > { %10035 = vst [vmem:[#allocation9_spill] sm:$0xff] %v8790_v47  ;;  %10036 = vst [vmem:[#allocation6_spill] sm:$0xff] %v8792_v25  ;;  %vm1608_vm5 = vcmp.ge.f32.partialorder %v8792_v25, 0.75 }
 0x224   : > { %v6478_v24 = vpop.f32.mrf.mxu1  ;;  %1749 = vst.msk [vmem:[%s8447_s30 + $0xd8] sm:$0xff] %vm745_vm0, %v8790_v47  ;;  %v8804_v34 = vsel %vm1608_vm5, 1.0, %v10008_v36 }
 0x225   : > { %v2448_v42 = vadd.f32 %v6478_v24, %v8405_v56  ;;  %10037 = vst [vmem:[#allocation7_spill] sm:$0xff] %v8804_v34  ;;  %1748 = vst.msk [vmem:[%s8447_s30 + $0xd0] sm:$0xff] %vm745_vm0, %v8804_v34  ;;  %v1671_v24 = vsub.f32 1.0, %v8516_v1 }
 0x226   : > { %v2442_v20 = vpop.f32.mrf.mxu1 }
 0x227   : > { %v2443_v31 = vadd.f32 %v8405_v56, %v2442_v20  ;;  %v2582_v35 = vsub.f32 %v2448_v42, %v1695_v7  ;;  %v1670_v20 = vsub.f32 1.0, %v8527_v29  ;;  %v1699_v1 = vmul.f32 %v1671_v24, %v8498_v43 }
 0x229   : > { %v2581_v48 = vsub.f32 %v2443_v31, %v1694_v26  ;;  %v2610_v47 = vmul.f32 0.5714286, %v2582_v35  ;;  %v1673_v35 = vsub.f32 1.0, %v8541_v28 }
 0x22a   : > { %v6481_v2 = vpop.f32.mrf.mxu1 }
 0x22b   : > { %v2609_v61 = vmul.f32 0.5714286, %v2581_v48  ;;  %v2458_v25 = vadd.f32 %v6481_v2, %v8405_v56  ;;  %v8814_v62 = vadd.f32 %v2610_v47, %v1695_v7 }
 0x22c   : > { %v2452_v42 = vpop.f32.mrf.mxu1 }
 0x22d   : > { %v8817_v17 = vadd.f32 %v2609_v61, %v1694_v26  ;;  %v2584_v34 = vsub.f32 %v2458_v25, %v1697_v15  ;;  %v2453_v31 = vadd.f32 %v8405_v56, %v2452_v42  ;;  %vm2666_vm6 = vcmp.ge.f32.partialorder %v8814_v62, 0.75 }
 0x22e   : > { %v6484_v29 = vpop.f32.mrf.mxu1  ;;  %v1698_v25 = vmul.f32 %v1670_v20, %v8508_v60  ;;  %v1675_v26 = vsub.f32 1.0, %v8582_v58  ;;  %v8829_v28 = vsel %vm2666_vm6, 1.0, %v10008_v36  ;;  %v1701_v60 = vmul.f32 %v1673_v35, %v8524_v41 }
 0x22f   : > { %vm2665_vm7 = vcmp.ge.f32.partialorder %v8817_v17, 0.75  ;;  %v2612_v47 = vmul.f32 0.5714286, %v2584_v34  ;;  %v2583_v27 = vsub.f32 %v2453_v31, %v1696_v38  ;;  %v2468_v7 = vadd.f32 %v6484_v29, %v8405_v56  ;;  %5694 = vst.msk [vmem:[%s8447_s30 + $0xe8] sm:$0xff] %vm745_vm0, %v8829_v28 }
 0x230   : > { %v2462_v43 = vpop.f32.mrf.mxu1  ;;  %v8832_v39 = vsel %vm2665_vm7, 1.0, %v10008_v36  ;;  %v1700_v58 = vmul.f32 %v1672_v18, %v8551_v8  ;;  %v1703_v20 = vmul.f32 %v1675_v26, %v8564_v37  ;;  %v1674_v42 = vsub.f32 1.0, %v8593_v51 }
 0x231   : > { %v8834_v9 = vadd.f32 %v2612_v47, %v1697_v15  ;;  %v2611_v16 = vmul.f32 0.5714286, %v2583_v27  ;;  %v2586_v48 = vsub.f32 %v2468_v7, %v1699_v1  ;;  %v2463_v34 = vadd.f32 %v8405_v56, %v2462_v43  ;;  %5693 = vst.msk [vmem:[%s8447_s30 + $0xe0] sm:$0xff] %vm745_vm0, %v8832_v39 }
 0x232   : > { %v6487_v24 = vpop.f32.mrf.mxu1  ;;  %v1677_v37 = vsub.f32 1.0, %v8617_v4  ;;  %v1676_v51 = vsub.f32 1.0, %v8628_v53  ;;  %v1702_v4 = vmul.f32 %v1674_v42, %v8579_v59  ;;  %v1679_v53 = vsub.f32 1.0, %v8639_v13 }
 0x233   : > { %vm2668_vm8 = vcmp.ge.f32.partialorder %v8834_v9, 0.75  ;;  %v8846_v2 = vadd.f32 %v2611_v16, %v1696_v38  ;;  %v2614_v15 = vmul.f32 0.5714286, %v2586_v48  ;;  %v2585_v61 = vsub.f32 %v2463_v34, %v1698_v25 }
 0x234   : > { %v2478_v31 = vadd.f32 %v6487_v24, %v8405_v56  ;;  %v2472_v29 = vpop.f32.mrf.mxu1  ;;  %v8852_v41 = vsel %vm2668_vm8, 1.0, %v10008_v36  ;;  %v1704_v59 = vmul.f32 %v1676_v51, %v8613_v19  ;;  %v1681_v19 = vsub.f32 1.0, %v8666_v12 }
 0x235   : > { %vm2667_vm9 = vcmp.ge.f32.partialorder %v8846_v2, 0.75  ;;  %v8855_v8 = vadd.f32 %v2614_v15, %v1699_v1  ;;  %v2613_v35 = vmul.f32 0.5714286, %v2585_v61  ;;  %v2473_v38 = vadd.f32 %v8405_v56, %v2472_v29  ;;  %5696 = vst.msk [vmem:[%s8447_s30 + $0xf8] sm:$0xff] %vm745_vm0, %v8852_v41 }
 0x236   : > { %v2588_v18 = vsub.f32 %v2478_v31, %v1701_v60  ;;  %v6490_v47 = vpop.f32.mrf.mxu1  ;;  %v8864_v27 = vsel %vm2667_vm9, 1.0, %v10008_v36  ;;  %v1705_v15 = vmul.f32 %v1677_v37, %v8605_v0  ;;  %v1678_v0 = vsub.f32 1.0, %v8650_v22 }
 0x237   : > { %vm2670_vm10 = vcmp.ge.f32.partialorder %v8855_v8, 0.75  ;;  %v8867_v1 = vadd.f32 %v2613_v35, %v1698_v25  ;;  %v2587_v7 = vsub.f32 %v2473_v38, %v1700_v58  ;;  %v2488_v26 = vadd.f32 %v6490_v47, %v8405_v56  ;;  %5695 = vst.msk [vmem:[%s8447_s30 + $0xf0] sm:$0xff] %vm745_vm0, %v8864_v27 }
 0x238   : > { %v2616_v43 = vmul.f32 0.5714286, %v2588_v18  ;;  %v2482_v16 = vpop.f32.mrf.mxu1  ;;  %v8876_v48 = vsel %vm2670_vm10, 1.0, %v10008_v36  ;;  %v1707_v18 = vmul.f32 %v1679_v53, %v8619_v14  ;;  %v1680_v47 = vsub.f32 1.0, %v8676_v6 }
 0x239   : > { %vm2669_vm11 = vcmp.ge.f32.partialorder %v8867_v1, 0.75  ;;  %v2615_v25 = vmul.f32 0.5714286, %v2587_v7  ;;  %v2590_v34 = vsub.f32 %v2488_v26, %v1703_v20  ;;  %v2483_v24 = vadd.f32 %v8405_v56, %v2482_v16  ;;  %5698 = vst.msk [vmem:[%s8447_s30 + $0x108] sm:$0xff] %vm745_vm0, %v8876_v48 }
 0x23a   : > { %v8885_v13 = vadd.f32 %v2616_v43, %v1701_v60  ;;  %v6493_v61 = vpop.f32.mrf.mxu1  ;;  %v8888_v42 = vsel %vm2669_vm11, 1.0, %v10008_v36  ;;  %v1706_v6 = vmul.f32 %v1678_v0, %v8633_v52  ;;  %v1683_v52 = vsub.f32 1.0, %v8686_v11 }
 0x23b   : > { %v8890_v31 = vadd.f32 %v2615_v25, %v1700_v58  ;;  %v2618_v29 = vmul.f32 0.5714286, %v2590_v34  ;;  %v2589_v35 = vsub.f32 %v2483_v24, %v1702_v4  ;;  %v2498_v38 = vadd.f32 %v6493_v61, %v8405_v56  ;;  %5697 = vst.msk [vmem:[%s8447_s30 + $0x100] sm:$0xff] %vm745_vm0, %v8888_v42 }
 0x23c   : > { %vm2672_vm12 = vcmp.ge.f32.partialorder %v8885_v13, 0.75  ;;  %v2492_v60 = vpop.f32.mrf.mxu1  ;;  %v1709_v61 = vmul.f32 %v1681_v19, %v8657_v40 }
 0x23d   : > { %vm2671_vm13 = vcmp.ge.f32.partialorder %v8890_v31, 0.75  ;;  %v8901_v58 = vadd.f32 %v2618_v29, %v1703_v20  ;;  %v2617_v37 = vmul.f32 0.5714286, %v2589_v35  ;;  %v2592_v51 = vsub.f32 %v2498_v38, %v1705_v15 }
 0x23e   : > { %v2493_v7 = vadd.f32 %v8405_v56, %v2492_v60  ;;  %v6496_v14 = vpop.f32.mrf.mxu1  ;;  %v8906_v22 = vsel %vm2672_vm12, 1.0, %v10008_v36  ;;  %v8909_v12 = vsel %vm2671_vm13, 1.0, %v10008_v36  ;;  %v1708_v29 = vmul.f32 %v1680_v47, %v8660_v33 }
 0x23f   : > { %vm2674_vm14 = vcmp.ge.f32.partialorder %v8901_v58, 0.75  ;;  %v8912_v26 = vadd.f32 %v2617_v37, %v1702_v4  ;;  %v2620_v20 = vmul.f32 0.5714286, %v2592_v51  ;;  %v2508_v53 = vadd.f32 %v6496_v14, %v8405_v56  ;;  %5700 = vst.msk [vmem:[%s8447_s30 + $0x118] sm:$0xff] %vm745_vm0, %v8906_v22  ;;  %5699 = vst.msk [vmem:[%s8447_s30 + $0x110] sm:$0xff] %vm745_vm0, %v8909_v12 }
 0x240   : > { %v2591_v43 = vsub.f32 %v2493_v7, %v1704_v59  ;;  %v2502_v16 = vpop.f32.mrf.mxu1  ;;  %v8923_v25 = vsel %vm2674_vm14, 1.0, %v10008_v36  ;;  %v1682_v37 = vsub.f32 1.0, %v8709_v21  ;;  %v1711_v21 = vmul.f32 %v1683_v52, %v8670_v32 }
 0x241   : > { %vm2673_vm15 = vcmp.ge.f32.partialorder %v8912_v26, 0.75  ;;  %v8926_v4 = vadd.f32 %v2620_v20, %v1705_v15  ;;  %v2594_v34 = vsub.f32 %v2508_v53, %v1707_v18  ;;  %v2503_v24 = vadd.f32 %v8405_v56, %v2502_v16  ;;  %5702 = vst.msk [vmem:[%s8447_s30 + $0x128] sm:$0xff] %vm745_vm0, %v8923_v25 }
 0x242   : > { %v2619_v35 = vmul.f32 0.5714286, %v2591_v43  ;;  %v6499_v38 = vpop.f32.mrf.mxu1  ;;  %v8943_v40 = vsel %vm2673_vm15, 1.0, %v10008_v36  ;;  %v1684_v20 = vsub.f32 1.0, %v8722_v3 }
 0x243   : > { %vm2676_vm1 = vcmp.ge.f32.partialorder %v8926_v4, 0.75  ;;  %v2622_v15 = vmul.f32 0.5714286, %v2594_v34  ;;  %v2593_v0 = vsub.f32 %v2503_v24, %v1706_v6  ;;  %v2518_v60 = vadd.f32 %v6499_v38, %v8405_v56  ;;  %5701 = vst.msk [vmem:[%s8447_s30 + $0x120] sm:$0xff] %vm745_vm0, %v8943_v40 }
 0x244   : > { %v8938_v51 = vadd.f32 %v2619_v35, %v1704_v59  ;;  %v2512_v7 = vpop.f32.mrf.mxu1  ;;  %v8946_v33 = vsel %vm2676_vm1, 1.0, %v10008_v36  ;;  %v1685_v59 = vsub.f32 1.0, %v8719_v44  ;;  %v1710_v34 = vmul.f32 %v1682_v37, %v8695_v10 }
 0x245   : > { %v8948_v11 = vadd.f32 %v2622_v15, %v1707_v18  ;;  %v2621_v19 = vmul.f32 0.5714286, %v2593_v0  ;;  %v2596_v47 = vsub.f32 %v2518_v60, %v1709_v61  ;;  %v2513_v14 = vadd.f32 %v8405_v56, %v2512_v7  ;;  %5704 = vst.msk [vmem:[%s8447_s30 + $0x138] sm:$0xff] %vm745_vm0, %v8946_v33 }
 0x246   : > { %vm2675_vm2 = vcmp.ge.f32.partialorder %v8938_v51, 0.75  ;;  %v6502_v18 = vpop.f32.mrf.mxu1  ;;  %v1687_v24 = vsub.f32 1.0, %v8732_v50  ;;  %v1713_v10 = vmul.f32 %v1685_v59, %v8698_v55  ;;  %v1712_v55 = vmul.f32 %v1684_v20, %v8700_v23 }
 0x247   : > { %vm2678_vm3 = vcmp.ge.f32.partialorder %v8948_v11, 0.75  ;;  %v8962_v53 = vadd.f32 %v2621_v19, %v1706_v6  ;;  %v2624_v43 = vmul.f32 0.5714286, %v2596_v47  ;;  %v2595_v16 = vsub.f32 %v2513_v14, %v1708_v29 }
 0x248   : > { %v2528_v32 = vadd.f32 %v6502_v18, %v8405_v56  ;;  %v2522_v52 = vpop.f32.mrf.mxu1  ;;  %v8968_v44 = vsel %vm2675_vm2, 1.0, %v10008_v36  ;;  %v8981_v15 = vsel %vm2678_vm3, 1.0, %v10008_v36  ;;  %v1686_v7 = vsub.f32 1.0, %v8739_v49 }
 0x249   : > { %vm2677_vm4 = vcmp.ge.f32.partialorder %v8962_v53, 0.75  ;;  %v8971_v3 = vadd.f32 %v2624_v43, %v1709_v61  ;;  %v2623_v6 = vmul.f32 0.5714286, %v2595_v16  ;;  %v2523_v35 = vadd.f32 %v8405_v56, %v2522_v52  ;;  %5703 = vst.msk [vmem:[%s8447_s30 + $0x130] sm:$0xff] %vm745_vm0, %v8968_v44  ;;  %5706 = vst.msk [vmem:[%s8447_s30 + $0x148] sm:$0xff] %vm745_vm0, %v8981_v15 }
 0x24a   : > { %v2598_v50 = vsub.f32 %v2528_v32, %v1711_v21  ;;  %v6505_v38 = vpop.f32.mrf.mxu1  ;;  %v8984_v0 = vsel %vm2677_vm4, 1.0, %v10008_v36  ;;  %v1715_v18 = vmul.f32 %v1687_v24, %v8704_v30  ;;  %v1689_v43 = vsub.f32 1.0, %v8752_v54 }
 0x24b   : > { %vm2680_vm5 = vcmp.ge.f32.partialorder %v8971_v3, 0.75  ;;  %v8987_v61 = vadd.f32 %v2623_v6, %v1708_v29  ;;  %v2597_v60 = vsub.f32 %v2523_v35, %v1710_v34  ;;  %v2538_v37 = vadd.f32 %v6505_v38, %v8405_v56  ;;  %5705 = vst.msk [vmem:[%s8447_s30 + $0x140] sm:$0xff] %vm745_vm0, %v8984_v0 }
 0x24c   : > { %v2626_v19 = vmul.f32 0.5714286, %v2598_v50  ;;  %v2532_v47 = vpop.f32.mrf.mxu1  ;;  %v9007_v23 = vsel %vm2680_vm5, 1.0, %v10008_v36  ;;  %v1714_v30 = vmul.f32 %v1686_v7, %v8713_v63  ;;  %v1688_v54 = vsub.f32 1.0, %v8760_v45 }
 0x24d   : > { %vm2679_vm6 = vcmp.ge.f32.partialorder %v8987_v61, 0.75  ;;  %v2625_v29 = vmul.f32 0.5714286, %v2597_v60  ;;  %v2600_v14 = vsub.f32 %v2538_v37, %v1713_v10  ;;  %v2533_v59 = vadd.f32 %v8405_v56, %v2532_v47  ;;  %5708 = vst.msk [vmem:[%s8447_s30 + $0x158] sm:$0xff] %vm745_vm0, %v9007_v23 }
 0x24e   : > { %v9002_v16 = vadd.f32 %v2626_v19, %v1711_v21  ;;  %v6508_v32 = vpop.f32.mrf.mxu1  ;;  %v9021_v24 = vsel %vm2679_vm6, 1.0, %v10008_v36  ;;  %v1717_v63 = vmul.f32 %v1689_v43, %v8741_v46  ;;  %v1691_v45 = vsub.f32 1.0, %v8777_v57  ;;  %v9041_v19 = vld [vmem:[%s9971_s4] ss:$0 sm:$0xff]  ;;  %v10038_v57 = vld [vmem:[#allocation5_spill] sm:$0xff] }
 0x24f   : > { %v9009_v49 = vadd.f32 %v2625_v29, %v1710_v34  ;;  %v2628_v20 = vmul.f32 0.5714286, %v2600_v14  ;;  %v2599_v52 = vsub.f32 %v2533_v59, %v1712_v55  ;;  %v2548_v6 = vadd.f32 %v6508_v32, %v8405_v56  ;;  %5707 = vst.msk [vmem:[%s8447_s30 + $0x150] sm:$0xff] %vm745_vm0, %v9021_v24 }
 0x250   : > { %vm2682_vm7 = vcmp.ge.f32.partialorder %v9002_v16, 0.75  ;;  %v2542_v21 = vpop.f32.mrf.mxu1  ;;  %v1690_v47 = vsub.f32 1.0, %v10038_v57 }
 0x251   : > { %vm2681_vm8 = vcmp.ge.f32.partialorder %v9009_v49, 0.75  ;;  %v9024_v34 = vadd.f32 %v2628_v20, %v1713_v10  ;;  %v2627_v35 = vmul.f32 0.5714286, %v2599_v52  ;;  %v2602_v50 = vsub.f32 %v2548_v6, %v1715_v18  ;;  %v10040_v52 = vld [vmem:[#allocation9_spill] sm:$0xff] }
 0x252   : > { %v2543_v38 = vadd.f32 %v8405_v56, %v2542_v21  ;;  %v6511_v60 = vpop.f32.mrf.mxu1  ;;  %v9033_v37 = vsel %vm2682_vm7, 1.0, %v10008_v36  ;;  %v1716_v56 = vmul.f32 %v1688_v54, %v8746_v5  ;;  %v10039_v5 = vld [vmem:[#allocation11_spill] sm:$0xff]  ;;  %v1693_v6 = vsub.f32 1.0, %v10040_v52 }
 0x253   : > { %vm2684_vm9 = vcmp.ge.f32.partialorder %v9024_v34, 0.75  ;;  %v9036_v10 = vadd.f32 %v2627_v35, %v1712_v55  ;;  %v2630_v7 = vmul.f32 0.5714286, %v2602_v50  ;;  %v2558_v46 = vadd.f32 %v9041_v19, %v6511_v60  ;;  %5710 = vst.msk [vmem:[%s8447_s30 + $0x168] sm:$0xff] %vm745_vm0, %v9033_v37 }
 0x254   : > { %v2601_v29 = vsub.f32 %v2543_v38, %v1714_v30  ;;  %v2552_v14 = vpop.f32.mrf.mxu1  ;;  %v9052_v55 = vsel %vm2681_vm8, 1.0, %v10008_v36  ;;  %v1719_v20 = vmul.f32 %v1691_v45, %v10039_v5  ;;  %v9066_v35 = vsel %vm2684_vm9, 1.0, %v10008_v36  ;;  %v10041_v45 = vld [vmem:[#allocation4_spill] sm:$0xff] }
 0x255   : > { %vm2683_vm10 = vcmp.ge.f32.partialorder %v9036_v10, 0.75  ;;  %v9055_v59 = vadd.f32 %v2630_v7, %v1715_v18  ;;  %v2604_v43 = vsub.f32 %v2558_v46, %v1717_v63  ;;  %v2553_v32 = vadd.f32 %v9041_v19, %v2552_v14  ;;  %5709 = vst.msk [vmem:[%s8447_s30 + $0x160] sm:$0xff] %vm745_vm0, %v9052_v55  ;;  %5712 = vst.msk [vmem:[%s8447_s30 + $0x178] sm:$0xff] %vm745_vm0, %v9066_v35  ;;  %v10042_v7 = vld [vmem:[#allocation7_spill] sm:$0xff] }
 0x256   : > { %v2629_v54 = vmul.f32 0.5714286, %v2601_v29  ;;  %v6514_v21 = vpop.f32.mrf.mxu1  ;;  %v1718_v60 = vmul.f32 %v1690_v47, %v10041_v45  ;;  %v1692_v46 = vsub.f32 1.0, %v10042_v7  ;;  %v9080_v14 = vsel %vm2683_vm10, 1.0, %v10008_v36  ;;  %v10043_v47 = vld [vmem:[#allocation10_spill] sm:$0xff] }
 0x257   : > { %vm2686_vm11 = vcmp.ge.f32.partialorder %v9055_v59, 0.75  ;;  %v2632_v18 = vmul.f32 0.5714286, %v2604_v43  ;;  %v2603_v50 = vsub.f32 %v2553_v32, %v1716_v56  ;;  %v2568_v38 = vadd.f32 %v9041_v19, %v6514_v21  ;;  %5711 = vst.msk [vmem:[%s8447_s30 + $0x170] sm:$0xff] %vm745_vm0, %v9080_v14 }
 0x258   : > { %v9075_v57 = vadd.f32 %v2629_v54, %v1714_v30  ;;  %v2562_v29 = vpop.f32.mrf.mxu1  ;;  %v1721_v21 = vmul.f32 %v1693_v6, %v10043_v47  ;;  %v2750_v54 = vsub.f32 1.0, %v8829_v28  ;;  %v10045_v6 = vld [vmem:[#allocation6_spill] sm:$0xff] }
 0x259   : > { %v9082_v43 = vadd.f32 %v2632_v18, %v1717_v63  ;;  %v2631_v32 = vmul.f32 0.5714286, %v2603_v50  ;;  %v2606_v5 = vsub.f32 %v2568_v38, %v1719_v20  ;;  %v2563_v52 = vadd.f32 %v9041_v19, %v2562_v29 }
 0x25a   : > { %vm2685_vm12 = vcmp.ge.f32.partialorder %v9075_v57, 0.75  ;;  %v6517_v30 = vpop.f32.mrf.mxu1  ;;  %v9094_v63 = vsel %vm2686_vm11, 1.0, %v10008_v36  ;;  %v1720_v45 = vmul.f32 %v1692_v46, %v10045_v6  ;;  %v2749_v29 = vsub.f32 1.0, %v8832_v39 }
 0x25b   : > { %vm2688_vm13 = vcmp.ge.f32.partialorder %v9082_v43, 0.75  ;;  %v9097_v18 = vadd.f32 %v2631_v32, %v1716_v56  ;;  %v2634_v50 = vmul.f32 0.5714286, %v2606_v5  ;;  %v2605_v38 = vsub.f32 %v2563_v52, %v1718_v60  ;;  %5714 = vst.msk [vmem:[%s8447_s30 + $0x188] sm:$0xff] %vm745_vm0, %v9094_v63 }
 0x25c   : > { %v2578_v7 = vadd.f32 %v9041_v19, %v6517_v30  ;;  %v2572_v28 = vpop.f32.mrf.mxu1  ;;  %v9106_v47 = vsel %vm2685_vm12, 1.0, %v10008_v36  ;;  %v2778_v52 = vmul.f32 %v2750_v54, %v8814_v62  ;;  %v2752_v39 = vsub.f32 1.0, %v8852_v41 }
 0x25d   : > { %10044 = vst [vmem:[#allocation8_spill] sm:$0xff] %v9097_v18  ;;  %vm2687_vm14 = vcmp.ge.f32.partialorder %v9097_v18, 0.75  ;;  %v9109_v56 = vadd.f32 %v2634_v50, %v1719_v20  ;;  %v2633_v32 = vmul.f32 0.5714286, %v2605_v38  ;;  %v2573_v5 = vadd.f32 %v9041_v19, %v2572_v28  ;;  %5713 = vst.msk [vmem:[%s8447_s30 + $0x180] sm:$0xff] %vm745_vm0, %v9106_v47 }
 0x25e   : > { %v2608_v46 = vsub.f32 %v2578_v7, %v1721_v21  ;;  %v6578_v30 = vpop.f32.mrf.mxu1  ;;  %v9120_v6 = vsel %vm2688_vm13, 1.0, %v10008_v36  ;;  %v2777_v54 = vmul.f32 %v2749_v29, %v8817_v17  ;;  %v2751_v7 = vsub.f32 1.0, %v8864_v27 }
 0x25f   : > { %vm2690_vm15 = vcmp.ge.f32.partialorder %v9109_v56, 0.75  ;;  %v9123_v20 = vadd.f32 %v2633_v32, %v1718_v60  ;;  %v2607_v50 = vsub.f32 %v2573_v5, %v1720_v45  ;;  %v3532_v38 = vadd.f32 %v9041_v19, %v6578_v30  ;;  %5716 = vst.msk [vmem:[%s8447_s30 + $0x198] sm:$0xff] %vm745_vm0, %v9120_v6 }
 0x260   : > { %v2636_v62 = vmul.f32 0.5714286, %v2608_v46  ;;  %v3526_v41 = vpop.f32.mrf.mxu1  ;;  %v9134_v28 = vsel %vm2687_vm14, 1.0, %v10008_v36  ;;  %v2780_v17 = vmul.f32 %v2752_v39, %v8834_v9  ;;  %v2754_v29 = vsub.f32 1.0, %v8876_v48 }
 0x261   : > { %vm2689_vm1 = vcmp.ge.f32.partialorder %v9123_v20, 0.75  ;;  %v2635_v60 = vmul.f32 0.5714286, %v2607_v50  ;;  %v3666_v32 = vsub.f32 %v3532_v38, %v2778_v52  ;;  %v3527_v5 = vadd.f32 %v9041_v19, %v3526_v41  ;;  %5715 = vst.msk [vmem:[%s8447_s30 + $0x190] sm:$0xff] %vm745_vm0, %v9134_v28 }
 0x262   : > { %v9141_v46 = vadd.f32 %v2636_v62, %v1721_v21  ;;  %v6581_v27 = vpop.f32.mrf.mxu1  ;;  %v9148_v30 = vsel %vm2690_vm15, 1.0, %v10008_v36  ;;  %v2779_v9 = vmul.f32 %v2751_v7, %v8846_v2  ;;  %v2753_v21 = vsub.f32 1.0, %v8888_v42 }
 0x263   : > { %v9150_v50 = vadd.f32 %v2635_v60, %v1720_v45  ;;  %v3694_v38 = vmul.f32 0.5714286, %v3666_v32  ;;  %v3665_v41 = vsub.f32 %v3527_v5, %v2777_v54  ;;  %v3542_v18 = vadd.f32 %v9041_v19, %v6581_v27  ;;  %5718 = vst.msk [vmem:[%s8447_s30 + $0x1a8] sm:$0xff] %vm745_vm0, %v9148_v30 }
 0x264   : > { %vm2692_vm2 = vcmp.ge.f32.partialorder %v9141_v46, 0.75  ;;  %v3536_v48 = vpop.f32.mrf.mxu1  ;;  %v9162_v45 = vsel %vm2689_vm1, 1.0, %v10008_v36  ;;  %v2782_v7 = vmul.f32 %v2754_v29, %v8855_v8  ;;  %v2756_v32 = vsub.f32 1.0, %v8906_v22 }
 0x265   : > { %vm2691_vm3 = vcmp.ge.f32.partialorder %v9150_v50, 0.75  ;;  %v9165_v39 = vadd.f32 %v3694_v38, %v2778_v52  ;;  %v3693_v62 = vmul.f32 0.5714286, %v3665_v41  ;;  %v3668_v60 = vsub.f32 %v3542_v18, %v2780_v17  ;;  %5717 = vst.msk [vmem:[%s8447_s30 + $0x1a0] sm:$0xff] %vm745_vm0, %v9162_v45 }
 0x266   : > { %v3537_v2 = vadd.f32 %v9041_v19, %v3536_v48  ;;  %v6584_v42 = vpop.f32.mrf.mxu1  ;;  %v9174_v5 = vsel %vm2692_vm2, 1.0, %v10008_v36  ;;  %v2781_v8 = vmul.f32 %v2753_v21, %v8867_v1  ;;  %v2755_v22 = vsub.f32 1.0, %v8909_v12 }
 0x267   : > { %vm3750_vm4 = vcmp.ge.f32.partialorder %v9165_v39, 0.75  ;;  %v9177_v52 = vadd.f32 %v3693_v62, %v2777_v54  ;;  %v3696_v27 = vmul.f32 0.5714286, %v3668_v60  ;;  %v3552_v18 = vadd.f32 %v9041_v19, %v6584_v42  ;;  %5720 = vst.msk [vmem:[%s8447_s30 + $0x1b8] sm:$0xff] %vm745_vm0, %v9174_v5 }
 0x268   : > { %v3667_v38 = vsub.f32 %v3537_v2, %v2779_v9  ;;  %v3546_v29 = vpop.f32.mrf.mxu1  ;;  %v9188_v41 = vsel %vm2691_vm3, 1.0, %v10008_v36  ;;  %v2784_v21 = vmul.f32 %v2756_v32, %v8885_v13  ;;  %v2758_v60 = vsub.f32 1.0, %v8923_v25 }
 0x269   : > { %vm3749_vm5 = vcmp.ge.f32.partialorder %v9177_v52, 0.75  ;;  %v9191_v54 = vadd.f32 %v3696_v27, %v2780_v17  ;;  %v3670_v48 = vsub.f32 %v3552_v18, %v2782_v7  ;;  %v3547_v62 = vadd.f32 %v9041_v19, %v3546_v29  ;;  %5719 = vst.msk [vmem:[%s8447_s30 + $0x1b0] sm:$0xff] %vm745_vm0, %v9188_v41 }
 0x26a   : > { %v3695_v1 = vmul.f32 0.5714286, %v3667_v38  ;;  %v6587_v12 = vpop.f32.mrf.mxu1  ;;  %v9202_v2 = vsel %vm3750_vm4, 1.0, %v10008_v36  ;;  %v2783_v13 = vmul.f32 %v2755_v22, %v8890_v31  ;;  %v2757_v32 = vsub.f32 1.0, %v8943_v40 }
 0x26b   : > { %vm3752_vm6 = vcmp.ge.f32.partialorder %v9191_v54, 0.75  ;;  %v3698_v17 = vmul.f32 0.5714286, %v3670_v48  ;;  %v3669_v42 = vsub.f32 %v3547_v62, %v2781_v8  ;;  %v3562_v27 = vadd.f32 %v9041_v19, %v6587_v12  ;;  %5862 = vst.msk [vmem:[%s8447_s30 + $0x1c8] sm:$0xff] %vm745_vm0, %v9202_v2 }
 0x26c   : > { %v9209_v18 = vadd.f32 %v3695_v1, %v2779_v9  ;;  %v3556_v25 = vpop.f32.mrf.mxu1  ;;  %v9216_v38 = vsel %vm3749_vm5, 1.0, %v10008_v36  ;;  %v2786_v31 = vmul.f32 %v2758_v60, %v8901_v58  ;;  %v2760_v9 = vsub.f32 1.0, %v8946_v33 }
 0x26d   : > { %v9218_v29 = vadd.f32 %v3698_v17, %v2782_v7  ;;  %v3697_v48 = vmul.f32 0.5714286, %v3669_v42  ;;  %v3672_v62 = vsub.f32 %v3562_v27, %v2784_v21  ;;  %v3557_v12 = vadd.f32 %v9041_v19, %v3556_v25  ;;  %5861 = vst.msk [vmem:[%s8447_s30 + $0x1c0] sm:$0xff] %vm745_vm0, %v9216_v38 }
 0x26e   : > { %vm3751_vm7 = vcmp.ge.f32.partialorder %v9209_v18, 0.75  ;;  %v6590_v40 = vpop.f32.mrf.mxu1  ;;  %v9230_v7 = vsel %vm3752_vm6, 1.0, %v10008_v36  ;;  %v2785_v60 = vmul.f32 %v2757_v32, %v8912_v26  ;;  %v2759_v42 = vsub.f32 1.0, %v8968_v44 }
 0x26f   : > { %vm3754_vm8 = vcmp.ge.f32.partialorder %v9218_v29, 0.75  ;;  %v9233_v22 = vadd.f32 %v3697_v48, %v2781_v8  ;;  %v3700_v1 = vmul.f32 0.5714286, %v3672_v62  ;;  %v3671_v17 = vsub.f32 %v3557_v12, %v2783_v13  ;;  %5864 = vst.msk [vmem:[%s8447_s30 + $0x1d8] sm:$0xff] %vm745_vm0, %v9230_v7 }
 0x270   : > { %v3572_v58 = vadd.f32 %v9041_v19, %v6590_v40  ;;  %v3566_v33 = vpop.f32.mrf.mxu1  ;;  %v9242_v27 = vsel %vm3751_vm7, 1.0, %v10008_v36  ;;  %v2788_v26 = vmul.f32 %v2760_v9, %v8926_v4  ;;  %v2762_v44 = vsub.f32 1.0, %v8981_v15 }
 0x271   : > { %vm3753_vm9 = vcmp.ge.f32.partialorder %v9233_v22, 0.75  ;;  %v9245_v8 = vadd.f32 %v3700_v1, %v2784_v21  ;;  %v3699_v25 = vmul.f32 0.5714286, %v3671_v17  ;;  %v3567_v48 = vadd.f32 %v9041_v19, %v3566_v33  ;;  %5863 = vst.msk [vmem:[%s8447_s30 + $0x1d0] sm:$0xff] %vm745_vm0, %v9242_v27 }
 0x272   : > { %v3674_v62 = vsub.f32 %v3572_v58, %v2786_v31  ;;  %v6593_v32 = vpop.f32.mrf.mxu1  ;;  %v9256_v12 = vsel %vm3754_vm8, 1.0, %v10008_v36  ;;  %v2787_v9 = vmul.f32 %v2759_v42, %v8938_v51  ;;  %v2761_v17 = vsub.f32 1.0, %v8984_v0 }
 0x273   : > { %vm3756_vm10 = vcmp.ge.f32.partialorder %v9245_v8, 0.75  ;;  %v9259_v21 = vadd.f32 %v3699_v25, %v2783_v13  ;;  %v3673_v40 = vsub.f32 %v3567_v48, %v2785_v60  ;;  %v3582_v1 = vadd.f32 %v9041_v19, %v6593_v32  ;;  %5866 = vst.msk [vmem:[%s8447_s30 + $0x1e8] sm:$0xff] %vm745_vm0, %v9256_v12 }
 0x274   : > { %v3702_v4 = vmul.f32 0.5714286, %v3674_v62  ;;  %v3576_v15 = vpop.f32.mrf.mxu1  ;;  %v9270_v58 = vsel %vm3753_vm9, 1.0, %v10008_v36  ;;  %v2790_v51 = vmul.f32 %v2762_v44, %v8948_v11  ;;  %v2764_v42 = vsub.f32 1.0, %v9007_v23 }
 0x275   : > { %vm3755_vm11 = vcmp.ge.f32.partialorder %v9259_v21, 0.75  ;;  %v3701_v13 = vmul.f32 0.5714286, %v3673_v40  ;;  %v3676_v33 = vsub.f32 %v3582_v1, %v2788_v26  ;;  %v3577_v25 = vadd.f32 %v9041_v19, %v3576_v15  ;;  %5865 = vst.msk [vmem:[%s8447_s30 + $0x1e0] sm:$0xff] %vm745_vm0, %v9270_v58 }
 0x276   : > { %v9277_v48 = vadd.f32 %v3702_v4, %v2786_v31  ;;  %v6596_v0 = vpop.f32.mrf.mxu1  ;;  %v9284_v62 = vsel %vm3756_vm10, 1.0, %v10008_v36  ;;  %v2789_v11 = vmul.f32 %v2761_v17, %v8962_v53  ;;  %v2763_v31 = vsub.f32 1.0, %v9021_v24 }
 0x277   : > { %v9286_v32 = vadd.f32 %v3701_v13, %v2785_v60  ;;  %v3704_v40 = vmul.f32 0.5714286, %v3676_v33  ;;  %v3675_v1 = vsub.f32 %v3577_v25, %v2787_v9  ;;  %v3592_v15 = vadd.f32 %v9041_v19, %v6596_v0  ;;  %5868 = vst.msk [vmem:[%s8447_s30 + $0x1f8] sm:$0xff] %vm745_vm0, %v9284_v62 }
 0x278   : > { %vm3758_vm12 = vcmp.ge.f32.partialorder %v9277_v48, 0.75  ;;  %v3586_v23 = vpop.f32.mrf.mxu1  ;;  %v9298_v60 = vsel %vm3755_vm11, 1.0, %v10008_v36  ;;  %v2792_v17 = vmul.f32 %v2764_v42, %v8971_v3  ;;  %v2766_v33 = vsub.f32 1.0, %v9033_v37 }
 0x279   : > { %vm3757_vm13 = vcmp.ge.f32.partialorder %v9286_v32, 0.75  ;;  %v9301_v44 = vadd.f32 %v3704_v40, %v2788_v26  ;;  %v3703_v4 = vmul.f32 0.5714286, %v3675_v1  ;;  %v3678_v13 = vsub.f32 %v3592_v15, %v2790_v51  ;;  %5867 = vst.msk [vmem:[%s8447_s30 + $0x1f0] sm:$0xff] %vm745_vm0, %v9298_v60 }
 0x27a   : > { %v3587_v53 = vadd.f32 %v9041_v19, %v3586_v23  ;;  %v6599_v24 = vpop.f32.mrf.mxu1  ;;  %v9310_v25 = vsel %vm3758_vm12, 1.0, %v10008_v36  ;;  %v2791_v3 = vmul.f32 %v2763_v31, %v8987_v61  ;;  %v2765_v37 = vsub.f32 1.0, %v9052_v55 }
 0x27b   : > { %vm3760_vm14 = vcmp.ge.f32.partialorder %v9301_v44, 0.75  ;;  %v9313_v26 = vadd.f32 %v3703_v4, %v2787_v9  ;;  %v3706_v0 = vmul.f32 0.5714286, %v3678_v13  ;;  %v3602_v40 = vadd.f32 %v9041_v19, %v6599_v24  ;;  %5870 = vst.msk [vmem:[%s8447_s30 + $0x208] sm:$0xff] %vm745_vm0, %v9310_v25 }
 0x27c   : > { %v3677_v1 = vsub.f32 %v3587_v53, %v2789_v11  ;;  %v3596_v42 = vpop.f32.mrf.mxu1  ;;  %v9324_v15 = vsel %vm3757_vm13, 1.0, %v10008_v36  ;;  %v2794_v31 = vmul.f32 %v2766_v33, %v9002_v16  ;;  %v2768_v13 = vsub.f32 1.0, %v9066_v35 }
 0x27d   : > { %vm3759_vm15 = vcmp.ge.f32.partialorder %v9313_v26, 0.75  ;;  %v9327_v9 = vadd.f32 %v3706_v0, %v2790_v51  ;;  %v3680_v23 = vsub.f32 %v3602_v40, %v2792_v17  ;;  %v3597_v4 = vadd.f32 %v9041_v19, %v3596_v42  ;;  %5869 = vst.msk [vmem:[%s8447_s30 + $0x200] sm:$0xff] %vm745_vm0, %v9324_v15 }
 0x27e   : > { %v3705_v61 = vmul.f32 0.5714286, %v3677_v1  ;;  %v6602_v55 = vpop.f32.mrf.mxu1  ;;  %v9338_v53 = vsel %vm3760_vm14, 1.0, %v10008_v36  ;;  %v2793_v16 = vmul.f32 %v2765_v37, %v9009_v49  ;;  %v2767_v33 = vsub.f32 1.0, %v9080_v14 }
 0x27f   : > { %vm3762_vm1 = vcmp.ge.f32.partialorder %v9327_v9, 0.75  ;;  %v3708_v51 = vmul.f32 0.5714286, %v3680_v23  ;;  %v3679_v24 = vsub.f32 %v3597_v4, %v2791_v3  ;;  %v3612_v0 = vadd.f32 %v9041_v19, %v6602_v55  ;;  %5872 = vst.msk [vmem:[%s8447_s30 + $0x218] sm:$0xff] %vm745_vm0, %v9338_v53 }
 0x280   : > { %v9345_v40 = vadd.f32 %v3705_v61, %v2789_v11  ;;  %v3606_v35 = vpop.f32.mrf.mxu1  ;;  %v9352_v1 = vsel %vm3759_vm15, 1.0, %v10008_v36  ;;  %v2796_v49 = vmul.f32 %v2768_v13, %v9024_v34  ;;  %v2770_v11 = vsub.f32 1.0, %v9094_v63 }
 0x281   : > { %v9354_v42 = vadd.f32 %v3708_v51, %v2792_v17  ;;  %v3707_v23 = vmul.f32 0.5714286, %v3679_v24  ;;  %v3682_v4 = vsub.f32 %v3612_v0, %v2794_v31  ;;  %v3607_v55 = vadd.f32 %v9041_v19, %v3606_v35  ;;  %5871 = vst.msk [vmem:[%s8447_s30 + $0x210] sm:$0xff] %vm745_vm0, %v9352_v1 }
 0x282   : > { %vm3761_vm2 = vcmp.ge.f32.partialorder %v9345_v40, 0.75  ;;  %v6605_v14 = vpop.f32.mrf.mxu1  ;;  %v9366_v17 = vsel %vm3762_vm1, 1.0, %v10008_v36  ;;  %v2795_v13 = vmul.f32 %v2767_v33, %v9036_v10  ;;  %v2769_v24 = vsub.f32 1.0, %v9106_v47 }
 0x283   : > { %vm3764_vm3 = vcmp.ge.f32.partialorder %v9354_v42, 0.75  ;;  %v9369_v37 = vadd.f32 %v3707_v23, %v2791_v3  ;;  %v3710_v61 = vmul.f32 0.5714286, %v3682_v4  ;;  %v3681_v51 = vsub.f32 %v3607_v55, %v2793_v16  ;;  %5874 = vst.msk [vmem:[%s8447_s30 + $0x228] sm:$0xff] %vm745_vm0, %v9366_v17 }
 0x284   : > { %v3622_v34 = vadd.f32 %v9041_v19, %v6605_v14  ;;  %v3616_v63 = vpop.f32.mrf.mxu1  ;;  %v9378_v0 = vsel %vm3761_vm2, 1.0, %v10008_v36  ;;  %v2798_v10 = vmul.f32 %v2770_v11, %v9055_v59  ;;  %v2772_v47 = vsub.f32 1.0, %v9120_v6 }
 0x285   : > { %vm3763_vm4 = vcmp.ge.f32.partialorder %v9369_v37, 0.75  ;;  %v9381_v3 = vadd.f32 %v3710_v61, %v2794_v31  ;;  %v3709_v35 = vmul.f32 0.5714286, %v3681_v51  ;;  %v3617_v23 = vadd.f32 %v9041_v19, %v3616_v63  ;;  %5873 = vst.msk [vmem:[%s8447_s30 + $0x220] sm:$0xff] %vm745_vm0, %v9378_v0 }
 0x286   : > { %v3684_v4 = vsub.f32 %v3622_v34, %v2796_v49  ;;  %v6608_v33 = vpop.f32.mrf.mxu1  ;;  %v9392_v55 = vsel %vm3764_vm3, 1.0, %v10008_v36  ;;  %v2797_v11 = vmul.f32 %v2769_v24, %v9075_v57  ;;  %v2771_v51 = vsub.f32 1.0, %v9134_v28 }
 0x287   : > { %vm3766_vm5 = vcmp.ge.f32.partialorder %v9381_v3, 0.75  ;;  %v9395_v31 = vadd.f32 %v3709_v35, %v2793_v16  ;;  %v3683_v14 = vsub.f32 %v3617_v23, %v2795_v13  ;;  %v3632_v61 = vadd.f32 %v9041_v19, %v6608_v33  ;;  %5876 = vst.msk [vmem:[%s8447_s30 + $0x238] sm:$0xff] %vm745_vm0, %v9392_v55 }
 0x288   : > { %v3712_v59 = vmul.f32 0.5714286, %v3684_v4  ;;  %v3626_v6 = vpop.f32.mrf.mxu1  ;;  %v9406_v34 = vsel %vm3763_vm4, 1.0, %v10008_v36  ;;  %v2800_v57 = vmul.f32 %v2772_v47, %v9082_v43  ;;  %v2774_v24 = vsub.f32 1.0, %v9148_v30  ;;  %v10046_v43 = vld [vmem:[#allocation8_spill] sm:$0xff] }
 0x289   : > { %vm3765_vm6 = vcmp.ge.f32.partialorder %v9395_v31, 0.75  ;;  %v3711_v16 = vmul.f32 0.5714286, %v3683_v14  ;;  %v3686_v63 = vsub.f32 %v3632_v61, %v2798_v10  ;;  %v3627_v35 = vadd.f32 %v9041_v19, %v3626_v6  ;;  %5875 = vst.msk [vmem:[%s8447_s30 + $0x230] sm:$0xff] %vm745_vm0, %v9406_v34 }
 0x28a   : > { %v9413_v23 = vadd.f32 %v3712_v59, %v2796_v49  ;;  %v6611_v28 = vpop.f32.mrf.mxu1  ;;  %v9420_v4 = vsel %vm3766_vm5, 1.0, %v10008_v36  ;;  %v2799_v49 = vmul.f32 %v2771_v51, %v10046_v43  ;;  %v2773_v47 = vsub.f32 1.0, %v9162_v45 }
 0x28b   : > { %v9422_v33 = vadd.f32 %v3711_v16, %v2795_v13  ;;  %v3714_v14 = vmul.f32 0.5714286, %v3686_v63  ;;  %v3685_v61 = vsub.f32 %v3627_v35, %v2797_v11  ;;  %v3642_v6 = vadd.f32 %v9041_v19, %v6611_v28  ;;  %5878 = vst.msk [vmem:[%s8447_s30 + $0x248] sm:$0xff] %vm745_vm0, %v9420_v4 }
 0x28c   : > { %vm3768_vm7 = vcmp.ge.f32.partialorder %v9413_v23, 0.75  ;;  %v3636_v30 = vpop.f32.mrf.mxu1  ;;  %v9434_v13 = vsel %vm3765_vm6, 1.0, %v10008_v36  ;;  %v2802_v35 = vmul.f32 %v2774_v24, %v9109_v56  ;;  %v2776_v28 = vsub.f32 1.0, %v9174_v5 }
 0x28d   : > { %vm3767_vm8 = vcmp.ge.f32.partialorder %v9422_v33, 0.75  ;;  %v9437_v59 = vadd.f32 %v3714_v14, %v2798_v10  ;;  %v3713_v16 = vmul.f32 0.5714286, %v3685_v61  ;;  %v3688_v63 = vsub.f32 %v3642_v6, %v2800_v57  ;;  %5877 = vst.msk [vmem:[%s8447_s30 + $0x240] sm:$0xff] %vm745_vm0, %v9434_v13 }
 0x28e   : > { %v3637_v51 = vadd.f32 %v9041_v19, %v3636_v30  ;;  %v6614_v45 = vpop.f32.mrf.mxu1  ;;  %v9446_v43 = vsel %vm3768_vm7, 1.0, %v10008_v36  ;;  %v2801_v56 = vmul.f32 %v2773_v47, %v9123_v20  ;;  %v2775_v5 = vsub.f32 1.0, %v9188_v41 }
 0x28f   : > { %10047 = vst [vmem:[#allocation5_spill] sm:$0xff] %v9437_v59  ;;  %vm3770_vm9 = vcmp.ge.f32.partialorder %v9437_v59, 0.75  ;;  %v9449_v10 = vadd.f32 %v3713_v16, %v2797_v11  ;;  %v3716_v14 = vmul.f32 0.5714286, %v3688_v63  ;;  %v3652_v61 = vadd.f32 %v9041_v19, %v6614_v45  ;;  %5880 = vst.msk [vmem:[%s8447_s30 + $0x258] sm:$0xff] %vm745_vm0, %v9446_v43 }
 0x290   : > { %v3687_v6 = vsub.f32 %v3637_v51, %v2799_v49  ;;  %v3646_v24 = vpop.f32.mrf.mxu1  ;;  %v9460_v30 = vsel %vm3767_vm8, 1.0, %v10008_v36  ;;  %v2804_v47 = vmul.f32 %v2776_v28, %v9141_v46  ;;  %v3834_v51 = vsub.f32 1.0, %v9202_v2 }
 0x291   : > { %vm3769_vm10 = vcmp.ge.f32.partialorder %v9449_v10, 0.75  ;;  %v9463_v11 = vadd.f32 %v3716_v14, %v2800_v57  ;;  %v3690_v16 = vsub.f32 %v3652_v61, %v2802_v35  ;;  %v3647_v63 = vadd.f32 %v9041_v19, %v3646_v24  ;;  %5879 = vst.msk [vmem:[%s8447_s30 + $0x250] sm:$0xff] %vm745_vm0, %v9460_v30 }
 0x292   : > { %v3715_v20 = vmul.f32 0.5714286, %v3687_v6  ;;  %v6617_v41 = vpop.f32.mrf.mxu1  ;;  %v9474_v45 = vsel %vm3770_vm9, 1.0, %v10008_v36  ;;  %v2803_v46 = vmul.f32 %v2775_v5, %v9150_v50  ;;  %v3833_v28 = vsub.f32 1.0, %v9216_v38 }
 0x293   : > { %vm3772_vm11 = vcmp.ge.f32.partialorder %v9463_v11, 0.75  ;;  %v3718_v57 = vmul.f32 0.5714286, %v3690_v16  ;;  %v3689_v14 = vsub.f32 %v3647_v63, %v2801_v56  ;;  %v3662_v61 = vadd.f32 %v9041_v19, %v6617_v41  ;;  %5882 = vst.msk [vmem:[%s8447_s30 + $0x268] sm:$0xff] %vm745_vm0, %v9474_v45 }
 0x294   : > { %v9481_v6 = vadd.f32 %v3715_v20, %v2799_v49  ;;  %v3656_v2 = vpop.f32.mrf.mxu1  ;;  %v9488_v24 = vsel %vm3769_vm10, 1.0, %v10008_v36  ;;  %v3862_v50 = vmul.f32 %v3834_v51, %v9165_v39  ;;  %v3836_v49 = vsub.f32 1.0, %v9230_v7 }
 0x295   : > { %v9490_v16 = vadd.f32 %v3718_v57, %v2802_v35  ;;  %v3717_v63 = vmul.f32 0.5714286, %v3689_v14  ;;  %v3692_v41 = vsub.f32 %v3662_v61, %v2804_v47  ;;  %v3657_v59 = vadd.f32 %v9041_v19, %v3656_v2  ;;  %5881 = vst.msk [vmem:[%s8447_s30 + $0x260] sm:$0xff] %vm745_vm0, %v9488_v24 }
 0x296   : > { %vm3771_vm12 = vcmp.ge.f32.partialorder %v9481_v6, 0.75  ;;  %v6678_v38 = vpop.f32.mrf.mxu1  ;;  %v9502_v35 = vsel %vm3772_vm11, 1.0, %v10008_v36  ;;  %v3861_v51 = vmul.f32 %v3833_v28, %v9177_v52  ;;  %v3835_v14 = vsub.f32 1.0, %v9242_v27 }
 0x297   : > { %vm3774_vm13 = vcmp.ge.f32.partialorder %v9490_v16, 0.75  ;;  %v9505_v5 = vadd.f32 %v3717_v63, %v2801_v56  ;;  %v3720_v20 = vmul.f32 0.5714286, %v3692_v41  ;;  %v3691_v57 = vsub.f32 %v3657_v59, %v2803_v46  ;;  %5884 = vst.msk [vmem:[%s8447_s30 + $0x278] sm:$0xff] %vm745_vm0, %v9502_v35 }
 0x298   : > { %v4560_v39 = vadd.f32 %v9041_v19, %v6678_v38  ;;  %v4554_v7 = vpop.f32.mrf.mxu1  ;;  %v9514_v61 = vsel %vm3771_vm12, 1.0, %v10008_v36  ;;  %v3864_v52 = vmul.f32 %v3836_v49, %v9191_v54  ;;  %v3838_v27 = vsub.f32 1.0, %v9256_v12 }
 0x299   : > { %vm3773_vm14 = vcmp.ge.f32.partialorder %v9505_v5, 0.75  ;;  %v9517_v56 = vadd.f32 %v3720_v20, %v2804_v47  ;;  %v3719_v2 = vmul.f32 0.5714286, %v3691_v57  ;;  %v4555_v59 = vadd.f32 %v9041_v19, %v4554_v7  ;;  %5883 = vst.msk [vmem:[%s8447_s30 + $0x270] sm:$0xff] %vm745_vm0, %v9514_v61 }
 0x29a   : > { %v4694_v63 = vsub.f32 %v4560_v39, %v3862_v50  ;;  %v6681_v28 = vpop.f32.mrf.mxu1  ;;  %v9528_v41 = vsel %vm3774_vm13, 1.0, %v10008_v36  ;;  %v3863_v49 = vmul.f32 %v3835_v14, %v9209_v18  ;;  %v3837_v57 = vsub.f32 1.0, %v9270_v58 }
 0x29b   : > { %vm3776_vm15 = vcmp.ge.f32.partialorder %v9517_v56, 0.75  ;;  %v9531_v47 = vadd.f32 %v3719_v2, %v2803_v46  ;;  %v4693_v38 = vsub.f32 %v4555_v59, %v3861_v51  ;;  %v4570_v20 = vadd.f32 %v9041_v19, %v6681_v28  ;;  %5886 = vst.msk [vmem:[%s8447_s30 + $0x288] sm:$0xff] %vm745_vm0, %v9528_v41 }
 0x29c   : > { %v4722_v54 = vmul.f32 0.5714286, %v4694_v63  ;;  %v4564_v12 = vpop.f32.mrf.mxu1  ;;  %v9542_v39 = vsel %vm3773_vm14, 1.0, %v10008_v36  ;;  %v3866_v18 = vmul.f32 %v3838_v27, %v9218_v29  ;;  %v3840_v58 = vsub.f32 1.0, %v9284_v62 }
 0x29d   : > { %vm3775_vm1 = vcmp.ge.f32.partialorder %v9531_v47, 0.75  ;;  %v4721_v46 = vmul.f32 0.5714286, %v4693_v38  ;;  %v4696_v7 = vsub.f32 %v4570_v20, %v3864_v52  ;;  %v4565_v2 = vadd.f32 %v9041_v19, %v4564_v12  ;;  %5885 = vst.msk [vmem:[%s8447_s30 + $0x280] sm:$0xff] %vm745_vm0, %v9542_v39 }
 0x29e   : > { %v4750_v59 = vadd.f32 %v4722_v54, %v3862_v50  ;;  %v6684_v14 = vpop.f32.mrf.mxu1  ;;  %v9554_v63 = vsel %vm3776_vm15, 1.0, %v10008_v36  ;;  %v3865_v29 = vmul.f32 %v3837_v57, %v9233_v22  ;;  %v3839_v50 = vsub.f32 1.0, %v9298_v60 }
 0x29f   : > { %v4749_v28 = vadd.f32 %v4721_v46, %v3861_v51  ;;  %v4724_v38 = vmul.f32 0.5714286, %v4696_v7  ;;  %v4695_v20 = vsub.f32 %v4565_v2, %v3863_v49  ;;  %v4580_v12 = vadd.f32 %v9041_v19, %v6684_v14  ;;  %5888 = vst.msk [vmem:[%s8447_s30 + $0x298] sm:$0xff] %vm745_vm0, %v9554_v63 }
 0x2a0   : > { %vm4778_vm2 = vcmp.ge.f32.partialorder %v4750_v59, 0.75  ;;  %v4574_v62 = vpop.f32.mrf.mxu1  ;;  %v9565_v27 = vsel %vm3775_vm1, 1.0, %v10008_v36  ;;  %v3868_v7 = vmul.f32 %v3840_v58, %v9245_v8  ;;  %v3842_v14 = vsub.f32 1.0, %v9310_v25 }
 0x2a1   : > { %v6002_v51 = vsel %vm4778_vm2, 1.0, %v10008_v36  ;;  %vm4777_vm3 = vcmp.ge.f32.partialorder %v4749_v28, 0.75  ;;  %v4752_v54 = vadd.f32 %v4724_v38, %v3864_v52  ;;  %v4723_v46 = vmul.f32 0.5714286, %v4695_v20  ;;  %5887 = vst.msk [vmem:[%s8447_s30 + $0x290] sm:$0xff] %vm745_vm0, %v9565_v27 }
 0x2a2   : > { %6030 = vst.msk [vmem:[%s8447_s30 + $0x2a8] sm:$0xff] %vm745_vm0, %v6002_v51  ;;  %v6001_v22 = vsel %vm4777_vm3, 1.0, %v10008_v36  ;;  %v4698_v57 = vsub.f32 %v4580_v12, %v3866_v18  ;;  %v4575_v60 = vadd.f32 %v9041_v19, %v4574_v62  ;;  %v6687_v2 = vpop.f32.mrf.mxu1  ;;  %v3841_v12 = vsub.f32 1.0, %v9324_v15 }
 0x2a3   : > { %6029 = vst.msk [vmem:[%s8447_s30 + $0x2a0] sm:$0xff] %vm745_vm0, %v6001_v22  ;;  %vm4780_vm4 = vcmp.ge.f32.partialorder %v4752_v54, 0.75  ;;  %v4751_v59 = vadd.f32 %v4723_v46, %v3863_v49  ;;  %v4590_v52 = vadd.f32 %v9041_v19, %v6687_v2  ;;  %v3867_v58 = vmul.f32 %v3839_v50, %v9259_v21 }
 0x2a4   : > { %v6004_v28 = vsel %vm4780_vm4, 1.0, %v10008_v36  ;;  %v4726_v38 = vmul.f32 0.5714286, %v4698_v57  ;;  %v4697_v20 = vsub.f32 %v4575_v60, %v3865_v29  ;;  %v4584_v51 = vpop.f32.mrf.mxu1  ;;  %v3844_v22 = vsub.f32 1.0, %v9338_v53 }
 0x2a5   : > { %6032 = vst.msk [vmem:[%s8447_s30 + $0x2b8] sm:$0xff] %vm745_vm0, %v6004_v28  ;;  %vm4779_vm5 = vcmp.ge.f32.partialorder %v4751_v59, 0.75  ;;  %v4700_v8 = vsub.f32 %v4590_v52, %v3868_v7  ;;  %v4585_v49 = vadd.f32 %v9041_v19, %v4584_v51  ;;  %v3870_v60 = vmul.f32 %v3842_v14, %v9277_v48 }
 0x2a6   : > { %v6003_v62 = vsel %vm4779_vm5, 1.0, %v10008_v36  ;;  %v4754_v54 = vadd.f32 %v4726_v38, %v3866_v18  ;;  %v4725_v25 = vmul.f32 0.5714286, %v4697_v20  ;;  %v6690_v46 = vpop.f32.mrf.mxu1  ;;  %v3869_v50 = vmul.f32 %v3841_v12, %v9286_v32 }
 0x2a7   : > { %6031 = vst.msk [vmem:[%s8447_s30 + $0x2b0] sm:$0xff] %vm745_vm0, %v6003_v62  ;;  %v4728_v57 = vmul.f32 0.5714286, %v4700_v8  ;;  %v4699_v15 = vsub.f32 %v4585_v49, %v3867_v58  ;;  %v4600_v2 = vadd.f32 %v9041_v19, %v6690_v46  ;;  %v3843_v18 = vsub.f32 1.0, %v9352_v1 }
 0x2a8   : > { %vm4782_vm6 = vcmp.ge.f32.partialorder %v4754_v54, 0.75  ;;  %v4753_v21 = vadd.f32 %v4725_v25, %v3865_v29  ;;  %v4594_v59 = vpop.f32.mrf.mxu1  ;;  %v3872_v14 = vmul.f32 %v3844_v22, %v9301_v44  ;;  %v3846_v32 = vsub.f32 1.0, %v9366_v17 }
 0x2a9   : > { %v6006_v52 = vsel %vm4782_vm6, 1.0, %v10008_v36  ;;  %v4756_v28 = vadd.f32 %v4728_v57, %v3868_v7  ;;  %v4727_v53 = vmul.f32 0.5714286, %v4699_v15  ;;  %v4702_v38 = vsub.f32 %v4600_v2, %v3870_v60 }
 0x2aa   : > { %6034 = vst.msk [vmem:[%s8447_s30 + $0x2c8] sm:$0xff] %vm745_vm0, %v6006_v52  ;;  %vm4781_vm7 = vcmp.ge.f32.partialorder %v4753_v21, 0.75  ;;  %v4595_v48 = vadd.f32 %v9041_v19, %v4594_v59  ;;  %v6693_v29 = vpop.f32.mrf.mxu1  ;;  %v3871_v49 = vmul.f32 %v3843_v18, %v9313_v26  ;;  %v3874_v26 = vmul.f32 %v3846_v32, %v9327_v9 }
 0x2ab   : > { %v6005_v20 = vsel %vm4781_vm7, 1.0, %v10008_v36  ;;  %vm4784_vm8 = vcmp.ge.f32.partialorder %v4756_v28, 0.75  ;;  %v4755_v1 = vadd.f32 %v4727_v53, %v3867_v58  ;;  %v4730_v51 = vmul.f32 0.5714286, %v4702_v38 }
 0x2ac   : > { %6033 = vst.msk [vmem:[%s8447_s30 + $0x2c0] sm:$0xff] %vm745_vm0, %v6005_v20  ;;  %v6008_v7 = vsel %vm4784_vm8, 1.0, %v10008_v36  ;;  %v4701_v12 = vsub.f32 %v4595_v48, %v3869_v50  ;;  %v4610_v8 = vadd.f32 %v9041_v19, %v6693_v29  ;;  %v4604_v62 = vpop.f32.mrf.mxu1  ;;  %v3845_v58 = vsub.f32 1.0, %v9378_v0 }
 0x2ad   : > { %6036 = vst.msk [vmem:[%s8447_s30 + $0x2d8] sm:$0xff] %vm745_vm0, %v6008_v7  ;;  %vm4783_vm9 = vcmp.ge.f32.partialorder %v4755_v1, 0.75  ;;  %v4758_v44 = vadd.f32 %v4730_v51, %v3870_v60  ;;  %v4605_v17 = vadd.f32 %v9041_v19, %v4604_v62  ;;  %v3848_v9 = vsub.f32 1.0, %v9392_v55 }
 0x2ae   : > { %v6007_v54 = vsel %vm4783_vm9, 1.0, %v10008_v36  ;;  %v4729_v25 = vmul.f32 0.5714286, %v4701_v12  ;;  %v4704_v46 = vsub.f32 %v4610_v8, %v3872_v14  ;;  %v6696_v22 = vpop.f32.mrf.mxu1  ;;  %v3873_v52 = vmul.f32 %v3845_v58, %v9345_v40 }
 0x2af   : > { %6035 = vst.msk [vmem:[%s8447_s30 + $0x2d0] sm:$0xff] %vm745_vm0, %v6007_v54  ;;  %vm4786_vm10 = vcmp.ge.f32.partialorder %v4758_v44, 0.75  ;;  %v4703_v57 = vsub.f32 %v4605_v17, %v3871_v49  ;;  %v4620_v15 = vadd.f32 %v9041_v19, %v6696_v22  ;;  %v3847_v32 = vsub.f32 1.0, %v9406_v34 }
 0x2b0   : > { %v6010_v60 = vsel %vm4786_vm10, 1.0, %v10008_v36  ;;  %v4757_v2 = vadd.f32 %v4729_v25, %v3869_v50  ;;  %v4732_v21 = vmul.f32 0.5714286, %v4704_v46  ;;  %v4614_v59 = vpop.f32.mrf.mxu1  ;;  %v3876_v51 = vmul.f32 %v3848_v9, %v9354_v42 }
 0x2b1   : > { %6038 = vst.msk [vmem:[%s8447_s30 + $0x2e8] sm:$0xff] %vm745_vm0, %v6010_v60  ;;  %v4731_v0 = vmul.f32 0.5714286, %v4703_v57  ;;  %v4706_v18 = vsub.f32 %v4620_v15, %v3874_v26  ;;  %v4615_v28 = vadd.f32 %v9041_v19, %v4614_v59  ;;  %v3875_v62 = vmul.f32 %v3847_v32, %v9369_v37  ;;  %v9648_v15 = vld [vmem:[%s9971_s4] ss:$0 sm:$0xff] }
 0x2b2   : > { %vm4785_vm11 = vcmp.ge.f32.partialorder %v4757_v2, 0.75  ;;  %v4760_v53 = vadd.f32 %v4732_v21, %v3872_v14  ;;  %v6699_v14 = vpop.f32.mrf.mxu1  ;;  %v3850_v54 = vsub.f32 1.0, %v9420_v4  ;;  %v3849_v22 = vsub.f32 1.0, %v9434_v13 }
 0x2b3   : > { %v6009_v38 = vsel %vm4785_vm11, 1.0, %v10008_v36  ;;  %v4759_v48 = vadd.f32 %v4731_v0, %v3871_v49  ;;  %v4734_v50 = vmul.f32 0.5714286, %v4706_v18  ;;  %v4705_v29 = vsub.f32 %v4615_v28, %v3873_v52 }
 0x2b4   : > { %6037 = vst.msk [vmem:[%s8447_s30 + $0x2e0] sm:$0xff] %vm745_vm0, %v6009_v38  ;;  %vm4788_vm12 = vcmp.ge.f32.partialorder %v4760_v53, 0.75  ;;  %v4630_v7 = vadd.f32 %v9041_v19, %v6699_v14  ;;  %v4624_v12 = vpop.f32.mrf.mxu1  ;;  %v3852_v13 = vsub.f32 1.0, %v9446_v43  ;;  %v3877_v59 = vmul.f32 %v3849_v22, %v9395_v31  ;;  %v10048_v14 = vld [vmem:[#allocation5_spill] sm:$0xff] }
 0x2b5   : > { %v6012_v40 = vsel %vm4788_vm12, 1.0, %v10008_v36  ;;  %vm4787_vm13 = vcmp.ge.f32.partialorder %v4759_v48, 0.75  ;;  %v4762_v20 = vadd.f32 %v4734_v50, %v3874_v26  ;;  %v4733_v1 = vmul.f32 0.5714286, %v4705_v29 }
 0x2b6   : > { %6040 = vst.msk [vmem:[%s8447_s30 + $0x2f8] sm:$0xff] %vm745_vm0, %v6012_v40  ;;  %v6011_v55 = vsel %vm4787_vm13, 1.0, %v10008_v36  ;;  %v4708_v49 = vsub.f32 %v4630_v7, %v3876_v51  ;;  %v4625_v44 = vadd.f32 %v9041_v19, %v4624_v12  ;;  %v3878_v26 = vmul.f32 %v3850_v54, %v9381_v3 }
 0x2b7   : > { %6039 = vst.msk [vmem:[%s8447_s30 + $0x2f0] sm:$0xff] %vm745_vm0, %v6011_v55  ;;  %vm4790_vm14 = vcmp.ge.f32.partialorder %v4762_v20, 0.75  ;;  %v4761_v34 = vadd.f32 %v4733_v1, %v3873_v52  ;;  %v3851_v0 = vsub.f32 1.0, %v9460_v30  ;;  %v3880_v53 = vmul.f32 %v3852_v13, %v9413_v23 }
 0x2b8   : > { %v6014_v8 = vsel %vm4790_vm14, 1.0, %v10008_v36  ;;  %v4736_v17 = vmul.f32 0.5714286, %v4708_v49  ;;  %v4707_v58 = vsub.f32 %v4625_v44, %v3875_v62  ;;  %v3854_v50 = vsub.f32 1.0, %v9474_v45 }
 0x2b9   : > { %6042 = vst.msk [vmem:[%s8447_s30 + $0x308] sm:$0xff] %vm745_vm0, %v6014_v8  ;;  %vm4789_vm15 = vcmp.ge.f32.partialorder %v4761_v34, 0.75  ;;  %v3879_v29 = vmul.f32 %v3851_v0, %v9422_v33  ;;  %v3853_v40 = vsub.f32 1.0, %v9488_v24  ;;  %v3855_v49 = vsub.f32 1.0, %v9514_v61 }
 0x2ba   : > { %v6013_v42 = vsel %vm4789_vm15, 1.0, %v10008_v36  ;;  %v4764_v25 = vadd.f32 %v4736_v17, %v3876_v51  ;;  %v4735_v46 = vmul.f32 0.5714286, %v4707_v58  ;;  %v3882_v55 = vmul.f32 %v3854_v50, %v10048_v14 }
 0x2bb   : > { %6041 = vst.msk [vmem:[%s8447_s30 + $0x300] sm:$0xff] %vm745_vm0, %v6013_v42  ;;  %v3856_v51 = vsub.f32 1.0, %v9502_v35  ;;  %v3881_v24 = vmul.f32 %v3853_v40, %v9449_v10 }
 0x2bc   : > { %vm4792_vm1 = vcmp.ge.f32.partialorder %v4764_v25, 0.75  ;;  %v4763_v37 = vadd.f32 %v4735_v46, %v3875_v62  ;;  %v6702_v19 = vpop.f32.mrf.mxu1  ;;  %v3883_v46 = vmul.f32 %v3855_v49, %v9481_v6  ;;  %v5160_v49 = vld [vmem:[%s8447_s30 + $0x28] sm:$0xff] (%p6838_p5) }
 0x2bd   : > { %v6016_v57 = vsel %vm4792_vm1, 1.0, %v10008_v36  ;;  %v4640_v60 = vadd.f32 %v9648_v15, %v6702_v19  ;;  %v3884_v17 = vmul.f32 %v3856_v51, %v9463_v11  ;;  %5161 = vst [vmem:[%s9737_s12 + $0x28] sm:$0xff] (%p6838_p5), %v5160_v49  ;;  %v5288_v49 = vld [vmem:[%s8447_s30 + $0x228] sm:$0xff] (%p6838_p5) }
 0x2be   : > { %6044 = vst.msk [vmem:[%s8447_s30 + $0x318] sm:$0xff] %vm745_vm0, %v6016_v57  ;;  %vm4791_vm2 = vcmp.ge.f32.partialorder %v4763_v37, 0.75  ;;  %v4634_v4 = vpop.f32.mrf.mxu1  ;;  %v3858_v37 = vsub.f32 1.0, %v9528_v41  ;;  %v3860_v41 = vsub.f32 1.0, %v9554_v63  ;;  %5289 = vst [vmem:[%s9737_s12 + $0x768] sm:$0xff] (%p6838_p5), %v5288_v49 }
 0x2bf   : > { %v6015_v2 = vsel %vm4791_vm2, 1.0, %v10008_v36  ;;  %v4710_v21 = vsub.f32 %v4640_v60, %v3878_v26  ;;  %v4635_v3 = vadd.f32 %v9648_v15, %v4634_v4  ;;  %v3857_v60 = vsub.f32 1.0, %v9542_v39 }
 0x2c0   : > { %6043 = vst.msk [vmem:[%s8447_s30 + $0x310] sm:$0xff] %vm745_vm0, %v6015_v2 }
 0x2c1   : > { %v4738_v18 = vmul.f32 0.5714286, %v4710_v21  ;;  %v4709_v52 = vsub.f32 %v4635_v3, %v3877_v59  ;;  %v6705_v28 = vpop.f32.mrf.mxu1  ;;  %v3886_v21 = vmul.f32 %v3858_v37, %v9490_v16  ;;  %v5186_v37 = vld [vmem:[%s8447_s30 + $0x90] sm:$0xff] (%p6838_p5) }
 0x2c2   : > { %v4650_v9 = vadd.f32 %v9648_v15, %v6705_v28  ;;  %5187 = vst [vmem:[%s9737_s12 + $0x90] sm:$0xff] (%p6838_p5), %v5186_v37  ;;  %v5314_v37 = vld [vmem:[%s8447_s30 + $0x290] sm:$0xff] (%p6838_p5) }
 0x2c3   : > { %v4766_v43 = vadd.f32 %v4738_v18, %v3878_v26  ;;  %v4737_v38 = vmul.f32 0.5714286, %v4709_v52  ;;  %v4644_v48 = vpop.f32.mrf.mxu1  ;;  %v3885_v52 = vmul.f32 %v3857_v60, %v9505_v5  ;;  %v5196_v60 = vld [vmem:[%s8447_s30 + $0xb8] sm:$0xff] (%p6838_p5)  ;;  %5315 = vst [vmem:[%s9737_s12 + $0x7d0] sm:$0xff] (%p6838_p5), %v5314_v37 }
 0x2c4   : > { %v4712_v31 = vsub.f32 %v4650_v9, %v3880_v53  ;;  %v4645_v32 = vadd.f32 %v9648_v15, %v4644_v48  ;;  %5197 = vst [vmem:[%s9737_s12 + $0xb8] sm:$0xff] (%p6838_p5), %v5196_v60  ;;  %v5324_v60 = vld [vmem:[%s8447_s30 + $0x2b8] sm:$0xff] (%p6838_p5) }
 0x2c5   : > { %vm4794_vm3 = vcmp.ge.f32.partialorder %v4766_v43, 0.75  ;;  %v4765_v30 = vadd.f32 %v4737_v38, %v3877_v59  ;;  %v3888_v38 = vmul.f32 %v3860_v41, %v9517_v56  ;;  %v5210_v41 = vld [vmem:[%s8447_s30 + $0xf0] sm:$0xff] (%p6838_p5)  ;;  %5325 = vst [vmem:[%s9737_s12 + $0xa98] sm:$0xff] (%p6838_p5), %v5324_v60 }
 0x2c6   : > { %v6018_v20 = vsel %vm4794_vm3, 1.0, %v10008_v36  ;;  %v4740_v23 = vmul.f32 0.5714286, %v4712_v31  ;;  %v4711_v1 = vsub.f32 %v4645_v32, %v3879_v29  ;;  %5211 = vst [vmem:[%s9737_s12 + $0x390] sm:$0xff] (%p6838_p5), %v5210_v41  ;;  %v5338_v41 = vld [vmem:[%s8447_s30 + $0x2f0] sm:$0xff] (%p6838_p5) }
 0x2c7   : > { %6046 = vst.msk [vmem:[%s8447_s30 + $0x328] sm:$0xff] %vm745_vm0, %v6018_v20  ;;  %vm4793_vm4 = vcmp.ge.f32.partialorder %v4765_v30, 0.75  ;;  %v6708_v45 = vpop.f32.mrf.mxu1  ;;  %5339 = vst [vmem:[%s9737_s12 + $0xad0] sm:$0xff] (%p6838_p5), %v5338_v41 }
 0x2c8   : > { %v6017_v33 = vsel %vm4793_vm4, 1.0, %v10008_v36  ;;  %v4768_v7 = vadd.f32 %v4740_v23, %v3880_v53  ;;  %v4739_v34 = vmul.f32 0.5714286, %v4711_v1  ;;  %v4660_v12 = vadd.f32 %v9648_v15, %v6708_v45 }
 0x2c9   : > { %6045 = vst.msk [vmem:[%s8447_s30 + $0x320] sm:$0xff] %vm745_vm0, %v6017_v33  ;;  %v4654_v8 = vpop.f32.mrf.mxu1  ;;  %v3859_v53 = vsub.f32 1.0, %v9565_v27 }
 0x2ca   : > { %vm4796_vm5 = vcmp.ge.f32.partialorder %v4768_v7, 0.75  ;;  %v4767_v62 = vadd.f32 %v4739_v34, %v3879_v29  ;;  %v4714_v44 = vsub.f32 %v4660_v12, %v3882_v55  ;;  %v4655_v35 = vadd.f32 %v9648_v15, %v4654_v8  ;;  %v5150_v34 = vld [vmem:[%s8447_s30] sm:$0xff] (%p6838_p5)  ;;  %v5152_v12 = vld [vmem:[%s8447_s30 + $0x8] sm:$0xff] (%p6838_p5) }
 0x2cb   : > { %v6020_v42 = vsel %vm4796_vm5, 1.0, %v10008_v36  ;;  %v6711_v58 = vpop.f32.mrf.mxu1  ;;  %v3887_v29 = vmul.f32 %v3859_v53, %v9531_v47  ;;  %v5158_v8 = vld [vmem:[%s8447_s30 + $0x20] sm:$0xff] (%p6838_p5)  ;;  %5151 = vst [vmem:[%s9737_s12] sm:$0xff] (%p6838_p5), %v5150_v34  ;;  %5153 = vst [vmem:[%s9737_s12 + $0x8] sm:$0xff] (%p6838_p5), %v5152_v12  ;;  %v5224_v53 = vld [vmem:[%s8447_s30 + $0x128] sm:$0xff] (%p6838_p5) }
 0x2cc   : > { %6048 = vst.msk [vmem:[%s8447_s30 + $0x338] sm:$0xff] %vm745_vm0, %v6020_v42  ;;  %vm4795_vm6 = vcmp.ge.f32.partialorder %v4767_v62, 0.75  ;;  %v4742_v54 = vmul.f32 0.5714286, %v4714_v44  ;;  %v4713_v25 = vsub.f32 %v4655_v35, %v3881_v24  ;;  %v4670_v10 = vadd.f32 %v9648_v15, %v6711_v58  ;;  %v5162_v62 = vld [vmem:[%s8447_s30 + $0x30] sm:$0xff] (%p6838_p5)  ;;  %v5164_v44 = vld [vmem:[%s8447_s30 + $0x38] sm:$0xff] (%p6838_p5) }
 0x2cd   : > { %v6019_v61 = vsel %vm4795_vm6, 1.0, %v10008_v36  ;;  %v4664_v22 = vpop.f32.mrf.mxu1  ;;  %v5166_v35 = vld [vmem:[%s8447_s30 + $0x40] sm:$0xff] (%p6838_p5)  ;;  %5159 = vst [vmem:[%s9737_s12 + $0x20] sm:$0xff] (%p6838_p5), %v5158_v8  ;;  %5163 = vst [vmem:[%s9737_s12 + $0x30] sm:$0xff] (%p6838_p5), %v5162_v62  ;;  %v5168_v42 = vld [vmem:[%s8447_s30 + $0x48] sm:$0xff] (%p6838_p5) }
 0x2ce   : > { %6047 = vst.msk [vmem:[%s8447_s30 + $0x330] sm:$0xff] %vm745_vm0, %v6019_v61  ;;  %v4770_v19 = vadd.f32 %v4742_v54, %v3882_v55  ;;  %v4741_v11 = vmul.f32 0.5714286, %v4713_v25  ;;  %v4716_v57 = vsub.f32 %v4670_v10, %v3884_v17  ;;  %v4665_v26 = vadd.f32 %v9648_v15, %v4664_v22  ;;  %5165 = vst [vmem:[%s9737_s12 + $0x38] sm:$0xff] (%p6838_p5), %v5164_v44  ;;  %v5172_v58 = vld [vmem:[%s8447_s30 + $0x58] sm:$0xff] (%p6838_p5)  ;;  %v5174_v54 = vld [vmem:[%s8447_s30 + $0x60] sm:$0xff] (%p6838_p5) }
 0x2cf   : > { %5167 = vst [vmem:[%s9737_s12 + $0x40] sm:$0xff] (%p6838_p5), %v5166_v35  ;;  %5169 = vst [vmem:[%s9737_s12 + $0x48] sm:$0xff] (%p6838_p5), %v5168_v42  ;;  %v5176_v25 = vld [vmem:[%s8447_s30 + $0x68] sm:$0xff] (%p6838_p5)  ;;  %v5178_v10 = vld [vmem:[%s8447_s30 + $0x70] sm:$0xff] (%p6838_p5) }
 0x2d0   : > { %vm4798_vm7 = vcmp.ge.f32.partialorder %v4770_v19, 0.75  ;;  %v4769_v4 = vadd.f32 %v4741_v11, %v3881_v24  ;;  %v4744_v13 = vmul.f32 0.5714286, %v4716_v57  ;;  %v4715_v2 = vsub.f32 %v4665_v26, %v3883_v46  ;;  %v6714_v59 = vpop.f32.mrf.mxu1  ;;  %v5156_v24 = vld [vmem:[%s8447_s30 + $0x18] sm:$0xff] (%p6838_p5)  ;;  %5173 = vst [vmem:[%s9737_s12 + $0x58] sm:$0xff] (%p6838_p5), %v5172_v58  ;;  %5175 = vst [vmem:[%s9737_s12 + $0x60] sm:$0xff] (%p6838_p5), %v5174_v54 }
 0x2d1   : > { %v6022_v6 = vsel %vm4798_vm7, 1.0, %v10008_v36  ;;  %v4680_v39 = vadd.f32 %v9648_v15, %v6714_v59  ;;  %5157 = vst [vmem:[%s9737_s12 + $0x18] sm:$0xff] (%p6838_p5), %v5156_v24  ;;  %5177 = vst [vmem:[%s9737_s12 + $0x68] sm:$0xff] (%p6838_p5), %v5176_v25  ;;  %v5180_v61 = vld [vmem:[%s8447_s30 + $0x78] sm:$0xff] (%p6838_p5)  ;;  %v5184_v22 = vld [vmem:[%s8447_s30 + $0x88] sm:$0xff] (%p6838_p5) }
 0x2d2   : > { %6050 = vst.msk [vmem:[%s8447_s30 + $0x348] sm:$0xff] %vm745_vm0, %v6022_v6  ;;  %vm4797_vm8 = vcmp.ge.f32.partialorder %v4769_v4, 0.75  ;;  %v4772_v3 = vadd.f32 %v4744_v13, %v3884_v17  ;;  %v4743_v0 = vmul.f32 0.5714286, %v4715_v2  ;;  %v4674_v28 = vpop.f32.mrf.mxu1  ;;  %v5170_v17 = vld [vmem:[%s8447_s30 + $0x50] sm:$0xff] (%p6838_p5)  ;;  %5179 = vst [vmem:[%s9737_s12 + $0x70] sm:$0xff] (%p6838_p5), %v5178_v10 }
 0x2d3   : > { %v6021_v18 = vsel %vm4797_vm8, 1.0, %v10008_v36  ;;  %v4718_v63 = vsub.f32 %v4680_v39, %v3886_v21  ;;  %v4675_v9 = vadd.f32 %v9648_v15, %v4674_v28  ;;  %5171 = vst [vmem:[%s9737_s12 + $0x50] sm:$0xff] (%p6838_p5), %v5170_v17  ;;  %5181 = vst [vmem:[%s9737_s12 + $0x78] sm:$0xff] (%p6838_p5), %v5180_v61  ;;  %v5188_v19 = vld [vmem:[%s8447_s30 + $0x98] sm:$0xff] (%p6838_p5)  ;;  %v5190_v11 = vld [vmem:[%s8447_s30 + $0xa0] sm:$0xff] (%p6838_p5) }
 0x2d4   : > { %6049 = vst.msk [vmem:[%s8447_s30 + $0x340] sm:$0xff] %vm745_vm0, %v6021_v18  ;;  %vm4800_vm9 = vcmp.ge.f32.partialorder %v4772_v3, 0.75  ;;  %v4771_v16 = vadd.f32 %v4743_v0, %v3883_v46  ;;  %v6717_v48 = vpop.f32.mrf.mxu1  ;;  %v5182_v46 = vld [vmem:[%s8447_s30 + $0x80] sm:$0xff] (%p6838_p5)  ;;  %5185 = vst [vmem:[%s9737_s12 + $0x88] sm:$0xff] (%p6838_p5), %v5184_v22  ;;  %v5192_v57 = vld [vmem:[%s8447_s30 + $0xa8] sm:$0xff] (%p6838_p5) }
 0x2d5   : > { %v6024_v43 = vsel %vm4800_vm9, 1.0, %v10008_v36  ;;  %v4746_v5 = vmul.f32 0.5714286, %v4718_v63  ;;  %v4717_v50 = vsub.f32 %v4675_v9, %v3885_v52  ;;  %v4690_v27 = vadd.f32 %v9648_v15, %v6717_v48  ;;  %5183 = vst [vmem:[%s9737_s12 + $0x80] sm:$0xff] (%p6838_p5), %v5182_v46  ;;  %5189 = vst [vmem:[%s9737_s12 + $0x98] sm:$0xff] (%p6838_p5), %v5188_v19  ;;  %v5194_v26 = vld [vmem:[%s8447_s30 + $0xb0] sm:$0xff] (%p6838_p5) }
 0x2d6   : > { %6052 = vst.msk [vmem:[%s8447_s30 + $0x358] sm:$0xff] %vm745_vm0, %v6024_v43  ;;  %vm4799_vm10 = vcmp.ge.f32.partialorder %v4771_v16, 0.75  ;;  %v4684_v32 = vpop.f32.mrf.mxu1  ;;  %5191 = vst [vmem:[%s9737_s12 + $0xa0] sm:$0xff] (%p6838_p5), %v5190_v11  ;;  %v5198_v4 = vld [vmem:[%s8447_s30 + $0xc0] sm:$0xff] (%p6838_p5)  ;;  %v5200_v13 = vld [vmem:[%s8447_s30 + $0xc8] sm:$0xff] (%p6838_p5) }
 0x2d7   : > { %v6023_v31 = vsel %vm4799_vm10, 1.0, %v10008_v36  ;;  %v4774_v30 = vadd.f32 %v4746_v5, %v3886_v21  ;;  %v4745_v40 = vmul.f32 0.5714286, %v4717_v50  ;;  %v4720_v56 = vsub.f32 %v4690_v27, %v3888_v38  ;;  %5193 = vst [vmem:[%s9737_s12 + $0xa8] sm:$0xff] (%p6838_p5), %v5192_v57  ;;  %5195 = vst [vmem:[%s9737_s12 + $0xb0] sm:$0xff] (%p6838_p5), %v5194_v26  ;;  %v5202_v2 = vld [vmem:[%s8447_s30 + $0xd0] sm:$0xff] (%p6838_p5) }
 0x2d8   : > { %6051 = vst.msk [vmem:[%s8447_s30 + $0x350] sm:$0xff] %vm745_vm0, %v6023_v31  ;;  %v4685_v20 = vadd.f32 %v9648_v15, %v4684_v32  ;;  %5199 = vst [vmem:[%s9737_s12 + $0xc0] sm:$0xff] (%p6838_p5), %v5198_v4  ;;  %v5204_v6 = vld [vmem:[%s8447_s30 + $0xd8] sm:$0xff] (%p6838_p5)  ;;  %v5206_v21 = vld [vmem:[%s8447_s30 + $0xe0] sm:$0xff] (%p6838_p5) }
 0x2d9   : > { %vm4802_vm11 = vcmp.ge.f32.partialorder %v4774_v30, 0.75  ;;  %v4773_v23 = vadd.f32 %v4745_v40, %v3885_v52  ;;  %v4748_v1 = vmul.f32 0.5714286, %v4720_v56  ;;  %5201 = vst [vmem:[%s9737_s12 + $0xc8] sm:$0xff] (%p6838_p5), %v5200_v13  ;;  %5203 = vst [vmem:[%s9737_s12 + $0xd0] sm:$0xff] (%p6838_p5), %v5202_v2  ;;  %v5208_v59 = vld [vmem:[%s8447_s30 + $0xe8] sm:$0xff] (%p6838_p5) }
 0x2da   : > { %v4719_v14 = vsub.f32 %v4685_v20, %v3887_v29  ;;  %v6026_v55 = vsel %vm4802_vm11, 1.0, %v10008_v36  ;;  %5205 = vst [vmem:[%s9737_s12 + $0xd8] sm:$0xff] (%p6838_p5), %v5204_v6  ;;  %5207 = vst [vmem:[%s9737_s12 + $0x380] sm:$0xff] (%p6838_p5), %v5206_v21  ;;  %v5212_v3 = vld [vmem:[%s8447_s30 + $0xf8] sm:$0xff] (%p6838_p5)  ;;  %v5214_v0 = vld [vmem:[%s8447_s30 + $0x100] sm:$0xff] (%p6838_p5) }
 0x2db   : > { %6054 = vst.msk [vmem:[%s8447_s30 + $0x368] sm:$0xff] %vm745_vm0, %v6026_v55  ;;  %vm4801_vm12 = vcmp.ge.f32.partialorder %v4773_v23, 0.75  ;;  %v4776_v47 = vadd.f32 %v4748_v1, %v3888_v38  ;;  %5209 = vst [vmem:[%s9737_s12 + $0x388] sm:$0xff] (%p6838_p5), %v5208_v59  ;;  %v5216_v39 = vld [vmem:[%s8447_s30 + $0x108] sm:$0xff] (%p6838_p5)  ;;  %v5218_v18 = vld [vmem:[%s8447_s30 + $0x110] sm:$0xff] (%p6838_p5) }
 0x2dc   : > { %v4747_v45 = vmul.f32 0.5714286, %v4719_v14  ;;  %v6025_v51 = vsel %vm4801_vm12, 1.0, %v10008_v36  ;;  %5213 = vst [vmem:[%s9737_s12 + $0x398] sm:$0xff] (%p6838_p5), %v5212_v3  ;;  %5215 = vst [vmem:[%s9737_s12 + $0x3a0] sm:$0xff] (%p6838_p5), %v5214_v0  ;;  %v5220_v52 = vld [vmem:[%s8447_s30 + $0x118] sm:$0xff] (%p6838_p5) }
 0x2dd   : > { %6053 = vst.msk [vmem:[%s8447_s30 + $0x360] sm:$0xff] %vm745_vm0, %v6025_v51  ;;  %vm4804_vm13 = vcmp.ge.f32.partialorder %v4776_v47, 0.75  ;;  %5217 = vst [vmem:[%s9737_s12 + $0x3a8] sm:$0xff] (%p6838_p5), %v5216_v39  ;;  %v5222_v28 = vld [vmem:[%s8447_s30 + $0x120] sm:$0xff] (%p6838_p5)  ;;  %v5226_v16 = vld [vmem:[%s8447_s30 + $0x130] sm:$0xff] (%p6838_p5) }
 0x2de   : > { %v4775_v33 = vadd.f32 %v4747_v45, %v3887_v29  ;;  %v6028_v15 = vsel %vm4804_vm13, 1.0, %v10008_v36  ;;  %4896 = sbr.rel (!%p6838_p5) target bundleno = 773 (0x305), region = 82  ;;  %5219 = vst [vmem:[%s9737_s12 + $0x3b0] sm:$0xff] (%p6838_p5), %v5218_v18  ;;  %5221 = vst [vmem:[%s9737_s12 + $0x3b8] sm:$0xff] (%p6838_p5), %v5220_v52  ;;  %v5228_v63 = vld [vmem:[%s8447_s30 + $0x138] sm:$0xff] (%p6838_p5)  ;;  %v5230_v9 = vld [vmem:[%s8447_s30 + $0x140] sm:$0xff] (%p6838_p5) }
 0x2df   : > { %6056 = vst.msk [vmem:[%s8447_s30 + $0x378] sm:$0xff] %vm745_vm0, %v6028_v15  ;;  %5223 = vst [vmem:[%s9737_s12 + $0x3c0] sm:$0xff] (%p6838_p5), %v5222_v28  ;;  %v5232_v43 = vld [vmem:[%s8447_s30 + $0x148] sm:$0xff] (%p6838_p5)  ;;  %v5234_v38 = vld [vmem:[%s8447_s30 + $0x150] sm:$0xff] (%p6838_p5) }
 0x2e0   : > { %vm4803_vm14 = vcmp.ge.f32.partialorder %v4775_v33, 0.75  ;;  %5225 = vst [vmem:[%s9737_s12 + $0x3c8] sm:$0xff] (%p6838_p5), %v5224_v53  ;;  %5227 = vst [vmem:[%s9737_s12 + $0x3d0] sm:$0xff] (%p6838_p5), %v5226_v16  ;;  %v5236_v48 = vld [vmem:[%s8447_s30 + $0x158] sm:$0xff] (%p6838_p5)  ;;  %v5238_v5 = vld [vmem:[%s8447_s30 + $0x160] sm:$0xff] (%p6838_p5) }
 0x2e1   : > { %v6027_v7 = vsel %vm4803_vm14, 1.0, %v10008_v36  ;;  %v5154_v36 = vld [vmem:[%s8447_s30 + $0x10] sm:$0xff] (%p6838_p5)  ;;  %5229 = vst [vmem:[%s9737_s12 + $0x3d8] sm:$0xff] (%p6838_p5), %v5228_v63  ;;  %5231 = vst [vmem:[%s9737_s12 + $0x3e0] sm:$0xff] (%p6838_p5), %v5230_v9  ;;  %v5240_v50 = vld [vmem:[%s8447_s30 + $0x168] sm:$0xff] (%p6838_p5) }
 0x2e2   : > { %6055 = vst.msk [vmem:[%s8447_s30 + $0x370] sm:$0xff] %vm745_vm0, %v6027_v7  ;;  %5155 = vst [vmem:[%s9737_s12 + $0x10] sm:$0xff] (%p6838_p5), %v5154_v36  ;;  %v5242_v27 = vld [vmem:[%s8447_s30 + $0x170] sm:$0xff] (%p6838_p5)  ;;  %v5244_v31 = vld [vmem:[%s8447_s30 + $0x178] sm:$0xff] (%p6838_p5) }
 0x2e3   : > { %5233 = vst [vmem:[%s9737_s12 + $0x3e8] sm:$0xff] %v5232_v43  ;;  %5235 = vst [vmem:[%s9737_s12 + $0x3f0] sm:$0xff] %v5234_v38  ;;  %v5246_v29 = vld [vmem:[%s8447_s30 + $0x180] sm:$0xff]  ;;  %v5248_v32 = vld [vmem:[%s8447_s30 + $0x188] sm:$0xff] }
 0x2e4   : > { %5237 = vst [vmem:[%s9737_s12 + $0x3f8] sm:$0xff] %v5236_v48  ;;  %5239 = vst [vmem:[%s9737_s12 + $0x400] sm:$0xff] %v5238_v5  ;;  %v5250_v30 = vld [vmem:[%s8447_s30 + $0x190] sm:$0xff]  ;;  %v5252_v40 = vld [vmem:[%s8447_s30 + $0x198] sm:$0xff] }
 0x2e5   : > { %5241 = vst [vmem:[%s9737_s12 + $0x408] sm:$0xff] %v5240_v50  ;;  %5243 = vst [vmem:[%s9737_s12 + $0x410] sm:$0xff] %v5242_v27  ;;  %v5254_v56 = vld [vmem:[%s8447_s30 + $0x1a0] sm:$0xff]  ;;  %v5256_v20 = vld [vmem:[%s8447_s30 + $0x1a8] sm:$0xff] }
 0x2e6   : > { %5245 = vst [vmem:[%s9737_s12 + $0x418] sm:$0xff] %v5244_v31  ;;  %5247 = vst [vmem:[%s9737_s12 + $0x420] sm:$0xff] %v5246_v29  ;;  %v5258_v23 = vld [vmem:[%s8447_s30 + $0x1b0] sm:$0xff]  ;;  %v5260_v1 = vld [vmem:[%s8447_s30 + $0x1b8] sm:$0xff] }
 0x2e7   : > { %5249 = vst [vmem:[%s9737_s12 + $0x428] sm:$0xff] %v5248_v32  ;;  %5251 = vst [vmem:[%s9737_s12 + $0x430] sm:$0xff] %v5250_v30  ;;  %v5262_v14 = vld [vmem:[%s8447_s30 + $0x1c0] sm:$0xff]  ;;  %v5264_v55 = vld [vmem:[%s8447_s30 + $0x1c8] sm:$0xff] }
 0x2e8   : > { %5253 = vst [vmem:[%s9737_s12 + $0x438] sm:$0xff] %v5252_v40  ;;  %5255 = vst [vmem:[%s9737_s12 + $0x440] sm:$0xff] %v5254_v56  ;;  %v5266_v47 = vld [vmem:[%s8447_s30 + $0x1d0] sm:$0xff]  ;;  %v5268_v45 = vld [vmem:[%s8447_s30 + $0x1d8] sm:$0xff] }
 0x2e9   : > { %5257 = vst [vmem:[%s9737_s12 + $0x448] sm:$0xff] %v5256_v20  ;;  %5259 = vst [vmem:[%s9737_s12 + $0x450] sm:$0xff] %v5258_v23  ;;  %v5270_v51 = vld [vmem:[%s8447_s30 + $0x1e0] sm:$0xff]  ;;  %v5272_v33 = vld [vmem:[%s8447_s30 + $0x1e8] sm:$0xff] }
 0x2ea   : > { %5261 = vst [vmem:[%s9737_s12 + $0x458] sm:$0xff] %v5260_v1  ;;  %5263 = vst [vmem:[%s9737_s12 + $0x700] sm:$0xff] %v5262_v14  ;;  %v5274_v15 = vld [vmem:[%s8447_s30 + $0x1f0] sm:$0xff]  ;;  %v5276_v7 = vld [vmem:[%s8447_s30 + $0x1f8] sm:$0xff] }
 0x2eb   : > { %5265 = vst [vmem:[%s9737_s12 + $0x708] sm:$0xff] %v5264_v55  ;;  %5267 = vst [vmem:[%s9737_s12 + $0x710] sm:$0xff] %v5266_v47  ;;  %v5278_v34 = vld [vmem:[%s8447_s30 + $0x200] sm:$0xff]  ;;  %v5280_v12 = vld [vmem:[%s8447_s30 + $0x208] sm:$0xff] }
 0x2ec   : > { %5269 = vst [vmem:[%s9737_s12 + $0x718] sm:$0xff] %v5268_v45  ;;  %5271 = vst [vmem:[%s9737_s12 + $0x720] sm:$0xff] %v5270_v51  ;;  %v5282_v36 = vld [vmem:[%s8447_s30 + $0x210] sm:$0xff]  ;;  %v5284_v24 = vld [vmem:[%s8447_s30 + $0x218] sm:$0xff] }
 0x2ed   : > { %5273 = vst [vmem:[%s9737_s12 + $0x728] sm:$0xff] %v5272_v33  ;;  %5275 = vst [vmem:[%s9737_s12 + $0x730] sm:$0xff] %v5274_v15  ;;  %v5286_v8 = vld [vmem:[%s8447_s30 + $0x220] sm:$0xff]  ;;  %v5290_v62 = vld [vmem:[%s8447_s30 + $0x230] sm:$0xff] }
 0x2ee   : > { %5277 = vst [vmem:[%s9737_s12 + $0x738] sm:$0xff] %v5276_v7  ;;  %5279 = vst [vmem:[%s9737_s12 + $0x740] sm:$0xff] %v5278_v34  ;;  %v5292_v44 = vld [vmem:[%s8447_s30 + $0x238] sm:$0xff]  ;;  %v5294_v35 = vld [vmem:[%s8447_s30 + $0x240] sm:$0xff] }
 0x2ef   : > { %5281 = vst [vmem:[%s9737_s12 + $0x748] sm:$0xff] %v5280_v12  ;;  %5283 = vst [vmem:[%s9737_s12 + $0x750] sm:$0xff] %v5282_v36  ;;  %v5296_v42 = vld [vmem:[%s8447_s30 + $0x248] sm:$0xff]  ;;  %v5298_v17 = vld [vmem:[%s8447_s30 + $0x250] sm:$0xff] }
 0x2f0   : > { %5285 = vst [vmem:[%s9737_s12 + $0x758] sm:$0xff] %v5284_v24  ;;  %5287 = vst [vmem:[%s9737_s12 + $0x760] sm:$0xff] %v5286_v8  ;;  %v5300_v58 = vld [vmem:[%s8447_s30 + $0x258] sm:$0xff]  ;;  %v5302_v54 = vld [vmem:[%s8447_s30 + $0x260] sm:$0xff] }
 0x2f1   : > { %5291 = vst [vmem:[%s9737_s12 + $0x770] sm:$0xff] %v5290_v62  ;;  %5293 = vst [vmem:[%s9737_s12 + $0x778] sm:$0xff] %v5292_v44  ;;  %v5304_v25 = vld [vmem:[%s8447_s30 + $0x268] sm:$0xff]  ;;  %v5306_v10 = vld [vmem:[%s8447_s30 + $0x270] sm:$0xff] }
 0x2f2   : > { %5295 = vst [vmem:[%s9737_s12 + $0x780] sm:$0xff] %v5294_v35  ;;  %5297 = vst [vmem:[%s9737_s12 + $0x788] sm:$0xff] %v5296_v42  ;;  %v5308_v61 = vld [vmem:[%s8447_s30 + $0x278] sm:$0xff]  ;;  %v5310_v46 = vld [vmem:[%s8447_s30 + $0x280] sm:$0xff] }
 0x2f3   : > { %5299 = vst [vmem:[%s9737_s12 + $0x790] sm:$0xff] %v5298_v17  ;;  %5301 = vst [vmem:[%s9737_s12 + $0x798] sm:$0xff] %v5300_v58  ;;  %v5312_v22 = vld [vmem:[%s8447_s30 + $0x288] sm:$0xff]  ;;  %v5316_v19 = vld [vmem:[%s8447_s30 + $0x298] sm:$0xff] }
 0x2f4   : > { %5303 = vst [vmem:[%s9737_s12 + $0x7a0] sm:$0xff] %v5302_v54  ;;  %5305 = vst [vmem:[%s9737_s12 + $0x7a8] sm:$0xff] %v5304_v25  ;;  %v5318_v11 = vld [vmem:[%s8447_s30 + $0x2a0] sm:$0xff]  ;;  %v5320_v57 = vld [vmem:[%s8447_s30 + $0x2a8] sm:$0xff] }
 0x2f5   : > { %5307 = vst [vmem:[%s9737_s12 + $0x7b0] sm:$0xff] %v5306_v10  ;;  %5309 = vst [vmem:[%s9737_s12 + $0x7b8] sm:$0xff] %v5308_v61  ;;  %v5322_v26 = vld [vmem:[%s8447_s30 + $0x2b0] sm:$0xff]  ;;  %v5326_v4 = vld [vmem:[%s8447_s30 + $0x2c0] sm:$0xff] }
 0x2f6   : > { %5311 = vst [vmem:[%s9737_s12 + $0x7c0] sm:$0xff] %v5310_v46  ;;  %5313 = vst [vmem:[%s9737_s12 + $0x7c8] sm:$0xff] %v5312_v22  ;;  %v5328_v13 = vld [vmem:[%s8447_s30 + $0x2c8] sm:$0xff]  ;;  %v5330_v2 = vld [vmem:[%s8447_s30 + $0x2d0] sm:$0xff] }
 0x2f7   : > { %5317 = vst [vmem:[%s9737_s12 + $0x7d8] sm:$0xff] %v5316_v19  ;;  %5319 = vst [vmem:[%s9737_s12 + $0xa80] sm:$0xff] %v5318_v11  ;;  %v5332_v6 = vld [vmem:[%s8447_s30 + $0x2d8] sm:$0xff]  ;;  %v5334_v21 = vld [vmem:[%s8447_s30 + $0x2e0] sm:$0xff] }
 0x2f8   : > { %5321 = vst [vmem:[%s9737_s12 + $0xa88] sm:$0xff] %v5320_v57  ;;  %5323 = vst [vmem:[%s9737_s12 + $0xa90] sm:$0xff] %v5322_v26  ;;  %v5336_v59 = vld [vmem:[%s8447_s30 + $0x2e8] sm:$0xff]  ;;  %v5340_v3 = vld [vmem:[%s8447_s30 + $0x2f8] sm:$0xff] }
 0x2f9   : > { %5327 = vst [vmem:[%s9737_s12 + $0xaa0] sm:$0xff] %v5326_v4  ;;  %5329 = vst [vmem:[%s9737_s12 + $0xaa8] sm:$0xff] %v5328_v13  ;;  %v5342_v0 = vld [vmem:[%s8447_s30 + $0x300] sm:$0xff]  ;;  %v5344_v39 = vld [vmem:[%s8447_s30 + $0x308] sm:$0xff] }
 0x2fa   : > { %5331 = vst [vmem:[%s9737_s12 + $0xab0] sm:$0xff] %v5330_v2  ;;  %5333 = vst [vmem:[%s9737_s12 + $0xab8] sm:$0xff] %v5332_v6  ;;  %v5346_v18 = vld [vmem:[%s8447_s30 + $0x310] sm:$0xff]  ;;  %v5348_v52 = vld [vmem:[%s8447_s30 + $0x318] sm:$0xff] }
 0x2fb   : > { %5335 = vst [vmem:[%s9737_s12 + $0xac0] sm:$0xff] %v5334_v21  ;;  %5337 = vst [vmem:[%s9737_s12 + $0xac8] sm:$0xff] %v5336_v59  ;;  %v5350_v28 = vld [vmem:[%s8447_s30 + $0x320] sm:$0xff]  ;;  %v5352_v53 = vld [vmem:[%s8447_s30 + $0x328] sm:$0xff] }
 0x2fc   : > { %5341 = vst [vmem:[%s9737_s12 + $0xad8] sm:$0xff] %v5340_v3  ;;  %5343 = vst [vmem:[%s9737_s12 + $0xae0] sm:$0xff] %v5342_v0  ;;  %v5354_v16 = vld [vmem:[%s8447_s30 + $0x330] sm:$0xff]  ;;  %v5356_v63 = vld [vmem:[%s8447_s30 + $0x338] sm:$0xff] }
 0x2fd   : > { %5345 = vst [vmem:[%s9737_s12 + $0xae8] sm:$0xff] %v5344_v39  ;;  %5347 = vst [vmem:[%s9737_s12 + $0xaf0] sm:$0xff] %v5346_v18  ;;  %v5358_v9 = vld [vmem:[%s8447_s30 + $0x340] sm:$0xff]  ;;  %v5360_v43 = vld [vmem:[%s8447_s30 + $0x348] sm:$0xff] }
 0x2fe   : > { %5349 = vst [vmem:[%s9737_s12 + $0xaf8] sm:$0xff] %v5348_v52  ;;  %5351 = vst [vmem:[%s9737_s12 + $0xb00] sm:$0xff] %v5350_v28  ;;  %v5362_v38 = vld [vmem:[%s8447_s30 + $0x350] sm:$0xff]  ;;  %v5364_v48 = vld [vmem:[%s8447_s30 + $0x358] sm:$0xff] }
 0x2ff   : > { %5353 = vst [vmem:[%s9737_s12 + $0xb08] sm:$0xff] %v5352_v53  ;;  %5355 = vst [vmem:[%s9737_s12 + $0xb10] sm:$0xff] %v5354_v16  ;;  %v5366_v5 = vld [vmem:[%s8447_s30 + $0x360] sm:$0xff]  ;;  %v5368_v50 = vld [vmem:[%s8447_s30 + $0x368] sm:$0xff] }
 0x300   : > { %5357 = vst [vmem:[%s9737_s12 + $0xb18] sm:$0xff] %v5356_v63  ;;  %5359 = vst [vmem:[%s9737_s12 + $0xb20] sm:$0xff] %v5358_v9  ;;  %v5370_v27 = vld [vmem:[%s8447_s30 + $0x370] sm:$0xff]  ;;  %v5372_v31 = vld [vmem:[%s8447_s30 + $0x378] sm:$0xff] }
 0x301   : > { %5361 = vst [vmem:[%s9737_s12 + $0xb28] sm:$0xff] %v5360_v43  ;;  %5363 = vst [vmem:[%s9737_s12 + $0xb30] sm:$0xff] %v5362_v38 }
 0x302   : > { %5365 = vst [vmem:[%s9737_s12 + $0xb38] sm:$0xff] %v5364_v48  ;;  %5367 = vst [vmem:[%s9737_s12 + $0xb40] sm:$0xff] %v5366_v5 }
 0x303   : > { %5369 = vst [vmem:[%s9737_s12 + $0xb48] sm:$0xff] %v5368_v50  ;;  %5371 = vst [vmem:[%s9737_s12 + $0xb50] sm:$0xff] %v5370_v27 }
 0x304   : > { %5373 = vst [vmem:[%s9737_s12 + $0xb58] sm:$0xff] %v5372_v31 }
 0x305 PF: > { %p12_p10 = scmp.ge.s32.totalorder %s6825_s22, 6   ;;  %s10049_s18 = smov %s6771_s19 }
 0x306   : > { %s10050_s19 = smov %s6836_s25  ;;  %s10051_s20 = smov %s6825_s22 }
 0x307   :  { %14 = sbr.rel (!%p12_p10) target bundleno = 2 (0x2), region = 157 }

</bundles_post_ra>
